<compile_context>
chip_gen: v7x
topology: tpu7x:2x2x1
jax: 0.10.0
libtpu: 0.0.40
codegen_flags: <defaults>
</compile_context>

<pallas_src>
import functools

import numpy as np

import jax
import jax.numpy as jnp
from jax.experimental import pallas as pl
from jax.experimental.pallas import tpu as pltpu

_LANES = 128  # vreg lane width; all activation channel axes are padded to this


# --------------------------------------------------------------------------- #
# Generation-aware knobs
# --------------------------------------------------------------------------- #
def _pick_vmem_limit():
    try:
        info = pltpu.get_tpu_info()
        cap = getattr(info, "vmem_capacity_bytes", 0) or 0
        if cap >= 100 * 2**20:          # v5e / v6e class parts (128 MiB VMEM)
            return 96 * 2**20
        if cap > 0:                     # v7x class parts (64 MiB VMEM)
            return 48 * 2**20
    except Exception:
        pass
    return 48 * 2**20                   # safe on every generation


_VMEM_LIMIT = _pick_vmem_limit()


def _buffered_probe_kernel(x_ref, o_ref):
    o_ref[...] = x_ref[...] + 1.0


def _probe_buffered_support():
    """Check whether pl.Buffered(1) (single-buffered resident blocks) lowers."""
    try:
        fn = pl.pallas_call(
            _buffered_probe_kernel,
            out_shape=jax.ShapeDtypeStruct((8, 128), jnp.float32),
            grid=(1,),
            in_specs=[pl.BlockSpec((8, 128), lambda i: (0, 0),
                                   pipeline_mode=pl.Buffered(1))],
            out_specs=pl.BlockSpec((8, 128), lambda i: (0, 0)),
        )
        jax.block_until_ready(fn(jnp.zeros((8, 128), jnp.float32)))
        return True
    except Exception:
        return False


_HAS_BUFFERED1 = _probe_buffered_support()


def _resident_spec(block_shape, index_map):
    """BlockSpec for a block that is revisited across the row axis: single-buffer
    it when supported so whole-image residency does not double VMEM on v7x."""
    if _HAS_BUFFERED1:
        return pl.BlockSpec(block_shape, index_map, pipeline_mode=pl.Buffered(1))
    return pl.BlockSpec(block_shape, index_map)


def _row_tile(h, max_tile=16):
    """Largest divisor of h that is <= max_tile (output rows per grid step)."""
    for t in range(min(h, max_tile), 0, -1):
        if h % t == 0:
            return t
    return 1


# --------------------------------------------------------------------------- #
# Kernel 1: fused 3x3 stride-1 conv + BN + ReLU (+ optional fused 1x1 classifier)
# --------------------------------------------------------------------------- #
def _conv3x3_s1_kernel(x_ref, w_ref, s_ref, b_ref, *rest, th, wo, cp, relu, second):
    if second:
        w2_ref, b2_ref, o_ref = rest
    else:
        (o_ref,) = rest
    base = pl.program_id(1) * th                      # top output row of this tile
    acc = jnp.zeros((th * wo, _LANES), jnp.float32)
    # TODO(synk): fold the 3 kw taps per kh into one (TH*W, 3*Cin) operand to cut
    # MXU pushes 9 -> 3 and deepen the contraction (v6e/v7x item).
    for kh in range(3):
        for kw in range(3):
            win = x_ref[0, pl.ds(base + kh, th), pl.ds(kw, wo), :]   # (th, wo, cp)
            acc = acc + jnp.dot(win.reshape(th * wo, cp), w_ref[kh * 3 + kw],
                                preferred_element_type=jnp.float32)
    acc = acc * s_ref[...] + b_ref[...]               # folded BN, f32 epilogue
    if relu:
        acc = jnp.maximum(acc, 0.0)
    if second:                                        # fused 1x1 classifier
        acc = jnp.dot(acc.astype(jnp.bfloat16), w2_ref[...],
                      preferred_element_type=jnp.float32) + b2_ref[...]
    o_ref[0] = acc.reshape(th, wo, o_ref.shape[-1]).astype(o_ref.dtype)


def conv3x3_s1(x, w, scale, bias, *, relu=True, out_offset=0,
               w2=None, bias2=None, out_dtype=jnp.bfloat16):
    """3x3 stride-1 pad-1 conv + BN + ReLU on 128-lane-padded NHWC, optionally
    followed in the same kernel by a 1x1 conv (the FCNHead classifier).
    Output channels are written into lanes [out_offset : out_offset + Cout]."""
    N, H, W, Cp = x.shape
    KH, KW, Cin, Cout = w.shape
    assert (KH, KW) == (3, 3) and Cin <= Cp and out_offset + Cout <= _LANES
    xp = jnp.pad(x.astype(jnp.bfloat16), ((0, 0), (1, 1), (1, 1), (0, 0)))
    Hp, Wp = H + 2, W + 2

    # Zero-pad weights / place output channels; padded lanes get scale=1, bias=0
    # so they stay exactly zero after ReLU (required by the fused classifier).
    wf = jnp.zeros((9, Cp, _LANES), jnp.float32)
    wf = wf.at[:, :Cin, out_offset:out_offset + Cout].set(w.reshape(9, Cin, Cout))
    wf = wf.astype(jnp.bfloat16)
    sp = jnp.ones((1, _LANES), jnp.float32).at[0, out_offset:out_offset + Cout].set(
        scale.reshape(-1).astype(jnp.float32))
    bp = jnp.zeros((1, _LANES), jnp.float32).at[0, out_offset:out_offset + Cout].set(
        bias.reshape(-1).astype(jnp.float32))

    th = _row_tile(H)
    second = w2 is not None
    n_out = _LANES
    args = [xp, wf, sp, bp]
    # TODO(synk): at very large resolutions switch the resident padded image to
    # row tiles with a 2-row halo via manual DMA instead of whole-image residency.
    in_specs = [
        _resident_spec((1, Hp, Wp, Cp), lambda n, t: (n, 0, 0, 0)),
        pl.BlockSpec((9, Cp, _LANES), lambda n, t: (0, 0, 0)),
        pl.BlockSpec((1, _LANES), lambda n, t: (0, 0)),
        pl.BlockSpec((1, _LANES), lambda n, t: (0, 0)),
    ]
    if second:
        n_out = w2.shape[1]
        assert w2.shape[0] == Cout
        w2p = jnp.zeros((_LANES, n_out), jnp.float32)
        w2p = w2p.at[out_offset:out_offset + Cout].set(
            w2.astype(jnp.float32)).astype(jnp.bfloat16)
        b2p = bias2.reshape(1, n_out).astype(jnp.float32)
        args += [w2p, b2p]
        in_specs += [pl.BlockSpec((_LANES, n_out), lambda n, t: (0, 0)),
                     pl.BlockSpec((1, n_out), lambda n, t: (0, 0))]

    kernel = functools.partial(_conv3x3_s1_kernel, th=th, wo=W, cp=Cp,
                               relu=relu, second=second)
    flops = 2 * N * H * W * 9 * Cp * _LANES
    if second:
        flops += 2 * N * H * W * _LANES * n_out
    out_bytes = 4 if out_dtype == jnp.float32 else 2
    return pl.pallas_call(
        kernel,
        out_shape=jax.ShapeDtypeStruct((N, H, W, n_out), out_dtype),
        grid=(N, H // th),
        in_specs=in_specs,
        out_specs=pl.BlockSpec((1, th, W, n_out), lambda n, t: (n, t, 0, 0)),
        compiler_params=pltpu.CompilerParams(
            dimension_semantics=("parallel", "parallel"),
            vmem_limit_bytes=_VMEM_LIMIT),
        cost_estimate=pl.CostEstimate(
            flops=flops, transcendentals=0,
            bytes_accessed=N * Hp * Wp * Cp * 2 + 9 * Cp * _LANES * 2
                           + N * H * W * n_out * out_bytes),
    )(*args)


# --------------------------------------------------------------------------- #
# Kernel 2: fused 3x3 stride-2 conv + BN + ReLU (even/odd phase-split input)
# --------------------------------------------------------------------------- #
def _conv3x3_s2_kernel(pee_ref, peo_ref, poe_ref, poo_ref, w_ref, s_ref, b_ref,
                       o_ref, *, th, wo, cp, relu):
    base = pl.program_id(1) * th
    # Tap table ordered kh*3+kw: (phase ref, row offset, col offset) where
    # output (r, c) reads padded input (2r+kh, 2c+kw).
    taps = ((pee_ref, 0, 0), (peo_ref, 0, 0), (pee_ref, 0, 1),
            (poe_ref, 0, 0), (poo_ref, 0, 0), (poe_ref, 0, 1),
            (pee_ref, 1, 0), (peo_ref, 1, 0), (pee_ref, 1, 1))
    acc = jnp.zeros((th * wo, _LANES), jnp.float32)
    for i, (ref, ro, co) in enumerate(taps):
        win = ref[0, pl.ds(base + ro, th), pl.ds(co, wo), :]          # (th, wo, cp)
        acc = acc + jnp.dot(win.reshape(th * wo, cp), w_ref[i],
                            preferred_element_type=jnp.float32)
    acc = acc * s_ref[...] + b_ref[...]
    if relu:
        acc = jnp.maximum(acc, 0.0)
    o_ref[0] = acc.reshape(th, wo, _LANES).astype(o_ref.dtype)


def conv3x3_s2(x, w, scale, bias, *, relu=True, out_offset=0,
               out_dtype=jnp.bfloat16):
    """3x3 stride-2 pad-1 conv + BN + ReLU.  The padded input is phase-split by
    row/column parity in XLA (one cheap pass) so every in-kernel access is a
    contiguous slice; no im2col tensor is materialized."""
    N, H, W, Cp = x.shape
    KH, KW, Cin, Cout = w.shape
    assert (KH, KW) == (3, 3) and Cin <= Cp and out_offset + Cout <= _LANES
    Ho = (H - 1) // 2 + 1
    Wo = (W - 1) // 2 + 1
    xp = jnp.pad(x.astype(jnp.bfloat16), ((0, 0), (1, 1), (1, 1), (0, 0)))
    pee = xp[:, 0::2, 0::2, :]
    peo = xp[:, 0::2, 1::2, :]
    poe = xp[:, 1::2, 0::2, :]
    poo = xp[:, 1::2, 1::2, :]

    wf = jnp.zeros((9, Cp, _LANES), jnp.float32)
    wf = wf.at[:, :Cin, out_offset:out_offset + Cout].set(w.reshape(9, Cin, Cout))
    wf = wf.astype(jnp.bfloat16)
    sp = jnp.ones((1, _LANES), jnp.float32).at[0, out_offset:out_offset + Cout].set(
        scale.reshape(-1).astype(jnp.float32))
    bp = jnp.zeros((1, _LANES), jnp.float32).at[0, out_offset:out_offset + Cout].set(
        bias.reshape(-1).astype(jnp.float32))

    th = _row_tile(Ho)
    phase_specs = [_resident_spec((1,) + tuple(p.shape[1:]),
                                  lambda n, t: (n, 0, 0, 0))
                   for p in (pee, peo, poe, poo)]
    kernel = functools.partial(_conv3x3_s2_kernel, th=th, wo=Wo, cp=Cp, relu=relu)
    return pl.pallas_call(
        kernel,
        out_shape=jax.ShapeDtypeStruct((N, Ho, Wo, _LANES), out_dtype),
        grid=(N, Ho // th),
        in_specs=phase_specs + [
            pl.BlockSpec((9, Cp, _LANES), lambda n, t: (0, 0, 0)),
            pl.BlockSpec((1, _LANES), lambda n, t: (0, 0)),
            pl.BlockSpec((1, _LANES), lambda n, t: (0, 0)),
        ],
        out_specs=pl.BlockSpec((1, th, Wo, _LANES), lambda n, t: (n, t, 0, 0)),
        compiler_params=pltpu.CompilerParams(
            dimension_semantics=("parallel", "parallel"),
            vmem_limit_bytes=_VMEM_LIMIT),
        cost_estimate=pl.CostEstimate(
            flops=2 * N * Ho * Wo * 9 * Cp * _LANES, transcendentals=0,
            bytes_accessed=N * (H + 2) * (W + 2) * Cp * 2
                           + 9 * Cp * _LANES * 2 + N * Ho * Wo * _LANES * 2),
    )(pee, peo, poe, poo, wf, sp, bp)


# --------------------------------------------------------------------------- #
# Kernel 3: fused bilinear upsample of y2 (align_corners=True) + channel concat.
#           y1 lives in lanes [0:18], y2 in lanes [18:54]; concat == add.
# --------------------------------------------------------------------------- #
def _resize_concat_kernel(y1_ref, y2_ref, ww_ref, hlo_ref, hhi_ref, hfr_ref,
                          o_ref, *, th):
    base = pl.program_id(1) * th
    for j in range(th):
        r = base + j
        lo = hlo_ref[r]
        hi = hhi_ref[r]
        f = hfr_ref[r]
        r0 = y2_ref[0, lo].astype(jnp.float32)                # (W8, 128) row gather
        r1 = y2_ref[0, hi].astype(jnp.float32)
        row = (r0 + (r1 - r0) * f).astype(jnp.bfloat16)       # H-axis lerp (VPU)
        up = jnp.dot(ww_ref[...], row,                        # W-axis interp (MXU)
                     preferred_element_type=jnp.float32)      # (W4, 128)
        o_ref[0, j] = (up + y1_ref[0, j].astype(jnp.float32)).astype(o_ref.dtype)


def resize_concat(y1, y2, *, out_dtype=jnp.bfloat16):
    N, H4, W4, C = y1.shape
    _, H8, W8, C2 = y2.shape
    assert C == _LANES and C2 == _LANES
    hlo, hhi, hfr = _axis_lerp(H4, H8)
    ww = jnp.asarray(_axis_matrix(W4, W8), dtype=jnp.bfloat16)
    th = _row_tile(H4)
    kernel = functools.partial(_resize_concat_kernel, th=th)
    return pl.pallas_call(
        kernel,
        out_shape=jax.ShapeDtypeStruct((N, H4, W4, _LANES), out_dtype),
        grid=(N, H4 // th),
        in_specs=[
            pl.BlockSpec((1, th, W4, _LANES), lambda n, t: (n, t, 0, 0)),
            _resident_spec((1, H8, W8, _LANES), lambda n, t: (n, 0, 0, 0)),
            pl.BlockSpec((W4, W8), lambda n, t: (0, 0)),
            pl.BlockSpec(memory_space=pltpu.MemorySpace.SMEM),   # h_lo
            pl.BlockSpec(memory_space=pltpu.MemorySpace.SMEM),   # h_hi
            pl.BlockSpec(memory_space=pltpu.MemorySpace.SMEM),   # h_frac
        ],
        out_specs=pl.BlockSpec((1, th, W4, _LANES), lambda n, t: (n, t, 0, 0)),
        compiler_params=pltpu.CompilerParams(
            dimension_semantics=("parallel", "parallel"),
            vmem_limit_bytes=_VMEM_LIMIT),
    )(y1, y2, ww, jnp.asarray(hlo), jnp.asarray(hhi), jnp.asarray(hfr))


# --------------------------------------------------------------------------- #
# Kernel 4: final separable bilinear upsample (align_corners=True), NCHW output.
#           out[n, c] = Hmat @ X[n, c] @ Wmat^T   (both matmuls lane-dense).
# --------------------------------------------------------------------------- #
def _bilinear_nchw_kernel(hm_ref, wt_ref, x_ref, o_ref):
    tmp = jnp.dot(hm_ref[...], x_ref[0, 0], preferred_element_type=jnp.float32)
    o_ref[0, 0] = jnp.dot(tmp, wt_ref[...],
                          preferred_element_type=jnp.float32).astype(o_ref.dtype)


def bilinear_to_nchw(x_nchw_small, out_h, out_w, *, out_dtype=jnp.float32):
    N, C, H, W = x_nchw_small.shape
    hm = jnp.asarray(_axis_matrix(out_h, H), dtype=jnp.float32)
    wt = jnp.asarray(_axis_matrix(out_w, W).T, dtype=jnp.float32)
    return pl.pallas_call(
        _bilinear_nchw_kernel,
        out_shape=jax.ShapeDtypeStruct((N, C, out_h, out_w), out_dtype),
        grid=(N, C),
        in_specs=[
            pl.BlockSpec((out_h, H), lambda n, c: (0, 0)),
            pl.BlockSpec((W, out_w), lambda n, c: (0, 0)),
            pl.BlockSpec((1, 1, H, W), lambda n, c: (n, c, 0, 0)),
        ],
        out_specs=pl.BlockSpec((1, 1, out_h, out_w), lambda n, c: (n, c, 0, 0)),
        compiler_params=pltpu.CompilerParams(
            dimension_semantics=("parallel", "parallel"),
            vmem_limit_bytes=_VMEM_LIMIT),
        cost_estimate=pl.CostEstimate(
            flops=2 * N * C * (out_h * H * W + out_h * W * out_w),
            transcendentals=0,
            bytes_accessed=N * C * (H * W + out_h * out_w) * 4
                           + (out_h * H + W * out_w) * 4),
    )(hm, wt, x_nchw_small.astype(jnp.float32))


# --------------------------------------------------------------------------- #
# align_corners=True interpolation tables (host-side numpy)
# --------------------------------------------------------------------------- #
def _axis_lerp(out_size, in_size):
    if out_size > 1 and in_size > 1:
        src = np.arange(out_size, dtype=np.float64) * (in_size - 1) / (out_size - 1)
    else:
        src = np.zeros((out_size,), dtype=np.float64)
    lo = np.minimum(np.floor(src), in_size - 1).astype(np.int32)
    hi = np.minimum(lo + 1, in_size - 1).astype(np.int32)
    fr = (src - lo).astype(np.float32)
    return lo, hi, fr


def _axis_matrix(out_size, in_size):
    lo, hi, fr = _axis_lerp(out_size, in_size)
    m = np.zeros((out_size, in_size), dtype=np.float32)
    rows = np.arange(out_size)
    m[rows, lo] += 1.0 - fr
    m[rows, hi] += fr
    return m


# --------------------------------------------------------------------------- #
# Parameters (synthetic, deterministic) and BN folding
# --------------------------------------------------------------------------- #
def fold_bn(gamma, beta, mean, var, eps=1e-5):
    scale = gamma / jnp.sqrt(var + eps)
    bias = beta - mean * scale
    return scale, bias


def _wparam(key, shape, scale=0.1):
    return scale * jax.random.normal(key, shape, dtype=jnp.float32)


def _bn_params(key, c):
    k1, k2, k3, k4 = jax.random.split(key, 4)
    gamma = 1.0 + 0.05 * jax.random.normal(k1, (c,), dtype=jnp.float32)
    beta = 0.05 * jax.random.normal(k2, (c,), dtype=jnp.float32)
    mean = 0.05 * jax.random.normal(k3, (c,), dtype=jnp.float32)
    var = 1.0 + 0.05 * jnp.abs(jax.random.normal(k4, (c,), dtype=jnp.float32))
    return gamma, beta, mean, var


def init_params(key, in_channels=3, classes=1):
    ks = jax.random.split(key, 12)
    p = {}
    # HRNet-like stem: two stride-2 3x3 convs (input -> 1/4 resolution).
    p["stem1_w"] = _wparam(ks[0], (3, 3, in_channels, 16))
    p["stem1_bn"] = _bn_params(ks[1], 16)
    p["stem2_w"] = _wparam(ks[2], (3, 3, 16, 16))
    p["stem2_bn"] = _bn_params(ks[3], 16)
    # Branch 1 (high resolution, width 18) and branch 2 (1/2 res, width 36).
    p["br1_w"] = _wparam(ks[4], (3, 3, 16, 18))
    p["br1_bn"] = _bn_params(ks[5], 18)
    p["br2_w"] = _wparam(ks[6], (3, 3, 16, 36))
    p["br2_bn"] = _bn_params(ks[7], 36)
    # FCNHead: conv3x3 (54->54) + BN + ReLU, then 1x1 classifier.
    enc_c = 18 + 36
    p["head_w"] = _wparam(ks[8], (3, 3, enc_c, enc_c))
    p["head_bn"] = _bn_params(ks[9], enc_c)
    p["cls_w"] = _wparam(ks[10], (1, 1, enc_c, classes))
    p["cls_b"] = 0.05 * jax.random.normal(ks[11], (classes,), dtype=jnp.float32)
    return p


# --------------------------------------------------------------------------- #
# Forward pass (mirrors HRNet.forward: encoder -> FCNHead -> bilinear -> id)
# --------------------------------------------------------------------------- #
def hrnet_forward(params, x_nchw):
    x = jnp.transpose(x_nchw, (0, 2, 3, 1)).astype(jnp.float32)   # NCHW -> NHWC
    N, H, W, _ = x.shape

    # Encoder stem: two fused stride-2 3x3 conv+BN+ReLU kernels (no im2col).
    s, b = fold_bn(*params["stem1_bn"])
    h1 = conv3x3_s2(x, params["stem1_w"], s, b, relu=True)        # (N, H/2, W/2, 128)
    s, b = fold_bn(*params["stem2_bn"])
    h2 = conv3x3_s2(h1, params["stem2_w"], s, b, relu=True)       # (N, H/4, W/4, 128)

    # Parallel branches.  Branch-2 writes its 36 channels directly into lanes
    # [18:54] so the upsample kernel fuses the concat as a plain add with y1.
    s, b = fold_bn(*params["br1_bn"])
    y1 = conv3x3_s1(h2, params["br1_w"], s, b, relu=True, out_offset=0)
    s, b = fold_bn(*params["br2_bn"])
    br1_c = params["br1_w"].shape[3]
    y2 = conv3x3_s2(h2, params["br2_w"], s, b, relu=True, out_offset=br1_c)
    feat = resize_concat(y1, y2)                                  # (N, H/4, W/4, 128)

    # FCNHead: 3x3 conv + BN + ReLU fused with the 1x1 classifier in ONE kernel.
    s, b = fold_bn(*params["head_bn"])
    enc_c = params["head_w"].shape[3]
    classes = params["cls_b"].shape[0]
    z = conv3x3_s1(feat, params["head_w"], s, b, relu=True, out_offset=0,
                   w2=params["cls_w"].reshape(enc_c, classes),
                   bias2=params["cls_b"],
                   out_dtype=jnp.float32)                         # (N, H/4, W/4, classes)

    # F.interpolate(size=(H, W), mode='bilinear', align_corners=True); the
    # separable-matmul kernel emits NCHW directly (only a tiny 1/4-res,
    # classes-channel transpose is left to XLA).
    z = jnp.transpose(z, (0, 3, 1, 2))                            # (N, classes, H/4, W/4)
    out = bilinear_to_nchw(z, H, W, out_dtype=jnp.float32)        # (N, classes, H, W)

    # Activation(None) -> identity.
    return out


if __name__ == "__main__":
    key = jax.random.PRNGKey(0)
    pkey, xkey = jax.random.split(key)

    in_channels, classes = 3, 1
    params = init_params(pkey, in_channels=in_channels, classes=classes)

    # Small example input consistent with the module: NCHW, batch=2, C=3, 16x16.
    x = jax.random.normal(xkey, (2, in_channels, 16, 16), dtype=jnp.float32)

    fwd = jax.jit(functools.partial(hrnet_forward, params))
    out = jax.block_until_ready(fwd(x))

    assert out.shape == (2, classes, 16, 16), out.shape
    assert out.dtype == jnp.float32
    assert bool(jnp.all(jnp.isfinite(out)))
    print("KERNEL_OK")
</pallas_src>

<mosaic_0001>
module attributes {stable_mosaic.version = 11 : i64} {
  func.func @_buffered_probe_kernel(%arg0: i32, %arg1: memref<8x128xf32, #tpu.memory_space<vmem>>, %arg2: memref<8x128xf32, #tpu.memory_space<vmem>>) attributes {dimension_semantics = [#tpu.dimension_semantics<arbitrary>], iteration_bounds = array<i64: 1>, scalar_prefetch = 0 : i64, scratch_operands = 0 : i64, tpu.core_type = #tpu.core_type<tc>, window_params = [{pipeline_mode = #tpu.pipeline_mode<synchronous>, transform_indices = @transform_0, window_bounds = array<i64: 8, 128>}, {pipeline_mode = #tpu.pipeline_mode<synchronous>, transform_indices = @transform_1, window_bounds = array<i64: 8, 128>}]} {
    %c0 = arith.constant 0 : index
    %c0_0 = arith.constant 0 : index
    %0 = vector.load %arg1[%c0, %c0_0] : memref<8x128xf32, #tpu.memory_space<vmem>>, vector<8x128xf32>
    %cst = arith.constant 1.000000e+00 : f32
    %1 = vector.broadcast %cst : f32 to vector<8x128xf32>
    %2 = arith.addf %0, %1 : vector<8x128xf32>
    %c0_1 = arith.constant 0 : index
    %c0_2 = arith.constant 0 : index
    %3 = vector.load %arg2[%c0_1, %c0_2] : memref<8x128xf32, #tpu.memory_space<vmem>>, vector<8x128xf32>
    tpu.vector_store %arg2[%c0_1, %c0_2], %2 {strides = array<i32>} : memref<8x128xf32, #tpu.memory_space<vmem>>, vector<8x128xf32>,
    return
  }
  func.func @transform_0(%arg0: i32) -> (i32, i32) {
    %c0_i32 = arith.constant 0 : i32
    %c0_i32_0 = arith.constant 0 : i32
    %c0_i32_1 = arith.constant 0 : i32
    return %c0_i32, %c0_i32_0 : i32, i32
  }
  func.func @transform_1(%arg0: i32) -> (i32, i32) {
    %c0_i32 = arith.constant 0 : i32
    %c0_i32_0 = arith.constant 0 : i32
    %c0_i32_1 = arith.constant 0 : i32
    return %c0_i32, %c0_i32_0 : i32, i32
  }
}

module attributes {stable_mosaic.version = 11 : i64} {
  func.func @_conv3x3_s2_kernel(%arg0: i32, %arg1: i32, %arg2: memref<1x9x9x3xbf16, #tpu.memory_space<vmem>>, %arg3: memref<1x9x9x3xbf16, #tpu.memory_space<vmem>>, %arg4: memref<1x9x9x3xbf16, #tpu.memory_space<vmem>>, %arg5: memref<1x9x9x3xbf16, #tpu.memory_space<vmem>>, %arg6: memref<9x3x128xbf16, #tpu.memory_space<vmem>>, %arg7: memref<1x128xf32, #tpu.memory_space<vmem>>, %arg8: memref<1x128xf32, #tpu.memory_space<vmem>>, %arg9: memref<1x8x8x128xbf16, #tpu.memory_space<vmem>>) attributes {dimension_semantics = [#tpu.dimension_semantics<parallel>, #tpu.dimension_semantics<parallel>], iteration_bounds = array<i64: 2, 1>, scalar_prefetch = 0 : i64, scratch_operands = 0 : i64, tpu.core_type = #tpu.core_type<tc>, window_params = [{transform_indices = @transform_0, window_bounds = array<i64: 1, 9, 9, 3>}, {transform_indices = @transform_1, window_bounds = array<i64: 1, 9, 9, 3>}, {transform_indices = @transform_2, window_bounds = array<i64: 1, 9, 9, 3>}, {transform_indices = @transform_3, window_bounds = array<i64: 1, 9, 9, 3>}, {pipeline_mode = #tpu.pipeline_mode<synchronous>, transform_indices = @transform_4, window_bounds = array<i64: 9, 3, 128>}, {pipeline_mode = #tpu.pipeline_mode<synchronous>, transform_indices = @transform_5, window_bounds = array<i64: 1, 128>}, {pipeline_mode = #tpu.pipeline_mode<synchronous>, transform_indices = @transform_6, window_bounds = array<i64: 1, 128>}, {transform_indices = @transform_7, window_bounds = array<i64: 1, 8, 8, 128>}]} {
    %c8_i32 = arith.constant 8 : i32
    %0 = arith.muli %arg1, %c8_i32 : i32
    %cst = arith.constant 0.000000e+00 : f32
    %1 = vector.broadcast %cst : f32 to vector<64x128xf32>
    %c0_i32 = arith.constant 0 : i32
    %2 = arith.addi %0, %c0_i32 : i32
    %c0 = arith.constant 0 : index
    %3 = arith.index_cast %2 : i32 to index
    %c0_0 = arith.constant 0 : index
    %c0_1 = arith.constant 0 : index
    %4 = vector.load %arg2[%c0, %3, %c0_0, %c0_1] : memref<1x9x9x3xbf16, #tpu.memory_space<vmem>>, vector<1x8x8x3xbf16>
    %5 = vector.shape_cast %4 : vector<1x8x8x3xbf16> to vector<8x8x3xbf16>
    %6 = vector.shape_cast %5 : vector<8x8x3xbf16> to vector<64x3xbf16>
    %c0_2 = arith.constant 0 : index
    %c0_3 = arith.constant 0 : index
    %c0_4 = arith.constant 0 : index
    %7 = vector.load %arg6[%c0_2, %c0_3, %c0_4] : memref<9x3x128xbf16, #tpu.memory_space<vmem>>, vector<1x3x128xbf16>
    %8 = vector.shape_cast %7 : vector<1x3x128xbf16> to vector<3x128xbf16>
    %cst_5 = arith.constant dense<0.000000e+00> : vector<64x128xf32>
    %9 = tpu.matmul %6, %8, %cst_5 {dimension_numbers = #tpu.dot_dimension_numbers<[1], [0], [0], [1], [0, 0, 1, 1], [], []>} : vector<64x3xbf16>, vector<3x128xbf16>, vector<64x128xf32> -> vector<64x128xf32>
    %10 = arith.addf %1, %9 : vector<64x128xf32>
    %c0_i32_6 = arith.constant 0 : i32
    %11 = arith.addi %0, %c0_i32_6 : i32
    %c0_7 = arith.constant 0 : index
    %12 = arith.index_cast %11 : i32 to index
    %c0_8 = arith.constant 0 : index
    %c0_9 = arith.constant 0 : index
    %13 = vector.load %arg3[%c0_7, %12, %c0_8, %c0_9] : memref<1x9x9x3xbf16, #tpu.memory_space<vmem>>, vector<1x8x8x3xbf16>
    %14 = vector.shape_cast %13 : vector<1x8x8x3xbf16> to vector<8x8x3xbf16>
    %15 = vector.shape_cast %14 : vector<8x8x3xbf16> to vector<64x3xbf16>
    %c1 = arith.constant 1 : index
    %c0_10 = arith.constant 0 : index
    %c0_11 = arith.constant 0 : index
    %16 = vector.load %arg6[%c1, %c0_10, %c0_11] : memref<9x3x128xbf16, #tpu.memory_space<vmem>>, vector<1x3x128xbf16>
    %17 = vector.shape_cast %16 : vector<1x3x128xbf16> to vector<3x128xbf16>
    %cst_12 = arith.constant dense<0.000000e+00> : vector<64x128xf32>
    %18 = tpu.matmul %15, %17, %cst_12 {dimension_numbers = #tpu.dot_dimension_numbers<[1], [0], [0], [1], [0, 0, 1, 1], [], []>} : vector<64x3xbf16>, vector<3x128xbf16>, vector<64x128xf32> -> vector<64x128xf32>
    %19 = arith.addf %10, %18 : vector<64x128xf32>
    %c0_i32_13 = arith.constant 0 : i32
    %20 = arith.addi %0, %c0_i32_13 : i32
    %c0_14 = arith.constant 0 : index
    %21 = arith.index_cast %20 : i32 to index
    %c1_15 = arith.constant 1 : index
    %c0_16 = arith.constant 0 : index
    %22 = vector.load %arg2[%c0_14, %21, %c1_15, %c0_16] : memref<1x9x9x3xbf16, #tpu.memory_space<vmem>>, vector<1x8x8x3xbf16>
    %23 = vector.shape_cast %22 : vector<1x8x8x3xbf16> to vector<8x8x3xbf16>
    %24 = vector.shape_cast %23 : vector<8x8x3xbf16> to vector<64x3xbf16>
    %c2 = arith.constant 2 : index
    %c0_17 = arith.constant 0 : index
    %c0_18 = arith.constant 0 : index
    %25 = vector.load %arg6[%c2, %c0_17, %c0_18] : memref<9x3x128xbf16, #tpu.memory_space<vmem>>, vector<1x3x128xbf16>
    %26 = vector.shape_cast %25 : vector<1x3x128xbf16> to vector<3x128xbf16>
    %cst_19 = arith.constant dense<0.000000e+00> : vector<64x128xf32>
    %27 = tpu.matmul %24, %26, %cst_19 {dimension_numbers = #tpu.dot_dimension_numbers<[1], [0], [0], [1], [0, 0, 1, 1], [], []>} : vector<64x3xbf16>, vector<3x128xbf16>, vector<64x128xf32> -> vector<64x128xf32>
    %28 = arith.addf %19, %27 : vector<64x128xf32>
    %c0_i32_20 = arith.constant 0 : i32
    %29 = arith.addi %0, %c0_i32_20 : i32
    %c0_21 = arith.constant 0 : index
    %30 = arith.index_cast %29 : i32 to index
    %c0_22 = arith.constant 0 : index
    %c0_23 = arith.constant 0 : index
    %31 = vector.load %arg4[%c0_21, %30, %c0_22, %c0_23] : memref<1x9x9x3xbf16, #tpu.memory_space<vmem>>, vector<1x8x8x3xbf16>
    %32 = vector.shape_cast %31 : vector<1x8x8x3xbf16> to vector<8x8x3xbf16>
    %33 = vector.shape_cast %32 : vector<8x8x3xbf16> to vector<64x3xbf16>
    %c3 = arith.constant 3 : index
    %c0_24 = arith.constant 0 : index
    %c0_25 = arith.constant 0 : index
    %34 = vector.load %arg6[%c3, %c0_24, %c0_25] : memref<9x3x128xbf16, #tpu.memory_space<vmem>>, vector<1x3x128xbf16>
    %35 = vector.shape_cast %34 : vector<1x3x128xbf16> to vector<3x128xbf16>
    %cst_26 = arith.constant dense<0.000000e+00> : vector<64x128xf32>
    %36 = tpu.matmul %33, %35, %cst_26 {dimension_numbers = #tpu.dot_dimension_numbers<[1], [0], [0], [1], [0, 0, 1, 1], [], []>} : vector<64x3xbf16>, vector<3x128xbf16>, vector<64x128xf32> -> vector<64x128xf32>
    %37 = arith.addf %28, %36 : vector<64x128xf32>
    %c0_i32_27 = arith.constant 0 : i32
    %38 = arith.addi %0, %c0_i32_27 : i32
    %c0_28 = arith.constant 0 : index
    %39 = arith.index_cast %38 : i32 to index
    %c0_29 = arith.constant 0 : index
    %c0_30 = arith.constant 0 : index
    %40 = vector.load %arg5[%c0_28, %39, %c0_29, %c0_30] : memref<1x9x9x3xbf16, #tpu.memory_space<vmem>>, vector<1x8x8x3xbf16>
    %41 = vector.shape_cast %40 : vector<1x8x8x3xbf16> to vector<8x8x3xbf16>
    %42 = vector.shape_cast %41 : vector<8x8x3xbf16> to vector<64x3xbf16>
    %c4 = arith.constant 4 : index
    %c0_31 = arith.constant 0 : index
    %c0_32 = arith.constant 0 : index
    %43 = vector.load %arg6[%c4, %c0_31, %c0_32] : memref<9x3x128xbf16, #tpu.memory_space<vmem>>, vector<1x3x128xbf16>
    %44 = vector.shape_cast %43 : vector<1x3x128xbf16> to vector<3x128xbf16>
    %cst_33 = arith.constant dense<0.000000e+00> : vector<64x128xf32>
    %45 = tpu.matmul %42, %44, %cst_33 {dimension_numbers = #tpu.dot_dimension_numbers<[1], [0], [0], [1], [0, 0, 1, 1], [], []>} : vector<64x3xbf16>, vector<3x128xbf16>, vector<64x128xf32> -> vector<64x128xf32>
    %46 = arith.addf %37, %45 : vector<64x128xf32>
    %c0_i32_34 = arith.constant 0 : i32
    %47 = arith.addi %0, %c0_i32_34 : i32
    %c0_35 = arith.constant 0 : index
    %48 = arith.index_cast %47 : i32 to index
    %c1_36 = arith.constant 1 : index
    %c0_37 = arith.constant 0 : index
    %49 = vector.load %arg4[%c0_35, %48, %c1_36, %c0_37] : memref<1x9x9x3xbf16, #tpu.memory_space<vmem>>, vector<1x8x8x3xbf16>
    %50 = vector.shape_cast %49 : vector<1x8x8x3xbf16> to vector<8x8x3xbf16>
    %51 = vector.shape_cast %50 : vector<8x8x3xbf16> to vector<64x3xbf16>
    %c5 = arith.constant 5 : index
    %c0_38 = arith.constant 0 : index
    %c0_39 = arith.constant 0 : index
    %52 = vector.load %arg6[%c5, %c0_38, %c0_39] : memref<9x3x128xbf16, #tpu.memory_space<vmem>>, vector<1x3x128xbf16>
    %53 = vector.shape_cast %52 : vector<1x3x128xbf16> to vector<3x128xbf16>
    %cst_40 = arith.constant dense<0.000000e+00> : vector<64x128xf32>
    %54 = tpu.matmul %51, %53, %cst_40 {dimension_numbers = #tpu.dot_dimension_numbers<[1], [0], [0], [1], [0, 0, 1, 1], [], []>} : vector<64x3xbf16>, vector<3x128xbf16>, vector<64x128xf32> -> vector<64x128xf32>
    %55 = arith.addf %46, %54 : vector<64x128xf32>
    %c1_i32 = arith.constant 1 : i32
    %56 = arith.addi %0, %c1_i32 : i32
    %c0_41 = arith.constant 0 : index
    %57 = arith.index_cast %56 : i32 to index
    %c0_42 = arith.constant 0 : index
    %c0_43 = arith.constant 0 : index
    %58 = vector.load %arg2[%c0_41, %57, %c0_42, %c0_43] : memref<1x9x9x3xbf16, #tpu.memory_space<vmem>>, vector<1x8x8x3xbf16>
    %59 = vector.shape_cast %58 : vector<1x8x8x3xbf16> to vector<8x8x3xbf16>
    %60 = vector.shape_cast %59 : vector<8x8x3xbf16> to vector<64x3xbf16>
    %c6 = arith.constant 6 : index
    %c0_44 = arith.constant 0 : index
    %c0_45 = arith.constant 0 : index
    %61 = vector.load %arg6[%c6, %c0_44, %c0_45] : memref<9x3x128xbf16, #tpu.memory_space<vmem>>, vector<1x3x128xbf16>
    %62 = vector.shape_cast %61 : vector<1x3x128xbf16> to vector<3x128xbf16>
    %cst_46 = arith.constant dense<0.000000e+00> : vector<64x128xf32>
    %63 = tpu.matmul %60, %62, %cst_46 {dimension_numbers = #tpu.dot_dimension_numbers<[1], [0], [0], [1], [0, 0, 1, 1], [], []>} : vector<64x3xbf16>, vector<3x128xbf16>, vector<64x128xf32> -> vector<64x128xf32>
    %64 = arith.addf %55, %63 : vector<64x128xf32>
    %c1_i32_47 = arith.constant 1 : i32
    %65 = arith.addi %0, %c1_i32_47 : i32
    %c0_48 = arith.constant 0 : index
    %66 = arith.index_cast %65 : i32 to index
    %c0_49 = arith.constant 0 : index
    %c0_50 = arith.constant 0 : index
    %67 = vector.load %arg3[%c0_48, %66, %c0_49, %c0_50] : memref<1x9x9x3xbf16, #tpu.memory_space<vmem>>, vector<1x8x8x3xbf16>
    %68 = vector.shape_cast %67 : vector<1x8x8x3xbf16> to vector<8x8x3xbf16>
    %69 = vector.shape_cast %68 : vector<8x8x3xbf16> to vector<64x3xbf16>
    %c7 = arith.constant 7 : index
    %c0_51 = arith.constant 0 : index
    %c0_52 = arith.constant 0 : index
    %70 = vector.load %arg6[%c7, %c0_51, %c0_52] : memref<9x3x128xbf16, #tpu.memory_space<vmem>>, vector<1x3x128xbf16>
    %71 = vector.shape_cast %70 : vector<1x3x128xbf16> to vector<3x128xbf16>
    %cst_53 = arith.constant dense<0.000000e+00> : vector<64x128xf32>
    %72 = tpu.matmul %69, %71, %cst_53 {dimension_numbers = #tpu.dot_dimension_numbers<[1], [0], [0], [1], [0, 0, 1, 1], [], []>} : vector<64x3xbf16>, vector<3x128xbf16>, vector<64x128xf32> -> vector<64x128xf32>
    %73 = arith.addf %64, %72 : vector<64x128xf32>
    %c1_i32_54 = arith.constant 1 : i32
    %74 = arith.addi %0, %c1_i32_54 : i32
    %c0_55 = arith.constant 0 : index
    %75 = arith.index_cast %74 : i32 to index
    %c1_56 = arith.constant 1 : index
    %c0_57 = arith.constant 0 : index
    %76 = vector.load %arg2[%c0_55, %75, %c1_56, %c0_57] : memref<1x9x9x3xbf16, #tpu.memory_space<vmem>>, vector<1x8x8x3xbf16>
    %77 = vector.shape_cast %76 : vector<1x8x8x3xbf16> to vector<8x8x3xbf16>
    %78 = vector.shape_cast %77 : vector<8x8x3xbf16> to vector<64x3xbf16>
    %c8 = arith.constant 8 : index
    %c0_58 = arith.constant 0 : index
    %c0_59 = arith.constant 0 : index
    %79 = vector.load %arg6[%c8, %c0_58, %c0_59] : memref<9x3x128xbf16, #tpu.memory_space<vmem>>, vector<1x3x128xbf16>
    %80 = vector.shape_cast %79 : vector<1x3x128xbf16> to vector<3x128xbf16>
    %cst_60 = arith.constant dense<0.000000e+00> : vector<64x128xf32>
    %81 = tpu.matmul %78, %80, %cst_60 {dimension_numbers = #tpu.dot_dimension_numbers<[1], [0], [0], [1], [0, 0, 1, 1], [], []>} : vector<64x3xbf16>, vector<3x128xbf16>, vector<64x128xf32> -> vector<64x128xf32>
    %82 = arith.addf %73, %81 : vector<64x128xf32>
    %c0_61 = arith.constant 0 : index
    %c0_62 = arith.constant 0 : index
    %83 = vector.load %arg7[%c0_61, %c0_62] : memref<1x128xf32, #tpu.memory_space<vmem>>, vector<1x128xf32>
    %84 = vector.broadcast %83 : vector<1x128xf32> to vector<64x128xf32>
    %85 = arith.mulf %82, %84 : vector<64x128xf32>
    %c0_63 = arith.constant 0 : index
    %c0_64 = arith.constant 0 : index
    %86 = vector.load %arg8[%c0_63, %c0_64] : memref<1x128xf32, #tpu.memory_space<vmem>>, vector<1x128xf32>
    %87 = vector.broadcast %86 : vector<1x128xf32> to vector<64x128xf32>
    %88 = arith.addf %85, %87 : vector<64x128xf32>
    %cst_65 = arith.constant 0.000000e+00 : f32
    %89 = vector.broadcast %cst_65 : f32 to vector<64x128xf32>
    %90 = arith.maximumf %88, %89 : vector<64x128xf32>
    %91 = vector.shape_cast %90 : vector<64x128xf32> to vector<8x8x128xf32>
    %92 = arith.truncf %91 : vector<8x8x128xf32> to vector<8x8x128xbf16>
    %c0_66 = arith.constant 0 : index
    %c0_67 = arith.constant 0 : index
    %c0_68 = arith.constant 0 : index
    %c0_69 = arith.constant 0 : index
    %93 = vector.load %arg9[%c0_66, %c0_67, %c0_68, %c0_69] : memref<1x8x8x128xbf16, #tpu.memory_space<vmem>>, vector<1x8x8x128xbf16>
    %94 = vector.shape_cast %93 : vector<1x8x8x128xbf16> to vector<8x8x128xbf16>
    %95 = vector.shape_cast %92 : vector<8x8x128xbf16> to vector<1x8x8x128xbf16>
    tpu.vector_store %arg9[%c0_66, %c0_67, %c0_68, %c0_69], %95 {strides = array<i32>} : memref<1x8x8x128xbf16, #tpu.memory_space<vmem>>, vector<1x8x8x128xbf16>,
    return
  }
  func.func @transform_0(%arg0: i32, %arg1: i32) -> (i32, i32, i32, i32) {
    %c0_i32 = arith.constant 0 : i32
    %c0_i32_0 = arith.constant 0 : i32
    %c0_i32_1 = arith.constant 0 : i32
    %c0_i32_2 = arith.constant 0 : i32
    return %arg0, %c0_i32, %c0_i32_0, %c0_i32_1 : i32, i32, i32, i32
  }
  func.func @transform_1(%arg0: i32, %arg1: i32) -> (i32, i32, i32, i32) {
    %c0_i32 = arith.constant 0 : i32
    %c0_i32_0 = arith.constant 0 : i32
    %c0_i32_1 = arith.constant 0 : i32
    %c0_i32_2 = arith.constant 0 : i32
    return %arg0, %c0_i32, %c0_i32_0, %c0_i32_1 : i32, i32, i32, i32
  }
  func.func @transform_2(%arg0: i32, %arg1: i32) -> (i32, i32, i32, i32) {
    %c0_i32 = arith.constant 0 : i32
    %c0_i32_0 = arith.constant 0 : i32
    %c0_i32_1 = arith.constant 0 : i32
    %c0_i32_2 = arith.constant 0 : i32
    return %arg0, %c0_i32, %c0_i32_0, %c0_i32_1 : i32, i32, i32, i32
  }
  func.func @transform_3(%arg0: i32, %arg1: i32) -> (i32, i32, i32, i32) {
    %c0_i32 = arith.constant 0 : i32
    %c0_i32_0 = arith.constant 0 : i32
    %c0_i32_1 = arith.constant 0 : i32
    %c0_i32_2 = arith.constant 0 : i32
    return %arg0, %c0_i32, %c0_i32_0, %c0_i32_1 : i32, i32, i32, i32
  }
  func.func @transform_4(%arg0: i32, %arg1: i32) -> (i32, i32, i32) {
    %c0_i32 = arith.constant 0 : i32
    %c0_i32_0 = arith.constant 0 : i32
    %c0_i32_1 = arith.constant 0 : i32
    %c0_i32_2 = arith.constant 0 : i32
    return %c0_i32, %c0_i32_0, %c0_i32_1 : i32, i32, i32
  }
  func.func @transform_5(%arg0: i32, %arg1: i32) -> (i32, i32) {
    %c0_i32 = arith.constant 0 : i32
    %c0_i32_0 = arith.constant 0 : i32
    %c0_i32_1 = arith.constant 0 : i32
    return %c0_i32, %c0_i32_0 : i32, i32
  }
  func.func @transform_6(%arg0: i32, %arg1: i32) -> (i32, i32) {
    %c0_i32 = arith.constant 0 : i32
    %c0_i32_0 = arith.constant 0 : i32
    %c0_i32_1 = arith.constant 0 : i32
    return %c0_i32, %c0_i32_0 : i32, i32
  }
  func.func @transform_7(%arg0: i32, %arg1: i32) -> (i32, i32, i32, i32) {
    %c0_i32 = arith.constant 0 : i32
    %c0_i32_0 = arith.constant 0 : i32
    %c0_i32_1 = arith.constant 0 : i32
    return %arg0, %arg1, %c0_i32, %c0_i32_0 : i32, i32, i32, i32
  }
}

module attributes {stable_mosaic.version = 11 : i64} {
  func.func @_conv3x3_s2_kernel(%arg0: i32, %arg1: i32, %arg2: memref<1x5x5x128xbf16, #tpu.memory_space<vmem>>, %arg3: memref<1x5x5x128xbf16, #tpu.memory_space<vmem>>, %arg4: memref<1x5x5x128xbf16, #tpu.memory_space<vmem>>, %arg5: memref<1x5x5x128xbf16, #tpu.memory_space<vmem>>, %arg6: memref<9x128x128xbf16, #tpu.memory_space<vmem>>, %arg7: memref<1x128xf32, #tpu.memory_space<vmem>>, %arg8: memref<1x128xf32, #tpu.memory_space<vmem>>, %arg9: memref<1x4x4x128xbf16, #tpu.memory_space<vmem>>) attributes {dimension_semantics = [#tpu.dimension_semantics<parallel>, #tpu.dimension_semantics<parallel>], iteration_bounds = array<i64: 2, 1>, scalar_prefetch = 0 : i64, scratch_operands = 0 : i64, tpu.core_type = #tpu.core_type<tc>, window_params = [{transform_indices = @transform_0, window_bounds = array<i64: 1, 5, 5, 128>}, {transform_indices = @transform_1, window_bounds = array<i64: 1, 5, 5, 128>}, {transform_indices = @transform_2, window_bounds = array<i64: 1, 5, 5, 128>}, {transform_indices = @transform_3, window_bounds = array<i64: 1, 5, 5, 128>}, {pipeline_mode = #tpu.pipeline_mode<synchronous>, transform_indices = @transform_4, window_bounds = array<i64: 9, 128, 128>}, {pipeline_mode = #tpu.pipeline_mode<synchronous>, transform_indices = @transform_5, window_bounds = array<i64: 1, 128>}, {pipeline_mode = #tpu.pipeline_mode<synchronous>, transform_indices = @transform_6, window_bounds = array<i64: 1, 128>}, {transform_indices = @transform_7, window_bounds = array<i64: 1, 4, 4, 128>}]} {
    %c4_i32 = arith.constant 4 : i32
    %0 = arith.muli %arg1, %c4_i32 : i32
    %cst = arith.constant 0.000000e+00 : f32
    %1 = vector.broadcast %cst : f32 to vector<16x128xf32>
    %c0_i32 = arith.constant 0 : i32
    %2 = arith.addi %0, %c0_i32 : i32
    %c0 = arith.constant 0 : index
    %3 = arith.index_cast %2 : i32 to index
    %c0_0 = arith.constant 0 : index
    %c0_1 = arith.constant 0 : index
    %4 = vector.load %arg2[%c0, %3, %c0_0, %c0_1] : memref<1x5x5x128xbf16, #tpu.memory_space<vmem>>, vector<1x4x4x128xbf16>
    %5 = vector.shape_cast %4 : vector<1x4x4x128xbf16> to vector<4x4x128xbf16>
    %6 = vector.shape_cast %5 : vector<4x4x128xbf16> to vector<16x128xbf16>
    %c0_2 = arith.constant 0 : index
    %c0_3 = arith.constant 0 : index
    %c0_4 = arith.constant 0 : index
    %7 = vector.load %arg6[%c0_2, %c0_3, %c0_4] : memref<9x128x128xbf16, #tpu.memory_space<vmem>>, vector<1x128x128xbf16>
    %8 = vector.shape_cast %7 : vector<1x128x128xbf16> to vector<128x128xbf16>
    %cst_5 = arith.constant dense<0.000000e+00> : vector<16x128xf32>
    %9 = tpu.matmul %6, %8, %cst_5 {dimension_numbers = #tpu.dot_dimension_numbers<[1], [0], [0], [1], [0, 0, 1, 1], [], []>} : vector<16x128xbf16>, vector<128x128xbf16>, vector<16x128xf32> -> vector<16x128xf32>
    %10 = arith.addf %1, %9 : vector<16x128xf32>
    %c0_i32_6 = arith.constant 0 : i32
    %11 = arith.addi %0, %c0_i32_6 : i32
    %c0_7 = arith.constant 0 : index
    %12 = arith.index_cast %11 : i32 to index
    %c0_8 = arith.constant 0 : index
    %c0_9 = arith.constant 0 : index
    %13 = vector.load %arg3[%c0_7, %12, %c0_8, %c0_9] : memref<1x5x5x128xbf16, #tpu.memory_space<vmem>>, vector<1x4x4x128xbf16>
    %14 = vector.shape_cast %13 : vector<1x4x4x128xbf16> to vector<4x4x128xbf16>
    %15 = vector.shape_cast %14 : vector<4x4x128xbf16> to vector<16x128xbf16>
    %c1 = arith.constant 1 : index
    %c0_10 = arith.constant 0 : index
    %c0_11 = arith.constant 0 : index
    %16 = vector.load %arg6[%c1, %c0_10, %c0_11] : memref<9x128x128xbf16, #tpu.memory_space<vmem>>, vector<1x128x128xbf16>
    %17 = vector.shape_cast %16 : vector<1x128x128xbf16> to vector<128x128xbf16>
    %cst_12 = arith.constant dense<0.000000e+00> : vector<16x128xf32>
    %18 = tpu.matmul %15, %17, %cst_12 {dimension_numbers = #tpu.dot_dimension_numbers<[1], [0], [0], [1], [0, 0, 1, 1], [], []>} : vector<16x128xbf16>, vector<128x128xbf16>, vector<16x128xf32> -> vector<16x128xf32>
    %19 = arith.addf %10, %18 : vector<16x128xf32>
    %c0_i32_13 = arith.constant 0 : i32
    %20 = arith.addi %0, %c0_i32_13 : i32
    %c0_14 = arith.constant 0 : index
    %21 = arith.index_cast %20 : i32 to index
    %c1_15 = arith.constant 1 : index
    %c0_16 = arith.constant 0 : index
    %22 = vector.load %arg2[%c0_14, %21, %c1_15, %c0_16] : memref<1x5x5x128xbf16, #tpu.memory_space<vmem>>, vector<1x4x4x128xbf16>
    %23 = vector.shape_cast %22 : vector<1x4x4x128xbf16> to vector<4x4x128xbf16>
    %24 = vector.shape_cast %23 : vector<4x4x128xbf16> to vector<16x128xbf16>
    %c2 = arith.constant 2 : index
    %c0_17 = arith.constant 0 : index
    %c0_18 = arith.constant 0 : index
    %25 = vector.load %arg6[%c2, %c0_17, %c0_18] : memref<9x128x128xbf16, #tpu.memory_space<vmem>>, vector<1x128x128xbf16>
    %26 = vector.shape_cast %25 : vector<1x128x128xbf16> to vector<128x128xbf16>
    %cst_19 = arith.constant dense<0.000000e+00> : vector<16x128xf32>
    %27 = tpu.matmul %24, %26, %cst_19 {dimension_numbers = #tpu.dot_dimension_numbers<[1], [0], [0], [1], [0, 0, 1, 1], [], []>} : vector<16x128xbf16>, vector<128x128xbf16>, vector<16x128xf32> -> vector<16x128xf32>
    %28 = arith.addf %19, %27 : vector<16x128xf32>
    %c0_i32_20 = arith.constant 0 : i32
    %29 = arith.addi %0, %c0_i32_20 : i32
    %c0_21 = arith.constant 0 : index
    %30 = arith.index_cast %29 : i32 to index
    %c0_22 = arith.constant 0 : index
    %c0_23 = arith.constant 0 : index
    %31 = vector.load %arg4[%c0_21, %30, %c0_22, %c0_23] : memref<1x5x5x128xbf16, #tpu.memory_space<vmem>>, vector<1x4x4x128xbf16>
    %32 = vector.shape_cast %31 : vector<1x4x4x128xbf16> to vector<4x4x128xbf16>
    %33 = vector.shape_cast %32 : vector<4x4x128xbf16> to vector<16x128xbf16>
    %c3 = arith.constant 3 : index
    %c0_24 = arith.constant 0 : index
    %c0_25 = arith.constant 0 : index
    %34 = vector.load %arg6[%c3, %c0_24, %c0_25] : memref<9x128x128xbf16, #tpu.memory_space<vmem>>, vector<1x128x128xbf16>
    %35 = vector.shape_cast %34 : vector<1x128x128xbf16> to vector<128x128xbf16>
    %cst_26 = arith.constant dense<0.000000e+00> : vector<16x128xf32>
    %36 = tpu.matmul %33, %35, %cst_26 {dimension_numbers = #tpu.dot_dimension_numbers<[1], [0], [0], [1], [0, 0, 1, 1], [], []>} : vector<16x128xbf16>, vector<128x128xbf16>, vector<16x128xf32> -> vector<16x128xf32>
    %37 = arith.addf %28, %36 : vector<16x128xf32>
    %c0_i32_27 = arith.constant 0 : i32
    %38 = arith.addi %0, %c0_i32_27 : i32
    %c0_28 = arith.constant 0 : index
    %39 = arith.index_cast %38 : i32 to index
    %c0_29 = arith.constant 0 : index
    %c0_30 = arith.constant 0 : index
    %40 = vector.load %arg5[%c0_28, %39, %c0_29, %c0_30] : memref<1x5x5x128xbf16, #tpu.memory_space<vmem>>, vector<1x4x4x128xbf16>
    %41 = vector.shape_cast %40 : vector<1x4x4x128xbf16> to vector<4x4x128xbf16>
    %42 = vector.shape_cast %41 : vector<4x4x128xbf16> to vector<16x128xbf16>
    %c4 = arith.constant 4 : index
    %c0_31 = arith.constant 0 : index
    %c0_32 = arith.constant 0 : index
    %43 = vector.load %arg6[%c4, %c0_31, %c0_32] : memref<9x128x128xbf16, #tpu.memory_space<vmem>>, vector<1x128x128xbf16>
    %44 = vector.shape_cast %43 : vector<1x128x128xbf16> to vector<128x128xbf16>
    %cst_33 = arith.constant dense<0.000000e+00> : vector<16x128xf32>
    %45 = tpu.matmul %42, %44, %cst_33 {dimension_numbers = #tpu.dot_dimension_numbers<[1], [0], [0], [1], [0, 0, 1, 1], [], []>} : vector<16x128xbf16>, vector<128x128xbf16>, vector<16x128xf32> -> vector<16x128xf32>
    %46 = arith.addf %37, %45 : vector<16x128xf32>
    %c0_i32_34 = arith.constant 0 : i32
    %47 = arith.addi %0, %c0_i32_34 : i32
    %c0_35 = arith.constant 0 : index
    %48 = arith.index_cast %47 : i32 to index
    %c1_36 = arith.constant 1 : index
    %c0_37 = arith.constant 0 : index
    %49 = vector.load %arg4[%c0_35, %48, %c1_36, %c0_37] : memref<1x5x5x128xbf16, #tpu.memory_space<vmem>>, vector<1x4x4x128xbf16>
    %50 = vector.shape_cast %49 : vector<1x4x4x128xbf16> to vector<4x4x128xbf16>
    %51 = vector.shape_cast %50 : vector<4x4x128xbf16> to vector<16x128xbf16>
    %c5 = arith.constant 5 : index
    %c0_38 = arith.constant 0 : index
    %c0_39 = arith.constant 0 : index
    %52 = vector.load %arg6[%c5, %c0_38, %c0_39] : memref<9x128x128xbf16, #tpu.memory_space<vmem>>, vector<1x128x128xbf16>
    %53 = vector.shape_cast %52 : vector<1x128x128xbf16> to vector<128x128xbf16>
    %cst_40 = arith.constant dense<0.000000e+00> : vector<16x128xf32>
    %54 = tpu.matmul %51, %53, %cst_40 {dimension_numbers = #tpu.dot_dimension_numbers<[1], [0], [0], [1], [0, 0, 1, 1], [], []>} : vector<16x128xbf16>, vector<128x128xbf16>, vector<16x128xf32> -> vector<16x128xf32>
    %55 = arith.addf %46, %54 : vector<16x128xf32>
    %c1_i32 = arith.constant 1 : i32
    %56 = arith.addi %0, %c1_i32 : i32
    %c0_41 = arith.constant 0 : index
    %57 = arith.index_cast %56 : i32 to index
    %c0_42 = arith.constant 0 : index
    %c0_43 = arith.constant 0 : index
    %58 = vector.load %arg2[%c0_41, %57, %c0_42, %c0_43] : memref<1x5x5x128xbf16, #tpu.memory_space<vmem>>, vector<1x4x4x128xbf16>
    %59 = vector.shape_cast %58 : vector<1x4x4x128xbf16> to vector<4x4x128xbf16>
    %60 = vector.shape_cast %59 : vector<4x4x128xbf16> to vector<16x128xbf16>
    %c6 = arith.constant 6 : index
    %c0_44 = arith.constant 0 : index
    %c0_45 = arith.constant 0 : index
    %61 = vector.load %arg6[%c6, %c0_44, %c0_45] : memref<9x128x128xbf16, #tpu.memory_space<vmem>>, vector<1x128x128xbf16>
    %62 = vector.shape_cast %61 : vector<1x128x128xbf16> to vector<128x128xbf16>
    %cst_46 = arith.constant dense<0.000000e+00> : vector<16x128xf32>
    %63 = tpu.matmul %60, %62, %cst_46 {dimension_numbers = #tpu.dot_dimension_numbers<[1], [0], [0], [1], [0, 0, 1, 1], [], []>} : vector<16x128xbf16>, vector<128x128xbf16>, vector<16x128xf32> -> vector<16x128xf32>
    %64 = arith.addf %55, %63 : vector<16x128xf32>
    %c1_i32_47 = arith.constant 1 : i32
    %65 = arith.addi %0, %c1_i32_47 : i32
    %c0_48 = arith.constant 0 : index
    %66 = arith.index_cast %65 : i32 to index
    %c0_49 = arith.constant 0 : index
    %c0_50 = arith.constant 0 : index
    %67 = vector.load %arg3[%c0_48, %66, %c0_49, %c0_50] : memref<1x5x5x128xbf16, #tpu.memory_space<vmem>>, vector<1x4x4x128xbf16>
    %68 = vector.shape_cast %67 : vector<1x4x4x128xbf16> to vector<4x4x128xbf16>
    %69 = vector.shape_cast %68 : vector<4x4x128xbf16> to vector<16x128xbf16>
    %c7 = arith.constant 7 : index
    %c0_51 = arith.constant 0 : index
    %c0_52 = arith.constant 0 : index
    %70 = vector.load %arg6[%c7, %c0_51, %c0_52] : memref<9x128x128xbf16, #tpu.memory_space<vmem>>, vector<1x128x128xbf16>
    %71 = vector.shape_cast %70 : vector<1x128x128xbf16> to vector<128x128xbf16>
    %cst_53 = arith.constant dense<0.000000e+00> : vector<16x128xf32>
    %72 = tpu.matmul %69, %71, %cst_53 {dimension_numbers = #tpu.dot_dimension_numbers<[1], [0], [0], [1], [0, 0, 1, 1], [], []>} : vector<16x128xbf16>, vector<128x128xbf16>, vector<16x128xf32> -> vector<16x128xf32>
    %73 = arith.addf %64, %72 : vector<16x128xf32>
    %c1_i32_54 = arith.constant 1 : i32
    %74 = arith.addi %0, %c1_i32_54 : i32
    %c0_55 = arith.constant 0 : index
    %75 = arith.index_cast %74 : i32 to index
    %c1_56 = arith.constant 1 : index
    %c0_57 = arith.constant 0 : index
    %76 = vector.load %arg2[%c0_55, %75, %c1_56, %c0_57] : memref<1x5x5x128xbf16, #tpu.memory_space<vmem>>, vector<1x4x4x128xbf16>
    %77 = vector.shape_cast %76 : vector<1x4x4x128xbf16> to vector<4x4x128xbf16>
    %78 = vector.shape_cast %77 : vector<4x4x128xbf16> to vector<16x128xbf16>
    %c8 = arith.constant 8 : index
    %c0_58 = arith.constant 0 : index
    %c0_59 = arith.constant 0 : index
    %79 = vector.load %arg6[%c8, %c0_58, %c0_59] : memref<9x128x128xbf16, #tpu.memory_space<vmem>>, vector<1x128x128xbf16>
    %80 = vector.shape_cast %79 : vector<1x128x128xbf16> to vector<128x128xbf16>
    %cst_60 = arith.constant dense<0.000000e+00> : vector<16x128xf32>
    %81 = tpu.matmul %78, %80, %cst_60 {dimension_numbers = #tpu.dot_dimension_numbers<[1], [0], [0], [1], [0, 0, 1, 1], [], []>} : vector<16x128xbf16>, vector<128x128xbf16>, vector<16x128xf32> -> vector<16x128xf32>
    %82 = arith.addf %73, %81 : vector<16x128xf32>
    %c0_61 = arith.constant 0 : index
    %c0_62 = arith.constant 0 : index
    %83 = vector.load %arg7[%c0_61, %c0_62] : memref<1x128xf32, #tpu.memory_space<vmem>>, vector<1x128xf32>
    %84 = vector.broadcast %83 : vector<1x128xf32> to vector<16x128xf32>
    %85 = arith.mulf %82, %84 : vector<16x128xf32>
    %c0_63 = arith.constant 0 : index
    %c0_64 = arith.constant 0 : index
    %86 = vector.load %arg8[%c0_63, %c0_64] : memref<1x128xf32, #tpu.memory_space<vmem>>, vector<1x128xf32>
    %87 = vector.broadcast %86 : vector<1x128xf32> to vector<16x128xf32>
    %88 = arith.addf %85, %87 : vector<16x128xf32>
    %cst_65 = arith.constant 0.000000e+00 : f32
    %89 = vector.broadcast %cst_65 : f32 to vector<16x128xf32>
    %90 = arith.maximumf %88, %89 : vector<16x128xf32>
    %91 = vector.shape_cast %90 : vector<16x128xf32> to vector<4x4x128xf32>
    %92 = arith.truncf %91 : vector<4x4x128xf32> to vector<4x4x128xbf16>
    %c0_66 = arith.constant 0 : index
    %c0_67 = arith.constant 0 : index
    %c0_68 = arith.constant 0 : index
    %c0_69 = arith.constant 0 : index
    %93 = vector.load %arg9[%c0_66, %c0_67, %c0_68, %c0_69] : memref<1x4x4x128xbf16, #tpu.memory_space<vmem>>, vector<1x4x4x128xbf16>
    %94 = vector.shape_cast %93 : vector<1x4x4x128xbf16> to vector<4x4x128xbf16>
    %95 = vector.shape_cast %92 : vector<4x4x128xbf16> to vector<1x4x4x128xbf16>
    tpu.vector_store %arg9[%c0_66, %c0_67, %c0_68, %c0_69], %95 {strides = array<i32>} : memref<1x4x4x128xbf16, #tpu.memory_space<vmem>>, vector<1x4x4x128xbf16>,
    return
  }
  func.func @transform_0(%arg0: i32, %arg1: i32) -> (i32, i32, i32, i32) {
    %c0_i32 = arith.constant 0 : i32
    %c0_i32_0 = arith.constant 0 : i32
    %c0_i32_1 = arith.constant 0 : i32
    %c0_i32_2 = arith.constant 0 : i32
    return %arg0, %c0_i32, %c0_i32_0, %c0_i32_1 : i32, i32, i32, i32
  }
  func.func @transform_1(%arg0: i32, %arg1: i32) -> (i32, i32, i32, i32) {
    %c0_i32 = arith.constant 0 : i32
    %c0_i32_0 = arith.constant 0 : i32
    %c0_i32_1 = arith.constant 0 : i32
    %c0_i32_2 = arith.constant 0 : i32
    return %arg0, %c0_i32, %c0_i32_0, %c0_i32_1 : i32, i32, i32, i32
  }
  func.func @transform_2(%arg0: i32, %arg1: i32) -> (i32, i32, i32, i32) {
    %c0_i32 = arith.constant 0 : i32
    %c0_i32_0 = arith.constant 0 : i32
    %c0_i32_1 = arith.constant 0 : i32
    %c0_i32_2 = arith.constant 0 : i32
    return %arg0, %c0_i32, %c0_i32_0, %c0_i32_1 : i32, i32, i32, i32
  }
  func.func @transform_3(%arg0: i32, %arg1: i32) -> (i32, i32, i32, i32) {
    %c0_i32 = arith.constant 0 : i32
    %c0_i32_0 = arith.constant 0 : i32
    %c0_i32_1 = arith.constant 0 : i32
    %c0_i32_2 = arith.constant 0 : i32
    return %arg0, %c0_i32, %c0_i32_0, %c0_i32_1 : i32, i32, i32, i32
  }
  func.func @transform_4(%arg0: i32, %arg1: i32) -> (i32, i32, i32) {
    %c0_i32 = arith.constant 0 : i32
    %c0_i32_0 = arith.constant 0 : i32
    %c0_i32_1 = arith.constant 0 : i32
    %c0_i32_2 = arith.constant 0 : i32
    return %c0_i32, %c0_i32_0, %c0_i32_1 : i32, i32, i32
  }
  func.func @transform_5(%arg0: i32, %arg1: i32) -> (i32, i32) {
    %c0_i32 = arith.constant 0 : i32
    %c0_i32_0 = arith.constant 0 : i32
    %c0_i32_1 = arith.constant 0 : i32
    return %c0_i32, %c0_i32_0 : i32, i32
  }
  func.func @transform_6(%arg0: i32, %arg1: i32) -> (i32, i32) {
    %c0_i32 = arith.constant 0 : i32
    %c0_i32_0 = arith.constant 0 : i32
    %c0_i32_1 = arith.constant 0 : i32
    return %c0_i32, %c0_i32_0 : i32, i32
  }
  func.func @transform_7(%arg0: i32, %arg1: i32) -> (i32, i32, i32, i32) {
    %c0_i32 = arith.constant 0 : i32
    %c0_i32_0 = arith.constant 0 : i32
    %c0_i32_1 = arith.constant 0 : i32
    return %arg0, %arg1, %c0_i32, %c0_i32_0 : i32, i32, i32, i32
  }
}

module attributes {stable_mosaic.version = 11 : i64} {
  func.func @_conv3x3_s1_kernel(%arg0: i32, %arg1: i32, %arg2: memref<1x6x6x128xbf16, #tpu.memory_space<vmem>>, %arg3: memref<9x128x128xbf16, #tpu.memory_space<vmem>>, %arg4: memref<1x128xf32, #tpu.memory_space<vmem>>, %arg5: memref<1x128xf32, #tpu.memory_space<vmem>>, %arg6: memref<1x4x4x128xbf16, #tpu.memory_space<vmem>>) attributes {dimension_semantics = [#tpu.dimension_semantics<parallel>, #tpu.dimension_semantics<parallel>], iteration_bounds = array<i64: 2, 1>, scalar_prefetch = 0 : i64, scratch_operands = 0 : i64, tpu.core_type = #tpu.core_type<tc>, window_params = [{transform_indices = @transform_0, window_bounds = array<i64: 1, 6, 6, 128>}, {pipeline_mode = #tpu.pipeline_mode<synchronous>, transform_indices = @transform_1, window_bounds = array<i64: 9, 128, 128>}, {pipeline_mode = #tpu.pipeline_mode<synchronous>, transform_indices = @transform_2, window_bounds = array<i64: 1, 128>}, {pipeline_mode = #tpu.pipeline_mode<synchronous>, transform_indices = @transform_3, window_bounds = array<i64: 1, 128>}, {transform_indices = @transform_4, window_bounds = array<i64: 1, 4, 4, 128>}]} {
    %c4_i32 = arith.constant 4 : i32
    %0 = arith.muli %arg1, %c4_i32 : i32
    %cst = arith.constant 0.000000e+00 : f32
    %1 = vector.broadcast %cst : f32 to vector<16x128xf32>
    %c0_i32 = arith.constant 0 : i32
    %2 = arith.addi %0, %c0_i32 : i32
    %c0 = arith.constant 0 : index
    %3 = arith.index_cast %2 : i32 to index
    %c0_0 = arith.constant 0 : index
    %c0_1 = arith.constant 0 : index
    %4 = vector.load %arg2[%c0, %3, %c0_0, %c0_1] : memref<1x6x6x128xbf16, #tpu.memory_space<vmem>>, vector<1x4x4x128xbf16>
    %5 = vector.shape_cast %4 : vector<1x4x4x128xbf16> to vector<4x4x128xbf16>
    %6 = vector.shape_cast %5 : vector<4x4x128xbf16> to vector<16x128xbf16>
    %c0_2 = arith.constant 0 : index
    %c0_3 = arith.constant 0 : index
    %c0_4 = arith.constant 0 : index
    %7 = vector.load %arg3[%c0_2, %c0_3, %c0_4] : memref<9x128x128xbf16, #tpu.memory_space<vmem>>, vector<1x128x128xbf16>
    %8 = vector.shape_cast %7 : vector<1x128x128xbf16> to vector<128x128xbf16>
    %cst_5 = arith.constant dense<0.000000e+00> : vector<16x128xf32>
    %9 = tpu.matmul %6, %8, %cst_5 {dimension_numbers = #tpu.dot_dimension_numbers<[1], [0], [0], [1], [0, 0, 1, 1], [], []>} : vector<16x128xbf16>, vector<128x128xbf16>, vector<16x128xf32> -> vector<16x128xf32>
    %10 = arith.addf %1, %9 : vector<16x128xf32>
    %c0_i32_6 = arith.constant 0 : i32
    %11 = arith.addi %0, %c0_i32_6 : i32
    %c0_7 = arith.constant 0 : index
    %12 = arith.index_cast %11 : i32 to index
    %c1 = arith.constant 1 : index
    %c0_8 = arith.constant 0 : index
    %13 = vector.load %arg2[%c0_7, %12, %c1, %c0_8] : memref<1x6x6x128xbf16, #tpu.memory_space<vmem>>, vector<1x4x4x128xbf16>
    %14 = vector.shape_cast %13 : vector<1x4x4x128xbf16> to vector<4x4x128xbf16>
    %15 = vector.shape_cast %14 : vector<4x4x128xbf16> to vector<16x128xbf16>
    %c1_9 = arith.constant 1 : index
    %c0_10 = arith.constant 0 : index
    %c0_11 = arith.constant 0 : index
    %16 = vector.load %arg3[%c1_9, %c0_10, %c0_11] : memref<9x128x128xbf16, #tpu.memory_space<vmem>>, vector<1x128x128xbf16>
    %17 = vector.shape_cast %16 : vector<1x128x128xbf16> to vector<128x128xbf16>
    %cst_12 = arith.constant dense<0.000000e+00> : vector<16x128xf32>
    %18 = tpu.matmul %15, %17, %cst_12 {dimension_numbers = #tpu.dot_dimension_numbers<[1], [0], [0], [1], [0, 0, 1, 1], [], []>} : vector<16x128xbf16>, vector<128x128xbf16>, vector<16x128xf32> -> vector<16x128xf32>
    %19 = arith.addf %10, %18 : vector<16x128xf32>
    %c0_i32_13 = arith.constant 0 : i32
    %20 = arith.addi %0, %c0_i32_13 : i32
    %c0_14 = arith.constant 0 : index
    %21 = arith.index_cast %20 : i32 to index
    %c2 = arith.constant 2 : index
    %c0_15 = arith.constant 0 : index
    %22 = vector.load %arg2[%c0_14, %21, %c2, %c0_15] : memref<1x6x6x128xbf16, #tpu.memory_space<vmem>>, vector<1x4x4x128xbf16>
    %23 = vector.shape_cast %22 : vector<1x4x4x128xbf16> to vector<4x4x128xbf16>
    %24 = vector.shape_cast %23 : vector<4x4x128xbf16> to vector<16x128xbf16>
    %c2_16 = arith.constant 2 : index
    %c0_17 = arith.constant 0 : index
    %c0_18 = arith.constant 0 : index
    %25 = vector.load %arg3[%c2_16, %c0_17, %c0_18] : memref<9x128x128xbf16, #tpu.memory_space<vmem>>, vector<1x128x128xbf16>
    %26 = vector.shape_cast %25 : vector<1x128x128xbf16> to vector<128x128xbf16>
    %cst_19 = arith.constant dense<0.000000e+00> : vector<16x128xf32>
    %27 = tpu.matmul %24, %26, %cst_19 {dimension_numbers = #tpu.dot_dimension_numbers<[1], [0], [0], [1], [0, 0, 1, 1], [], []>} : vector<16x128xbf16>, vector<128x128xbf16>, vector<16x128xf32> -> vector<16x128xf32>
    %28 = arith.addf %19, %27 : vector<16x128xf32>
    %c1_i32 = arith.constant 1 : i32
    %29 = arith.addi %0, %c1_i32 : i32
    %c0_20 = arith.constant 0 : index
    %30 = arith.index_cast %29 : i32 to index
    %c0_21 = arith.constant 0 : index
    %c0_22 = arith.constant 0 : index
    %31 = vector.load %arg2[%c0_20, %30, %c0_21, %c0_22] : memref<1x6x6x128xbf16, #tpu.memory_space<vmem>>, vector<1x4x4x128xbf16>
    %32 = vector.shape_cast %31 : vector<1x4x4x128xbf16> to vector<4x4x128xbf16>
    %33 = vector.shape_cast %32 : vector<4x4x128xbf16> to vector<16x128xbf16>
    %c3 = arith.constant 3 : index
    %c0_23 = arith.constant 0 : index
    %c0_24 = arith.constant 0 : index
    %34 = vector.load %arg3[%c3, %c0_23, %c0_24] : memref<9x128x128xbf16, #tpu.memory_space<vmem>>, vector<1x128x128xbf16>
    %35 = vector.shape_cast %34 : vector<1x128x128xbf16> to vector<128x128xbf16>
    %cst_25 = arith.constant dense<0.000000e+00> : vector<16x128xf32>
    %36 = tpu.matmul %33, %35, %cst_25 {dimension_numbers = #tpu.dot_dimension_numbers<[1], [0], [0], [1], [0, 0, 1, 1], [], []>} : vector<16x128xbf16>, vector<128x128xbf16>, vector<16x128xf32> -> vector<16x128xf32>
    %37 = arith.addf %28, %36 : vector<16x128xf32>
    %c1_i32_26 = arith.constant 1 : i32
    %38 = arith.addi %0, %c1_i32_26 : i32
    %c0_27 = arith.constant 0 : index
    %39 = arith.index_cast %38 : i32 to index
    %c1_28 = arith.constant 1 : index
    %c0_29 = arith.constant 0 : index
    %40 = vector.load %arg2[%c0_27, %39, %c1_28, %c0_29] : memref<1x6x6x128xbf16, #tpu.memory_space<vmem>>, vector<1x4x4x128xbf16>
    %41 = vector.shape_cast %40 : vector<1x4x4x128xbf16> to vector<4x4x128xbf16>
    %42 = vector.shape_cast %41 : vector<4x4x128xbf16> to vector<16x128xbf16>
    %c4 = arith.constant 4 : index
    %c0_30 = arith.constant 0 : index
    %c0_31 = arith.constant 0 : index
    %43 = vector.load %arg3[%c4, %c0_30, %c0_31] : memref<9x128x128xbf16, #tpu.memory_space<vmem>>, vector<1x128x128xbf16>
    %44 = vector.shape_cast %43 : vector<1x128x128xbf16> to vector<128x128xbf16>
    %cst_32 = arith.constant dense<0.000000e+00> : vector<16x128xf32>
    %45 = tpu.matmul %42, %44, %cst_32 {dimension_numbers = #tpu.dot_dimension_numbers<[1], [0], [0], [1], [0, 0, 1, 1], [], []>} : vector<16x128xbf16>, vector<128x128xbf16>, vector<16x128xf32> -> vector<16x128xf32>
    %46 = arith.addf %37, %45 : vector<16x128xf32>
    %c1_i32_33 = arith.constant 1 : i32
    %47 = arith.addi %0, %c1_i32_33 : i32
    %c0_34 = arith.constant 0 : index
    %48 = arith.index_cast %47 : i32 to index
    %c2_35 = arith.constant 2 : index
    %c0_36 = arith.constant 0 : index
    %49 = vector.load %arg2[%c0_34, %48, %c2_35, %c0_36] : memref<1x6x6x128xbf16, #tpu.memory_space<vmem>>, vector<1x4x4x128xbf16>
    %50 = vector.shape_cast %49 : vector<1x4x4x128xbf16> to vector<4x4x128xbf16>
    %51 = vector.shape_cast %50 : vector<4x4x128xbf16> to vector<16x128xbf16>
    %c5 = arith.constant 5 : index
    %c0_37 = arith.constant 0 : index
    %c0_38 = arith.constant 0 : index
    %52 = vector.load %arg3[%c5, %c0_37, %c0_38] : memref<9x128x128xbf16, #tpu.memory_space<vmem>>, vector<1x128x128xbf16>
    %53 = vector.shape_cast %52 : vector<1x128x128xbf16> to vector<128x128xbf16>
    %cst_39 = arith.constant dense<0.000000e+00> : vector<16x128xf32>
    %54 = tpu.matmul %51, %53, %cst_39 {dimension_numbers = #tpu.dot_dimension_numbers<[1], [0], [0], [1], [0, 0, 1, 1], [], []>} : vector<16x128xbf16>, vector<128x128xbf16>, vector<16x128xf32> -> vector<16x128xf32>
    %55 = arith.addf %46, %54 : vector<16x128xf32>
    %c2_i32 = arith.constant 2 : i32
    %56 = arith.addi %0, %c2_i32 : i32
    %c0_40 = arith.constant 0 : index
    %57 = arith.index_cast %56 : i32 to index
    %c0_41 = arith.constant 0 : index
    %c0_42 = arith.constant 0 : index
    %58 = vector.load %arg2[%c0_40, %57, %c0_41, %c0_42] : memref<1x6x6x128xbf16, #tpu.memory_space<vmem>>, vector<1x4x4x128xbf16>
    %59 = vector.shape_cast %58 : vector<1x4x4x128xbf16> to vector<4x4x128xbf16>
    %60 = vector.shape_cast %59 : vector<4x4x128xbf16> to vector<16x128xbf16>
    %c6 = arith.constant 6 : index
    %c0_43 = arith.constant 0 : index
    %c0_44 = arith.constant 0 : index
    %61 = vector.load %arg3[%c6, %c0_43, %c0_44] : memref<9x128x128xbf16, #tpu.memory_space<vmem>>, vector<1x128x128xbf16>
    %62 = vector.shape_cast %61 : vector<1x128x128xbf16> to vector<128x128xbf16>
    %cst_45 = arith.constant dense<0.000000e+00> : vector<16x128xf32>
    %63 = tpu.matmul %60, %62, %cst_45 {dimension_numbers = #tpu.dot_dimension_numbers<[1], [0], [0], [1], [0, 0, 1, 1], [], []>} : vector<16x128xbf16>, vector<128x128xbf16>, vector<16x128xf32> -> vector<16x128xf32>
    %64 = arith.addf %55, %63 : vector<16x128xf32>
    %c2_i32_46 = arith.constant 2 : i32
    %65 = arith.addi %0, %c2_i32_46 : i32
    %c0_47 = arith.constant 0 : index
    %66 = arith.index_cast %65 : i32 to index
    %c1_48 = arith.constant 1 : index
    %c0_49 = arith.constant 0 : index
    %67 = vector.load %arg2[%c0_47, %66, %c1_48, %c0_49] : memref<1x6x6x128xbf16, #tpu.memory_space<vmem>>, vector<1x4x4x128xbf16>
    %68 = vector.shape_cast %67 : vector<1x4x4x128xbf16> to vector<4x4x128xbf16>
    %69 = vector.shape_cast %68 : vector<4x4x128xbf16> to vector<16x128xbf16>
    %c7 = arith.constant 7 : index
    %c0_50 = arith.constant 0 : index
    %c0_51 = arith.constant 0 : index
    %70 = vector.load %arg3[%c7, %c0_50, %c0_51] : memref<9x128x128xbf16, #tpu.memory_space<vmem>>, vector<1x128x128xbf16>
    %71 = vector.shape_cast %70 : vector<1x128x128xbf16> to vector<128x128xbf16>
    %cst_52 = arith.constant dense<0.000000e+00> : vector<16x128xf32>
    %72 = tpu.matmul %69, %71, %cst_52 {dimension_numbers = #tpu.dot_dimension_numbers<[1], [0], [0], [1], [0, 0, 1, 1], [], []>} : vector<16x128xbf16>, vector<128x128xbf16>, vector<16x128xf32> -> vector<16x128xf32>
    %73 = arith.addf %64, %72 : vector<16x128xf32>
    %c2_i32_53 = arith.constant 2 : i32
    %74 = arith.addi %0, %c2_i32_53 : i32
    %c0_54 = arith.constant 0 : index
    %75 = arith.index_cast %74 : i32 to index
    %c2_55 = arith.constant 2 : index
    %c0_56 = arith.constant 0 : index
    %76 = vector.load %arg2[%c0_54, %75, %c2_55, %c0_56] : memref<1x6x6x128xbf16, #tpu.memory_space<vmem>>, vector<1x4x4x128xbf16>
    %77 = vector.shape_cast %76 : vector<1x4x4x128xbf16> to vector<4x4x128xbf16>
    %78 = vector.shape_cast %77 : vector<4x4x128xbf16> to vector<16x128xbf16>
    %c8 = arith.constant 8 : index
    %c0_57 = arith.constant 0 : index
    %c0_58 = arith.constant 0 : index
    %79 = vector.load %arg3[%c8, %c0_57, %c0_58] : memref<9x128x128xbf16, #tpu.memory_space<vmem>>, vector<1x128x128xbf16>
    %80 = vector.shape_cast %79 : vector<1x128x128xbf16> to vector<128x128xbf16>
    %cst_59 = arith.constant dense<0.000000e+00> : vector<16x128xf32>
    %81 = tpu.matmul %78, %80, %cst_59 {dimension_numbers = #tpu.dot_dimension_numbers<[1], [0], [0], [1], [0, 0, 1, 1], [], []>} : vector<16x128xbf16>, vector<128x128xbf16>, vector<16x128xf32> -> vector<16x128xf32>
    %82 = arith.addf %73, %81 : vector<16x128xf32>
    %c0_60 = arith.constant 0 : index
    %c0_61 = arith.constant 0 : index
    %83 = vector.load %arg4[%c0_60, %c0_61] : memref<1x128xf32, #tpu.memory_space<vmem>>, vector<1x128xf32>
    %84 = vector.broadcast %83 : vector<1x128xf32> to vector<16x128xf32>
    %85 = arith.mulf %82, %84 : vector<16x128xf32>
    %c0_62 = arith.constant 0 : index
    %c0_63 = arith.constant 0 : index
    %86 = vector.load %arg5[%c0_62, %c0_63] : memref<1x128xf32, #tpu.memory_space<vmem>>, vector<1x128xf32>
    %87 = vector.broadcast %86 : vector<1x128xf32> to vector<16x128xf32>
    %88 = arith.addf %85, %87 : vector<16x128xf32>
    %cst_64 = arith.constant 0.000000e+00 : f32
    %89 = vector.broadcast %cst_64 : f32 to vector<16x128xf32>
    %90 = arith.maximumf %88, %89 : vector<16x128xf32>
    %91 = vector.shape_cast %90 : vector<16x128xf32> to vector<4x4x128xf32>
    %92 = arith.truncf %91 : vector<4x4x128xf32> to vector<4x4x128xbf16>
    %c0_65 = arith.constant 0 : index
    %c0_66 = arith.constant 0 : index
    %c0_67 = arith.constant 0 : index
    %c0_68 = arith.constant 0 : index
    %93 = vector.load %arg6[%c0_65, %c0_66, %c0_67, %c0_68] : memref<1x4x4x128xbf16, #tpu.memory_space<vmem>>, vector<1x4x4x128xbf16>
    %94 = vector.shape_cast %93 : vector<1x4x4x128xbf16> to vector<4x4x128xbf16>
    %95 = vector.shape_cast %92 : vector<4x4x128xbf16> to vector<1x4x4x128xbf16>
    tpu.vector_store %arg6[%c0_65, %c0_66, %c0_67, %c0_68], %95 {strides = array<i32>} : memref<1x4x4x128xbf16, #tpu.memory_space<vmem>>, vector<1x4x4x128xbf16>,
    return
  }
  func.func @transform_0(%arg0: i32, %arg1: i32) -> (i32, i32, i32, i32) {
    %c0_i32 = arith.constant 0 : i32
    %c0_i32_0 = arith.constant 0 : i32
    %c0_i32_1 = arith.constant 0 : i32
    %c0_i32_2 = arith.constant 0 : i32
    return %arg0, %c0_i32, %c0_i32_0, %c0_i32_1 : i32, i32, i32, i32
  }
  func.func @transform_1(%arg0: i32, %arg1: i32) -> (i32, i32, i32) {
    %c0_i32 = arith.constant 0 : i32
    %c0_i32_0 = arith.constant 0 : i32
    %c0_i32_1 = arith.constant 0 : i32
    %c0_i32_2 = arith.constant 0 : i32
    return %c0_i32, %c0_i32_0, %c0_i32_1 : i32, i32, i32
  }
  func.func @transform_2(%arg0: i32, %arg1: i32) -> (i32, i32) {
    %c0_i32 = arith.constant 0 : i32
    %c0_i32_0 = arith.constant 0 : i32
    %c0_i32_1 = arith.constant 0 : i32
    return %c0_i32, %c0_i32_0 : i32, i32
  }
  func.func @transform_3(%arg0: i32, %arg1: i32) -> (i32, i32) {
    %c0_i32 = arith.constant 0 : i32
    %c0_i32_0 = arith.constant 0 : i32
    %c0_i32_1 = arith.constant 0 : i32
    return %c0_i32, %c0_i32_0 : i32, i32
  }
  func.func @transform_4(%arg0: i32, %arg1: i32) -> (i32, i32, i32, i32) {
    %c0_i32 = arith.constant 0 : i32
    %c0_i32_0 = arith.constant 0 : i32
    %c0_i32_1 = arith.constant 0 : i32
    return %arg0, %arg1, %c0_i32, %c0_i32_0 : i32, i32, i32, i32
  }
}

module attributes {stable_mosaic.version = 11 : i64} {
  func.func @_conv3x3_s2_kernel(%arg0: i32, %arg1: i32, %arg2: memref<1x3x3x128xbf16, #tpu.memory_space<vmem>>, %arg3: memref<1x3x3x128xbf16, #tpu.memory_space<vmem>>, %arg4: memref<1x3x3x128xbf16, #tpu.memory_space<vmem>>, %arg5: memref<1x3x3x128xbf16, #tpu.memory_space<vmem>>, %arg6: memref<9x128x128xbf16, #tpu.memory_space<vmem>>, %arg7: memref<1x128xf32, #tpu.memory_space<vmem>>, %arg8: memref<1x128xf32, #tpu.memory_space<vmem>>, %arg9: memref<1x2x2x128xbf16, #tpu.memory_space<vmem>>) attributes {dimension_semantics = [#tpu.dimension_semantics<parallel>, #tpu.dimension_semantics<parallel>], iteration_bounds = array<i64: 2, 1>, scalar_prefetch = 0 : i64, scratch_operands = 0 : i64, tpu.core_type = #tpu.core_type<tc>, window_params = [{transform_indices = @transform_0, window_bounds = array<i64: 1, 3, 3, 128>}, {transform_indices = @transform_1, window_bounds = array<i64: 1, 3, 3, 128>}, {transform_indices = @transform_2, window_bounds = array<i64: 1, 3, 3, 128>}, {transform_indices = @transform_3, window_bounds = array<i64: 1, 3, 3, 128>}, {pipeline_mode = #tpu.pipeline_mode<synchronous>, transform_indices = @transform_4, window_bounds = array<i64: 9, 128, 128>}, {pipeline_mode = #tpu.pipeline_mode<synchronous>, transform_indices = @transform_5, window_bounds = array<i64: 1, 128>}, {pipeline_mode = #tpu.pipeline_mode<synchronous>, transform_indices = @transform_6, window_bounds = array<i64: 1, 128>}, {transform_indices = @transform_7, window_bounds = array<i64: 1, 2, 2, 128>}]} {
    %c2_i32 = arith.constant 2 : i32
    %0 = arith.muli %arg1, %c2_i32 : i32
    %cst = arith.constant 0.000000e+00 : f32
    %1 = vector.broadcast %cst : f32 to vector<4x128xf32>
    %c0_i32 = arith.constant 0 : i32
    %2 = arith.addi %0, %c0_i32 : i32
    %c0 = arith.constant 0 : index
    %3 = arith.index_cast %2 : i32 to index
    %c0_0 = arith.constant 0 : index
    %c0_1 = arith.constant 0 : index
    %4 = vector.load %arg2[%c0, %3, %c0_0, %c0_1] : memref<1x3x3x128xbf16, #tpu.memory_space<vmem>>, vector<1x2x2x128xbf16>
    %5 = vector.shape_cast %4 : vector<1x2x2x128xbf16> to vector<2x2x128xbf16>
    %6 = vector.shape_cast %5 : vector<2x2x128xbf16> to vector<4x128xbf16>
    %c0_2 = arith.constant 0 : index
    %c0_3 = arith.constant 0 : index
    %c0_4 = arith.constant 0 : index
    %7 = vector.load %arg6[%c0_2, %c0_3, %c0_4] : memref<9x128x128xbf16, #tpu.memory_space<vmem>>, vector<1x128x128xbf16>
    %8 = vector.shape_cast %7 : vector<1x128x128xbf16> to vector<128x128xbf16>
    %cst_5 = arith.constant dense<0.000000e+00> : vector<4x128xf32>
    %9 = tpu.matmul %6, %8, %cst_5 {dimension_numbers = #tpu.dot_dimension_numbers<[1], [0], [0], [1], [0, 0, 1, 1], [], []>} : vector<4x128xbf16>, vector<128x128xbf16>, vector<4x128xf32> -> vector<4x128xf32>
    %10 = arith.addf %1, %9 : vector<4x128xf32>
    %c0_i32_6 = arith.constant 0 : i32
    %11 = arith.addi %0, %c0_i32_6 : i32
    %c0_7 = arith.constant 0 : index
    %12 = arith.index_cast %11 : i32 to index
    %c0_8 = arith.constant 0 : index
    %c0_9 = arith.constant 0 : index
    %13 = vector.load %arg3[%c0_7, %12, %c0_8, %c0_9] : memref<1x3x3x128xbf16, #tpu.memory_space<vmem>>, vector<1x2x2x128xbf16>
    %14 = vector.shape_cast %13 : vector<1x2x2x128xbf16> to vector<2x2x128xbf16>
    %15 = vector.shape_cast %14 : vector<2x2x128xbf16> to vector<4x128xbf16>
    %c1 = arith.constant 1 : index
    %c0_10 = arith.constant 0 : index
    %c0_11 = arith.constant 0 : index
    %16 = vector.load %arg6[%c1, %c0_10, %c0_11] : memref<9x128x128xbf16, #tpu.memory_space<vmem>>, vector<1x128x128xbf16>
    %17 = vector.shape_cast %16 : vector<1x128x128xbf16> to vector<128x128xbf16>
    %cst_12 = arith.constant dense<0.000000e+00> : vector<4x128xf32>
    %18 = tpu.matmul %15, %17, %cst_12 {dimension_numbers = #tpu.dot_dimension_numbers<[1], [0], [0], [1], [0, 0, 1, 1], [], []>} : vector<4x128xbf16>, vector<128x128xbf16>, vector<4x128xf32> -> vector<4x128xf32>
    %19 = arith.addf %10, %18 : vector<4x128xf32>
    %c0_i32_13 = arith.constant 0 : i32
    %20 = arith.addi %0, %c0_i32_13 : i32
    %c0_14 = arith.constant 0 : index
    %21 = arith.index_cast %20 : i32 to index
    %c1_15 = arith.constant 1 : index
    %c0_16 = arith.constant 0 : index
    %22 = vector.load %arg2[%c0_14, %21, %c1_15, %c0_16] : memref<1x3x3x128xbf16, #tpu.memory_space<vmem>>, vector<1x2x2x128xbf16>
    %23 = vector.shape_cast %22 : vector<1x2x2x128xbf16> to vector<2x2x128xbf16>
    %24 = vector.shape_cast %23 : vector<2x2x128xbf16> to vector<4x128xbf16>
    %c2 = arith.constant 2 : index
    %c0_17 = arith.constant 0 : index
    %c0_18 = arith.constant 0 : index
    %25 = vector.load %arg6[%c2, %c0_17, %c0_18] : memref<9x128x128xbf16, #tpu.memory_space<vmem>>, vector<1x128x128xbf16>
    %26 = vector.shape_cast %25 : vector<1x128x128xbf16> to vector<128x128xbf16>
    %cst_19 = arith.constant dense<0.000000e+00> : vector<4x128xf32>
    %27 = tpu.matmul %24, %26, %cst_19 {dimension_numbers = #tpu.dot_dimension_numbers<[1], [0], [0], [1], [0, 0, 1, 1], [], []>} : vector<4x128xbf16>, vector<128x128xbf16>, vector<4x128xf32> -> vector<4x128xf32>
    %28 = arith.addf %19, %27 : vector<4x128xf32>
    %c0_i32_20 = arith.constant 0 : i32
    %29 = arith.addi %0, %c0_i32_20 : i32
    %c0_21 = arith.constant 0 : index
    %30 = arith.index_cast %29 : i32 to index
    %c0_22 = arith.constant 0 : index
    %c0_23 = arith.constant 0 : index
    %31 = vector.load %arg4[%c0_21, %30, %c0_22, %c0_23] : memref<1x3x3x128xbf16, #tpu.memory_space<vmem>>, vector<1x2x2x128xbf16>
    %32 = vector.shape_cast %31 : vector<1x2x2x128xbf16> to vector<2x2x128xbf16>
    %33 = vector.shape_cast %32 : vector<2x2x128xbf16> to vector<4x128xbf16>
    %c3 = arith.constant 3 : index
    %c0_24 = arith.constant 0 : index
    %c0_25 = arith.constant 0 : index
    %34 = vector.load %arg6[%c3, %c0_24, %c0_25] : memref<9x128x128xbf16, #tpu.memory_space<vmem>>, vector<1x128x128xbf16>
    %35 = vector.shape_cast %34 : vector<1x128x128xbf16> to vector<128x128xbf16>
    %cst_26 = arith.constant dense<0.000000e+00> : vector<4x128xf32>
    %36 = tpu.matmul %33, %35, %cst_26 {dimension_numbers = #tpu.dot_dimension_numbers<[1], [0], [0], [1], [0, 0, 1, 1], [], []>} : vector<4x128xbf16>, vector<128x128xbf16>, vector<4x128xf32> -> vector<4x128xf32>
    %37 = arith.addf %28, %36 : vector<4x128xf32>
    %c0_i32_27 = arith.constant 0 : i32
    %38 = arith.addi %0, %c0_i32_27 : i32
    %c0_28 = arith.constant 0 : index
    %39 = arith.index_cast %38 : i32 to index
    %c0_29 = arith.constant 0 : index
    %c0_30 = arith.constant 0 : index
    %40 = vector.load %arg5[%c0_28, %39, %c0_29, %c0_30] : memref<1x3x3x128xbf16, #tpu.memory_space<vmem>>, vector<1x2x2x128xbf16>
    %41 = vector.shape_cast %40 : vector<1x2x2x128xbf16> to vector<2x2x128xbf16>
    %42 = vector.shape_cast %41 : vector<2x2x128xbf16> to vector<4x128xbf16>
    %c4 = arith.constant 4 : index
    %c0_31 = arith.constant 0 : index
    %c0_32 = arith.constant 0 : index
    %43 = vector.load %arg6[%c4, %c0_31, %c0_32] : memref<9x128x128xbf16, #tpu.memory_space<vmem>>, vector<1x128x128xbf16>
    %44 = vector.shape_cast %43 : vector<1x128x128xbf16> to vector<128x128xbf16>
    %cst_33 = arith.constant dense<0.000000e+00> : vector<4x128xf32>
    %45 = tpu.matmul %42, %44, %cst_33 {dimension_numbers = #tpu.dot_dimension_numbers<[1], [0], [0], [1], [0, 0, 1, 1], [], []>} : vector<4x128xbf16>, vector<128x128xbf16>, vector<4x128xf32> -> vector<4x128xf32>
    %46 = arith.addf %37, %45 : vector<4x128xf32>
    %c0_i32_34 = arith.constant 0 : i32
    %47 = arith.addi %0, %c0_i32_34 : i32
    %c0_35 = arith.constant 0 : index
    %48 = arith.index_cast %47 : i32 to index
    %c1_36 = arith.constant 1 : index
    %c0_37 = arith.constant 0 : index
    %49 = vector.load %arg4[%c0_35, %48, %c1_36, %c0_37] : memref<1x3x3x128xbf16, #tpu.memory_space<vmem>>, vector<1x2x2x128xbf16>
    %50 = vector.shape_cast %49 : vector<1x2x2x128xbf16> to vector<2x2x128xbf16>
    %51 = vector.shape_cast %50 : vector<2x2x128xbf16> to vector<4x128xbf16>
    %c5 = arith.constant 5 : index
    %c0_38 = arith.constant 0 : index
    %c0_39 = arith.constant 0 : index
    %52 = vector.load %arg6[%c5, %c0_38, %c0_39] : memref<9x128x128xbf16, #tpu.memory_space<vmem>>, vector<1x128x128xbf16>
    %53 = vector.shape_cast %52 : vector<1x128x128xbf16> to vector<128x128xbf16>
    %cst_40 = arith.constant dense<0.000000e+00> : vector<4x128xf32>
    %54 = tpu.matmul %51, %53, %cst_40 {dimension_numbers = #tpu.dot_dimension_numbers<[1], [0], [0], [1], [0, 0, 1, 1], [], []>} : vector<4x128xbf16>, vector<128x128xbf16>, vector<4x128xf32> -> vector<4x128xf32>
    %55 = arith.addf %46, %54 : vector<4x128xf32>
    %c1_i32 = arith.constant 1 : i32
    %56 = arith.addi %0, %c1_i32 : i32
    %c0_41 = arith.constant 0 : index
    %57 = arith.index_cast %56 : i32 to index
    %c0_42 = arith.constant 0 : index
    %c0_43 = arith.constant 0 : index
    %58 = vector.load %arg2[%c0_41, %57, %c0_42, %c0_43] : memref<1x3x3x128xbf16, #tpu.memory_space<vmem>>, vector<1x2x2x128xbf16>
    %59 = vector.shape_cast %58 : vector<1x2x2x128xbf16> to vector<2x2x128xbf16>
    %60 = vector.shape_cast %59 : vector<2x2x128xbf16> to vector<4x128xbf16>
    %c6 = arith.constant 6 : index
    %c0_44 = arith.constant 0 : index
    %c0_45 = arith.constant 0 : index
    %61 = vector.load %arg6[%c6, %c0_44, %c0_45] : memref<9x128x128xbf16, #tpu.memory_space<vmem>>, vector<1x128x128xbf16>
    %62 = vector.shape_cast %61 : vector<1x128x128xbf16> to vector<128x128xbf16>
    %cst_46 = arith.constant dense<0.000000e+00> : vector<4x128xf32>
    %63 = tpu.matmul %60, %62, %cst_46 {dimension_numbers = #tpu.dot_dimension_numbers<[1], [0], [0], [1], [0, 0, 1, 1], [], []>} : vector<4x128xbf16>, vector<128x128xbf16>, vector<4x128xf32> -> vector<4x128xf32>
    %64 = arith.addf %55, %63 : vector<4x128xf32>
    %c1_i32_47 = arith.constant 1 : i32
    %65 = arith.addi %0, %c1_i32_47 : i32
    %c0_48 = arith.constant 0 : index
    %66 = arith.index_cast %65 : i32 to index
    %c0_49 = arith.constant 0 : index
    %c0_50 = arith.constant 0 : index
    %67 = vector.load %arg3[%c0_48, %66, %c0_49, %c0_50] : memref<1x3x3x128xbf16, #tpu.memory_space<vmem>>, vector<1x2x2x128xbf16>
    %68 = vector.shape_cast %67 : vector<1x2x2x128xbf16> to vector<2x2x128xbf16>
    %69 = vector.shape_cast %68 : vector<2x2x128xbf16> to vector<4x128xbf16>
    %c7 = arith.constant 7 : index
    %c0_51 = arith.constant 0 : index
    %c0_52 = arith.constant 0 : index
    %70 = vector.load %arg6[%c7, %c0_51, %c0_52] : memref<9x128x128xbf16, #tpu.memory_space<vmem>>, vector<1x128x128xbf16>
    %71 = vector.shape_cast %70 : vector<1x128x128xbf16> to vector<128x128xbf16>
    %cst_53 = arith.constant dense<0.000000e+00> : vector<4x128xf32>
    %72 = tpu.matmul %69, %71, %cst_53 {dimension_numbers = #tpu.dot_dimension_numbers<[1], [0], [0], [1], [0, 0, 1, 1], [], []>} : vector<4x128xbf16>, vector<128x128xbf16>, vector<4x128xf32> -> vector<4x128xf32>
    %73 = arith.addf %64, %72 : vector<4x128xf32>
    %c1_i32_54 = arith.constant 1 : i32
    %74 = arith.addi %0, %c1_i32_54 : i32
    %c0_55 = arith.constant 0 : index
    %75 = arith.index_cast %74 : i32 to index
    %c1_56 = arith.constant 1 : index
    %c0_57 = arith.constant 0 : index
    %76 = vector.load %arg2[%c0_55, %75, %c1_56, %c0_57] : memref<1x3x3x128xbf16, #tpu.memory_space<vmem>>, vector<1x2x2x128xbf16>
    %77 = vector.shape_cast %76 : vector<1x2x2x128xbf16> to vector<2x2x128xbf16>
    %78 = vector.shape_cast %77 : vector<2x2x128xbf16> to vector<4x128xbf16>
    %c8 = arith.constant 8 : index
    %c0_58 = arith.constant 0 : index
    %c0_59 = arith.constant 0 : index
    %79 = vector.load %arg6[%c8, %c0_58, %c0_59] : memref<9x128x128xbf16, #tpu.memory_space<vmem>>, vector<1x128x128xbf16>
    %80 = vector.shape_cast %79 : vector<1x128x128xbf16> to vector<128x128xbf16>
    %cst_60 = arith.constant dense<0.000000e+00> : vector<4x128xf32>
    %81 = tpu.matmul %78, %80, %cst_60 {dimension_numbers = #tpu.dot_dimension_numbers<[1], [0], [0], [1], [0, 0, 1, 1], [], []>} : vector<4x128xbf16>, vector<128x128xbf16>, vector<4x128xf32> -> vector<4x128xf32>
    %82 = arith.addf %73, %81 : vector<4x128xf32>
    %c0_61 = arith.constant 0 : index
    %c0_62 = arith.constant 0 : index
    %83 = vector.load %arg7[%c0_61, %c0_62] : memref<1x128xf32, #tpu.memory_space<vmem>>, vector<1x128xf32>
    %84 = vector.broadcast %83 : vector<1x128xf32> to vector<4x128xf32>
    %85 = arith.mulf %82, %84 : vector<4x128xf32>
    %c0_63 = arith.constant 0 : index
    %c0_64 = arith.constant 0 : index
    %86 = vector.load %arg8[%c0_63, %c0_64] : memref<1x128xf32, #tpu.memory_space<vmem>>, vector<1x128xf32>
    %87 = vector.broadcast %86 : vector<1x128xf32> to vector<4x128xf32>
    %88 = arith.addf %85, %87 : vector<4x128xf32>
    %cst_65 = arith.constant 0.000000e+00 : f32
    %89 = vector.broadcast %cst_65 : f32 to vector<4x128xf32>
    %90 = arith.maximumf %88, %89 : vector<4x128xf32>
    %91 = vector.shape_cast %90 : vector<4x128xf32> to vector<2x2x128xf32>
    %92 = arith.truncf %91 : vector<2x2x128xf32> to vector<2x2x128xbf16>
    %c0_66 = arith.constant 0 : index
    %c0_67 = arith.constant 0 : index
    %c0_68 = arith.constant 0 : index
    %c0_69 = arith.constant 0 : index
    %93 = vector.load %arg9[%c0_66, %c0_67, %c0_68, %c0_69] : memref<1x2x2x128xbf16, #tpu.memory_space<vmem>>, vector<1x2x2x128xbf16>
    %94 = vector.shape_cast %93 : vector<1x2x2x128xbf16> to vector<2x2x128xbf16>
    %95 = vector.shape_cast %92 : vector<2x2x128xbf16> to vector<1x2x2x128xbf16>
    tpu.vector_store %arg9[%c0_66, %c0_67, %c0_68, %c0_69], %95 {strides = array<i32>} : memref<1x2x2x128xbf16, #tpu.memory_space<vmem>>, vector<1x2x2x128xbf16>,
    return
  }
  func.func @transform_0(%arg0: i32, %arg1: i32) -> (i32, i32, i32, i32) {
    %c0_i32 = arith.constant 0 : i32
    %c0_i32_0 = arith.constant 0 : i32
    %c0_i32_1 = arith.constant 0 : i32
    %c0_i32_2 = arith.constant 0 : i32
    return %arg0, %c0_i32, %c0_i32_0, %c0_i32_1 : i32, i32, i32, i32
  }
  func.func @transform_1(%arg0: i32, %arg1: i32) -> (i32, i32, i32, i32) {
    %c0_i32 = arith.constant 0 : i32
    %c0_i32_0 = arith.constant 0 : i32
    %c0_i32_1 = arith.constant 0 : i32
    %c0_i32_2 = arith.constant 0 : i32
    return %arg0, %c0_i32, %c0_i32_0, %c0_i32_1 : i32, i32, i32, i32
  }
  func.func @transform_2(%arg0: i32, %arg1: i32) -> (i32, i32, i32, i32) {
    %c0_i32 = arith.constant 0 : i32
    %c0_i32_0 = arith.constant 0 : i32
    %c0_i32_1 = arith.constant 0 : i32
    %c0_i32_2 = arith.constant 0 : i32
    return %arg0, %c0_i32, %c0_i32_0, %c0_i32_1 : i32, i32, i32, i32
  }
  func.func @transform_3(%arg0: i32, %arg1: i32) -> (i32, i32, i32, i32) {
    %c0_i32 = arith.constant 0 : i32
    %c0_i32_0 = arith.constant 0 : i32
    %c0_i32_1 = arith.constant 0 : i32
    %c0_i32_2 = arith.constant 0 : i32
    return %arg0, %c0_i32, %c0_i32_0, %c0_i32_1 : i32, i32, i32, i32
  }
  func.func @transform_4(%arg0: i32, %arg1: i32) -> (i32, i32, i32) {
    %c0_i32 = arith.constant 0 : i32
    %c0_i32_0 = arith.constant 0 : i32
    %c0_i32_1 = arith.constant 0 : i32
    %c0_i32_2 = arith.constant 0 : i32
    return %c0_i32, %c0_i32_0, %c0_i32_1 : i32, i32, i32
  }
  func.func @transform_5(%arg0: i32, %arg1: i32) -> (i32, i32) {
    %c0_i32 = arith.constant 0 : i32
    %c0_i32_0 = arith.constant 0 : i32
    %c0_i32_1 = arith.constant 0 : i32
    return %c0_i32, %c0_i32_0 : i32, i32
  }
  func.func @transform_6(%arg0: i32, %arg1: i32) -> (i32, i32) {
    %c0_i32 = arith.constant 0 : i32
    %c0_i32_0 = arith.constant 0 : i32
    %c0_i32_1 = arith.constant 0 : i32
    return %c0_i32, %c0_i32_0 : i32, i32
  }
  func.func @transform_7(%arg0: i32, %arg1: i32) -> (i32, i32, i32, i32) {
    %c0_i32 = arith.constant 0 : i32
    %c0_i32_0 = arith.constant 0 : i32
    %c0_i32_1 = arith.constant 0 : i32
    return %arg0, %arg1, %c0_i32, %c0_i32_0 : i32, i32, i32, i32
  }
}

module attributes {stable_mosaic.version = 11 : i64} {
  func.func @_resize_concat_kernel(%arg0: i32, %arg1: i32, %arg2: memref<1x4x4x128xbf16, #tpu.memory_space<vmem>>, %arg3: memref<1x2x2x128xbf16, #tpu.memory_space<vmem>>, %arg4: memref<4x2xbf16, #tpu.memory_space<vmem>>, %arg5: memref<4xi32, #tpu.memory_space<smem>>, %arg6: memref<4xi32, #tpu.memory_space<smem>>, %arg7: memref<4xf32, #tpu.memory_space<smem>>, %arg8: memref<1x4x4x128xbf16, #tpu.memory_space<vmem>>) attributes {dimension_semantics = [#tpu.dimension_semantics<parallel>, #tpu.dimension_semantics<parallel>], iteration_bounds = array<i64: 2, 1>, scalar_prefetch = 0 : i64, scratch_operands = 0 : i64, tpu.core_type = #tpu.core_type<tc>, window_params = [{transform_indices = @transform_0, window_bounds = array<i64: 1, 4, 4, 128>}, {transform_indices = @transform_1, window_bounds = array<i64: 1, 2, 2, 128>}, {pipeline_mode = #tpu.pipeline_mode<synchronous>, transform_indices = @transform_2, window_bounds = array<i64: 4, 2>}, {transform_indices = @transform_3, window_bounds = array<i64: 4>}, {transform_indices = @transform_4, window_bounds = array<i64: 4>}, {transform_indices = @transform_5, window_bounds = array<i64: 4>}, {transform_indices = @transform_6, window_bounds = array<i64: 1, 4, 4, 128>}]} {
    %c4_i32 = arith.constant 4 : i32
    %0 = arith.muli %arg1, %c4_i32 : i32
    %c0_i32 = arith.constant 0 : i32
    %1 = arith.addi %0, %c0_i32 : i32
    %2 = arith.index_cast %1 : i32 to index
    %3 = memref.load %arg5[%2] : memref<4xi32, #tpu.memory_space<smem>>
    %4 = arith.index_cast %1 : i32 to index
    %5 = memref.load %arg6[%4] : memref<4xi32, #tpu.memory_space<smem>>
    %6 = arith.index_cast %1 : i32 to index
    %7 = memref.load %arg7[%6] : memref<4xf32, #tpu.memory_space<smem>>
    %c0 = arith.constant 0 : index
    %8 = arith.index_cast %3 : i32 to index
    %c0_0 = arith.constant 0 : index
    %c0_1 = arith.constant 0 : index
    %9 = vector.load %arg3[%c0, %8, %c0_0, %c0_1] : memref<1x2x2x128xbf16, #tpu.memory_space<vmem>>, vector<1x1x2x128xbf16>
    %10 = vector.shape_cast %9 : vector<1x1x2x128xbf16> to vector<2x128xbf16>
    %11 = arith.extf %10 : vector<2x128xbf16> to vector<2x128xf32>
    %c0_2 = arith.constant 0 : index
    %12 = arith.index_cast %5 : i32 to index
    %c0_3 = arith.constant 0 : index
    %c0_4 = arith.constant 0 : index
    %13 = vector.load %arg3[%c0_2, %12, %c0_3, %c0_4] : memref<1x2x2x128xbf16, #tpu.memory_space<vmem>>, vector<1x1x2x128xbf16>
    %14 = vector.shape_cast %13 : vector<1x1x2x128xbf16> to vector<2x128xbf16>
    %15 = arith.extf %14 : vector<2x128xbf16> to vector<2x128xf32>
    %16 = arith.subf %15, %11 : vector<2x128xf32>
    %17 = vector.broadcast %7 : f32 to vector<2x128xf32>
    %18 = arith.mulf %16, %17 : vector<2x128xf32>
    %19 = arith.addf %11, %18 : vector<2x128xf32>
    %20 = arith.truncf %19 : vector<2x128xf32> to vector<2x128xbf16>
    %c0_5 = arith.constant 0 : index
    %c0_6 = arith.constant 0 : index
    %21 = vector.load %arg4[%c0_5, %c0_6] : memref<4x2xbf16, #tpu.memory_space<vmem>>, vector<4x2xbf16>
    %cst = arith.constant dense<0.000000e+00> : vector<4x128xf32>
    %22 = tpu.matmul %21, %20, %cst {dimension_numbers = #tpu.dot_dimension_numbers<[1], [0], [0], [1], [0, 0, 1, 1], [], []>} : vector<4x2xbf16>, vector<2x128xbf16>, vector<4x128xf32> -> vector<4x128xf32>
    %c0_7 = arith.constant 0 : index
    %c0_8 = arith.constant 0 : index
    %c0_9 = arith.constant 0 : index
    %c0_10 = arith.constant 0 : index
    %23 = vector.load %arg2[%c0_7, %c0_8, %c0_9, %c0_10] : memref<1x4x4x128xbf16, #tpu.memory_space<vmem>>, vector<1x1x4x128xbf16>
    %24 = vector.shape_cast %23 : vector<1x1x4x128xbf16> to vector<4x128xbf16>
    %25 = arith.extf %24 : vector<4x128xbf16> to vector<4x128xf32>
    %26 = arith.addf %22, %25 : vector<4x128xf32>
    %27 = arith.truncf %26 : vector<4x128xf32> to vector<4x128xbf16>
    %c0_11 = arith.constant 0 : index
    %c0_12 = arith.constant 0 : index
    %c0_13 = arith.constant 0 : index
    %c0_14 = arith.constant 0 : index
    %28 = vector.load %arg8[%c0_11, %c0_12, %c0_13, %c0_14] : memref<1x4x4x128xbf16, #tpu.memory_space<vmem>>, vector<1x1x4x128xbf16>
    %29 = vector.shape_cast %28 : vector<1x1x4x128xbf16> to vector<4x128xbf16>
    %30 = vector.shape_cast %27 : vector<4x128xbf16> to vector<1x1x4x128xbf16>
    tpu.vector_store %arg8[%c0_11, %c0_12, %c0_13, %c0_14], %30 {strides = array<i32>} : memref<1x4x4x128xbf16, #tpu.memory_space<vmem>>, vector<1x1x4x128xbf16>,
    %c1_i32 = arith.constant 1 : i32
    %31 = arith.addi %0, %c1_i32 : i32
    %32 = arith.index_cast %31 : i32 to index
    %33 = memref.load %arg5[%32] : memref<4xi32, #tpu.memory_space<smem>>
    %34 = arith.index_cast %31 : i32 to index
    %35 = memref.load %arg6[%34] : memref<4xi32, #tpu.memory_space<smem>>
    %36 = arith.index_cast %31 : i32 to index
    %37 = memref.load %arg7[%36] : memref<4xf32, #tpu.memory_space<smem>>
    %c0_15 = arith.constant 0 : index
    %38 = arith.index_cast %33 : i32 to index
    %c0_16 = arith.constant 0 : index
    %c0_17 = arith.constant 0 : index
    %39 = vector.load %arg3[%c0_15, %38, %c0_16, %c0_17] : memref<1x2x2x128xbf16, #tpu.memory_space<vmem>>, vector<1x1x2x128xbf16>
    %40 = vector.shape_cast %39 : vector<1x1x2x128xbf16> to vector<2x128xbf16>
    %41 = arith.extf %40 : vector<2x128xbf16> to vector<2x128xf32>
    %c0_18 = arith.constant 0 : index
    %42 = arith.index_cast %35 : i32 to index
    %c0_19 = arith.constant 0 : index
    %c0_20 = arith.constant 0 : index
    %43 = vector.load %arg3[%c0_18, %42, %c0_19, %c0_20] : memref<1x2x2x128xbf16, #tpu.memory_space<vmem>>, vector<1x1x2x128xbf16>
    %44 = vector.shape_cast %43 : vector<1x1x2x128xbf16> to vector<2x128xbf16>
    %45 = arith.extf %44 : vector<2x128xbf16> to vector<2x128xf32>
    %46 = arith.subf %45, %41 : vector<2x128xf32>
    %47 = vector.broadcast %37 : f32 to vector<2x128xf32>
    %48 = arith.mulf %46, %47 : vector<2x128xf32>
    %49 = arith.addf %41, %48 : vector<2x128xf32>
    %50 = arith.truncf %49 : vector<2x128xf32> to vector<2x128xbf16>
    %c0_21 = arith.constant 0 : index
    %c0_22 = arith.constant 0 : index
    %51 = vector.load %arg4[%c0_21, %c0_22] : memref<4x2xbf16, #tpu.memory_space<vmem>>, vector<4x2xbf16>
    %cst_23 = arith.constant dense<0.000000e+00> : vector<4x128xf32>
    %52 = tpu.matmul %51, %50, %cst_23 {dimension_numbers = #tpu.dot_dimension_numbers<[1], [0], [0], [1], [0, 0, 1, 1], [], []>} : vector<4x2xbf16>, vector<2x128xbf16>, vector<4x128xf32> -> vector<4x128xf32>
    %c0_24 = arith.constant 0 : index
    %c1 = arith.constant 1 : index
    %c0_25 = arith.constant 0 : index
    %c0_26 = arith.constant 0 : index
    %53 = vector.load %arg2[%c0_24, %c1, %c0_25, %c0_26] : memref<1x4x4x128xbf16, #tpu.memory_space<vmem>>, vector<1x1x4x128xbf16>
    %54 = vector.shape_cast %53 : vector<1x1x4x128xbf16> to vector<4x128xbf16>
    %55 = arith.extf %54 : vector<4x128xbf16> to vector<4x128xf32>
    %56 = arith.addf %52, %55 : vector<4x128xf32>
    %57 = arith.truncf %56 : vector<4x128xf32> to vector<4x128xbf16>
    %c0_27 = arith.constant 0 : index
    %c1_28 = arith.constant 1 : index
    %c0_29 = arith.constant 0 : index
    %c0_30 = arith.constant 0 : index
    %58 = vector.load %arg8[%c0_27, %c1_28, %c0_29, %c0_30] : memref<1x4x4x128xbf16, #tpu.memory_space<vmem>>, vector<1x1x4x128xbf16>
    %59 = vector.shape_cast %58 : vector<1x1x4x128xbf16> to vector<4x128xbf16>
    %60 = vector.shape_cast %57 : vector<4x128xbf16> to vector<1x1x4x128xbf16>
    tpu.vector_store %arg8[%c0_27, %c1_28, %c0_29, %c0_30], %60 {strides = array<i32>} : memref<1x4x4x128xbf16, #tpu.memory_space<vmem>>, vector<1x1x4x128xbf16>,
    %c2_i32 = arith.constant 2 : i32
    %61 = arith.addi %0, %c2_i32 : i32
    %62 = arith.index_cast %61 : i32 to index
    %63 = memref.load %arg5[%62] : memref<4xi32, #tpu.memory_space<smem>>
    %64 = arith.index_cast %61 : i32 to index
    %65 = memref.load %arg6[%64] : memref<4xi32, #tpu.memory_space<smem>>
    %66 = arith.index_cast %61 : i32 to index
    %67 = memref.load %arg7[%66] : memref<4xf32, #tpu.memory_space<smem>>
    %c0_31 = arith.constant 0 : index
    %68 = arith.index_cast %63 : i32 to index
    %c0_32 = arith.constant 0 : index
    %c0_33 = arith.constant 0 : index
    %69 = vector.load %arg3[%c0_31, %68, %c0_32, %c0_33] : memref<1x2x2x128xbf16, #tpu.memory_space<vmem>>, vector<1x1x2x128xbf16>
    %70 = vector.shape_cast %69 : vector<1x1x2x128xbf16> to vector<2x128xbf16>
    %71 = arith.extf %70 : vector<2x128xbf16> to vector<2x128xf32>
    %c0_34 = arith.constant 0 : index
    %72 = arith.index_cast %65 : i32 to index
    %c0_35 = arith.constant 0 : index
    %c0_36 = arith.constant 0 : index
    %73 = vector.load %arg3[%c0_34, %72, %c0_35, %c0_36] : memref<1x2x2x128xbf16, #tpu.memory_space<vmem>>, vector<1x1x2x128xbf16>
    %74 = vector.shape_cast %73 : vector<1x1x2x128xbf16> to vector<2x128xbf16>
    %75 = arith.extf %74 : vector<2x128xbf16> to vector<2x128xf32>
    %76 = arith.subf %75, %71 : vector<2x128xf32>
    %77 = vector.broadcast %67 : f32 to vector<2x128xf32>
    %78 = arith.mulf %76, %77 : vector<2x128xf32>
    %79 = arith.addf %71, %78 : vector<2x128xf32>
    %80 = arith.truncf %79 : vector<2x128xf32> to vector<2x128xbf16>
    %c0_37 = arith.constant 0 : index
    %c0_38 = arith.constant 0 : index
    %81 = vector.load %arg4[%c0_37, %c0_38] : memref<4x2xbf16, #tpu.memory_space<vmem>>, vector<4x2xbf16>
    %cst_39 = arith.constant dense<0.000000e+00> : vector<4x128xf32>
    %82 = tpu.matmul %81, %80, %cst_39 {dimension_numbers = #tpu.dot_dimension_numbers<[1], [0], [0], [1], [0, 0, 1, 1], [], []>} : vector<4x2xbf16>, vector<2x128xbf16>, vector<4x128xf32> -> vector<4x128xf32>
    %c0_40 = arith.constant 0 : index
    %c2 = arith.constant 2 : index
    %c0_41 = arith.constant 0 : index
    %c0_42 = arith.constant 0 : index
    %83 = vector.load %arg2[%c0_40, %c2, %c0_41, %c0_42] : memref<1x4x4x128xbf16, #tpu.memory_space<vmem>>, vector<1x1x4x128xbf16>
    %84 = vector.shape_cast %83 : vector<1x1x4x128xbf16> to vector<4x128xbf16>
    %85 = arith.extf %84 : vector<4x128xbf16> to vector<4x128xf32>
    %86 = arith.addf %82, %85 : vector<4x128xf32>
    %87 = arith.truncf %86 : vector<4x128xf32> to vector<4x128xbf16>
    %c0_43 = arith.constant 0 : index
    %c2_44 = arith.constant 2 : index
    %c0_45 = arith.constant 0 : index
    %c0_46 = arith.constant 0 : index
    %88 = vector.load %arg8[%c0_43, %c2_44, %c0_45, %c0_46] : memref<1x4x4x128xbf16, #tpu.memory_space<vmem>>, vector<1x1x4x128xbf16>
    %89 = vector.shape_cast %88 : vector<1x1x4x128xbf16> to vector<4x128xbf16>
    %90 = vector.shape_cast %87 : vector<4x128xbf16> to vector<1x1x4x128xbf16>
    tpu.vector_store %arg8[%c0_43, %c2_44, %c0_45, %c0_46], %90 {strides = array<i32>} : memref<1x4x4x128xbf16, #tpu.memory_space<vmem>>, vector<1x1x4x128xbf16>,
    %c3_i32 = arith.constant 3 : i32
    %91 = arith.addi %0, %c3_i32 : i32
    %92 = arith.index_cast %91 : i32 to index
    %93 = memref.load %arg5[%92] : memref<4xi32, #tpu.memory_space<smem>>
    %94 = arith.index_cast %91 : i32 to index
    %95 = memref.load %arg6[%94] : memref<4xi32, #tpu.memory_space<smem>>
    %96 = arith.index_cast %91 : i32 to index
    %97 = memref.load %arg7[%96] : memref<4xf32, #tpu.memory_space<smem>>
    %c0_47 = arith.constant 0 : index
    %98 = arith.index_cast %93 : i32 to index
    %c0_48 = arith.constant 0 : index
    %c0_49 = arith.constant 0 : index
    %99 = vector.load %arg3[%c0_47, %98, %c0_48, %c0_49] : memref<1x2x2x128xbf16, #tpu.memory_space<vmem>>, vector<1x1x2x128xbf16>
    %100 = vector.shape_cast %99 : vector<1x1x2x128xbf16> to vector<2x128xbf16>
    %101 = arith.extf %100 : vector<2x128xbf16> to vector<2x128xf32>
    %c0_50 = arith.constant 0 : index
    %102 = arith.index_cast %95 : i32 to index
    %c0_51 = arith.constant 0 : index
    %c0_52 = arith.constant 0 : index
    %103 = vector.load %arg3[%c0_50, %102, %c0_51, %c0_52] : memref<1x2x2x128xbf16, #tpu.memory_space<vmem>>, vector<1x1x2x128xbf16>
    %104 = vector.shape_cast %103 : vector<1x1x2x128xbf16> to vector<2x128xbf16>
    %105 = arith.extf %104 : vector<2x128xbf16> to vector<2x128xf32>
    %106 = arith.subf %105, %101 : vector<2x128xf32>
    %107 = vector.broadcast %97 : f32 to vector<2x128xf32>
    %108 = arith.mulf %106, %107 : vector<2x128xf32>
    %109 = arith.addf %101, %108 : vector<2x128xf32>
    %110 = arith.truncf %109 : vector<2x128xf32> to vector<2x128xbf16>
    %c0_53 = arith.constant 0 : index
    %c0_54 = arith.constant 0 : index
    %111 = vector.load %arg4[%c0_53, %c0_54] : memref<4x2xbf16, #tpu.memory_space<vmem>>, vector<4x2xbf16>
    %cst_55 = arith.constant dense<0.000000e+00> : vector<4x128xf32>
    %112 = tpu.matmul %111, %110, %cst_55 {dimension_numbers = #tpu.dot_dimension_numbers<[1], [0], [0], [1], [0, 0, 1, 1], [], []>} : vector<4x2xbf16>, vector<2x128xbf16>, vector<4x128xf32> -> vector<4x128xf32>
    %c0_56 = arith.constant 0 : index
    %c3 = arith.constant 3 : index
    %c0_57 = arith.constant 0 : index
    %c0_58 = arith.constant 0 : index
    %113 = vector.load %arg2[%c0_56, %c3, %c0_57, %c0_58] : memref<1x4x4x128xbf16, #tpu.memory_space<vmem>>, vector<1x1x4x128xbf16>
    %114 = vector.shape_cast %113 : vector<1x1x4x128xbf16> to vector<4x128xbf16>
    %115 = arith.extf %114 : vector<4x128xbf16> to vector<4x128xf32>
    %116 = arith.addf %112, %115 : vector<4x128xf32>
    %117 = arith.truncf %116 : vector<4x128xf32> to vector<4x128xbf16>
    %c0_59 = arith.constant 0 : index
    %c3_60 = arith.constant 3 : index
    %c0_61 = arith.constant 0 : index
    %c0_62 = arith.constant 0 : index
    %118 = vector.load %arg8[%c0_59, %c3_60, %c0_61, %c0_62] : memref<1x4x4x128xbf16, #tpu.memory_space<vmem>>, vector<1x1x4x128xbf16>
    %119 = vector.shape_cast %118 : vector<1x1x4x128xbf16> to vector<4x128xbf16>
    %120 = vector.shape_cast %117 : vector<4x128xbf16> to vector<1x1x4x128xbf16>
    tpu.vector_store %arg8[%c0_59, %c3_60, %c0_61, %c0_62], %120 {strides = array<i32>} : memref<1x4x4x128xbf16, #tpu.memory_space<vmem>>, vector<1x1x4x128xbf16>,
    return
  }
  func.func @transform_0(%arg0: i32, %arg1: i32) -> (i32, i32, i32, i32) {
    %c0_i32 = arith.constant 0 : i32
    %c0_i32_0 = arith.constant 0 : i32
    %c0_i32_1 = arith.constant 0 : i32
    return %arg0, %arg1, %c0_i32, %c0_i32_0 : i32, i32, i32, i32
  }
  func.func @transform_1(%arg0: i32, %arg1: i32) -> (i32, i32, i32, i32) {
    %c0_i32 = arith.constant 0 : i32
    %c0_i32_0 = arith.constant 0 : i32
    %c0_i32_1 = arith.constant 0 : i32
    %c0_i32_2 = arith.constant 0 : i32
    return %arg0, %c0_i32, %c0_i32_0, %c0_i32_1 : i32, i32, i32, i32
  }
  func.func @transform_2(%arg0: i32, %arg1: i32) -> (i32, i32) {
    %c0_i32 = arith.constant 0 : i32
    %c0_i32_0 = arith.constant 0 : i32
    %c0_i32_1 = arith.constant 0 : i32
    return %c0_i32, %c0_i32_0 : i32, i32
  }
  func.func @transform_3(%arg0: i32, %arg1: i32) -> i32 {
    %c0_i32 = arith.constant 0 : i32
    %c0_i32_0 = arith.constant 0 : i32
    return %c0_i32 : i32
  }
  func.func @transform_4(%arg0: i32, %arg1: i32) -> i32 {
    %c0_i32 = arith.constant 0 : i32
    %c0_i32_0 = arith.constant 0 : i32
    return %c0_i32 : i32
  }
  func.func @transform_5(%arg0: i32, %arg1: i32) -> i32 {
    %c0_i32 = arith.constant 0 : i32
    %c0_i32_0 = arith.constant 0 : i32
    return %c0_i32 : i32
  }
  func.func @transform_6(%arg0: i32, %arg1: i32) -> (i32, i32, i32, i32) {
    %c0_i32 = arith.constant 0 : i32
    %c0_i32_0 = arith.constant 0 : i32
    %c0_i32_1 = arith.constant 0 : i32
    return %arg0, %arg1, %c0_i32, %c0_i32_0 : i32, i32, i32, i32
  }
}

module attributes {stable_mosaic.version = 11 : i64} {
  func.func @_conv3x3_s1_kernel(%arg0: i32, %arg1: i32, %arg2: memref<1x6x6x128xbf16, #tpu.memory_space<vmem>>, %arg3: memref<9x128x128xbf16, #tpu.memory_space<vmem>>, %arg4: memref<1x128xf32, #tpu.memory_space<vmem>>, %arg5: memref<1x128xf32, #tpu.memory_space<vmem>>, %arg6: memref<128x1xbf16, #tpu.memory_space<vmem>>, %arg7: memref<1x1xf32, #tpu.memory_space<vmem>>, %arg8: memref<1x4x4x1xf32, #tpu.memory_space<vmem>>) attributes {dimension_semantics = [#tpu.dimension_semantics<parallel>, #tpu.dimension_semantics<parallel>], iteration_bounds = array<i64: 2, 1>, scalar_prefetch = 0 : i64, scratch_operands = 0 : i64, tpu.core_type = #tpu.core_type<tc>, window_params = [{transform_indices = @transform_0, window_bounds = array<i64: 1, 6, 6, 128>}, {pipeline_mode = #tpu.pipeline_mode<synchronous>, transform_indices = @transform_1, window_bounds = array<i64: 9, 128, 128>}, {pipeline_mode = #tpu.pipeline_mode<synchronous>, transform_indices = @transform_2, window_bounds = array<i64: 1, 128>}, {pipeline_mode = #tpu.pipeline_mode<synchronous>, transform_indices = @transform_3, window_bounds = array<i64: 1, 128>}, {pipeline_mode = #tpu.pipeline_mode<synchronous>, transform_indices = @transform_4, window_bounds = array<i64: 128, 1>}, {pipeline_mode = #tpu.pipeline_mode<synchronous>, transform_indices = @transform_5, window_bounds = array<i64: 1, 1>}, {transform_indices = @transform_6, window_bounds = array<i64: 1, 4, 4, 1>}]} {
    %c4_i32 = arith.constant 4 : i32
    %0 = arith.muli %arg1, %c4_i32 : i32
    %cst = arith.constant 0.000000e+00 : f32
    %1 = vector.broadcast %cst : f32 to vector<16x128xf32>
    %c0_i32 = arith.constant 0 : i32
    %2 = arith.addi %0, %c0_i32 : i32
    %c0 = arith.constant 0 : index
    %3 = arith.index_cast %2 : i32 to index
    %c0_0 = arith.constant 0 : index
    %c0_1 = arith.constant 0 : index
    %4 = vector.load %arg2[%c0, %3, %c0_0, %c0_1] : memref<1x6x6x128xbf16, #tpu.memory_space<vmem>>, vector<1x4x4x128xbf16>
    %5 = vector.shape_cast %4 : vector<1x4x4x128xbf16> to vector<4x4x128xbf16>
    %6 = vector.shape_cast %5 : vector<4x4x128xbf16> to vector<16x128xbf16>
    %c0_2 = arith.constant 0 : index
    %c0_3 = arith.constant 0 : index
    %c0_4 = arith.constant 0 : index
    %7 = vector.load %arg3[%c0_2, %c0_3, %c0_4] : memref<9x128x128xbf16, #tpu.memory_space<vmem>>, vector<1x128x128xbf16>
    %8 = vector.shape_cast %7 : vector<1x128x128xbf16> to vector<128x128xbf16>
    %cst_5 = arith.constant dense<0.000000e+00> : vector<16x128xf32>
    %9 = tpu.matmul %6, %8, %cst_5 {dimension_numbers = #tpu.dot_dimension_numbers<[1], [0], [0], [1], [0, 0, 1, 1], [], []>} : vector<16x128xbf16>, vector<128x128xbf16>, vector<16x128xf32> -> vector<16x128xf32>
    %10 = arith.addf %1, %9 : vector<16x128xf32>
    %c0_i32_6 = arith.constant 0 : i32
    %11 = arith.addi %0, %c0_i32_6 : i32
    %c0_7 = arith.constant 0 : index
    %12 = arith.index_cast %11 : i32 to index
    %c1 = arith.constant 1 : index
    %c0_8 = arith.constant 0 : index
    %13 = vector.load %arg2[%c0_7, %12, %c1, %c0_8] : memref<1x6x6x128xbf16, #tpu.memory_space<vmem>>, vector<1x4x4x128xbf16>
    %14 = vector.shape_cast %13 : vector<1x4x4x128xbf16> to vector<4x4x128xbf16>
    %15 = vector.shape_cast %14 : vector<4x4x128xbf16> to vector<16x128xbf16>
    %c1_9 = arith.constant 1 : index
    %c0_10 = arith.constant 0 : index
    %c0_11 = arith.constant 0 : index
    %16 = vector.load %arg3[%c1_9, %c0_10, %c0_11] : memref<9x128x128xbf16, #tpu.memory_space<vmem>>, vector<1x128x128xbf16>
    %17 = vector.shape_cast %16 : vector<1x128x128xbf16> to vector<128x128xbf16>
    %cst_12 = arith.constant dense<0.000000e+00> : vector<16x128xf32>
    %18 = tpu.matmul %15, %17, %cst_12 {dimension_numbers = #tpu.dot_dimension_numbers<[1], [0], [0], [1], [0, 0, 1, 1], [], []>} : vector<16x128xbf16>, vector<128x128xbf16>, vector<16x128xf32> -> vector<16x128xf32>
    %19 = arith.addf %10, %18 : vector<16x128xf32>
    %c0_i32_13 = arith.constant 0 : i32
    %20 = arith.addi %0, %c0_i32_13 : i32
    %c0_14 = arith.constant 0 : index
    %21 = arith.index_cast %20 : i32 to index
    %c2 = arith.constant 2 : index
    %c0_15 = arith.constant 0 : index
    %22 = vector.load %arg2[%c0_14, %21, %c2, %c0_15] : memref<1x6x6x128xbf16, #tpu.memory_space<vmem>>, vector<1x4x4x128xbf16>
    %23 = vector.shape_cast %22 : vector<1x4x4x128xbf16> to vector<4x4x128xbf16>
    %24 = vector.shape_cast %23 : vector<4x4x128xbf16> to vector<16x128xbf16>
    %c2_16 = arith.constant 2 : index
    %c0_17 = arith.constant 0 : index
    %c0_18 = arith.constant 0 : index
    %25 = vector.load %arg3[%c2_16, %c0_17, %c0_18] : memref<9x128x128xbf16, #tpu.memory_space<vmem>>, vector<1x128x128xbf16>
    %26 = vector.shape_cast %25 : vector<1x128x128xbf16> to vector<128x128xbf16>
    %cst_19 = arith.constant dense<0.000000e+00> : vector<16x128xf32>
    %27 = tpu.matmul %24, %26, %cst_19 {dimension_numbers = #tpu.dot_dimension_numbers<[1], [0], [0], [1], [0, 0, 1, 1], [], []>} : vector<16x128xbf16>, vector<128x128xbf16>, vector<16x128xf32> -> vector<16x128xf32>
    %28 = arith.addf %19, %27 : vector<16x128xf32>
    %c1_i32 = arith.constant 1 : i32
    %29 = arith.addi %0, %c1_i32 : i32
    %c0_20 = arith.constant 0 : index
    %30 = arith.index_cast %29 : i32 to index
    %c0_21 = arith.constant 0 : index
    %c0_22 = arith.constant 0 : index
    %31 = vector.load %arg2[%c0_20, %30, %c0_21, %c0_22] : memref<1x6x6x128xbf16, #tpu.memory_space<vmem>>, vector<1x4x4x128xbf16>
    %32 = vector.shape_cast %31 : vector<1x4x4x128xbf16> to vector<4x4x128xbf16>
    %33 = vector.shape_cast %32 : vector<4x4x128xbf16> to vector<16x128xbf16>
    %c3 = arith.constant 3 : index
    %c0_23 = arith.constant 0 : index
    %c0_24 = arith.constant 0 : index
    %34 = vector.load %arg3[%c3, %c0_23, %c0_24] : memref<9x128x128xbf16, #tpu.memory_space<vmem>>, vector<1x128x128xbf16>
    %35 = vector.shape_cast %34 : vector<1x128x128xbf16> to vector<128x128xbf16>
    %cst_25 = arith.constant dense<0.000000e+00> : vector<16x128xf32>
    %36 = tpu.matmul %33, %35, %cst_25 {dimension_numbers = #tpu.dot_dimension_numbers<[1], [0], [0], [1], [0, 0, 1, 1], [], []>} : vector<16x128xbf16>, vector<128x128xbf16>, vector<16x128xf32> -> vector<16x128xf32>
    %37 = arith.addf %28, %36 : vector<16x128xf32>
    %c1_i32_26 = arith.constant 1 : i32
    %38 = arith.addi %0, %c1_i32_26 : i32
    %c0_27 = arith.constant 0 : index
    %39 = arith.index_cast %38 : i32 to index
    %c1_28 = arith.constant 1 : index
    %c0_29 = arith.constant 0 : index
    %40 = vector.load %arg2[%c0_27, %39, %c1_28, %c0_29] : memref<1x6x6x128xbf16, #tpu.memory_space<vmem>>, vector<1x4x4x128xbf16>
    %41 = vector.shape_cast %40 : vector<1x4x4x128xbf16> to vector<4x4x128xbf16>
    %42 = vector.shape_cast %41 : vector<4x4x128xbf16> to vector<16x128xbf16>
    %c4 = arith.constant 4 : index
    %c0_30 = arith.constant 0 : index
    %c0_31 = arith.constant 0 : index
    %43 = vector.load %arg3[%c4, %c0_30, %c0_31] : memref<9x128x128xbf16, #tpu.memory_space<vmem>>, vector<1x128x128xbf16>
    %44 = vector.shape_cast %43 : vector<1x128x128xbf16> to vector<128x128xbf16>
    %cst_32 = arith.constant dense<0.000000e+00> : vector<16x128xf32>
    %45 = tpu.matmul %42, %44, %cst_32 {dimension_numbers = #tpu.dot_dimension_numbers<[1], [0], [0], [1], [0, 0, 1, 1], [], []>} : vector<16x128xbf16>, vector<128x128xbf16>, vector<16x128xf32> -> vector<16x128xf32>
    %46 = arith.addf %37, %45 : vector<16x128xf32>
    %c1_i32_33 = arith.constant 1 : i32
    %47 = arith.addi %0, %c1_i32_33 : i32
    %c0_34 = arith.constant 0 : index
    %48 = arith.index_cast %47 : i32 to index
    %c2_35 = arith.constant 2 : index
    %c0_36 = arith.constant 0 : index
    %49 = vector.load %arg2[%c0_34, %48, %c2_35, %c0_36] : memref<1x6x6x128xbf16, #tpu.memory_space<vmem>>, vector<1x4x4x128xbf16>
    %50 = vector.shape_cast %49 : vector<1x4x4x128xbf16> to vector<4x4x128xbf16>
    %51 = vector.shape_cast %50 : vector<4x4x128xbf16> to vector<16x128xbf16>
    %c5 = arith.constant 5 : index
    %c0_37 = arith.constant 0 : index
    %c0_38 = arith.constant 0 : index
    %52 = vector.load %arg3[%c5, %c0_37, %c0_38] : memref<9x128x128xbf16, #tpu.memory_space<vmem>>, vector<1x128x128xbf16>
    %53 = vector.shape_cast %52 : vector<1x128x128xbf16> to vector<128x128xbf16>
    %cst_39 = arith.constant dense<0.000000e+00> : vector<16x128xf32>
    %54 = tpu.matmul %51, %53, %cst_39 {dimension_numbers = #tpu.dot_dimension_numbers<[1], [0], [0], [1], [0, 0, 1, 1], [], []>} : vector<16x128xbf16>, vector<128x128xbf16>, vector<16x128xf32> -> vector<16x128xf32>
    %55 = arith.addf %46, %54 : vector<16x128xf32>
    %c2_i32 = arith.constant 2 : i32
    %56 = arith.addi %0, %c2_i32 : i32
    %c0_40 = arith.constant 0 : index
    %57 = arith.index_cast %56 : i32 to index
    %c0_41 = arith.constant 0 : index
    %c0_42 = arith.constant 0 : index
    %58 = vector.load %arg2[%c0_40, %57, %c0_41, %c0_42] : memref<1x6x6x128xbf16, #tpu.memory_space<vmem>>, vector<1x4x4x128xbf16>
    %59 = vector.shape_cast %58 : vector<1x4x4x128xbf16> to vector<4x4x128xbf16>
    %60 = vector.shape_cast %59 : vector<4x4x128xbf16> to vector<16x128xbf16>
    %c6 = arith.constant 6 : index
    %c0_43 = arith.constant 0 : index
    %c0_44 = arith.constant 0 : index
    %61 = vector.load %arg3[%c6, %c0_43, %c0_44] : memref<9x128x128xbf16, #tpu.memory_space<vmem>>, vector<1x128x128xbf16>
    %62 = vector.shape_cast %61 : vector<1x128x128xbf16> to vector<128x128xbf16>
    %cst_45 = arith.constant dense<0.000000e+00> : vector<16x128xf32>
    %63 = tpu.matmul %60, %62, %cst_45 {dimension_numbers = #tpu.dot_dimension_numbers<[1], [0], [0], [1], [0, 0, 1, 1], [], []>} : vector<16x128xbf16>, vector<128x128xbf16>, vector<16x128xf32> -> vector<16x128xf32>
    %64 = arith.addf %55, %63 : vector<16x128xf32>
    %c2_i32_46 = arith.constant 2 : i32
    %65 = arith.addi %0, %c2_i32_46 : i32
    %c0_47 = arith.constant 0 : index
    %66 = arith.index_cast %65 : i32 to index
    %c1_48 = arith.constant 1 : index
    %c0_49 = arith.constant 0 : index
    %67 = vector.load %arg2[%c0_47, %66, %c1_48, %c0_49] : memref<1x6x6x128xbf16, #tpu.memory_space<vmem>>, vector<1x4x4x128xbf16>
    %68 = vector.shape_cast %67 : vector<1x4x4x128xbf16> to vector<4x4x128xbf16>
    %69 = vector.shape_cast %68 : vector<4x4x128xbf16> to vector<16x128xbf16>
    %c7 = arith.constant 7 : index
    %c0_50 = arith.constant 0 : index
    %c0_51 = arith.constant 0 : index
    %70 = vector.load %arg3[%c7, %c0_50, %c0_51] : memref<9x128x128xbf16, #tpu.memory_space<vmem>>, vector<1x128x128xbf16>
    %71 = vector.shape_cast %70 : vector<1x128x128xbf16> to vector<128x128xbf16>
    %cst_52 = arith.constant dense<0.000000e+00> : vector<16x128xf32>
    %72 = tpu.matmul %69, %71, %cst_52 {dimension_numbers = #tpu.dot_dimension_numbers<[1], [0], [0], [1], [0, 0, 1, 1], [], []>} : vector<16x128xbf16>, vector<128x128xbf16>, vector<16x128xf32> -> vector<16x128xf32>
    %73 = arith.addf %64, %72 : vector<16x128xf32>
    %c2_i32_53 = arith.constant 2 : i32
    %74 = arith.addi %0, %c2_i32_53 : i32
    %c0_54 = arith.constant 0 : index
    %75 = arith.index_cast %74 : i32 to index
    %c2_55 = arith.constant 2 : index
    %c0_56 = arith.constant 0 : index
    %76 = vector.load %arg2[%c0_54, %75, %c2_55, %c0_56] : memref<1x6x6x128xbf16, #tpu.memory_space<vmem>>, vector<1x4x4x128xbf16>
    %77 = vector.shape_cast %76 : vector<1x4x4x128xbf16> to vector<4x4x128xbf16>
    %78 = vector.shape_cast %77 : vector<4x4x128xbf16> to vector<16x128xbf16>
    %c8 = arith.constant 8 : index
    %c0_57 = arith.constant 0 : index
    %c0_58 = arith.constant 0 : index
    %79 = vector.load %arg3[%c8, %c0_57, %c0_58] : memref<9x128x128xbf16, #tpu.memory_space<vmem>>, vector<1x128x128xbf16>
    %80 = vector.shape_cast %79 : vector<1x128x128xbf16> to vector<128x128xbf16>
    %cst_59 = arith.constant dense<0.000000e+00> : vector<16x128xf32>
    %81 = tpu.matmul %78, %80, %cst_59 {dimension_numbers = #tpu.dot_dimension_numbers<[1], [0], [0], [1], [0, 0, 1, 1], [], []>} : vector<16x128xbf16>, vector<128x128xbf16>, vector<16x128xf32> -> vector<16x128xf32>
    %82 = arith.addf %73, %81 : vector<16x128xf32>
    %c0_60 = arith.constant 0 : index
    %c0_61 = arith.constant 0 : index
    %83 = vector.load %arg4[%c0_60, %c0_61] : memref<1x128xf32, #tpu.memory_space<vmem>>, vector<1x128xf32>
    %84 = vector.broadcast %83 : vector<1x128xf32> to vector<16x128xf32>
    %85 = arith.mulf %82, %84 : vector<16x128xf32>
    %c0_62 = arith.constant 0 : index
    %c0_63 = arith.constant 0 : index
    %86 = vector.load %arg5[%c0_62, %c0_63] : memref<1x128xf32, #tpu.memory_space<vmem>>, vector<1x128xf32>
    %87 = vector.broadcast %86 : vector<1x128xf32> to vector<16x128xf32>
    %88 = arith.addf %85, %87 : vector<16x128xf32>
    %cst_64 = arith.constant 0.000000e+00 : f32
    %89 = vector.broadcast %cst_64 : f32 to vector<16x128xf32>
    %90 = arith.maximumf %88, %89 : vector<16x128xf32>
    %91 = arith.truncf %90 : vector<16x128xf32> to vector<16x128xbf16>
    %c0_65 = arith.constant 0 : index
    %c0_66 = arith.constant 0 : index
    %92 = vector.load %arg6[%c0_65, %c0_66] : memref<128x1xbf16, #tpu.memory_space<vmem>>, vector<128x1xbf16>
    %cst_67 = arith.constant dense<0.000000e+00> : vector<16x1xf32>
    %93 = tpu.matmul %91, %92, %cst_67 {dimension_numbers = #tpu.dot_dimension_numbers<[1], [0], [0], [1], [0, 0, 1, 1], [], []>} : vector<16x128xbf16>, vector<128x1xbf16>, vector<16x1xf32> -> vector<16x1xf32>
    %c0_68 = arith.constant 0 : index
    %c0_69 = arith.constant 0 : index
    %94 = vector.load %arg7[%c0_68, %c0_69] : memref<1x1xf32, #tpu.memory_space<vmem>>, vector<1x1xf32>
    %95 = vector.broadcast %94 : vector<1x1xf32> to vector<16x1xf32>
    %96 = arith.addf %93, %95 : vector<16x1xf32>
    %97 = vector.shape_cast %96 : vector<16x1xf32> to vector<4x4x1xf32>
    %c0_70 = arith.constant 0 : index
    %c0_71 = arith.constant 0 : index
    %c0_72 = arith.constant 0 : index
    %c0_73 = arith.constant 0 : index
    %98 = vector.load %arg8[%c0_70, %c0_71, %c0_72, %c0_73] : memref<1x4x4x1xf32, #tpu.memory_space<vmem>>, vector<1x4x4x1xf32>
    %99 = vector.shape_cast %98 : vector<1x4x4x1xf32> to vector<4x4x1xf32>
    %100 = vector.shape_cast %97 : vector<4x4x1xf32> to vector<1x4x4x1xf32>
    tpu.vector_store %arg8[%c0_70, %c0_71, %c0_72, %c0_73], %100 {strides = array<i32>} : memref<1x4x4x1xf32, #tpu.memory_space<vmem>>, vector<1x4x4x1xf32>,
    return
  }
  func.func @transform_0(%arg0: i32, %arg1: i32) -> (i32, i32, i32, i32) {
    %c0_i32 = arith.constant 0 : i32
    %c0_i32_0 = arith.constant 0 : i32
    %c0_i32_1 = arith.constant 0 : i32
    %c0_i32_2 = arith.constant 0 : i32
    return %arg0, %c0_i32, %c0_i32_0, %c0_i32_1 : i32, i32, i32, i32
  }
  func.func @transform_1(%arg0: i32, %arg1: i32) -> (i32, i32, i32) {
    %c0_i32 = arith.constant 0 : i32
    %c0_i32_0 = arith.constant 0 : i32
    %c0_i32_1 = arith.constant 0 : i32
    %c0_i32_2 = arith.constant 0 : i32
    return %c0_i32, %c0_i32_0, %c0_i32_1 : i32, i32, i32
  }
  func.func @transform_2(%arg0: i32, %arg1: i32) -> (i32, i32) {
    %c0_i32 = arith.constant 0 : i32
    %c0_i32_0 = arith.constant 0 : i32
    %c0_i32_1 = arith.constant 0 : i32
    return %c0_i32, %c0_i32_0 : i32, i32
  }
  func.func @transform_3(%arg0: i32, %arg1: i32) -> (i32, i32) {
    %c0_i32 = arith.constant 0 : i32
    %c0_i32_0 = arith.constant 0 : i32
    %c0_i32_1 = arith.constant 0 : i32
    return %c0_i32, %c0_i32_0 : i32, i32
  }
  func.func @transform_4(%arg0: i32, %arg1: i32) -> (i32, i32) {
    %c0_i32 = arith.constant 0 : i32
    %c0_i32_0 = arith.constant 0 : i32
    %c0_i32_1 = arith.constant 0 : i32
    return %c0_i32, %c0_i32_0 : i32, i32
  }
  func.func @transform_5(%arg0: i32, %arg1: i32) -> (i32, i32) {
    %c0_i32 = arith.constant 0 : i32
    %c0_i32_0 = arith.constant 0 : i32
    %c0_i32_1 = arith.constant 0 : i32
    return %c0_i32, %c0_i32_0 : i32, i32
  }
  func.func @transform_6(%arg0: i32, %arg1: i32) -> (i32, i32, i32, i32) {
    %c0_i32 = arith.constant 0 : i32
    %c0_i32_0 = arith.constant 0 : i32
    %c0_i32_1 = arith.constant 0 : i32
    return %arg0, %arg1, %c0_i32, %c0_i32_0 : i32, i32, i32, i32
  }
}

module attributes {stable_mosaic.version = 11 : i64} {
  func.func @_bilinear_nchw_kernel(%arg0: i32, %arg1: i32, %arg2: memref<16x4xf32, #tpu.memory_space<vmem>>, %arg3: memref<4x16xf32, #tpu.memory_space<vmem>>, %arg4: memref<1x1x4x4xf32, #tpu.memory_space<vmem>>, %arg5: memref<1x1x16x16xf32, #tpu.memory_space<vmem>>) attributes {dimension_semantics = [#tpu.dimension_semantics<parallel>, #tpu.dimension_semantics<parallel>], iteration_bounds = array<i64: 2, 1>, scalar_prefetch = 0 : i64, scratch_operands = 0 : i64, tpu.core_type = #tpu.core_type<tc>, window_params = [{pipeline_mode = #tpu.pipeline_mode<synchronous>, transform_indices = @transform_0, window_bounds = array<i64: 16, 4>}, {pipeline_mode = #tpu.pipeline_mode<synchronous>, transform_indices = @transform_1, window_bounds = array<i64: 4, 16>}, {transform_indices = @transform_2, window_bounds = array<i64: 1, 1, 4, 4>}, {transform_indices = @transform_3, window_bounds = array<i64: 1, 1, 16, 16>}]} {
    %c0 = arith.constant 0 : index
    %c0_0 = arith.constant 0 : index
    %0 = vector.load %arg2[%c0, %c0_0] : memref<16x4xf32, #tpu.memory_space<vmem>>, vector<16x4xf32>
    %c0_1 = arith.constant 0 : index
    %c0_2 = arith.constant 0 : index
    %c0_3 = arith.constant 0 : index
    %c0_4 = arith.constant 0 : index
    %1 = vector.load %arg4[%c0_1, %c0_2, %c0_3, %c0_4] : memref<1x1x4x4xf32, #tpu.memory_space<vmem>>, vector<1x1x4x4xf32>
    %2 = vector.shape_cast %1 : vector<1x1x4x4xf32> to vector<4x4xf32>
    %cst = arith.constant dense<0.000000e+00> : vector<16x4xf32>
    %3 = tpu.matmul %0, %2, %cst {dimension_numbers = #tpu.dot_dimension_numbers<[1], [0], [0], [1], [0, 0, 1, 1], [], []>} : vector<16x4xf32>, vector<4x4xf32>, vector<16x4xf32> -> vector<16x4xf32>
    %c0_5 = arith.constant 0 : index
    %c0_6 = arith.constant 0 : index
    %4 = vector.load %arg3[%c0_5, %c0_6] : memref<4x16xf32, #tpu.memory_space<vmem>>, vector<4x16xf32>
    %cst_7 = arith.constant dense<0.000000e+00> : vector<16x16xf32>
    %5 = tpu.matmul %3, %4, %cst_7 {dimension_numbers = #tpu.dot_dimension_numbers<[1], [0], [0], [1], [0, 0, 1, 1], [], []>} : vector<16x4xf32>, vector<4x16xf32>, vector<16x16xf32> -> vector<16x16xf32>
    %c0_8 = arith.constant 0 : index
    %c0_9 = arith.constant 0 : index
    %c0_10 = arith.constant 0 : index
    %c0_11 = arith.constant 0 : index
    %6 = vector.load %arg5[%c0_8, %c0_9, %c0_10, %c0_11] : memref<1x1x16x16xf32, #tpu.memory_space<vmem>>, vector<1x1x16x16xf32>
    %7 = vector.shape_cast %6 : vector<1x1x16x16xf32> to vector<16x16xf32>
    %8 = vector.shape_cast %5 : vector<16x16xf32> to vector<1x1x16x16xf32>
    tpu.vector_store %arg5[%c0_8, %c0_9, %c0_10, %c0_11], %8 {strides = array<i32>} : memref<1x1x16x16xf32, #tpu.memory_space<vmem>>, vector<1x1x16x16xf32>,
    return
  }
  func.func @transform_0(%arg0: i32, %arg1: i32) -> (i32, i32) {
    %c0_i32 = arith.constant 0 : i32
    %c0_i32_0 = arith.constant 0 : i32
    %c0_i32_1 = arith.constant 0 : i32
    return %c0_i32, %c0_i32_0 : i32, i32
  }
  func.func @transform_1(%arg0: i32, %arg1: i32) -> (i32, i32) {
    %c0_i32 = arith.constant 0 : i32
    %c0_i32_0 = arith.constant 0 : i32
    %c0_i32_1 = arith.constant 0 : i32
    return %c0_i32, %c0_i32_0 : i32, i32
  }
  func.func @transform_2(%arg0: i32, %arg1: i32) -> (i32, i32, i32, i32) {
    %c0_i32 = arith.constant 0 : i32
    %c0_i32_0 = arith.constant 0 : i32
    %c0_i32_1 = arith.constant 0 : i32
    return %arg0, %arg1, %c0_i32, %c0_i32_0 : i32, i32, i32, i32
  }
  func.func @transform_3(%arg0: i32, %arg1: i32) -> (i32, i32, i32, i32) {
    %c0_i32 = arith.constant 0 : i32
    %c0_i32_0 = arith.constant 0 : i32
    %c0_i32_1 = arith.constant 0 : i32
    return %arg0, %arg1, %c0_i32, %c0_i32_0 : i32, i32, i32, i32
  }
}

</mosaic_0001>

<bundles_post_ra>
// kernel: tpu_custom_call.1
= control target key start
LH: loop header
LB: loop body
LE: loop exit
PB: predicated region body
PF: predicated region fallthrough
CT: control target
= control target key end

     0   :  { %6 = vsyncpa [#allocation3], 0  ;;  %s125_s0 = inlined_call_operand.hbm [shape: f32[8,128], index: 0, kind: input, shape index: {}]   ;;  %s126_s1 = inlined_call_operand.hbm [shape: f32[8,128], index: 1, kind: output, shape index: {}]  }
   0x1   :  { %7 = vsyncpa [#allocation4], 0  ;;  %s89_s6 = smov [#allocation2]   ;;  %s41_s10 = scalar_lea.hbm %s125_s0, 128 }
   0x2   :  { %s14_s7 = sshll.u32 %s89_s6, 4  ;;  %p42_p0 = scmp.ne.s32.totalorder %s125_s0, %s41_s10  ;;  %s15_s7 = int_to_ptr.vmem [resolvable:$true] %s14_s7 }
   0x3   :  { %p45_p1 = scmp.lt.u32.totalorder %s41_s10, %s125_s0 }
   0x5   :  { %p47_p2 = pnand %p45_p1, %p42_p0 }
   0x7   :  { %50 = shalt.err (!%p47_p2)
}
   0x8   :  { %s51_s15 = scalar_lea.vmem %s15_s7, 128  ;;  %p56_p4 = scmp.lt.s32.totalorder %s15_s7, %s15_s7 }
   0x9   :  { %p52_p3 = scmp.ne.s32.totalorder %s15_s7, %s51_s15  ;;  %p57_p5 = scmp.lt.s32.totalorder %s51_s15, %s51_s15 }
   0xb   :  { %p58_p6 = por %p57_p5, %p56_p4 }
   0xd   :  { %p59_p7 = pnand %p58_p6, %p52_p3 }
   0xf   :  { %62 = shalt.err (!%p59_p7)
}
  0x10   :  { %17 = dma.hbm_to_vmem [thread:$0]  %s125_s0, 128, %s15_s7, [#allocation3]  }
  0x11   :  { %85 = dma.done.wait [#allocation3], 128  }
  0x12   :  { %86 = vsyncadd [#allocation3], 4294967168  ;;  %s90_s18 = smov [#allocation5]   ;;  %v21_v0 = vld [vmem:[#allocation2] sm:$0xff] }
  0x13   :  { %s30_s19 = sshll.u32 %s90_s18, 4  ;;  %v22_v1 = vadd.f32 1.0, %v21_v0  ;;  %s31_s19 = int_to_ptr.vmem [resolvable:$true] %s30_s19 }
  0x14   :  { %s63_s20 = scalar_lea.vmem %s31_s19, 128  ;;  %p68_p9 = scmp.lt.s32.totalorder %s31_s19, %s31_s19 }
  0x15   :  { %23 = vst [vmem:[#allocation5] sm:$0xff] %v22_v1  ;;  %p64_p8 = scmp.ne.s32.totalorder %s31_s19, %s63_s20  ;;  %p69_p10 = scmp.lt.s32.totalorder %s63_s20, %s63_s20 }
  0x17   :  { %p70_p11 = por %p69_p10, %p68_p9 }
  0x19   :  { %p71_p12 = pnand %p70_p11, %p64_p8 }
  0x1b   :  { %74 = shalt.err (!%p71_p12)
}
  0x1c   :  { %s75_s23 = scalar_lea.hbm %s126_s1, 128 }
  0x1d   :  { %p76_p13 = scmp.ne.s32.totalorder %s126_s1, %s75_s23  ;;  %p79_p0 = scmp.lt.u32.totalorder %s75_s23, %s126_s1 }
  0x1f   :  { %p81_p1 = pnand %p79_p0, %p76_p13 }
  0x21   :  { %84 = shalt.err (!%p81_p1)
}
  0x22   :  { %33 = dma.vmem_to_hbm [thread:$0]  %s31_s19, 128, %s126_s1, [#allocation4]  }
  0x23   :  { %87 = dma.done.wait [#allocation4], 128  }
  0x24   :  { %88 = vsyncadd [#allocation4], 4294967168 }
  0x25   :  { %37 = vsyncpa [#allocation3], 1 }
  0x26   :  { %38 = vsyncpa [#allocation4], 1 }

// kernel: hrnet_forward.7
= control target key start
LH: loop header
LB: loop body
LE: loop exit
PB: predicated region body
PF: predicated region fallthrough
CT: control target
= control target key end

     0   :  { %s2422_s24 = smov 0   ;;  %s2424_s25 = smov 0   ;;  %s2720_s0 = inlined_call_operand.vmem [shape: bf16[2,9,9,3], index: 0, kind: input, shape index: {}]   ;;  %s2721_s1 = inlined_call_operand.vmem [shape: bf16[2,9,9,3], index: 1, kind: input, shape index: {}]   ;;  %s2722_s2 = inlined_call_operand.vmem [shape: bf16[2,9,9,3], index: 2, kind: input, shape index: {}]   ;;  %s2723_s3 = inlined_call_operand.vmem [shape: bf16[2,9,9,3], index: 3, kind: input, shape index: {}]   ;;  %s2724_s4 = inlined_call_operand.vmem [shape: bf16[9,3,128], index: 4, kind: input, shape index: {}]   ;;  %s2725_s5 = inlined_call_operand.vmem [shape: f32[1,128], index: 5, kind: input, shape index: {}]   ;;  %s2726_s6 = inlined_call_operand.vmem [shape: f32[1,128], index: 6, kind: input, shape index: {}]   ;;  %s2727_s7 = inlined_call_operand.vmem [shape: bf16[2,8,8,128], index: 7, kind: output, shape index: {}]  }
   0x1   :  { %s2426_s26 = smov 0  }
   0x2 LB: > { %s29_s27 = sadd.s32 1, %s2375_s25  ;;  %p1959_p0 = scmp.ge.s32.totalorder %s2379_s26, 1  ;;  %s2379_s26 = sphi %s2426_s26, %s17_s26   ;;  %s2375_s25 = sphi %s2424_s25, %s2731_s25   ;;  %s2371_s24 = sphi %s2422_s24, %s2730_s24  }
   0x3   : > { %p31_p1 = scmp.ge.s32.totalorder %s29_s27, 2  ;;  %p281_p2 = scmp.lt.s32.totalorder %s2379_s26, 3 }
   0x5   : > { %s2733_s27 = smov (%p31_p1, %s29_s27), 0  ;;  %p282_p3 = pnand %p1959_p0, %p281_p2 }
   0x6   : > { %v1966_v0 = vld [vmem:[%s2724_s4 + $0x2] sm:$0x3] (!%p282_p3)  ;;  %vm421_vm0 = vcmask (!%p282_p3), 1040384   ;;  %vm422_vm1 = vcmask (!%p282_p3), 1041408   ;;  %p332_p4 = scmp.lt.s32.totalorder (!%p282_p3), %s2371_s24, 1  ;;  %v2381_v1 = vmov (!%p282_p3), 65535  }
   0x7   : > { %285 = sbr.rel (%p282_p3) target bundleno = 321 (0x141), region = 48  ;;  %v423_v2 = vsel (!%p282_p3), %vm421_vm0, 4294967295, %v2381_v1  ;;  %v2001_v3 = vld [vmem:[%s2724_s4 + $0x8] sm:$0x3] (!%p282_p3)  ;;  %v375_v4 = vld [vmem:[%s2724_s4] sm:$0x3] (!%p282_p3) }
   0x8   : > { %v2449_v5 = vsel (!%p282_p3), %vm422_vm1, %v423_v2, 0  ;;  %v2010_v6 = vld [vmem:[%s2724_s4 + $0xa] sm:$0x3] (!%p282_p3)  ;;  %vm408_vm2 = vcmask (!%p282_p3), 23552   ;;  %v2027_v11 = vld [vmem:[%s2724_s4 + $0xc] sm:$0x3] (!%p282_p3) }
   0x9   : > { %v426_v7 = vand.u32 (!%p282_p3), %v1966_v0, %v2449_v5  ;;  %v2458_v8 = vand.u32 (!%p282_p3), %v2001_v3, %v2449_v5  ;;  %v526_v9 = vand.u32 (!%p282_p3), %v2449_v5, %v375_v4  ;;  %v1221_v10 = vand.u32 (!%p282_p3), %v2010_v6, %v2449_v5  ;;  %v1983_v12 = vld [vmem:[%s2724_s4 + $0x4] sm:$0x3] (!%p282_p3)  ;;  %v2044_v43 = vld [vmem:[%s2724_s4 + $0xe] sm:$0x3] (!%p282_p3)  ;;  %v1992_v48 = vld [vmem:[%s2724_s4 + $0x6] sm:$0x3] (!%p282_p3) }
   0xa   : > { %vm609_vm3 = vsmask.f32 (!%p282_p3), 3328  ;;  %v2498_v17 = vand.u32 (!%p282_p3), %v2027_v11, %v2449_v5  ;;  %v2501_v18 = vand.u32 (!%p282_p3), %v1983_v12, %v2449_v5  ;;  %vm610_vm4 = vsmask.f32 (!%p282_p3), 7440  ;;  %v2079_v49 = vld [vmem:[%s2726_s6] ss:$0 sm:$0xff] (!%p282_p3) }
   0xb   : > { %2151 = vmatprep.subr.bf16.mxu1 (!%p282_p3), %v426_v7  ;;  %2191 = vmatprep.subr.bf16.mxu0 (!%p282_p3), %v2458_v8  ;;  %vm2533_vm5 = vmor (!%p282_p3), %vm609_vm3, %vm610_vm4  ;;  %v2545_v3 = vand.u32 (!%p282_p3), %v2044_v43, %v2449_v5  ;;  %v2552_v11 = vand.u32 (!%p282_p3), %v1992_v48, %v2449_v5 }
   0xc   : > { %2152 = vmatpush3.bf16.msra.mxu1 (!%p282_p3), %v426_v7  ;;  %2192 = vmatpush3.bf16.msra.mxu0 (!%p282_p3), %v2458_v8 }
   0xd   : > { %2161 = vmatprep.subr.bf16.mxu1 (!%p282_p3), %v526_v9  ;;  %2201 = vmatprep.subr.bf16.mxu0 (!%p282_p3), %v1221_v10 }
   0xe   : > { %s2735_s24 = smov (!%p332_p4, %s2371_s24), 1 }
   0xf   : > { %s2463_s13 = smul.u32 72, %s2735_s24  ;;  %s2082_s21 = sshll.u32 %s2735_s24, 5 }
  0x10   : > { %s2705_s28 = scalar_lea.vmem %s2727_s7, %s2082_s21 }
  0x11   : > { %s2471_s16 = scalar_lea.vmem %s2721_s1, %s2463_s13  ;;  %s2484_s23 = scalar_lea.vmem %s2723_s3, %s2463_s13 }
  0x12   : > { %v2333_v13 = vld [vmem:[%s2471_s16] ss:$8 sps:$4 sm:$0xff]   ;;  %v2335_v15 = vld [vmem:[%s2471_s16 + $0x10] ss:$8 sps:$4 sm:$0xff]   ;;  %s2493_s30 = scalar_lea.vmem %s2722_s2, %s2463_s13  ;;  %s2521_s10 = scalar_lea.vmem %s2720_s0, %s2463_s13 }
  0x13   : > { %v2334_v14 = vld [vmem:[%s2484_s23] ss:$8 sps:$4 sm:$0xff]   ;;  %2153 = vmatprep.mubr.msk.bf16.mxu1 %vm408_vm2, %v2333_v13  ;;  %v2336_v16 = vld [vmem:[%s2484_s23 + $0x10] ss:$8 sps:$4 sm:$0xff]   ;;  %v1067_v22 = vld [vmem:[%s2493_s30 + $0x4] sm:$0x1] }
  0x14   : > { %2193 = vmatprep.mubr.msk.bf16.mxu0 %vm408_vm2, %v2334_v14  ;;  %2154 = vmatmul.mubr.msk.bf16.vlgmr.msra.gmra.mrb[0].mxu1 %vm408_vm2, %v2335_v15  ;;  %v2337_v19 = vld [vmem:[%s2471_s16 + $0x20] ss:$8 sps:$4 sm:$0xff]   ;;  %v2338_v20 = vld [vmem:[%s2471_s16 + $0x30] ss:$8 sps:$4 sm:$0xff]   ;;  %v1069_v24 = vld [vmem:[%s2493_s30 + $0xc] sm:$0x1] }
  0x15   : > { %2162 = vmatpush3.bf16.msra.mxu1 %v526_v9  ;;  %2194 = vmatmul.mubr.msk.bf16.vlgmr.msra.gmra.mrb[0].mxu0 %vm408_vm2, %v2336_v16  ;;  %v1066_v21 = vld [vmem:[%s2493_s30] sm:$0xf]  ;;  %v1068_v23 = vld [vmem:[%s2493_s30 + $0x8] sm:$0xf]  ;;  %v1092_v27 = vshll.u32 %v1067_v22, 16  ;;  %v1106_v30 = vshll.u32 %v1069_v24, 16 }
  0x16   : > { %2202 = vmatpush3.bf16.msra.mxu0 %v1221_v10  ;;  %2157 = vmatprep.mubr.msk.bf16.mxu1 %vm408_vm2, %v2337_v19  ;;  %v1083_v25 = vshrl.u32 %v1066_v21, 16  ;;  %v1086_v26 = vshll.u32 %v1066_v21, 16  ;;  %v1097_v28 = vshrl.u32 %v1068_v23, 16  ;;  %v1100_v29 = vshll.u32 %v1068_v23, 16  ;;  %v1070_v31 = vld [vmem:[%s2493_s30 + $0x10] sm:$0xf] }
  0x17   : > { %2211 = vmatprep.subr.bf16.mxu0 %v2498_v17  ;;  %2171 = vmatprep.subr.bf16.mxu1 %v2501_v18  ;;  %v1071_v32 = vld [vmem:[%s2493_s30 + $0x14] sm:$0x1]  ;;  %v1094_v35 = vrot.slane %v1092_v27, 5  ;;  %v1072_v37 = vld [vmem:[%s2493_s30 + $0x18] sm:$0xf]  ;;  %v1108_v39 = vrot.slane %v1106_v30, 5 }
  0x18   : > { %v1085_v33 = vrot.slane %v1083_v25, 4  ;;  %v1088_v34 = vrot.slane %v1086_v26, 5  ;;  %v1099_v36 = vrot.slane %v1097_v28, 4  ;;  %v1102_v38 = vrot.slane %v1100_v29, 5  ;;  %v1073_v40 = vld [vmem:[%s2493_s30 + $0x1c] sm:$0x1] }
  0x19   : > { %v1111_v41 = vshrl.u32 %v1070_v31, 16  ;;  %v1114_v42 = vshll.u32 %v1070_v31, 16  ;;  %v1120_v45 = vshll.u32 %v1071_v32, 16  ;;  %v1125_v46 = vshrl.u32 %v1072_v37, 16  ;;  %v2339_v58 = vld [vmem:[%s2521_s10] ss:$8 sps:$4 sm:$0xff]  }
  0x1a   : > { %v1089_v44 = vor.u32 %v1088_v34, %v1085_v33  ;;  %v1128_v47 = vshll.u32 %v1072_v37, 16  ;;  %v1103_v50 = vor.u32 %v1102_v38, %v1099_v36  ;;  %v1134_v53 = vshll.u32 %v1073_v40, 16  ;;  %v2340_v0 = vld [vmem:[%s2521_s10 + $0x10] ss:$8 sps:$4 sm:$0xff]   ;;  %v1074_v1 = vld [vmem:[%s2493_s30 + $0x20] sm:$0xf] }
  0x1b   : > { %v1113_v51 = vrot.slane %v1111_v41, 4  ;;  %v1116_v52 = vrot.slane %v1114_v42, 5  ;;  %v1122_v55 = vrot.slane %v1120_v45, 5  ;;  %v1127_v56 = vrot.slane %v1125_v46, 4  ;;  %v1075_v2 = vld [vmem:[%s2493_s30 + $0x24] sm:$0x1] }
  0x1c   : > { %2158 = vmatmul.mubr.msk.bf16.gmra.mrb[4].mxu1 %vm408_vm2, %v2338_v20  ;;  %v1090_v54 = vrot.slane %v1089_v44, 4  ;;  %v1130_v57 = vrot.slane %v1128_v47, 5  ;;  %v1104_v59 = vrot.slane %v1103_v50, 4  ;;  %v1136_v61 = vrot.slane %v1134_v53, 5  ;;  %v1076_v7 = vld [vmem:[%s2493_s30 + $0x28] sm:$0xf] }
  0x1d   : > { %v1117_v60 = vor.u32 %v1116_v52, %v1113_v51  ;;  %2163 = vmatprep.mubr.msk.bf16.mxu1 %vm408_vm2, %v2339_v58  ;;  %v1077_v9 = vld [vmem:[%s2493_s30 + $0x2c] sm:$0x1]  ;;  %v1139_v10 = vshrl.u32 %v1074_v1, 16  ;;  %v1142_v14 = vshll.u32 %v1074_v1, 16  ;;  %v1148_v15 = vshll.u32 %v1075_v2, 16 }
  0x1e   : > { %v1095_v62 = vsel %vm2533_vm5, %v1090_v54, %v1094_v35  ;;  %v1131_v63 = vor.u32 %v1130_v57, %v1127_v56  ;;  %v1109_v4 = vsel %vm2533_vm5, %v1104_v59, %v1108_v39  ;;  %v1078_v16 = vld [vmem:[%s2493_s30 + $0x30] sm:$0xf]  ;;  %v1153_v21 = vshrl.u32 %v1076_v7, 16  ;;  %v1079_v23 = vld [vmem:[%s2493_s30 + $0x34] sm:$0x1] }
  0x1f   : > { %v1118_v6 = vrot.slane %v1117_v60, 4  ;;  %v2011_v12 = vcombine.low %v1095_v62, %v1109_v4  ;;  %v1141_v20 = vrot.slane %v1139_v10, 4  ;;  %v1156_v22 = vshll.u32 %v1076_v7, 16  ;;  %v1080_v28 = vld [vmem:[%s2493_s30 + $0x38] sm:$0xf] }
  0x20   : > { %v1132_v13 = vrot.slane %v1131_v63, 4  ;;  %v1144_v25 = vrot.slane %v1142_v14, 5  ;;  %v1150_v26 = vrot.slane %v1148_v15, 5  ;;  %v1162_v27 = vshll.u32 %v1077_v9, 16  ;;  %v1081_v32 = vld [vmem:[%s2493_s30 + $0x3c] sm:$0x1] }
  0x21   : > { %v1123_v19 = vsel %vm2533_vm5, %v1118_v6, %v1122_v55  ;;  %2203 = vmatprep.mubr.msk.bf16.mxu0 %vm408_vm2, %v2011_v12  ;;  %v1155_v30 = vrot.slane %v1153_v21, 4  ;;  %v1158_v31 = vrot.slane %v1156_v22, 5  ;;  %v1167_v33 = vshrl.u32 %v1078_v16, 16  ;;  %v2341_v45 = vld [vmem:[%s2521_s10 + $0x20] ss:$8 sps:$4 sm:$0xff]  }
  0x22   : > { %v1137_v24 = vsel %vm2533_vm5, %v1132_v13, %v1136_v61  ;;  %v1145_v34 = vor.u32 %v1144_v25, %v1141_v20  ;;  %v1164_v35 = vrot.slane %v1162_v27, 5  ;;  %v1170_v36 = vshll.u32 %v1078_v16, 16  ;;  %v2343_v58 = vld [vmem:[%s2521_s10 + $0x8] ss:$8 sps:$4 sm:$0xff]   ;;  %v593_v59 = vld [vmem:[%s2521_s10] sm:$0xf] }
  0x23   : > { %v2012_v29 = vcombine.low %v1123_v19, %v1137_v24  ;;  %v1176_v37 = vshll.u32 %v1079_v23, 16  ;;  %v1159_v38 = vor.u32 %v1158_v31, %v1155_v30  ;;  %v1169_v39 = vrot.slane %v1167_v33, 4  ;;  %v594_v61 = vld [vmem:[%s2521_s10 + $0x4] sm:$0x1]  ;;  %v595_v62 = vld [vmem:[%s2521_s10 + $0x8] sm:$0xf] }
  0x24   : > { %2164 = vmatmul.mubr.msk.bf16.vlgmr.msra.gmra.mrb[0].mxu1 %vm408_vm2, %v2340_v0  ;;  %v1181_v40 = vshrl.u32 %v1080_v28, 16  ;;  %v1184_v41 = vshll.u32 %v1080_v28, 16  ;;  %v1146_v42 = vrot.slane %v1145_v34, 4  ;;  %v1172_v43 = vrot.slane %v1170_v36, 5  ;;  %v596_v63 = vld [vmem:[%s2521_s10 + $0xc] sm:$0x1] }
  0x25   : > { %2172 = vmatpush3.bf16.msra.mxu1 %v2501_v18  ;;  %2204 = vmatmul.mubr.msk.bf16.vlgmr.msra.gmra.mrb[0].mxu0 %vm408_vm2, %v2012_v29  ;;  %v1190_v44 = vshll.u32 %v1081_v32, 16  ;;  %v1160_v18 = vrot.slane %v1159_v38, 4  ;;  %v1178_v51 = vrot.slane %v1176_v37, 5  ;;  %v613_v1 = vshrl.u32 %v593_v59, 16  ;;  %v597_v6 = vld [vmem:[%s2521_s10 + $0x10] sm:$0xf] }
  0x26   : > { %2181 = vmatprep.subr.bf16.mxu1 %v2552_v11  ;;  %2212 = vmatpush3.bf16.msra.mxu0 %v2498_v17  ;;  %v1183_v46 = vrot.slane %v1181_v40, 4  ;;  %v1186_v47 = vrot.slane %v1184_v41, 5  ;;  %v1151_v48 = vsel %vm2533_vm5, %v1146_v42, %v1150_v26  ;;  %v1173_v50 = vor.u32 %v1172_v43, %v1169_v39  ;;  %v2342_v17 = vld [vmem:[%s2521_s10 + $0x30] ss:$8 sps:$4 sm:$0xff]   ;;  %v598_v13 = vld [vmem:[%s2521_s10 + $0x14] sm:$0x1] }
  0x27   : > { %2221 = vmatprep.subr.bf16.mxu0 %v2545_v3  ;;  %2167 = vmatprep.mubr.msk.bf16.mxu1 %vm408_vm2, %v2341_v45  ;;  %v1165_v52 = vsel %vm2533_vm5, %v1160_v18, %v1164_v35  ;;  %v1192_v54 = vrot.slane %v1190_v44, 5  ;;  %v616_v2 = vshll.u32 %v593_v59, 16  ;;  %v622_v4 = vshll.u32 %v594_v61, 16  ;;  %v599_v19 = vld [vmem:[%s2521_s10 + $0x18] sm:$0xf] }
  0x28   : > { %v1187_v53 = vor.u32 %v1186_v47, %v1183_v46  ;;  %v2013_v55 = vcombine.low %v1151_v48, %v1165_v52  ;;  %v1174_v56 = vrot.slane %v1173_v50, 4  ;;  %v627_v9 = vshrl.u32 %v595_v62, 16  ;;  %v600_v24 = vld [vmem:[%s2521_s10 + $0x1c] sm:$0x1]  ;;  %v2069_v26 = vld [vmem:[%s2724_s4 + $0x10] sm:$0x3] }
  0x29   : > { %v630_v10 = vshll.u32 %v595_v62, 16  ;;  %v636_v12 = vshll.u32 %v596_v63, 16  ;;  %v615_v14 = vrot.slane %v613_v1, 4  ;;  %v618_v15 = vrot.slane %v616_v2, 5  ;;  %v2344_v35 = vld [vmem:[%s2521_s10 + $0x18] ss:$8 sps:$4 sm:$0xff]  }
  0x2a   : > { %v1188_v57 = vrot.slane %v1187_v53, 4  ;;  %2207 = vmatprep.mubr.msk.bf16.mxu0 %vm408_vm2, %v2013_v55  ;;  %v1179_v60 = vsel %vm2533_vm5, %v1174_v56, %v1178_v51  ;;  %v624_v16 = vrot.slane %v622_v4, 5  ;;  %v641_v20 = vshrl.u32 %v597_v6, 16  ;;  %v2345_v42 = vld [vmem:[%s2521_s10 + $0x28] ss:$8 sps:$4 sm:$0xff]  }
  0x2b   : > { %v629_v21 = vrot.slane %v627_v9, 4  ;;  %v632_v22 = vrot.slane %v630_v10, 5  ;;  %v638_v23 = vrot.slane %v636_v12, 5  ;;  %v644_v25 = vshll.u32 %v597_v6, 16  ;;  %v601_v45 = vld [vmem:[%s2521_s10 + $0x20] sm:$0xf] }
  0x2c   : > { %2168 = vmatmul.mubr.msk.bf16.gmra.mrb[4].mxu1 %vm408_vm2, %v2342_v17  ;;  %v1193_v0 = vsel %vm2533_vm5, %v1188_v57, %v1192_v54  ;;  %v619_v27 = vor.u32 %v618_v15, %v615_v14  ;;  %v643_v28 = vrot.slane %v641_v20, 4  ;;  %v650_v29 = vshll.u32 %v598_v13, 16  ;;  %v602_v50 = vld [vmem:[%s2521_s10 + $0x24] sm:$0x1]  ;;  %v603_v51 = vld [vmem:[%s2521_s10 + $0x28] sm:$0xf] }
  0x2d   : > { %v2014_v7 = vcombine.low %v1179_v60, %v1193_v0  ;;  %v655_v30 = vshrl.u32 %v599_v19, 16  ;;  %v633_v31 = vor.u32 %v632_v22, %v629_v21  ;;  %v646_v32 = vrot.slane %v644_v25, 5  ;;  %v604_v53 = vld [vmem:[%s2521_s10 + $0x2c] sm:$0x1]  ;;  %v605_v60 = vld [vmem:[%s2521_s10 + $0x30] sm:$0xf] }
  0x2e   : > { %v658_v33 = vshll.u32 %v599_v19, 16  ;;  %v664_v34 = vshll.u32 %v600_v24, 16  ;;  %v620_v36 = vrot.slane %v619_v27, 4  ;;  %v652_v37 = vrot.slane %v650_v29, 5  ;;  %v606_v1 = vld [vmem:[%s2521_s10 + $0x34] sm:$0x1] }
  0x2f   : > { %2208 = vmatmul.mubr.msk.bf16.gmra.mrb[4].mxu0 %vm408_vm2, %v2014_v7  ;;  %v657_v38 = vrot.slane %v655_v30, 4  ;;  %v634_v39 = vrot.slane %v633_v31, 4  ;;  %v647_v40 = vor.u32 %v646_v32, %v643_v28  ;;  %v2602_v18 = vand.u32 %v2069_v26, %v2449_v5  ;;  %v2346_v4 = vld [vmem:[%s2521_s10 + $0x38] ss:$8 sps:$4 sm:$0xff]   ;;  %v608_v9 = vld [vmem:[%s2521_s10 + $0x3c] sm:$0x1] }
  0x30   : > { %2213 = vmatprep.mubr.msk.bf16.mxu0 %vm408_vm2, %v2343_v58  ;;  %v660_v41 = vrot.slane %v658_v33, 5  ;;  %v625_v43 = vsel %vm2533_vm5, %v620_v36, %v624_v16  ;;  %v666_v44 = vrot.slane %v664_v34, 5  ;;  %v669_v17 = vshrl.u32 %v601_v45, 16  ;;  %v607_v7 = vld [vmem:[%s2521_s10 + $0x38] sm:$0xf] }
  0x31   : > { %v639_v46 = vsel %vm2533_vm5, %v634_v39, %v638_v23  ;;  %v648_v47 = vrot.slane %v647_v40, 4  ;;  %v672_v54 = vshll.u32 %v601_v45, 16  ;;  %v678_v55 = vshll.u32 %v602_v50, 16  ;;  %v2347_v21 = vld [vmem:[%s2471_s16 + $0x8] ss:$8 sps:$4 sm:$0xff]  }
  0x32   : > { %v661_v48 = vor.u32 %v660_v41, %v657_v38  ;;  %v1984_v52 = vcombine.low %v625_v43, %v639_v46  ;;  %v683_v56 = vshrl.u32 %v603_v51, 16  ;;  %v671_v58 = vrot.slane %v669_v17, 4  ;;  %v2348_v38 = vld [vmem:[%s2471_s16 + $0x18] ss:$8 sps:$4 sm:$0xff]   ;;  %v2053_v43 = vld [vmem:[%s2521_s10 + $0x8] sm:$0xf] }
  0x33   : > { %v653_v5 = vsel %vm2533_vm5, %v648_v47, %v652_v37  ;;  %v686_v59 = vshll.u32 %v603_v51, 16  ;;  %v674_v61 = vrot.slane %v672_v54, 5  ;;  %v680_v62 = vrot.slane %v678_v55, 5  ;;  %v2349_v40 = vld [vmem:[%s2493_s30] ss:$8 sps:$4 sm:$0xff]  }
  0x34   : > { %v662_v57 = vrot.slane %v661_v48, 4  ;;  %2173 = vmatprep.mubr.msk.bf16.mxu1 %vm408_vm2, %v1984_v52  ;;  %v685_v63 = vrot.slane %v683_v56, 4  ;;  %v692_v0 = vshll.u32 %v604_v53, 16  ;;  %v697_v10 = vshrl.u32 %v605_v60, 16  ;;  %v2055_v45 = vld [vmem:[%s2521_s10 + $0x10] sm:$0xf] }
  0x35   : > { %v688_v6 = vrot.slane %v686_v59, 5  ;;  %v675_v12 = vor.u32 %v674_v61, %v671_v58  ;;  %v700_v14 = vshll.u32 %v605_v60, 16  ;;  %v706_v19 = vshll.u32 %v606_v1, 16  ;;  %v2056_v46 = vld [vmem:[%s2521_s10 + $0x14] sm:$0x1] }
  0x36   : > { %v667_v2 = vsel %vm2533_vm5, %v662_v57, %v666_v44  ;;  %v694_v13 = vrot.slane %v692_v0, 5  ;;  %v699_v16 = vrot.slane %v697_v10, 4  ;;  %v711_v20 = vshrl.u32 %v607_v7, 16  ;;  %v2054_v44 = vld [vmem:[%s2521_s10 + $0xc] sm:$0x1] }
  0x37   : > { %2214 = vmatmul.mubr.msk.bf16.vlgmr.msra.gmra.mrb[0].mxu0 %vm408_vm2, %v2344_v35  ;;  %v689_v15 = vor.u32 %v688_v6, %v685_v63  ;;  %v676_v22 = vrot.slane %v675_v12, 4  ;;  %v702_v23 = vrot.slane %v700_v14, 5  ;;  %v714_v24 = vshll.u32 %v607_v7, 16  ;;  %v2057_v53 = vld [vmem:[%s2521_s10 + $0x18] sm:$0xf] }
  0x38   : > { %2222 = vmatpush3.bf16.msra.mxu0 %v2545_v3  ;;  %2217 = vmatprep.mubr.msk.bf16.mxu0 %vm408_vm2, %v2345_v42  ;;  %v1985_v3 = vcombine.low %v653_v5, %v667_v2  ;;  %v720_v25 = vshll.u32 %v608_v9, 16  ;;  %v713_v27 = vrot.slane %v711_v20, 4  ;;  %v708_v30 = vrot.slane %v706_v19, 5  ;;  %v2351_v42 = vld [vmem:[%s2471_s16 + $0x28] ss:$8 sps:$4 sm:$0xff]  }
  0x39   : > { %2231 = vmatprep.subr.bf16.mxu0 %v2602_v18  ;;  %v690_v26 = vrot.slane %v689_v15, 4  ;;  %v681_v28 = vsel %vm2533_vm5, %v676_v22, %v680_v62  ;;  %v703_v29 = vor.u32 %v702_v23, %v699_v16  ;;  %v716_v31 = vrot.slane %v714_v24, 5  ;;  %v2058_v56 = vld [vmem:[%s2521_s10 + $0x1c] sm:$0x1]  ;;  %v2059_v5 = vld [vmem:[%s2521_s10 + $0x20] sm:$0xf] }
  0x3a   : > { %2174 = vmatmul.mubr.msk.bf16.vlgmr.msra.gmra.mrb[0].mxu1 %vm408_vm2, %v1985_v3  ;;  %v722_v35 = vrot.slane %v720_v25, 5  ;;  %v1555_v47 = vshrl.u32 %v2053_v43, 16  ;;  %v1558_v48 = vshll.u32 %v2053_v43, 16  ;;  %v1564_v50 = vshll.u32 %v2054_v44, 16  ;;  %v2350_v57 = vld [vmem:[%s2493_s30 + $0x10] ss:$8 sps:$4 sm:$0xff]  }
  0x3b   : > { %2182 = vmatpush3.bf16.msra.mxu1 %v2552_v11  ;;  %v695_v11 = vsel %vm2533_vm5, %v690_v26, %v694_v13  ;;  %v704_v33 = vrot.slane %v703_v29, 4  ;;  %v717_v34 = vor.u32 %v716_v31, %v713_v27  ;;  %v1569_v51 = vshrl.u32 %v2055_v45, 16  ;;  %v2352_v58 = vld [vmem:[%s2471_s16 + $0x38] ss:$8 sps:$4 sm:$0xff]   ;;  %v2060_v63 = vld [vmem:[%s2521_s10 + $0x24] sm:$0x1] }
  0x3c   : > { %2241 = vmatprep.subr.bf16.mxu1 %v2458_v8  ;;  %v1986_v32 = vcombine.low %v681_v28, %v695_v11  ;;  %v1572_v17 = vshll.u32 %v2055_v45, 16  ;;  %v1578_v52 = vshll.u32 %v2056_v46, 16  ;;  %v1557_v54 = vrot.slane %v1555_v47, 4  ;;  %v2353_v10 = vld [vmem:[%s2493_s30 + $0x20] ss:$8 sps:$4 sm:$0xff]  }
  0x3d   : > { %v709_v36 = vsel %vm2533_vm5, %v704_v33, %v708_v30  ;;  %v718_v37 = vrot.slane %v717_v34, 4  ;;  %v1560_v55 = vrot.slane %v1558_v48, 5  ;;  %v1566_v59 = vrot.slane %v1564_v50, 5  ;;  %v2062_v24 = vld [vmem:[%s2521_s10 + $0x2c] sm:$0x1] }
  0x3e   : > { %2177 = vmatprep.mubr.msk.bf16.mxu1 %vm408_vm2, %v1986_v32  ;;  %v1571_v60 = vrot.slane %v1569_v51, 4  ;;  %v1574_v61 = vrot.slane %v1572_v17, 5  ;;  %v1580_v62 = vrot.slane %v1578_v52, 5  ;;  %v1583_v1 = vshrl.u32 %v2057_v53, 16  ;;  %v2063_v25 = vld [vmem:[%s2521_s10 + $0x30] sm:$0xf] }
  0x3f   : > { %2218 = vmatmul.mubr.msk.bf16.gmra.mrb[4].mxu0 %vm408_vm2, %v2346_v4  ;;  %v723_v39 = vsel %vm2533_vm5, %v718_v37, %v722_v35  ;;  %v1561_v0 = vor.u32 %v1560_v55, %v1557_v54  ;;  %v1592_v2 = vshll.u32 %v2058_v56, 16  ;;  %v1597_v6 = vshrl.u32 %v2059_v5, 16  ;;  %v2064_v26 = vld [vmem:[%s2521_s10 + $0x34] sm:$0x1]  ;;  %v2354_v34 = vld [vmem:[%s2493_s30 + $0x30] ss:$8 sps:$4 sm:$0xff]  }
  0x40   : > { %2223 = vmatprep.mubr.msk.bf16.mxu0 %vm408_vm2, %v2347_v21  ;;  %v1987_v41 = vcombine.low %v709_v36, %v723_v39  ;;  %v1575_v4 = vor.u32 %v1574_v61, %v1571_v60  ;;  %v1600_v7 = vshll.u32 %v2059_v5, 16  ;;  %v1606_v9 = vshll.u32 %v2060_v63, 16  ;;  %v2061_v21 = vld [vmem:[%s2521_s10 + $0x28] sm:$0xf]  ;;  %v2065_v39 = vld [vmem:[%s2521_s10 + $0x38] sm:$0xf] }
  0x41   : > { %v1562_v3 = vrot.slane %v1561_v0, 4  ;;  %v1585_v12 = vrot.slane %v1583_v1, 4  ;;  %v1594_v14 = vrot.slane %v1592_v2, 5  ;;  %v1599_v16 = vrot.slane %v1597_v6, 4  ;;  %v2066_v43 = vld [vmem:[%s2521_s10 + $0x3c] sm:$0x1] }
  0x42   : > { %2178 = vmatmul.mubr.msk.bf16.gmra.mrb[4].mxu1 %vm408_vm2, %v1987_v41  ;;  %v1576_v15 = vrot.slane %v1575_v4, 4  ;;  %v1602_v19 = vrot.slane %v1600_v7, 5  ;;  %v1608_v20 = vrot.slane %v1606_v9, 5  ;;  %v1611_v29 = vshrl.u32 %v2061_v21, 16  ;;  %v2067_v47 = vld [vmem:[%s2521_s10 + $0x40] sm:$0xf] }
  0x43   : > { %2183 = vmatprep.mubr.msk.bf16.mxu1 %vm408_vm2, %v2349_v40  ;;  %v1567_v22 = vsel %vm2533_vm5, %v1562_v3, %v1566_v59  ;;  %v1614_v30 = vshll.u32 %v2061_v21, 16  ;;  %v1620_v32 = vshll.u32 %v2062_v24, 16  ;;  %v1625_v33 = vshrl.u32 %v2063_v25, 16  ;;  %v2068_v48 = vld [vmem:[%s2521_s10 + $0x44] sm:$0x1] }
  0x44   : > { %v1581_v27 = vsel %vm2533_vm5, %v1576_v15, %v1580_v62  ;;  %v1603_v28 = vor.u32 %v1602_v19, %v1599_v16  ;;  %v1613_v36 = vrot.slane %v1611_v29, 4  ;;  %v1639_v50 = vshrl.u32 %v2065_v39, 16  ;;  %v2355_v17 = vld [vmem:[%s2484_s23 + $0x20] ss:$8 sps:$4 sm:$0xff]  }
  0x45   : > { %v2070_v31 = vcombine.low %v1567_v22, %v1581_v27  ;;  %v1616_v37 = vrot.slane %v1614_v30, 5  ;;  %v1622_v40 = vrot.slane %v1620_v32, 5  ;;  %v1627_v41 = vrot.slane %v1625_v33, 4  ;;  %v2078_v22 = vld [vmem:[%s2725_s5] ss:$0 sm:$0xff] }
  0x46   : > { %v1604_v35 = vrot.slane %v1603_v28, 4  ;;  %v1648_v54 = vshll.u32 %v2066_v43, 16  ;;  %v1641_v5 = vrot.slane %v1639_v50, 4  ;;  %v1656_v59 = vshll.u32 %v2067_v47, 16 }
  0x47   : > { %2224 = vmatmul.mubr.msk.bf16.vlgmr.msra.gmra.mrb[0].mxu0 %vm408_vm2, %v2348_v38  ;;  %v1628_v38 = vshll.u32 %v2063_v25, 16  ;;  %v1617_v45 = vor.u32 %v1616_v37, %v1613_v36  ;;  %v1662_v60 = vshll.u32 %v2068_v48, 16 }
  0x48   : > { %2232 = vmatpush3.bf16.msra.mxu0 %v2602_v18  ;;  %2227 = vmatprep.mubr.msk.bf16.mxu0 %vm408_vm2, %v2351_v42  ;;  %v1586_v18 = vshll.u32 %v2057_v53, 16  ;;  %v1634_v42 = vshll.u32 %v2064_v26, 16  ;;  %v1609_v44 = vsel %vm2533_vm5, %v1604_v35, %v1608_v20  ;;  %v1642_v53 = vshll.u32 %v2065_v39, 16 }
  0x49   : > { %v1630_v46 = vrot.slane %v1628_v38, 5  ;;  %v1618_v55 = vrot.slane %v1617_v45, 4  ;;  %v1650_v1 = vrot.slane %v1648_v54, 5  ;;  %v1664_v9 = vrot.slane %v1662_v60, 5 }
  0x4a   : > { %v1588_v13 = vrot.slane %v1586_v18, 5  ;;  %2184 = vmatmul.mubr.msk.bf16.vlgmr.msra.gmra.mrb[0].mxu1 %vm408_vm2, %v2350_v57  ;;  %v1636_v52 = vrot.slane %v1634_v42, 5  ;;  %v1653_v57 = vshrl.u32 %v2067_v47, 16  ;;  %v1658_v18 = vrot.slane %v1656_v59, 5 }
  0x4b   : > { %2242 = vmatpush3.bf16.msra.mxu1 %v2458_v8  ;;  %2187 = vmatprep.mubr.msk.bf16.mxu1 %vm408_vm2, %v2353_v10  ;;  %v1631_v56 = vor.u32 %v1630_v46, %v1627_v41  ;;  %v1623_v61 = vsel %vm2533_vm5, %v1618_v55, %v1622_v40 }
  0x4c   : > { %v1589_v23 = vor.u32 %v1588_v13, %v1585_v12  ;;  %v1655_v63 = vrot.slane %v1653_v57, 4  ;;  %v2356_v13 = vld [vmem:[%s2484_s23 + $0x30] ss:$8 sps:$4 sm:$0xff]  }
  0x4d   : > { %v1632_v62 = vrot.slane %v1631_v56, 4 }
  0x4e   : > { %v1590_v11 = vrot.slane %v1589_v23, 4  ;;  %v1659_v7 = vor.u32 %v1658_v18, %v1655_v63 }
  0x4f   : > { %2228 = vmatmul.mubr.msk.bf16.gmra.mrb[4].mxu0 %vm408_vm2, %v2352_v58  ;;  %v1644_v58 = vrot.slane %v1642_v53, 5  ;;  %v1637_v2 = vsel %vm2533_vm5, %v1632_v62, %v1636_v52 }
  0x50   : > { %2233 = vmatprep.mubr.msk.bf16.mxu0 %vm408_vm2, %v2070_v31  ;;  %v1595_v8 = vsel %vm2533_vm5, %v1590_v11, %v1594_v14  ;;  %v2072_v4 = vcombine.low %v1623_v61, %v1637_v2  ;;  %v1660_v3 = vrot.slane %v1659_v7, 4 }
  0x51   : > { %v2071_v51 = vcombine.low %v1595_v8, %v1609_v44  ;;  %v1645_v0 = vor.u32 %v1644_v58, %v1641_v5 }
  0x52   : > { %2188 = vmatmul.mubr.msk.bf16.gmra.mrb[4].mxu1 %vm408_vm2, %v2354_v34  ;;  %v1665_v12 = vsel %vm2533_vm5, %v1660_v3, %v1664_v9 }
  0x53   : > { %2197 = vmatprep.mubr.msk.bf16.mxu1 %vm408_vm2, %v2355_v17  ;;  %v1646_v6 = vrot.slane %v1645_v0, 4 }
  0x55   : > { %v1651_v10 = vsel %vm2533_vm5, %v1646_v6, %v1650_v1 }
  0x56   : > { %v2073_v14 = vcombine.low %v1651_v10, %v1665_v12 }
  0x57   : > { %2234 = vmatmul.mubr.msk.bf16.vlgmr.msra.gmra.mrb[0].mxu0 %vm408_vm2, %v2071_v51 }
  0x58   : > { %2237 = vmatprep.mubr.msk.bf16.mxu0 %vm408_vm2, %v2072_v4 }
  0x5e   : > { %2198 = vmatmul.mubr.msk.bf16.vlgmr.msra.gmra.mrb[4].mxu1 %vm408_vm2, %v2356_v13 }
  0x5f   : > { %2238 = vmatmul.mubr.msk.bf16.gmra.mrb[4].mxu0 %vm408_vm2, %v2073_v14 }
 0x11d   : > { %v2185_v15 = vpop.f32.mrb[0].mxu1 }
 0x11e   : > { %v907_v16 = vpop.f32.mrb[1].mxu1 }
 0x11f   : > { %v2186_v19 = vpop.f32.mrb[2].mxu1 }
 0x120   : > { %v910_v20 = vpop.f32.mrb[3].mxu1 }
 0x12a   : > { %v2235_v21 = vpop.f32.mrb[0].mxu0 }
 0x12b   : > { %v2243_v23 = vadd.f32 %v2235_v21, %v2185_v15  ;;  %v1729_v24 = vpop.f32.mrb[1].mxu0 }
 0x12c   : > { %v2244_v25 = vadd.f32 %v1729_v24, %v907_v16  ;;  %v2236_v26 = vpop.f32.mrb[2].mxu0 }
 0x12d   : > { %v1777_v27 = vmul.f32 %v2243_v23, %v2078_v22  ;;  %v2245_v28 = vadd.f32 %v2236_v26, %v2186_v19  ;;  %v1732_v29 = vpop.f32.mrb[3].mxu0 }
 0x12e   : > { %v1775_v30 = vmul.f32 %v2244_v25, %v2078_v22  ;;  %v2246_v31 = vadd.f32 %v1732_v29, %v910_v20 }
 0x12f   : > { %v1792_v11 = vadd.f32 %v2079_v49, %v1777_v27  ;;  %v1778_v32 = vmul.f32 %v2245_v28, %v2078_v22 }
 0x130   : > { %v1790_v33 = vadd.f32 %v2079_v49, %v1775_v30  ;;  %v1776_v34 = vmul.f32 %v2246_v31, %v2078_v22 }
 0x131   : > { %v1793_v35 = vadd.f32 %v2079_v49, %v1778_v32  ;;  %v1800_v37 = vmax.f32 %v1792_v11, 0.0  ;;  %v2199_v44 = vpop.f32.mrb[4].mxu1 }
 0x132   : > { %v1791_v36 = vadd.f32 %v2079_v49, %v1776_v34  ;;  %v1798_v39 = vmax.f32 %v1790_v33, 0.0  ;;  %v2239_v40 = vpop.f32.mrb[4].mxu0  ;;  %v1043_v47 = vpop.f32.mrb[5].mxu1 }
 0x133   : > { %v1801_v38 = vmax.f32 %v1793_v35, 0.0  ;;  %v1745_v42 = vpop.f32.mrb[5].mxu0  ;;  %v2247_v46 = vadd.f32 %v2239_v40, %v2199_v44  ;;  %v2200_v51 = vpop.f32.mrb[6].mxu1 }
 0x134   : > { %v1799_v8 = vmax.f32 %v1791_v36, 0.0  ;;  %v2240_v45 = vpop.f32.mrb[6].mxu0  ;;  %v2248_v50 = vadd.f32 %v1745_v42, %v1043_v47  ;;  %v1046_v53 = vpop.f32.mrb[7].mxu1 }
 0x135   : > { %v2091_v41 = vpack.c.bf16 %v1801_v38, %v1800_v37  ;;  %v1748_v48 = vpop.f32.mrb[7].mxu0  ;;  %v1781_v17 = vmul.f32 %v2247_v46, %v2078_v22  ;;  %v2249_v52 = vadd.f32 %v2240_v45, %v2200_v51 }
 0x136   : > { %v2086_v43 = vpack.c.bf16 %v1799_v8, %v1798_v39  ;;  %v1779_v54 = vmul.f32 %v2248_v50, %v2078_v22  ;;  %v2250_v55 = vadd.f32 %v1748_v48, %v1046_v53 }
 0x137   : > { %2103 = vst [vmem:[%s2705_s28 + $0x8] sm:$0xff] %v2091_v41   ;;  %v1796_v56 = vadd.f32 %v2079_v49, %v1781_v17  ;;  %v1782_v5 = vmul.f32 %v2249_v52, %v2078_v22 }
 0x138   : > { %2087 = vst [vmem:[%s2705_s28] sm:$0xff] %v2086_v43   ;;  %v1794_v57 = vadd.f32 %v2079_v49, %v1779_v54  ;;  %v1780_v58 = vmul.f32 %v2250_v55, %v2078_v22 }
 0x139   : > { %v1797_v59 = vadd.f32 %v2079_v49, %v1782_v5  ;;  %v1804_v61 = vmax.f32 %v1796_v56, 0.0 }
 0x13a   : > { %v1795_v60 = vadd.f32 %v2079_v49, %v1780_v58  ;;  %v1802_v63 = vmax.f32 %v1794_v57, 0.0 }
 0x13b   : > { %v1805_v62 = vmax.f32 %v1797_v59, 0.0 }
 0x13c   : > { %v1803_v0 = vmax.f32 %v1795_v60, 0.0 }
 0x13d   : > { %v2101_v1 = vpack.c.bf16 %v1805_v62, %v1804_v61 }
 0x13e   : > { %v2096_v18 = vpack.c.bf16 %v1803_v0, %v1802_v63 }
 0x13f   : > { %2105 = vst [vmem:[%s2705_s28 + $0x18] sm:$0xff] %v2101_v1  }
 0x140   : > { %2104 = vst [vmem:[%s2705_s28 + $0x10] sm:$0xff] %v2096_v18  }
 0x141 PF: > { %s17_s26 = sadd.s32 1, %s2379_s26   ;;  %s2730_s24 = smov %s2375_s25 }
 0x142   : > { %p14_p5 = scmp.ge.s32.totalorder %s17_s26, 4   ;;  %s2731_s25 = smov %s2733_s27 }
 0x144   :  { %16 = sbr.rel (!%p14_p5) target bundleno = 2 (0x2), region = 101 }

// kernel: hrnet_forward.8
= control target key start
LH: loop header
LB: loop body
LE: loop exit
PB: predicated region body
PF: predicated region fallthrough
CT: control target
= control target key end

     0   :  { %s2738_s24 = smov 0   ;;  %s2740_s25 = smov 0   ;;  %s3190_s0 = inlined_call_operand.vmem [shape: bf16[2,5,5,128], index: 0, kind: input, shape index: {}]   ;;  %s3191_s1 = inlined_call_operand.vmem [shape: bf16[2,5,5,128], index: 1, kind: input, shape index: {}]   ;;  %s3192_s2 = inlined_call_operand.vmem [shape: bf16[2,5,5,128], index: 2, kind: input, shape index: {}]   ;;  %s3193_s3 = inlined_call_operand.vmem [shape: bf16[2,5,5,128], index: 3, kind: input, shape index: {}]   ;;  %s3194_s4 = inlined_call_operand.vmem [shape: bf16[9,128,128], index: 4, kind: input, shape index: {}]   ;;  %s3195_s5 = inlined_call_operand.vmem [shape: f32[1,128], index: 5, kind: input, shape index: {}]   ;;  %s3196_s6 = inlined_call_operand.vmem [shape: f32[1,128], index: 6, kind: input, shape index: {}]   ;;  %s3197_s7 = inlined_call_operand.vmem [shape: bf16[2,4,4,128], index: 7, kind: output, shape index: {}]  }
   0x1   :  { %s2742_s26 = smov 0  }
   0x2 LB: > { %s29_s27 = sadd.s32 1, %s2689_s25  ;;  %p2020_p0 = scmp.ge.s32.totalorder %s2693_s26, 1  ;;  %s2693_s26 = sphi %s2742_s26, %s17_s26   ;;  %s2689_s25 = sphi %s2740_s25, %s3205_s25   ;;  %s2685_s24 = sphi %s2738_s24, %s3204_s24  }
   0x3   : > { %p31_p1 = scmp.ge.s32.totalorder %s29_s27, 2  ;;  %p281_p2 = scmp.lt.s32.totalorder %s2693_s26, 3 }
   0x5   : > { %s3207_s27 = smov (%p31_p1, %s29_s27), 0  ;;  %p282_p3 = pnand %p2020_p0, %p281_p2 }
   0x6   : > { %v2575_v0 = vld [vmem:[%s3194_s4 + $0x40] sm:$0xff] (!%p282_p3)   ;;  %v2695_v1 = vmov (!%p282_p3), 0.0   ;;  %v2577_v3 = vld [vmem:[%s3194_s4 + $0x48] sm:$0xff] (!%p282_p3)   ;;  %vm2696_vm0 = vmmov (!%p282_p3), 0   ;;  %p332_p4 = scmp.lt.s32.totalorder (!%p282_p3), %s2685_s24, 1  ;;  %v2579_v5 = vld [vmem:[%s3194_s4 + $0x50] sm:$0xff] (!%p282_p3)   ;;  %v418_v9 = vlaneseq (!%p282_p3) }
   0x7   : > { %285 = sbr.rel (%p282_p3) target bundleno = 395 (0x18b), region = 48  ;;  %2337 = vmatprep.subr.bf16.mxu1 (!%p282_p3), %v2695_v1  ;;  %2417 = vmatprep.subr.bf16.mxu0 (!%p282_p3), %v2695_v1  ;;  %v2576_v2 = vld [vmem:[%s3194_s4 + $0x100] sm:$0xff] (!%p282_p3)   ;;  %v2578_v4 = vld [vmem:[%s3194_s4 + $0x108] sm:$0xff] (!%p282_p3)   ;;  %v2580_v6 = vld [vmem:[%s3194_s4 + $0x110] sm:$0xff] (!%p282_p3)   ;;  %v2697_v16 = vmov (!%p282_p3), 1983009808  }
   0x8   : > { %2338 = vmatpush3.bf16.msra.mxu1 (!%p282_p3), %v2575_v0  ;;  %2353 = vmatprep.mubr.msk.bf16.mxu1 (!%p282_p3), %vm2696_vm0, %v2695_v1  ;;  %v2581_v7 = vld [vmem:[%s3194_s4 + $0x58] sm:$0xff] (!%p282_p3)   ;;  %v2583_v10 = vld [vmem:[%s3194_s4 + $0x60] sm:$0xff] (!%p282_p3)   ;;  %v2585_v12 = vld [vmem:[%s3194_s4 + $0x68] sm:$0xff] (!%p282_p3)   ;;  %v419_v14 = vshrl.u32 (!%p282_p3), %v418_v9, 7  ;;  %v416_v17 = vunpack.c.l.s4 (!%p282_p3), %v2697_v16  ;;  %vm671_vm1 = vsmask.f32 (!%p282_p3), 1280 }
   0x9   : > { %2418 = vmatpush3.bf16.msra.mxu0 (!%p282_p3), %v2576_v2  ;;  %2339 = vmatprep.subr.bf16.mxu1 (!%p282_p3), %v2695_v1  ;;  %v2582_v8 = vld [vmem:[%s3194_s4 + $0x118] sm:$0xff] (!%p282_p3)   ;;  %v2584_v11 = vld [vmem:[%s3194_s4 + $0x120] sm:$0xff] (!%p282_p3)   ;;  %v2586_v13 = vld [vmem:[%s3194_s4 + $0x128] sm:$0xff] (!%p282_p3)   ;;  %vm672_vm2 = vsmask.f32 (!%p282_p3), 3336 }
   0xa   : > { %2419 = vmatprep.subr.bf16.mxu0 (!%p282_p3), %v2695_v1  ;;  %2433 = vmatprep.mubr.msk.bf16.mxu0 (!%p282_p3), %vm2696_vm0, %v2695_v1  ;;  %v2587_v18 = vld [vmem:[%s3194_s4 + $0x70] sm:$0xff] (!%p282_p3)   ;;  %v417_v20 = vunpack.c.0.s8 (!%p282_p3), %v416_v17  ;;  %v2589_v25 = vld [vmem:[%s3194_s4 + $0x78] sm:$0xff] (!%p282_p3)   ;;  %v2593_v28 = vld [vmem:[%s3194_s4] sm:$0xff] (!%p282_p3)   ;;  %vm674_vm3 = vsmask.f32 (!%p282_p3), 5392 }
   0xb   : > { %v2588_v23 = vld [vmem:[%s3194_s4 + $0x130] sm:$0xff] (!%p282_p3)   ;;  %v2590_v26 = vld [vmem:[%s3194_s4 + $0x138] sm:$0xff] (!%p282_p3)   ;;  %v2596_v30 = vld [vmem:[%s3194_s4 + $0x140] sm:$0xff] (!%p282_p3)   ;;  %vm676_vm4 = vsmask.f32 (!%p282_p3), 7448 }
   0xc   : > { %2340 = vmatpush3.bf16.msra.mxu1 (!%p282_p3), %v2577_v3  ;;  %v2836_v24 = vsub.s32 (!%p282_p3), %v417_v20, %v419_v14  ;;  %v2597_v31 = vld [vmem:[%s3194_s4 + $0x8] sm:$0xff] (!%p282_p3)   ;;  %v2599_v33 = vld [vmem:[%s3194_s4 + $0x10] sm:$0xff] (!%p282_p3)   ;;  %v2601_v35 = vld [vmem:[%s3194_s4 + $0x18] sm:$0xff] (!%p282_p3)  }
   0xd   : > { %2420 = vmatpush3.bf16.msra.mxu0 (!%p282_p3), %v2578_v4  ;;  %2341 = vmatprep.subr.bf16.mxu1 (!%p282_p3), %v2695_v1  ;;  %v2598_v32 = vld [vmem:[%s3194_s4 + $0x148] sm:$0xff] (!%p282_p3)   ;;  %v2600_v34 = vld [vmem:[%s3194_s4 + $0x150] sm:$0xff] (!%p282_p3)   ;;  %v2602_v36 = vld [vmem:[%s3194_s4 + $0x158] sm:$0xff] (!%p282_p3)  }
   0xe   : > { %s3209_s24 = smov (!%p332_p4, %s2685_s24), 1  ;;  %2421 = vmatprep.subr.bf16.mxu0 %v2695_v1  ;;  %vm2894_vm5 = vmor %vm671_vm1, %vm672_vm2  ;;  %v2603_v56 = vld [vmem:[%s3194_s4 + $0x20] sm:$0xff]  }
   0xf   : > { %s2798_s21 = smul.u32 20, %s3209_s24  ;;  %vm2906_vm6 = vmor %vm2894_vm5, %vm674_vm3  ;;  %v2604_v61 = vld [vmem:[%s3194_s4 + $0x160] sm:$0xff]   ;;  %s2255_s10 = sshll.u32 %s3209_s24, 3 }
  0x10   : > { %2342 = vmatpush3.bf16.msra.mxu1 %v2579_v5  ;;  %vm2921_vm7 = vmor %vm2906_vm6, %vm676_vm4  ;;  %v2640_v3 = vld [vmem:[%s3194_s4 + $0x1e0] sm:$0xff]   ;;  %s360_s12 = scalar_lea.vmem %s3197_s7, %s2255_s10 }
  0x11   : > { %2422 = vmatpush3.bf16.msra.mxu0 %v2580_v6  ;;  %2343 = vmatprep.subr.bf16.mxu1 %v2695_v1  ;;  %s2812_s9 = scalar_lea.vmem %s3191_s1, %s2798_s21  ;;  %s351_s16 = scalar_lea.vmem %s3193_s3, %s2798_s21 }
  0x12   : > { %2423 = vmatprep.subr.bf16.mxu0 %v2695_v1  ;;  %v2659_v15 = vld.sshfl [vmem:[%s2812_s9] sm:$0xf pattern:$0x76325410]  ;;  %s2880_s28 = scalar_lea.vmem %s3192_s2, %s2798_s21 }
  0x13   : > { %v2660_v19 = vld.sshfl [vmem:[%s2812_s9 + $0x8] sm:$0xf pattern:$0x76325410] }
  0x14   : > { %2344 = vmatpush3.bf16.msra.mxu1 %v2581_v7  ;;  %v2661_v21 = vld.sshfl [vmem:[%s351_s16] sm:$0xf pattern:$0x76325410]  ;;  %v429_v27 = vcombine.low %v2659_v15, %v2660_v19 }
  0x15   : > { %2424 = vmatpush3.bf16.msra.mxu0 %v2582_v8  ;;  %2345 = vmatprep.subr.bf16.mxu1 %v2695_v1  ;;  %v2662_v22 = vld.sshfl [vmem:[%s351_s16 + $0x8] sm:$0xf pattern:$0x76325410]  ;;  %s2862_s16 = scalar_lea.vmem %s3190_s0, %s2798_s21 }
  0x16   : > { %2425 = vmatprep.subr.bf16.mxu0 %v2695_v1  ;;  %v1039_v29 = vcombine.low %v2661_v21, %v2662_v22  ;;  %v2135_v37 = vld.sshfl [vmem:[%s2880_s28] sm:$0x13 pattern:$0x76325410]  ;;  %v2605_v8 = vld [vmem:[%s3194_s4 + $0x28] sm:$0xff]  }
  0x17   : > { %v2136_v39 = vld.sshfl [vmem:[%s2880_s28 + $0x4] sm:$0x13 pattern:$0x76325410]  ;;  %v1147_v40 = vcombine.high %v2135_v37, %v2135_v37  ;;  %v1173_v41 = vshrl.u32 %v2135_v37, 16  ;;  %v1176_v42 = vshll.u32 %v2135_v37, 16 }
  0x18   : > { %2346 = vmatpush3.bf16.msra.mxu1 %v2583_v10  ;;  %v2137_v43 = vld.sshfl [vmem:[%s2880_s28 + $0x8] sm:$0x13 pattern:$0x76325410]  ;;  %v1155_v44 = vcombine.high %v2136_v39, %v2136_v39  ;;  %v1187_v45 = vshrl.u32 %v2136_v39, 16  ;;  %v1190_v46 = vshll.u32 %v2136_v39, 16 }
  0x19   : > { %2426 = vmatpush3.bf16.msra.mxu0 %v2584_v11  ;;  %2347 = vmatprep.subr.bf16.mxu1 %v2695_v1  ;;  %v2138_v47 = vld.sshfl [vmem:[%s2880_s28 + $0xc] sm:$0x13 pattern:$0x76325410]  ;;  %v1163_v48 = vcombine.high %v2137_v43, %v2137_v43  ;;  %v1175_v49 = vrot.slane %v1173_v41, 6  ;;  %v1178_v50 = vrot.slane %v1176_v42, 7 }
  0x1a   : > { %2427 = vmatprep.subr.bf16.mxu0 %v2695_v1  ;;  %v1171_v52 = vcombine.high %v2138_v47, %v2138_v47  ;;  %v1182_v53 = vshll.u32 %v1147_v40, 16  ;;  %v1189_v54 = vrot.slane %v1187_v45, 6  ;;  %v1192_v55 = vrot.slane %v1190_v46, 7  ;;  %v2613_v37 = vld [vmem:[%s3194_s4 + $0x80] sm:$0xff]  }
  0x1b   : > { %v1179_v57 = vor.u32 %v1178_v50, %v1175_v49  ;;  %v1196_v58 = vshll.u32 %v1155_v44, 16  ;;  %v1201_v59 = vshrl.u32 %v2137_v43, 16  ;;  %v1204_v60 = vshll.u32 %v2137_v43, 16  ;;  %v2614_v40 = vld [vmem:[%s3194_s4 + $0x180] sm:$0xff]   ;;  %v2615_v50 = vld [vmem:[%s3194_s4 + $0x88] sm:$0xff]  }
  0x1c   : > { %2348 = vmatpush3.bf16.msra.mxu1 %v2585_v12  ;;  %v1184_v62 = vrot.slane %v1182_v53, 7  ;;  %v1193_v63 = vor.u32 %v1192_v55, %v1189_v54  ;;  %v1210_v0 = vshll.u32 %v1163_v48, 16  ;;  %v1215_v2 = vshrl.u32 %v2138_v47, 16  ;;  %v2606_v12 = vld [vmem:[%s3194_s4 + $0x168] sm:$0xff]  }
  0x1d   : > { %2428 = vmatpush3.bf16.msra.mxu0 %v2586_v13  ;;  %2349 = vmatprep.subr.bf16.mxu1 %v2695_v1  ;;  %v1180_v4 = vrot.slane %v1179_v57, 2  ;;  %v1198_v5 = vrot.slane %v1196_v58, 7  ;;  %v1203_v6 = vrot.slane %v1201_v59, 6  ;;  %v1206_v7 = vrot.slane %v1204_v60, 7  ;;  %v2616_v53 = vld [vmem:[%s3194_s4 + $0x188] sm:$0xff]  }
  0x1e   : > { %2429 = vmatprep.subr.bf16.mxu0 %v2695_v1  ;;  %v1194_v9 = vrot.slane %v1193_v63, 2  ;;  %v1217_v10 = vrot.slane %v1215_v2, 6  ;;  %v1218_v11 = vshll.u32 %v2138_v47, 16  ;;  %v1224_v14 = vshll.u32 %v1171_v52, 16 }
  0x1f   : > { %v1207_v13 = vor.u32 %v1206_v7, %v1203_v6  ;;  %v2663_v15 = vld.sshfl [vmem:[%s2862_s16] sm:$0xf pattern:$0x76325410]  ;;  %v1185_v17 = vsel %vm2921_vm7, %v1180_v4, %v1184_v62  ;;  %v1212_v19 = vrot.slane %v1210_v0, 7  ;;  %v2617_v4 = vld [vmem:[%s3194_s4 + $0x90] sm:$0xff]  }
  0x20   : > { %2350 = vmatpush3.bf16.msra.mxu1 %v2587_v18  ;;  %v2664_v16 = vld.sshfl [vmem:[%s2862_s16 + $0x8] sm:$0xf pattern:$0x76325410]  ;;  %v1199_v18 = vsel %vm2921_vm7, %v1194_v9, %v1198_v5  ;;  %v1220_v20 = vrot.slane %v1218_v11, 7  ;;  %v2618_v7 = vld [vmem:[%s3194_s4 + $0x190] sm:$0xff]  }
  0x21   : > { %2430 = vmatpush3.bf16.msra.mxu0 %v2588_v23  ;;  %2351 = vmatprep.subr.bf16.mxu1 %v2695_v1  ;;  %v1208_v21 = vrot.slane %v1207_v13, 2  ;;  %v1226_v23 = vrot.slane %v1224_v14, 7  ;;  %v2059_v39 = vld.sshfl [vmem:[%s2862_s16] sm:$0x13 pattern:$0x76325410] }
  0x22   : > { %2431 = vmatprep.subr.bf16.mxu0 %v2695_v1  ;;  %v1221_v22 = vor.u32 %v1220_v20, %v1217_v10  ;;  %v2060_v41 = vld.sshfl [vmem:[%s2862_s16 + $0x4] sm:$0x13 pattern:$0x76325410]  ;;  %v679_v42 = vshrl.u32 %v2059_v39, 16  ;;  %v682_v49 = vshll.u32 %v2059_v39, 16  ;;  %v646_v54 = vcombine.high %v2059_v39, %v2059_v39 }
  0x23   : > { %v2061_v43 = vld.sshfl [vmem:[%s2862_s16 + $0x8] sm:$0x13 pattern:$0x76325410]  ;;  %v654_v44 = vcombine.high %v2060_v41, %v2060_v41  ;;  %v693_v45 = vshrl.u32 %v2060_v41, 16  ;;  %v696_v46 = vshll.u32 %v2060_v41, 16 }
  0x24   : > { %2352 = vmatpush3.bf16.msra.mxu1 %v2589_v25  ;;  %v2607_v25 = vld [vmem:[%s3194_s4 + $0x30] sm:$0xff]   ;;  %v2062_v47 = vld.sshfl [vmem:[%s2862_s16 + $0xc] sm:$0x13 pattern:$0x76325410]  ;;  %v662_v48 = vcombine.high %v2061_v43, %v2061_v43  ;;  %v710_v57 = vshll.u32 %v2061_v43, 16 }
  0x25   : > { %2432 = vmatpush3.bf16.msra.mxu0 %v2590_v26  ;;  %2357 = vmatprep.subr.bf16.mxu1 %v2695_v1  ;;  %v1245_v26 = vcombine.low %v1185_v17, %v1199_v18  ;;  %v695_v51 = vrot.slane %v693_v45, 6  ;;  %v698_v52 = vrot.slane %v696_v46, 7  ;;  %v702_v55 = vshll.u32 %v654_v44, 16  ;;  %v2626_v39 = vld [vmem:[%s3194_s4 + $0x1b0] sm:$0xff]   ;;  %v2629_v45 = vld [vmem:[%s3194_s4 + $0xc0] sm:$0xff]  }
  0x26   : > { %2437 = vmatprep.subr.bf16.mxu0 %v2695_v1  ;;  %v681_v58 = vrot.slane %v679_v42, 6  ;;  %v716_v60 = vshll.u32 %v662_v48, 16  ;;  %v670_v62 = vcombine.high %v2062_v47, %v2062_v47  ;;  %v684_v63 = vrot.slane %v682_v49, 7  ;;  %v2627_v42 = vld [vmem:[%s3194_s4 + $0xb8] sm:$0xff]   ;;  %v2633_v48 = vld [vmem:[%s3194_s4 + $0xc8] sm:$0xff]  }
  0x27   : > { %2354 = vmatmul.mubr.bf16.vlgmr.msra.gmra.mrb[0].mxu1 %v429_v27  ;;  %v2608_v27 = vld [vmem:[%s3194_s4 + $0x170] sm:$0xff]   ;;  %v699_v59 = vor.u32 %v698_v52, %v695_v51  ;;  %v712_v2 = vrot.slane %v710_v57, 7  ;;  %v724_v6 = vshll.u32 %v2062_v47, 16  ;;  %v704_v9 = vrot.slane %v702_v55, 7 }
  0x28   : > { %2358 = vmatpush3.bf16.msra.mxu1 %v2593_v28  ;;  %2434 = vmatmul.mubr.bf16.vlgmr.msra.gmra.mrb[0].mxu0 %v1039_v29  ;;  %v1213_v28 = vsel %vm2921_vm7, %v1208_v21, %v1212_v19  ;;  %v1222_v29 = vrot.slane %v1221_v22, 2  ;;  %v718_v11 = vrot.slane %v716_v60, 7  ;;  %v688_v13 = vshll.u32 %v646_v54, 16  ;;  %v2620_v19 = vld [vmem:[%s3194_s4 + $0x198] sm:$0xff]   ;;  %v2621_v22 = vld [vmem:[%s3194_s4 + $0xa0] sm:$0xff]   ;;  %v2635_v57 = vld [vmem:[%s3194_s4 + $0xd0] sm:$0xff]  }
  0x29   : > { %2438 = vmatpush3.bf16.msra.mxu0 %v2596_v30  ;;  %2359 = vmatprep.subr.bf16.mxu1 %v2695_v1  ;;  %v726_v14 = vrot.slane %v724_v6, 7  ;;  %v730_v17 = vshll.u32 %v670_v62, 16  ;;  %v2226_v49 = vld.sshfl [vmem:[%s2862_s16 + $0x10] sm:$0x13 pattern:$0x76325410] }
  0x2a   : > { %2439 = vmatprep.subr.bf16.mxu0 %v2695_v1  ;;  %2373 = vmatprep.mubr.msk.bf16.mxu1 %vm2696_vm0, %v2695_v1  ;;  %v1227_v30 = vsel %vm2921_vm7, %v1222_v29, %v1226_v23  ;;  %v2622_v29 = vld [vmem:[%s3194_s4 + $0x1a0] sm:$0xff]   ;;  %v1666_v51 = vcombine.high %v2226_v49, %v2226_v49  ;;  %v1710_v52 = vshrl.u32 %v2226_v49, 16  ;;  %v2637_v62 = vld [vmem:[%s3194_s4 + $0xd8] sm:$0xff]  }
  0x2b   : > { %2453 = vmatprep.mubr.msk.bf16.mxu0 %vm2696_vm0, %v2695_v1 }
  0x2c   : > { %2360 = vmatpush3.bf16.msra.mxu1 %v2597_v31  ;;  %v2609_v31 = vld [vmem:[%s3194_s4 + $0x38] sm:$0xff]   ;;  %v1712_v54 = vrot.slane %v1710_v52, 6 }
  0x2d   : > { %2440 = vmatpush3.bf16.msra.mxu0 %v2598_v32  ;;  %2361 = vmatprep.subr.bf16.mxu1 %v2695_v1  ;;  %v1246_v32 = vcombine.low %v1213_v28, %v1227_v30  ;;  %v732_v28 = vrot.slane %v730_v17, 7  ;;  %v2623_v30 = vld [vmem:[%s3194_s4 + $0xa8] sm:$0xff]  }
  0x2e   : > { %2441 = vmatprep.subr.bf16.mxu0 %v2695_v1 }
  0x30   : > { %2362 = vmatpush3.bf16.msra.mxu1 %v2599_v33  ;;  %v1253_v33 = vrot.slane %v1245_v26, %v2836_v24  ;;  %v690_v26 = vrot.slane %v688_v13, 7  ;;  %v2670_v13 = vld.sshfl [vmem:[%s2812_s9 + $0xc] sm:$0xf pattern:$0x76325410] }
  0x31   : > { %2442 = vmatpush3.bf16.msra.mxu0 %v2600_v34  ;;  %2363 = vmatprep.subr.bf16.mxu1 %v2695_v1  ;;  %v2610_v34 = vld [vmem:[%s3194_s4 + $0x178] sm:$0xff]  }
  0x32   : > { %2443 = vmatprep.subr.bf16.mxu0 %v2695_v1 }
  0x34   : > { %2364 = vmatpush3.bf16.msra.mxu1 %v2601_v35  ;;  %v1260_v35 = vrot.slane %v1246_v32, %v2836_v24 }
  0x35   : > { %2444 = vmatpush3.bf16.msra.mxu0 %v2602_v36  ;;  %2365 = vmatprep.subr.bf16.mxu1 %v2695_v1  ;;  %v540_v36 = vcombine.low %v2663_v15, %v2664_v16  ;;  %v685_v15 = vor.u32 %v684_v63, %v681_v58  ;;  %v2636_v58 = vld [vmem:[%s3194_s4 + $0x1d0] sm:$0xff]   ;;  %v2638_v63 = vld [vmem:[%s3194_s4 + $0x1d8] sm:$0xff]  }
  0x36   : > { %2445 = vmatprep.subr.bf16.mxu0 %v2695_v1  ;;  %v1261_v38 = vcombine.low %v1253_v33, %v1260_v35  ;;  %v2624_v33 = vld [vmem:[%s3194_s4 + $0x1a8] sm:$0xff]  }
  0x37   : > { %v2665_v35 = vld.sshfl [vmem:[%s2862_s16 + $0x4] sm:$0xf pattern:$0x76325410] }
  0x38   : > { %2366 = vmatpush3.bf16.msra.mxu1 %v2603_v56  ;;  %v707_v56 = vshrl.u32 %v2061_v43, 16  ;;  %v2628_v43 = vld [vmem:[%s3194_s4 + $0x1b8] sm:$0xff]  }
  0x39   : > { %2446 = vmatpush3.bf16.msra.mxu0 %v2604_v61  ;;  %2367 = vmatprep.subr.bf16.mxu1 %v2695_v1  ;;  %v721_v61 = vshrl.u32 %v2062_v47, 16  ;;  %v2632_v47 = vld [vmem:[%s3194_s4 + $0x1c0] sm:$0xff]  }
  0x3a   : > { %2447 = vmatprep.subr.bf16.mxu0 %v2695_v1  ;;  %v709_v0 = vrot.slane %v707_v56, 6  ;;  %v1719_v56 = vshll.u32 %v1666_v51, 16 }
  0x3b   : > { %v723_v5 = vrot.slane %v721_v61, 6 }
  0x3c   : > { %2368 = vmatpush3.bf16.msra.mxu1 %v2605_v8  ;;  %v700_v8 = vrot.slane %v699_v59, 2  ;;  %v713_v10 = vor.u32 %v712_v2, %v709_v0  ;;  %v1721_v60 = vrot.slane %v1719_v56, 7 }
  0x3d   : > { %2448 = vmatpush3.bf16.msra.mxu0 %v2606_v12  ;;  %2369 = vmatprep.subr.bf16.mxu1 %v2695_v1  ;;  %v2619_v12 = vld [vmem:[%s3194_s4 + $0x98] sm:$0xff]   ;;  %v727_v18 = vor.u32 %v726_v14, %v723_v5  ;;  %v2639_v5 = vld [vmem:[%s3194_s4 + $0xe0] sm:$0xff]   ;;  %v2644_v14 = vld [vmem:[%s3194_s4 + $0x1f0] sm:$0xff]  }
  0x3e   : > { %2449 = vmatprep.subr.bf16.mxu0 %v2695_v1  ;;  %v714_v16 = vrot.slane %v713_v10, 2  ;;  %v3002_v20 = vsel %vm2921_vm7, %v700_v8, %v704_v9  ;;  %v2641_v8 = vld [vmem:[%s3194_s4 + $0xe8] sm:$0xff]   ;;  %v2667_v9 = vld.sshfl [vmem:[%s2880_s28] sm:$0xf pattern:$0x76325410] }
  0x3f   : > { %v2668_v10 = vld.sshfl [vmem:[%s2880_s28 + $0x8] sm:$0xf pattern:$0x76325410] }
  0x40   : > { %2370 = vmatpush3.bf16.msra.mxu1 %v2607_v25  ;;  %v3006_v21 = vsel %vm2921_vm7, %v714_v16, %v718_v11  ;;  %v686_v25 = vrot.slane %v685_v15, 2  ;;  %v2643_v11 = vld [vmem:[%s3194_s4 + $0xf0] sm:$0xff]   ;;  %v2645_v15 = vld [vmem:[%s3194_s4 + $0xf8] sm:$0xff]   ;;  %v903_v17 = vcombine.low %v2667_v9, %v2668_v10 }
  0x41   : > { %2450 = vmatpush3.bf16.msra.mxu0 %v2608_v27  ;;  %2371 = vmatprep.subr.bf16.mxu1 %v2695_v1  ;;  %v1740_v23 = vcombine.low %v3002_v20, %v3006_v21  ;;  %v728_v27 = vrot.slane %v727_v18, 2  ;;  %v2646_v16 = vld [vmem:[%s3194_s4 + $0x1f8] sm:$0xff]  }
  0x42   : > { %2451 = vmatprep.subr.bf16.mxu0 %v2695_v1 }
  0x43   : > { %v3026_v32 = vsel %vm2921_vm7, %v728_v27, %v732_v28  ;;  %v2658_v27 = vld [vmem:[%s3194_s4 + $0x238] sm:$0xff]  }
  0x44   : > { %2372 = vmatpush3.bf16.msra.mxu1 %v2609_v31  ;;  %v691_v31 = vsel %vm2921_vm7, %v686_v25, %v690_v26  ;;  %v2656_v25 = vld [vmem:[%s3194_s4 + $0x228] sm:$0xff]   ;;  %v2657_v26 = vld [vmem:[%s3194_s4 + $0x230] sm:$0xff]  }
  0x45   : > { %2452 = vmatpush3.bf16.msra.mxu0 %v2610_v34  ;;  %2377 = vmatprep.subr.bf16.mxu1 %v2695_v1  ;;  %v2625_v34 = vld [vmem:[%s3194_s4 + $0xb0] sm:$0xff]  }
  0x46   : > { %2457 = vmatprep.subr.bf16.mxu0 %v2695_v1 }
  0x47   : > { %2374 = vmatmul.mubr.bf16.vlgmr.msra.gmra.mrb[0].mxu1 %v540_v36  ;;  %v751_v36 = vcombine.low %v691_v31, %v3002_v20  ;;  %v2652_v20 = vld [vmem:[%s3194_s4 + $0x208] sm:$0xff]  }
  0x48   : > { %2378 = vmatpush3.bf16.msra.mxu1 %v2613_v37  ;;  %2454 = vmatmul.mubr.bf16.vlgmr.msra.gmra.mrb[0].mxu0 %v1261_v38  ;;  %v752_v37 = vcombine.low %v3006_v21, %v3026_v32  ;;  %v2666_v38 = vld.sshfl [vmem:[%s2862_s16 + $0xc] sm:$0xf pattern:$0x76325410] }
  0x49   : > { %2458 = vmatpush3.bf16.msra.mxu0 %v2614_v40  ;;  %2379 = vmatprep.subr.bf16.mxu1 %v2695_v1  ;;  %v759_v40 = vrot.slane %v751_v36, %v2836_v24  ;;  %v1398_v46 = vcombine.low %v2665_v35, %v2666_v38  ;;  %v2653_v21 = vld [vmem:[%s3194_s4 + $0x210] sm:$0xff]   ;;  %v2252_v36 = vld [vmem:[%s3196_s6] ss:$0 sm:$0xff] }
  0x4a   : > { %2459 = vmatprep.subr.bf16.mxu0 %v2695_v1  ;;  %2393 = vmatprep.mubr.msk.bf16.mxu1 %vm2696_vm0, %v2695_v1  ;;  %v766_v41 = vrot.slane %v752_v37, %v2836_v24 }
  0x4b   : > { %2473 = vmatprep.mubr.msk.bf16.mxu0 %vm2696_vm0, %v2695_v1 }
  0x4c   : > { %2380 = vmatpush3.bf16.msra.mxu1 %v2615_v50  ;;  %v767_v44 = vcombine.low %v759_v40, %v766_v41  ;;  %v2634_v50 = vld [vmem:[%s3194_s4 + $0x1c8] sm:$0xff]  }
  0x4d   : > { %2460 = vmatpush3.bf16.msra.mxu0 %v2616_v53  ;;  %2381 = vmatprep.subr.bf16.mxu1 %v2695_v1  ;;  %v1713_v53 = vshll.u32 %v2226_v49, 16 }
  0x4e   : > { %2461 = vmatprep.subr.bf16.mxu0 %v2695_v1 }
  0x4f   : > { %v1715_v55 = vrot.slane %v1713_v53, 7 }
  0x50   : > { %2382 = vmatpush3.bf16.msra.mxu1 %v2617_v4  ;;  %v1748_v4 = vrot.slane %v1740_v23, %v2836_v24  ;;  %v2655_v23 = vld [vmem:[%s3194_s4 + $0x220] sm:$0xff]  }
  0x51   : > { %2462 = vmatpush3.bf16.msra.mxu0 %v2618_v7  ;;  %2383 = vmatprep.subr.bf16.mxu1 %v2695_v1  ;;  %v1716_v59 = vor.u32 %v1715_v55, %v1712_v54 }
  0x52   : > { %2463 = vmatprep.subr.bf16.mxu0 %v2695_v1 }
  0x53   : > { %v1717_v61 = vrot.slane %v1716_v59, 2 }
  0x54   : > { %2384 = vmatpush3.bf16.msra.mxu1 %v2619_v12  ;;  %v2669_v12 = vld.sshfl [vmem:[%s2812_s9 + $0x4] sm:$0xf pattern:$0x76325410] }
  0x55   : > { %2464 = vmatpush3.bf16.msra.mxu0 %v2620_v19  ;;  %2385 = vmatprep.subr.bf16.mxu1 %v2695_v1  ;;  %v1722_v0 = vsel %vm2921_vm7, %v1717_v61, %v1721_v60  ;;  %v1534_v18 = vcombine.low %v2669_v12, %v2670_v13  ;;  %v2651_v19 = vld [vmem:[%s3194_s4 + $0x200] sm:$0xff]  }
  0x56   : > { %2465 = vmatprep.subr.bf16.mxu0 %v2695_v1  ;;  %v1741_v2 = vcombine.low %v3026_v32, %v1722_v0 }
  0x58   : > { %2386 = vmatpush3.bf16.msra.mxu1 %v2621_v22  ;;  %v1755_v6 = vrot.slane %v1741_v2, %v2836_v24  ;;  %v2642_v24 = vld [vmem:[%s3194_s4 + $0x1e8] sm:$0xff]   ;;  %v2654_v22 = vld [vmem:[%s3194_s4 + $0x218] sm:$0xff]  }
  0x59   : > { %2466 = vmatpush3.bf16.msra.mxu0 %v2622_v29  ;;  %2387 = vmatprep.subr.bf16.mxu1 %v2695_v1 }
  0x5a   : > { %2467 = vmatprep.subr.bf16.mxu0 %v2695_v1  ;;  %v1756_v7 = vcombine.low %v1748_v4, %v1755_v6 }
  0x5c   : > { %2388 = vmatpush3.bf16.msra.mxu1 %v2623_v30 }
  0x5d   : > { %2468 = vmatpush3.bf16.msra.mxu0 %v2624_v33  ;;  %2389 = vmatprep.subr.bf16.mxu1 %v2695_v1  ;;  %v2251_v33 = vld [vmem:[%s3195_s5] ss:$0 sm:$0xff] }
  0x5e   : > { %2469 = vmatprep.subr.bf16.mxu0 %v2695_v1 }
  0x60   : > { %2390 = vmatpush3.bf16.msra.mxu1 %v2625_v34 }
  0x61   : > { %2470 = vmatpush3.bf16.msra.mxu0 %v2626_v39  ;;  %2391 = vmatprep.subr.bf16.mxu1 %v2695_v1 }
  0x62   : > { %2471 = vmatprep.subr.bf16.mxu0 %v2695_v1 }
  0x64   : > { %2392 = vmatpush3.bf16.msra.mxu1 %v2627_v42 }
  0x65   : > { %2472 = vmatpush3.bf16.msra.mxu0 %v2628_v43  ;;  %2397 = vmatprep.subr.bf16.mxu1 %v2695_v1 }
  0x66   : > { %2477 = vmatprep.subr.bf16.mxu0 %v2695_v1 }
  0x67   : > { %2394 = vmatmul.mubr.bf16.vlgmr.msra.gmra.mrb[0].mxu1 %v767_v44 }
  0x68   : > { %2398 = vmatpush3.bf16.msra.mxu1 %v2629_v45  ;;  %2474 = vmatmul.mubr.bf16.vlgmr.msra.gmra.mrb[0].mxu0 %v1398_v46 }
  0x69   : > { %2478 = vmatpush3.bf16.msra.mxu0 %v2632_v47  ;;  %2399 = vmatprep.subr.bf16.mxu1 %v2695_v1 }
  0x6a   : > { %2479 = vmatprep.subr.bf16.mxu0 %v2695_v1  ;;  %2413 = vmatprep.mubr.msk.bf16.mxu1 %vm2696_vm0, %v2695_v1 }
  0x6b   : > { %2493 = vmatprep.mubr.msk.bf16.mxu0 %vm2696_vm0, %v2695_v1 }
  0x6c   : > { %2400 = vmatpush3.bf16.msra.mxu1 %v2633_v48 }
  0x6d   : > { %2480 = vmatpush3.bf16.msra.mxu0 %v2634_v50  ;;  %2401 = vmatprep.subr.bf16.mxu1 %v2695_v1 }
  0x6e   : > { %2481 = vmatprep.subr.bf16.mxu0 %v2695_v1 }
  0x70   : > { %2402 = vmatpush3.bf16.msra.mxu1 %v2635_v57 }
  0x71   : > { %2482 = vmatpush3.bf16.msra.mxu0 %v2636_v58  ;;  %2403 = vmatprep.subr.bf16.mxu1 %v2695_v1 }
  0x72   : > { %2483 = vmatprep.subr.bf16.mxu0 %v2695_v1 }
  0x74   : > { %2404 = vmatpush3.bf16.msra.mxu1 %v2637_v62 }
  0x75   : > { %2484 = vmatpush3.bf16.msra.mxu0 %v2638_v63  ;;  %2405 = vmatprep.subr.bf16.mxu1 %v2695_v1 }
  0x76   : > { %2485 = vmatprep.subr.bf16.mxu0 %v2695_v1 }
  0x78   : > { %2406 = vmatpush3.bf16.msra.mxu1 %v2639_v5 }
  0x79   : > { %2486 = vmatpush3.bf16.msra.mxu0 %v2640_v3  ;;  %2407 = vmatprep.subr.bf16.mxu1 %v2695_v1 }
  0x7a   : > { %2487 = vmatprep.subr.bf16.mxu0 %v2695_v1 }
  0x7c   : > { %2408 = vmatpush3.bf16.msra.mxu1 %v2641_v8 }
  0x7d   : > { %2488 = vmatpush3.bf16.msra.mxu0 %v2642_v24  ;;  %2409 = vmatprep.subr.bf16.mxu1 %v2695_v1 }
  0x7e   : > { %2489 = vmatprep.subr.bf16.mxu0 %v2695_v1 }
  0x80   : > { %2410 = vmatpush3.bf16.msra.mxu1 %v2643_v11 }
  0x81   : > { %2490 = vmatpush3.bf16.msra.mxu0 %v2644_v14  ;;  %2411 = vmatprep.subr.bf16.mxu1 %v2695_v1 }
  0x82   : > { %2491 = vmatprep.subr.bf16.mxu0 %v2695_v1 }
  0x84   : > { %2412 = vmatpush3.bf16.msra.mxu1 %v2645_v15 }
  0x85   : > { %2492 = vmatpush3.bf16.msra.mxu0 %v2646_v16 }
  0x86   : > { %2497 = vmatprep.subr.bf16.mxu0 %v2695_v1 }
  0x87   : > { %2414 = vmatmul.mubr.bf16.vlgmr.msra.gmra.mrb[0].mxu1 %v903_v17 }
  0x88   : > { %2494 = vmatmul.mubr.bf16.vlgmr.msra.gmra.mrb[0].mxu0 %v1534_v18 }
  0x89   : > { %2498 = vmatpush3.bf16.msra.mxu0 %v2651_v19  ;;  %2513 = vmatprep.mubr.msk.bf16.mxu0 %vm2696_vm0, %v2695_v1 }
  0x8a   : > { %2499 = vmatprep.subr.bf16.mxu0 %v2695_v1 }
  0x8d   : > { %2500 = vmatpush3.bf16.msra.mxu0 %v2652_v20 }
  0x8e   : > { %2501 = vmatprep.subr.bf16.mxu0 %v2695_v1 }
  0x91   : > { %2502 = vmatpush3.bf16.msra.mxu0 %v2653_v21 }
  0x92   : > { %2503 = vmatprep.subr.bf16.mxu0 %v2695_v1 }
  0x95   : > { %2504 = vmatpush3.bf16.msra.mxu0 %v2654_v22 }
  0x96   : > { %2505 = vmatprep.subr.bf16.mxu0 %v2695_v1 }
  0x99   : > { %2506 = vmatpush3.bf16.msra.mxu0 %v2655_v23 }
  0x9a   : > { %2507 = vmatprep.subr.bf16.mxu0 %v2695_v1 }
  0x9d   : > { %2508 = vmatpush3.bf16.msra.mxu0 %v2656_v25 }
  0x9e   : > { %2509 = vmatprep.subr.bf16.mxu0 %v2695_v1 }
  0xa1   : > { %2510 = vmatpush3.bf16.msra.mxu0 %v2657_v26 }
  0xa2   : > { %2511 = vmatprep.subr.bf16.mxu0 %v2695_v1 }
  0xa5   : > { %2512 = vmatpush3.bf16.msra.mxu0 %v2658_v27 }
  0xa8   : > { %2514 = vmatmul.mubr.bf16.vlgmr.msra.gmra.mrb[0].mxu0 %v1756_v7 }
 0x15a   : > { %v987_v28 = vpop.f32.mrb[0].mxu1 }
 0x15b   : > { %v2415_v29 = vpop.f32.mrb[1].mxu1 }
 0x15c   : > { %v990_v30 = vpop.f32.mrb[2].mxu1 }
 0x15d   : > { %v2416_v31 = vpop.f32.mrb[3].mxu1 }
 0x17b   : > { %v1840_v32 = vpop.f32.mrb[0].mxu0 }
 0x17c   : > { %v2517_v34 = vadd.f32 %v1840_v32, %v987_v28  ;;  %v2515_v35 = vpop.f32.mrb[1].mxu0 }
 0x17d   : > { %v1843_v37 = vpop.f32.mrb[2].mxu0 }
 0x17e   : > { %v1856_v1 = vmul.f32 %v2517_v34, %v2251_v33  ;;  %v2518_v38 = vadd.f32 %v1843_v37, %v990_v30  ;;  %v2516_v39 = vpop.f32.mrb[3].mxu0 }
 0x180   : > { %v1865_v40 = vadd.f32 %v2252_v36, %v1856_v1  ;;  %v1857_v41 = vmul.f32 %v2518_v38, %v2251_v33 }
 0x182   : > { %v1867_v42 = vmax.f32 %v1865_v40, 0.0  ;;  %v1866_v43 = vadd.f32 %v2252_v36, %v1857_v41 }
 0x184   : > { %v1871_v44 = vcombine.high %v1867_v42, %v1867_v42  ;;  %v1875_v45 = vpack.c.bf16 %v1867_v42, %v1867_v42  ;;  %v1868_v46 = vmax.f32 %v1866_v43, 0.0 }
 0x186   : > { %v1876_v47 = vpack.c.bf16 %v1871_v44, %v1871_v44  ;;  %1879 = vst [vmem:[%s360_s12] sm:$0x3] %v1875_v45  ;;  %v1872_v48 = vcombine.high %v1868_v46, %v1868_v46  ;;  %v1877_v49 = vpack.c.bf16 %v1868_v46, %v1868_v46 }
 0x188   : > { %1880 = vst [vmem:[%s360_s12 + $0x2] sm:$0x3] %v1876_v47  ;;  %v1878_v50 = vpack.c.bf16 %v1872_v48, %v1872_v48  ;;  %1881 = vst [vmem:[%s360_s12 + $0x4] sm:$0x3] %v1877_v49 }
 0x18a   : > { %1882 = vst [vmem:[%s360_s12 + $0x6] sm:$0x3] %v1878_v50 }
 0x18b PF: > { %s17_s26 = sadd.s32 1, %s2693_s26   ;;  %s3204_s24 = smov %s2689_s25 }
 0x18c   : > { %p14_p5 = scmp.ge.s32.totalorder %s17_s26, 4   ;;  %s3205_s25 = smov %s3207_s27 }
 0x18e   :  { %16 = sbr.rel (!%p14_p5) target bundleno = 2 (0x2), region = 101 }

// kernel: hrnet_forward.9
= control target key start
LH: loop header
LB: loop body
LE: loop exit
PB: predicated region body
PF: predicated region fallthrough
CT: control target
= control target key end

     0   :  { %s2707_s15 = smov 0   ;;  %s2709_s16 = smov 0   ;;  %s3177_s0 = inlined_call_operand.vmem [shape: bf16[2,6,6,128], index: 0, kind: input, shape index: {}]   ;;  %s3178_s1 = inlined_call_operand.vmem [shape: bf16[9,128,128], index: 1, kind: input, shape index: {}]   ;;  %s3179_s2 = inlined_call_operand.vmem [shape: f32[1,128], index: 2, kind: input, shape index: {}]   ;;  %s3180_s3 = inlined_call_operand.vmem [shape: f32[1,128], index: 3, kind: input, shape index: {}]   ;;  %s3181_s4 = inlined_call_operand.vmem [shape: bf16[2,4,4,128], index: 4, kind: output, shape index: {}]  }
   0x1   :  { %s2711_s17 = smov 0  }
   0x2 LB: > { %s26_s18 = sadd.s32 1, %s2673_s16  ;;  %p1983_p0 = scmp.ge.s32.totalorder %s2677_s17, 1  ;;  %s2677_s17 = sphi %s2711_s17, %s14_s17   ;;  %s2673_s16 = sphi %s2709_s16, %s3191_s16   ;;  %s2669_s15 = sphi %s2707_s15, %s3190_s15  }
   0x3   : > { %p28_p1 = scmp.ge.s32.totalorder %s26_s18, 2  ;;  %p176_p2 = scmp.lt.s32.totalorder %s2677_s17, 3 }
   0x5   : > { %s3193_s18 = smov (%p28_p1, %s26_s18), 0  ;;  %p177_p3 = pnand %p1983_p0, %p176_p2 }
   0x6   : > { %v2571_v0 = vld [vmem:[%s3178_s1 + $0x40] sm:$0xff] (!%p177_p3)   ;;  %v2679_v1 = vmov (!%p177_p3), 0.0   ;;  %v2573_v3 = vld [vmem:[%s3178_s1 + $0x48] sm:$0xff] (!%p177_p3)   ;;  %vm2680_vm0 = vmmov (!%p177_p3), 0   ;;  %p206_p4 = scmp.lt.s32.totalorder (!%p177_p3), %s2669_s15, 1  ;;  %v2575_v5 = vld [vmem:[%s3178_s1 + $0x50] sm:$0xff] (!%p177_p3)   ;;  %v370_v21 = vlaneseq (!%p177_p3) }
   0x7   : > { %180 = sbr.rel (%p177_p3) target bundleno = 400 (0x190), region = 36  ;;  %2333 = vmatprep.subr.bf16.mxu1 (!%p177_p3), %v2679_v1  ;;  %2413 = vmatprep.subr.bf16.mxu0 (!%p177_p3), %v2679_v1  ;;  %v2572_v2 = vld [vmem:[%s3178_s1 + $0x100] sm:$0xff] (!%p177_p3)   ;;  %v2574_v4 = vld [vmem:[%s3178_s1 + $0x108] sm:$0xff] (!%p177_p3)   ;;  %v2576_v6 = vld [vmem:[%s3178_s1 + $0x110] sm:$0xff] (!%p177_p3)   ;;  %vm285_vm1 = vsmask.f32 (!%p177_p3), 1280 }
   0x8   : > { %2334 = vmatpush3.bf16.msra.mxu1 (!%p177_p3), %v2571_v0  ;;  %2349 = vmatprep.mubr.msk.bf16.mxu1 (!%p177_p3), %vm2680_vm0, %v2679_v1  ;;  %v2577_v7 = vld [vmem:[%s3178_s1 + $0x58] sm:$0xff] (!%p177_p3)   ;;  %v2579_v9 = vld [vmem:[%s3178_s1 + $0x60] sm:$0xff] (!%p177_p3)   ;;  %v2581_v11 = vld [vmem:[%s3178_s1 + $0x68] sm:$0xff] (!%p177_p3)   ;;  %vm286_vm2 = vsmask.f32 (!%p177_p3), 3336  ;;  %v371_v53 = vshrl.u32 (!%p177_p3), %v370_v21, 7 }
   0x9   : > { %2414 = vmatpush3.bf16.msra.mxu0 (!%p177_p3), %v2572_v2  ;;  %2335 = vmatprep.subr.bf16.mxu1 (!%p177_p3), %v2679_v1  ;;  %v2578_v8 = vld [vmem:[%s3178_s1 + $0x118] sm:$0xff] (!%p177_p3)   ;;  %v2580_v10 = vld [vmem:[%s3178_s1 + $0x120] sm:$0xff] (!%p177_p3)   ;;  %v2582_v13 = vld [vmem:[%s3178_s1 + $0x128] sm:$0xff] (!%p177_p3)   ;;  %vm288_vm3 = vsmask.f32 (!%p177_p3), 5392  ;;  %vm623_vm8 = vcmask (!%p177_p3), 1040384  }
   0xa   : > { %2415 = vmatprep.subr.bf16.mxu0 (!%p177_p3), %v2679_v1  ;;  %2429 = vmatprep.mubr.msk.bf16.mxu0 (!%p177_p3), %vm2680_vm0, %v2679_v1  ;;  %vm2788_vm4 = vmor (!%p177_p3), %vm285_vm1, %vm286_vm2  ;;  %vm290_vm5 = vsmask.f32 (!%p177_p3), 7448  ;;  %v2583_v22 = vld [vmem:[%s3178_s1 + $0x70] sm:$0xff] (!%p177_p3)   ;;  %v2585_v49 = vld [vmem:[%s3178_s1 + $0x78] sm:$0xff] (!%p177_p3)   ;;  %v2681_v58 = vmov (!%p177_p3), 1983009808  }
   0xb   : > { %v2584_v27 = vld [vmem:[%s3178_s1 + $0x130] sm:$0xff] (!%p177_p3)   ;;  %vm2802_vm6 = vmor (!%p177_p3), %vm2788_vm4, %vm288_vm3  ;;  %v2586_v54 = vld [vmem:[%s3178_s1 + $0x138] sm:$0xff] (!%p177_p3)   ;;  %v368_v59 = vunpack.c.l.s4 (!%p177_p3), %v2681_v58  ;;  %vm624_vm9 = vcmask (!%p177_p3), 1042434   ;;  %vm626_vm11 = vcmask (!%p177_p3), 1044484   ;;  %vm628_vm13 = vcmask (!%p177_p3), 1046534  }
   0xc   : > { %2336 = vmatpush3.bf16.msra.mxu1 (!%p177_p3), %v2573_v3  ;;  %vm2811_vm7 = vmor (!%p177_p3), %vm2802_vm6, %vm290_vm5 }
   0xd   : > { %2416 = vmatpush3.bf16.msra.mxu0 (!%p177_p3), %v2574_v4  ;;  %2337 = vmatprep.subr.bf16.mxu1 (!%p177_p3), %v2679_v1  ;;  %v369_v3 = vunpack.c.0.s8 (!%p177_p3), %v368_v59  ;;  %vm625_vm10 = vmor (!%p177_p3), %vm623_vm8, %vm624_vm9 }
   0xe   : > { %s3195_s15 = smov (!%p206_p4, %s2669_s15), 1  ;;  %2417 = vmatprep.subr.bf16.mxu0 %v2679_v1  ;;  %vm627_vm12 = vmor %vm625_vm10, %vm626_vm11 }
   0xf   : > { %s2543_s5 = smul.u32 24, %s3195_s15  ;;  %vm2872_vm14 = vmor %vm627_vm12, %vm628_vm13  ;;  %s2251_s21 = sshll.u32 %s3195_s15, 3 }
  0x10   : > { %2338 = vmatpush3.bf16.msra.mxu1 %v2575_v5  ;;  %s219_s24 = scalar_lea.vmem %s3181_s4, %s2251_s21 }
  0x11   : > { %2418 = vmatpush3.bf16.msra.mxu0 %v2576_v6  ;;  %2339 = vmatprep.subr.bf16.mxu1 %v2679_v1  ;;  %s2767_s12 = scalar_lea.vmem %s3177_s0, %s2543_s5 }
  0x12   : > { %2419 = vmatprep.subr.bf16.mxu0 %v2679_v1  ;;  %v1987_v12 = vld.sshfl [vmem:[%s2767_s12] sm:$0x13 pattern:$0x76325410] }
  0x13   : > { %v1988_v14 = vld.sshfl [vmem:[%s2767_s12 + $0x4] sm:$0x13 pattern:$0x76325410]  ;;  %v260_v15 = vcombine.high %v1987_v12, %v1987_v12  ;;  %v293_v24 = vshrl.u32 %v1987_v12, 16  ;;  %v296_v25 = vshll.u32 %v1987_v12, 16 }
  0x14   : > { %2340 = vmatpush3.bf16.msra.mxu1 %v2577_v7  ;;  %v1989_v16 = vld.sshfl [vmem:[%s2767_s12 + $0x8] sm:$0x13 pattern:$0x76325410]  ;;  %v268_v17 = vcombine.high %v1988_v14, %v1988_v14  ;;  %v307_v28 = vshrl.u32 %v1988_v14, 16  ;;  %v310_v29 = vshll.u32 %v1988_v14, 16 }
  0x15   : > { %2420 = vmatpush3.bf16.msra.mxu0 %v2578_v8  ;;  %2341 = vmatprep.subr.bf16.mxu1 %v2679_v1  ;;  %v1990_v18 = vld.sshfl [vmem:[%s2767_s12 + $0xc] sm:$0x13 pattern:$0x76325410]  ;;  %v276_v19 = vcombine.high %v1989_v16, %v1989_v16  ;;  %v302_v26 = vshll.u32 %v260_v15, 16  ;;  %v321_v31 = vshrl.u32 %v1989_v16, 16 }
  0x16   : > { %2421 = vmatprep.subr.bf16.mxu0 %v2679_v1  ;;  %v284_v23 = vcombine.high %v1990_v18, %v1990_v18  ;;  %v316_v30 = vshll.u32 %v268_v17, 16  ;;  %v295_v33 = vrot.slane %v293_v24, 6  ;;  %v298_v34 = vrot.slane %v296_v25, 7 }
  0x17   : > { %v304_v35 = vrot.slane %v302_v26, 7  ;;  %v324_v36 = vshll.u32 %v1989_v16, 16  ;;  %v309_v37 = vrot.slane %v307_v28, 6  ;;  %v312_v38 = vrot.slane %v310_v29, 7  ;;  %v2589_v28 = vld [vmem:[%s3178_s1 + $0x8] sm:$0xff]   ;;  %v2588_v29 = vld [vmem:[%s3178_s1 + $0x140] sm:$0xff]  }
  0x18   : > { %2342 = vmatpush3.bf16.msra.mxu1 %v2579_v9  ;;  %v318_v39 = vrot.slane %v316_v30, 7  ;;  %v323_v40 = vrot.slane %v321_v31, 6  ;;  %v299_v41 = vor.u32 %v298_v34, %v295_v33  ;;  %v330_v43 = vshll.u32 %v276_v19, 16  ;;  %v2591_v31 = vld [vmem:[%s3178_s1 + $0x10] sm:$0xff]   ;;  %v2590_v33 = vld [vmem:[%s3178_s1 + $0x148] sm:$0xff]  }
  0x19   : > { %2422 = vmatpush3.bf16.msra.mxu0 %v2580_v10  ;;  %2343 = vmatprep.subr.bf16.mxu1 %v2679_v1  ;;  %v326_v42 = vrot.slane %v324_v36, 7  ;;  %v335_v44 = vshrl.u32 %v1990_v18, 16  ;;  %v313_v46 = vor.u32 %v312_v38, %v309_v37  ;;  %v338_v47 = vshll.u32 %v1990_v18, 16 }
  0x1a   : > { %2423 = vmatprep.subr.bf16.mxu0 %v2679_v1  ;;  %v344_v48 = vshll.u32 %v284_v23, 16  ;;  %v300_v50 = vrot.slane %v299_v41, 2  ;;  %v332_v56 = vrot.slane %v330_v43, 7  ;;  %v2831_v10 = vsub.s32 %v369_v3, %v371_v53  ;;  %v2601_v3 = vld [vmem:[%s3178_s1 + $0x38] sm:$0xff]  }
  0x1b   : > { %v327_v51 = vor.u32 %v326_v42, %v323_v40  ;;  %v337_v52 = vrot.slane %v335_v44, 6  ;;  %v314_v55 = vrot.slane %v313_v46, 2  ;;  %v340_v57 = vrot.slane %v338_v47, 7  ;;  %v2593_v42 = vld [vmem:[%s3178_s1 + $0x18] sm:$0xff]   ;;  %v2592_v46 = vld [vmem:[%s3178_s1 + $0x150] sm:$0xff]  }
  0x1c   : > { %2344 = vmatpush3.bf16.msra.mxu1 %v2581_v11  ;;  %v305_v60 = vsel %vm2811_vm7, %v300_v50, %v304_v35  ;;  %v346_v62 = vrot.slane %v344_v48, 7  ;;  %v2090_v63 = vld.sshfl [vmem:[%s2767_s12 + $0x10] sm:$0x13 pattern:$0x76325410]  ;;  %v2595_v50 = vld [vmem:[%s3178_s1 + $0x20] sm:$0xff]  }
  0x1d   : > { %2424 = vmatpush3.bf16.msra.mxu0 %v2582_v13  ;;  %2345 = vmatprep.subr.bf16.mxu1 %v2679_v1  ;;  %v328_v61 = vrot.slane %v327_v51, 2  ;;  %v319_v0 = vsel %vm2811_vm7, %v314_v55, %v318_v39  ;;  %v341_v2 = vor.u32 %v340_v57, %v337_v52  ;;  %v948_v4 = vcombine.high %v2090_v63, %v2090_v63  ;;  %v2120_v32 = vld.sshfl [vmem:[%s2767_s12 + $0x8] sm:$0x12 pattern:$0x76325410]  ;;  %v2594_v52 = vld [vmem:[%s3178_s1 + $0x158] sm:$0xff]  }
  0x1e   : > { %2425 = vmatprep.subr.bf16.mxu0 %v2679_v1  ;;  %v365_v5 = vcombine.low %v305_v60, %v319_v0  ;;  %v992_v6 = vshrl.u32 %v2090_v63, 16  ;;  %v995_v7 = vshll.u32 %v2090_v63, 16  ;;  %v2121_v34 = vld.sshfl [vmem:[%s2767_s12 + $0xc] sm:$0x12 pattern:$0x76325410]  ;;  %v1154_v35 = vcombine.high %v2120_v32, %v2120_v32 }
  0x1f   : > { %v333_v8 = vsel %vm2811_vm7, %v328_v61, %v332_v56  ;;  %v342_v9 = vrot.slane %v341_v2, 2  ;;  %v1001_v11 = vshll.u32 %v948_v4, 16  ;;  %v1162_v36 = vcombine.high %v2121_v34, %v2121_v34  ;;  %v2119_v40 = vld.sshfl [vmem:[%s2767_s12 + $0x4] sm:$0x12 pattern:$0x76325410] }
  0x20   : > { %2346 = vmatpush3.bf16.msra.mxu1 %v2583_v22  ;;  %v994_v12 = vrot.slane %v992_v6, 6  ;;  %v997_v13 = vrot.slane %v995_v7, 7  ;;  %v373_v16 = vrot.slane %v365_v5, %v2831_v10  ;;  %v1022_v19 = vcombine.low %v319_v0, %v333_v8  ;;  %v2587_v22 = vld [vmem:[%s3178_s1] sm:$0xff]   ;;  %v2597_v55 = vld [vmem:[%s3178_s1 + $0x28] sm:$0xff]   ;;  %v2600_v6 = vld [vmem:[%s3178_s1 + $0x170] sm:$0xff]  }
  0x21   : > { %2426 = vmatpush3.bf16.msra.mxu0 %v2584_v27  ;;  %2347 = vmatprep.subr.bf16.mxu1 %v2679_v1  ;;  %v347_v14 = vsel %vm2811_vm7, %v342_v9, %v346_v62  ;;  %v1003_v18 = vrot.slane %v1001_v11, 7  ;;  %v2124_v37 = vrot.slane %v2120_v32, 9  ;;  %v2125_v38 = vrot.slane %v2121_v34, 9  ;;  %v2599_v62 = vld [vmem:[%s3178_s1 + $0x30] sm:$0xff]   ;;  %v2598_v63 = vld [vmem:[%s3178_s1 + $0x168] sm:$0xff]  }
  0x22   : > { %2427 = vmatprep.subr.bf16.mxu0 %v2679_v1  ;;  %v366_v15 = vcombine.low %v333_v8, %v347_v14  ;;  %v998_v17 = vor.u32 %v997_v13, %v994_v12  ;;  %v1030_v26 = vrot.slane %v1022_v19, %v2831_v10  ;;  %v1177_v41 = vrot.slane %v1154_v35, 7  ;;  %v2122_v43 = vld.sshfl [vmem:[%s2767_s12 + $0x10] sm:$0x12 pattern:$0x76325410]  ;;  %v2605_v8 = vld [vmem:[%s3178_s1 + $0x80] sm:$0xff]  }
  0x23   : > { %v1181_v44 = vrot.slane %v1162_v36, 7  ;;  %v1146_v51 = vcombine.high %v2119_v40, %v2119_v40  ;;  %v1170_v53 = vcombine.high %v2122_v43, %v2122_v43  ;;  %v2123_v56 = vrot.slane %v2119_v40, 9  ;;  %v2649_v60 = vld.sshfl [vmem:[%s2767_s12] sm:$0xf pattern:$0x76325410] }
  0x24   : > { %2348 = vmatpush3.bf16.msra.mxu1 %v2585_v49  ;;  %v2838_v20 = vrot.slane %v366_v15, %v2831_v10  ;;  %v999_v21 = vrot.slane %v998_v17, 2  ;;  %v2888_v47 = vsel %vm2872_vm14, %v2124_v37, %v1177_v41  ;;  %v2126_v58 = vrot.slane %v2122_v43, 9  ;;  %v2650_v61 = vld.sshfl [vmem:[%s2767_s12 + $0x8] sm:$0xf pattern:$0x76325410] }
  0x25   : > { %2428 = vmatpush3.bf16.msra.mxu0 %v2586_v54  ;;  %2353 = vmatprep.subr.bf16.mxu1 %v2679_v1  ;;  %v2892_v48 = vsel %vm2872_vm14, %v2125_v38, %v1181_v44  ;;  %v2596_v54 = vld [vmem:[%s3178_s1 + $0x160] sm:$0xff]   ;;  %v1173_v57 = vrot.slane %v1146_v51, 7  ;;  %v1185_v59 = vrot.slane %v1170_v53, 7  ;;  %v492_v7 = vcombine.low %v2649_v60, %v2650_v61  ;;  %v2602_v12 = vld [vmem:[%s3178_s1 + $0x178] sm:$0xff]   ;;  %v2609_v17 = vld [vmem:[%s3178_s1 + $0x90] sm:$0xff]  }
  0x26   : > { %2433 = vmatprep.subr.bf16.mxu0 %v2679_v1  ;;  %v381_v23 = vcombine.low %v373_v16, %v2838_v20  ;;  %v2846_v24 = vsel %vm2811_vm7, %v999_v21, %v1003_v18  ;;  %v1745_v49 = vcombine.low %v2888_v47, %v2892_v48  ;;  %v2606_v15 = vld [vmem:[%s3178_s1 + $0x180] sm:$0xff]   ;;  %v2608_v18 = vld [vmem:[%s3178_s1 + $0x188] sm:$0xff]   ;;  %v2611_v19 = vld [vmem:[%s3178_s1 + $0x98] sm:$0xff]  }
  0x27   : > { %v1023_v25 = vcombine.low %v347_v14, %v2846_v24  ;;  %v2923_v0 = vsel %vm2872_vm14, %v2123_v56, %v1173_v57  ;;  %v2927_v2 = vsel %vm2872_vm14, %v2126_v58, %v1185_v59  ;;  %v2607_v14 = vld [vmem:[%s3178_s1 + $0x88] sm:$0xff]   ;;  %v2023_v16 = vld.sshfl [vmem:[%s2767_s12] sm:$0x12 pattern:$0x76325410] }
  0x28   : > { %2350 = vmatmul.mubr.bf16.vlgmr.msra.gmra.mrb[0].mxu1 %v381_v23  ;;  %v1204_v4 = vcombine.low %v2923_v0, %v2888_v47  ;;  %v1205_v5 = vcombine.low %v2892_v48, %v2927_v2  ;;  %v598_v21 = vcombine.high %v2023_v16, %v2023_v16  ;;  %v2613_v23 = vld [vmem:[%s3178_s1 + $0xa0] sm:$0xff]   ;;  %v2615_v35 = vld [vmem:[%s3178_s1 + $0xa8] sm:$0xff]   ;;  %v3018_v45 = vrot.slane %v1745_v49, %v2831_v10  ;;  %v2652_v59 = vld.sshfl [vmem:[%s2767_s12 + $0x10] sm:$0xf pattern:$0x76325410] }
  0x29   : > { %2354 = vmatpush3.bf16.msra.mxu1 %v2587_v22  ;;  %v1037_v27 = vrot.slane %v1023_v25, %v2831_v10  ;;  %2369 = vmatprep.mubr.msk.bf16.mxu1 %vm2680_vm0, %v2679_v1  ;;  %v2610_v22 = vld [vmem:[%s3178_s1 + $0x190] sm:$0xff]   ;;  %v2614_v40 = vld [vmem:[%s3178_s1 + $0x1a0] sm:$0xff]   ;;  %v2651_v58 = vld.sshfl [vmem:[%s2767_s12 + $0x8] sm:$0xf pattern:$0x76325410] }
  0x2a   : > { %2355 = vmatprep.subr.bf16.mxu1 %v2679_v1  ;;  %v1212_v9 = vrot.slane %v1204_v4, %v2831_v10  ;;  %v1219_v11 = vrot.slane %v1205_v5, %v2831_v10  ;;  %v2186_v25 = vld.sshfl [vmem:[%s2767_s12 + $0x14] sm:$0x13 pattern:$0x76325410]  ;;  %v2621_v61 = vld [vmem:[%s3178_s1 + $0xc0] sm:$0xff]   ;;  %v2626_v4 = vld [vmem:[%s3178_s1 + $0x1c8] sm:$0xff]  }
  0x2b   : > { %v1038_v30 = vcombine.low %v1030_v26, %v1037_v27  ;;  %v2027_v26 = vrot.slane %v2023_v16, 9  ;;  %v1489_v27 = vcombine.high %v2186_v25, %v2186_v25  ;;  %v2618_v47 = vld [vmem:[%s3178_s1 + $0x1b0] sm:$0xff]   ;;  %v2629_v5 = vld [vmem:[%s3178_s1 + $0xd8] sm:$0xff]  }
  0x2c   : > { %v1220_v13 = vcombine.low %v1212_v9, %v1219_v11  ;;  %v2633_v9 = vld [vmem:[%s3178_s1 + $0xe8] sm:$0xff]   ;;  %v2632_v11 = vld [vmem:[%s3178_s1 + $0x1e0] sm:$0xff]   ;;  %v2637_v16 = vld [vmem:[%s3178_s1 + $0xf8] sm:$0xff]  }
  0x2d   : > { %2430 = vmatmul.mubr.bf16.vlgmr.msra.gmra.mrb[0].mxu0 %v1038_v30  ;;  %2356 = vmatpush3.bf16.msra.mxu1 %v2589_v28  ;;  %v1533_v28 = vshrl.u32 %v2186_v25, 16  ;;  %v1536_v30 = vshll.u32 %v2186_v25, 16  ;;  %v2645_v25 = vld [vmem:[%s3178_s1 + $0x220] sm:$0xff]  }
  0x2e   : > { %2434 = vmatpush3.bf16.msra.mxu0 %v2588_v29  ;;  %2357 = vmatprep.subr.bf16.mxu1 %v2679_v1  ;;  %v632_v29 = vrot.slane %v598_v21, 7  ;;  %v2641_v21 = vld [vmem:[%s3178_s1 + $0x200] sm:$0xff]  }
  0x2f   : > { %2435 = vmatprep.subr.bf16.mxu0 %v2679_v1  ;;  %2449 = vmatprep.mubr.msk.bf16.mxu0 %vm2680_vm0, %v2679_v1  ;;  %v1535_v32 = vrot.slane %v1533_v28, 6  ;;  %v1538_v34 = vrot.slane %v1536_v30, 7  ;;  %v2648_v28 = vld [vmem:[%s3178_s1 + $0x238] sm:$0xff]  }
  0x30   : > { %v633_v37 = vsel %vm2872_vm14, %v2027_v26, %v632_v29  ;;  %v2646_v26 = vld [vmem:[%s3178_s1 + $0x228] sm:$0xff]  }
  0x31   : > { %2358 = vmatpush3.bf16.msra.mxu1 %v2591_v31  ;;  %v2612_v31 = vld [vmem:[%s3178_s1 + $0x198] sm:$0xff]   ;;  %v1539_v38 = vor.u32 %v1538_v34, %v1535_v32  ;;  %v663_v43 = vcombine.low %v633_v37, %v2923_v0  ;;  %v2625_v0 = vld [vmem:[%s3178_s1 + $0xc8] sm:$0xff]   ;;  %v2247_v34 = vld [vmem:[%s3179_s2] ss:$0 sm:$0xff] }
  0x32   : > { %2436 = vmatpush3.bf16.msra.mxu0 %v2590_v33  ;;  %2359 = vmatprep.subr.bf16.mxu1 %v2679_v1  ;;  %v1542_v33 = vshll.u32 %v1489_v27, 16  ;;  %v2647_v27 = vld [vmem:[%s3178_s1 + $0x230] sm:$0xff]  }
  0x33   : > { %2437 = vmatprep.subr.bf16.mxu0 %v2679_v1  ;;  %v1540_v41 = vrot.slane %v1539_v38, 2 }
  0x34   : > { %v1544_v36 = vrot.slane %v1542_v33, 7 }
  0x35   : > { %2360 = vmatpush3.bf16.msra.mxu1 %v2593_v42  ;;  %v2218_v42 = vld.sshfl [vmem:[%s2767_s12 + $0x14] sm:$0x12 pattern:$0x76325410] }
  0x36   : > { %2438 = vmatpush3.bf16.msra.mxu0 %v2592_v46  ;;  %2361 = vmatprep.subr.bf16.mxu1 %v2679_v1  ;;  %v1711_v44 = vcombine.high %v2218_v42, %v2218_v42  ;;  %v2222_v46 = vrot.slane %v2218_v42, 9  ;;  %v1545_v51 = vsel %vm2811_vm7, %v1540_v41, %v1544_v36 }
  0x37   : > { %2439 = vmatprep.subr.bf16.mxu0 %v2679_v1  ;;  %v1564_v53 = vcombine.low %v2846_v24, %v1545_v51  ;;  %v2619_v24 = vld [vmem:[%s3178_s1 + $0xb8] sm:$0xff]  }
  0x39   : > { %2362 = vmatpush3.bf16.msra.mxu1 %v2595_v50  ;;  %v2617_v50 = vld [vmem:[%s3178_s1 + $0xb0] sm:$0xff]   ;;  %v3021_v56 = vrot.slane %v1564_v53, %v2831_v10 }
  0x3a   : > { %2440 = vmatpush3.bf16.msra.mxu0 %v2594_v52  ;;  %2363 = vmatprep.subr.bf16.mxu1 %v2679_v1  ;;  %v2616_v52 = vld [vmem:[%s3178_s1 + $0x1a8] sm:$0xff]  }
  0x3b   : > { %2441 = vmatprep.subr.bf16.mxu0 %v2679_v1  ;;  %v1579_v39 = vcombine.low %v2838_v20, %v3021_v56  ;;  %v2644_v20 = vld [vmem:[%s3178_s1 + $0x218] sm:$0xff]  }
  0x3d   : > { %2364 = vmatpush3.bf16.msra.mxu1 %v2597_v55  ;;  %v671_v55 = vrot.slane %v663_v43, %v2831_v10 }
  0x3e   : > { %2442 = vmatpush3.bf16.msra.mxu0 %v2596_v54  ;;  %2365 = vmatprep.subr.bf16.mxu1 %v2679_v1  ;;  %v1726_v54 = vrot.slane %v1711_v44, 7 }
  0x3f   : > { %2443 = vmatprep.subr.bf16.mxu0 %v2679_v1  ;;  %v679_v49 = vcombine.low %v671_v55, %v3018_v45 }
  0x40   : > { %v1727_v57 = vsel %vm2872_vm14, %v2222_v46, %v1726_v54 }
  0x41   : > { %2366 = vmatpush3.bf16.msra.mxu1 %v2599_v62  ;;  %v1746_v60 = vcombine.low %v2927_v2, %v1727_v57  ;;  %v2624_v2 = vld [vmem:[%s3178_s1 + $0x1c0] sm:$0xff]  }
  0x42   : > { %2444 = vmatpush3.bf16.msra.mxu0 %v2598_v63  ;;  %2367 = vmatprep.subr.bf16.mxu1 %v2679_v1  ;;  %v2620_v63 = vld [vmem:[%s3178_s1 + $0x1b8] sm:$0xff]  }
  0x43   : > { %2445 = vmatprep.subr.bf16.mxu0 %v2679_v1  ;;  %v3039_v48 = vrot.slane %v1746_v60, %v2831_v10  ;;  %v1357_v10 = vcombine.low %v2651_v58, %v2652_v59 }
  0x45   : > { %2368 = vmatpush3.bf16.msra.mxu1 %v2601_v3  ;;  %v1761_v62 = vcombine.low %v3018_v45, %v3039_v48  ;;  %v2627_v3 = vld [vmem:[%s3178_s1 + $0xd0] sm:$0xff]  }
  0x46   : > { %2446 = vmatpush3.bf16.msra.mxu0 %v2600_v6  ;;  %2373 = vmatprep.subr.bf16.mxu1 %v2679_v1  ;;  %v2628_v6 = vld [vmem:[%s3178_s1 + $0x1d0] sm:$0xff]  }
  0x47   : > { %2447 = vmatprep.subr.bf16.mxu0 %v2679_v1 }
  0x48   : > { %2370 = vmatmul.mubr.bf16.vlgmr.msra.gmra.mrb[0].mxu1 %v492_v7  ;;  %v2631_v7 = vld [vmem:[%s3178_s1 + $0xe0] sm:$0xff]  }
  0x49   : > { %2374 = vmatpush3.bf16.msra.mxu1 %v2605_v8  ;;  %2389 = vmatprep.mubr.msk.bf16.mxu1 %vm2680_vm0, %v2679_v1  ;;  %v2630_v8 = vld [vmem:[%s3178_s1 + $0x1d8] sm:$0xff]  }
  0x4a   : > { %2448 = vmatpush3.bf16.msra.mxu0 %v2602_v12  ;;  %2375 = vmatprep.subr.bf16.mxu1 %v2679_v1  ;;  %v2653_v12 = vld.sshfl [vmem:[%s2767_s12 + $0x4] sm:$0xf pattern:$0x76325410] }
  0x4b   : > { %2453 = vmatprep.subr.bf16.mxu0 %v2679_v1 }
  0x4d   : > { %2450 = vmatmul.mubr.bf16.vlgmr.msra.gmra.mrb[0].mxu0 %v1220_v13  ;;  %2376 = vmatpush3.bf16.msra.mxu1 %v2607_v14  ;;  %v2654_v13 = vld.sshfl [vmem:[%s2767_s12 + $0xc] sm:$0xf pattern:$0x76325410] }
  0x4e   : > { %2454 = vmatpush3.bf16.msra.mxu0 %v2606_v15  ;;  %2377 = vmatprep.subr.bf16.mxu1 %v2679_v1  ;;  %v2635_v14 = vld [vmem:[%s3178_s1 + $0xf0] sm:$0xff]   ;;  %v2634_v15 = vld [vmem:[%s3178_s1 + $0x1e8] sm:$0xff]  }
  0x4f   : > { %2455 = vmatprep.subr.bf16.mxu0 %v2679_v1  ;;  %2469 = vmatprep.mubr.msk.bf16.mxu0 %vm2680_vm0, %v2679_v1 }
  0x51   : > { %2378 = vmatpush3.bf16.msra.mxu1 %v2609_v17  ;;  %v2636_v17 = vld [vmem:[%s3178_s1 + $0x1f0] sm:$0xff]  }
  0x52   : > { %2456 = vmatpush3.bf16.msra.mxu0 %v2608_v18  ;;  %2379 = vmatprep.subr.bf16.mxu1 %v2679_v1  ;;  %v816_v18 = vcombine.low %v2653_v12, %v2654_v13 }
  0x53   : > { %2457 = vmatprep.subr.bf16.mxu0 %v2679_v1 }
  0x55   : > { %2380 = vmatpush3.bf16.msra.mxu1 %v2611_v19  ;;  %v2638_v19 = vld [vmem:[%s3178_s1 + $0x1f8] sm:$0xff]  }
  0x56   : > { %2458 = vmatpush3.bf16.msra.mxu0 %v2610_v22  ;;  %2381 = vmatprep.subr.bf16.mxu1 %v2679_v1  ;;  %v2642_v22 = vld [vmem:[%s3178_s1 + $0x208] sm:$0xff]  }
  0x57   : > { %2459 = vmatprep.subr.bf16.mxu0 %v2679_v1 }
  0x59   : > { %2382 = vmatpush3.bf16.msra.mxu1 %v2613_v23  ;;  %v2643_v23 = vld [vmem:[%s3178_s1 + $0x210] sm:$0xff]  }
  0x5a   : > { %2460 = vmatpush3.bf16.msra.mxu0 %v2612_v31  ;;  %2383 = vmatprep.subr.bf16.mxu1 %v2679_v1 }
  0x5b   : > { %2461 = vmatprep.subr.bf16.mxu0 %v2679_v1 }
  0x5d   : > { %2384 = vmatpush3.bf16.msra.mxu1 %v2615_v35 }
  0x5e   : > { %2462 = vmatpush3.bf16.msra.mxu0 %v2614_v40  ;;  %2385 = vmatprep.subr.bf16.mxu1 %v2679_v1 }
  0x5f   : > { %2463 = vmatprep.subr.bf16.mxu0 %v2679_v1 }
  0x61   : > { %2386 = vmatpush3.bf16.msra.mxu1 %v2617_v50 }
  0x62   : > { %2464 = vmatpush3.bf16.msra.mxu0 %v2616_v52  ;;  %2387 = vmatprep.subr.bf16.mxu1 %v2679_v1 }
  0x63   : > { %2465 = vmatprep.subr.bf16.mxu0 %v2679_v1 }
  0x65   : > { %2388 = vmatpush3.bf16.msra.mxu1 %v2619_v24 }
  0x66   : > { %2466 = vmatpush3.bf16.msra.mxu0 %v2618_v47  ;;  %2393 = vmatprep.subr.bf16.mxu1 %v2679_v1 }
  0x67   : > { %2467 = vmatprep.subr.bf16.mxu0 %v2679_v1 }
  0x68   : > { %2390 = vmatmul.mubr.bf16.vlgmr.msra.gmra.mrb[0].mxu1 %v679_v49 }
  0x69   : > { %2394 = vmatpush3.bf16.msra.mxu1 %v2621_v61  ;;  %2409 = vmatprep.mubr.msk.bf16.mxu1 %vm2680_vm0, %v2679_v1 }
  0x6a   : > { %2468 = vmatpush3.bf16.msra.mxu0 %v2620_v63  ;;  %2395 = vmatprep.subr.bf16.mxu1 %v2679_v1 }
  0x6b   : > { %2473 = vmatprep.subr.bf16.mxu0 %v2679_v1 }
  0x6d   : > { %2470 = vmatmul.mubr.bf16.vlgmr.msra.gmra.mrb[0].mxu0 %v1357_v10  ;;  %2396 = vmatpush3.bf16.msra.mxu1 %v2625_v0 }
  0x6e   : > { %2474 = vmatpush3.bf16.msra.mxu0 %v2624_v2  ;;  %2397 = vmatprep.subr.bf16.mxu1 %v2679_v1 }
  0x6f   : > { %2475 = vmatprep.subr.bf16.mxu0 %v2679_v1  ;;  %2489 = vmatprep.mubr.msk.bf16.mxu0 %vm2680_vm0, %v2679_v1 }
  0x71   : > { %2398 = vmatpush3.bf16.msra.mxu1 %v2627_v3 }
  0x72   : > { %2476 = vmatpush3.bf16.msra.mxu0 %v2626_v4  ;;  %2399 = vmatprep.subr.bf16.mxu1 %v2679_v1 }
  0x73   : > { %2477 = vmatprep.subr.bf16.mxu0 %v2679_v1 }
  0x75   : > { %2400 = vmatpush3.bf16.msra.mxu1 %v2629_v5 }
  0x76   : > { %2478 = vmatpush3.bf16.msra.mxu0 %v2628_v6  ;;  %2401 = vmatprep.subr.bf16.mxu1 %v2679_v1 }
  0x77   : > { %2479 = vmatprep.subr.bf16.mxu0 %v2679_v1 }
  0x79   : > { %2402 = vmatpush3.bf16.msra.mxu1 %v2631_v7 }
  0x7a   : > { %2480 = vmatpush3.bf16.msra.mxu0 %v2630_v8  ;;  %2403 = vmatprep.subr.bf16.mxu1 %v2679_v1 }
  0x7b   : > { %2481 = vmatprep.subr.bf16.mxu0 %v2679_v1 }
  0x7d   : > { %2404 = vmatpush3.bf16.msra.mxu1 %v2633_v9 }
  0x7e   : > { %2482 = vmatpush3.bf16.msra.mxu0 %v2632_v11  ;;  %2405 = vmatprep.subr.bf16.mxu1 %v2679_v1 }
  0x7f   : > { %2483 = vmatprep.subr.bf16.mxu0 %v2679_v1 }
  0x81   : > { %2406 = vmatpush3.bf16.msra.mxu1 %v2635_v14 }
  0x82   : > { %2484 = vmatpush3.bf16.msra.mxu0 %v2634_v15  ;;  %2407 = vmatprep.subr.bf16.mxu1 %v2679_v1 }
  0x83   : > { %2485 = vmatprep.subr.bf16.mxu0 %v2679_v1 }
  0x85   : > { %2408 = vmatpush3.bf16.msra.mxu1 %v2637_v16 }
  0x86   : > { %2486 = vmatpush3.bf16.msra.mxu0 %v2636_v17 }
  0x87   : > { %2487 = vmatprep.subr.bf16.mxu0 %v2679_v1 }
  0x88   : > { %2410 = vmatmul.mubr.bf16.vlgmr.msra.gmra.mrb[0].mxu1 %v816_v18 }
  0x8a   : > { %2488 = vmatpush3.bf16.msra.mxu0 %v2638_v19 }
  0x8b   : > { %2493 = vmatprep.subr.bf16.mxu0 %v2679_v1 }
  0x8d   : > { %2490 = vmatmul.mubr.bf16.vlgmr.msra.gmra.mrb[0].mxu0 %v1579_v39 }
  0x8e   : > { %2494 = vmatpush3.bf16.msra.mxu0 %v2641_v21  ;;  %2509 = vmatprep.mubr.msk.bf16.mxu0 %vm2680_vm0, %v2679_v1 }
  0x8f   : > { %2495 = vmatprep.subr.bf16.mxu0 %v2679_v1 }
  0x92   : > { %2496 = vmatpush3.bf16.msra.mxu0 %v2642_v22 }
  0x93   : > { %2497 = vmatprep.subr.bf16.mxu0 %v2679_v1 }
  0x96   : > { %2498 = vmatpush3.bf16.msra.mxu0 %v2643_v23 }
  0x97   : > { %2499 = vmatprep.subr.bf16.mxu0 %v2679_v1 }
  0x9a   : > { %2500 = vmatpush3.bf16.msra.mxu0 %v2644_v20 }
  0x9b   : > { %2501 = vmatprep.subr.bf16.mxu0 %v2679_v1 }
  0x9e   : > { %2502 = vmatpush3.bf16.msra.mxu0 %v2645_v25 }
  0x9f   : > { %2503 = vmatprep.subr.bf16.mxu0 %v2679_v1 }
  0xa2   : > { %2504 = vmatpush3.bf16.msra.mxu0 %v2646_v26 }
  0xa3   : > { %2505 = vmatprep.subr.bf16.mxu0 %v2679_v1 }
  0xa6   : > { %2506 = vmatpush3.bf16.msra.mxu0 %v2647_v27 }
  0xa7   : > { %2507 = vmatprep.subr.bf16.mxu0 %v2679_v1  ;;  %v2248_v1 = vld [vmem:[%s3180_s3] ss:$0 sm:$0xff] }
  0xaa   : > { %2508 = vmatpush3.bf16.msra.mxu0 %v2648_v28 }
  0xad   : > { %2510 = vmatmul.mubr.bf16.vlgmr.msra.gmra.mrb[0].mxu0 %v1761_v62 }
 0x15b   : > { %v900_v29 = vpop.f32.mrb[0].mxu1 }
 0x15c   : > { %v2411_v30 = vpop.f32.mrb[1].mxu1 }
 0x15d   : > { %v903_v31 = vpop.f32.mrb[2].mxu1 }
 0x15e   : > { %v2412_v32 = vpop.f32.mrb[3].mxu1 }
 0x180   : > { %v1845_v33 = vpop.f32.mrb[0].mxu0 }
 0x181   : > { %v2513_v35 = vadd.f32 %v1845_v33, %v900_v29  ;;  %v2511_v36 = vpop.f32.mrb[1].mxu0 }
 0x182   : > { %v1848_v37 = vpop.f32.mrb[2].mxu0 }
 0x183   : > { %v1861_v38 = vmul.f32 %v2513_v35, %v2247_v34  ;;  %v2514_v40 = vadd.f32 %v1848_v37, %v903_v31  ;;  %v2512_v41 = vpop.f32.mrb[3].mxu0 }
 0x185   : > { %v1870_v42 = vadd.f32 %v2248_v1, %v1861_v38  ;;  %v1862_v43 = vmul.f32 %v2514_v40, %v2247_v34 }
 0x187   : > { %v1872_v44 = vmax.f32 %v1870_v42, 0.0  ;;  %v1871_v46 = vadd.f32 %v2248_v1, %v1862_v43 }
 0x189   : > { %v1876_v50 = vcombine.high %v1872_v44, %v1872_v44  ;;  %v1880_v51 = vpack.c.bf16 %v1872_v44, %v1872_v44  ;;  %v1873_v52 = vmax.f32 %v1871_v46, 0.0 }
 0x18b   : > { %v1881_v53 = vpack.c.bf16 %v1876_v50, %v1876_v50  ;;  %1884 = vst [vmem:[%s219_s24] sm:$0x3] %v1880_v51  ;;  %v1877_v54 = vcombine.high %v1873_v52, %v1873_v52  ;;  %v1882_v55 = vpack.c.bf16 %v1873_v52, %v1873_v52 }
 0x18d   : > { %1885 = vst [vmem:[%s219_s24 + $0x2] sm:$0x3] %v1881_v53  ;;  %v1883_v45 = vpack.c.bf16 %v1877_v54, %v1877_v54  ;;  %1886 = vst [vmem:[%s219_s24 + $0x4] sm:$0x3] %v1882_v55 }
 0x18f   : > { %1887 = vst [vmem:[%s219_s24 + $0x6] sm:$0x3] %v1883_v45 }
 0x190 PF: > { %s14_s17 = sadd.s32 1, %s2677_s17   ;;  %s3190_s15 = smov %s2673_s16 }
 0x191   : > { %p11_p5 = scmp.ge.s32.totalorder %s14_s17, 4   ;;  %s3191_s16 = smov %s3193_s18 }
 0x193   :  { %13 = sbr.rel (!%p11_p5) target bundleno = 2 (0x2), region = 77 }

// kernel: hrnet_forward.11
= control target key start
LH: loop header
LB: loop body
LE: loop exit
PB: predicated region body
PF: predicated region fallthrough
CT: control target
= control target key end

     0   :  { %11 = vsyncpa [#allocation3], 0  ;;  %s1160_s0 = inlined_call_operand.vmem [shape: bf16[2,4,4,128], index: 0, kind: input, shape index: {}]   ;;  %s1161_s1 = inlined_call_operand.vmem [shape: bf16[2,2,2,128], index: 1, kind: input, shape index: {}]   ;;  %s1162_s2 = inlined_call_operand.vmem [shape: bf16[4,2], index: 2, kind: input, shape index: {}]   ;;  %s1163_s3 = inlined_call_operand.vmem [shape: s32[4], index: 3, kind: input, shape index: {}]   ;;  %s1164_s4 = inlined_call_operand.vmem [shape: s32[4], index: 4, kind: input, shape index: {}]   ;;  %s1165_s5 = inlined_call_operand.vmem [shape: f32[4], index: 5, kind: input, shape index: {}]   ;;  %s1166_s6 = inlined_call_operand.vmem [shape: bf16[2,4,4,128], index: 6, kind: output, shape index: {}]  }
   0x1   :  { %12 = vsyncpa [#allocation5], 0  ;;  %s1003_s21 = smov 0   ;;  %s1005_s22 = smov 0  }
   0x2   :  { %s1007_s23 = smov 0  }
   0x3 LB: > { %s228_s26 = sshll.u32 %s1164_s4, 4  ;;  %s758_s27 = sadd.s32 4294967295, %s961_s23   ;;  %s961_s23 = sphi %s1007_s23, %s18_s23   ;;  %s957_s22 = sphi %s1005_s22, %s1177_s22   ;;  %s953_s21 = sphi %s1003_s21, %s1176_s21   ;;  %s229_s26 = int_to_ptr.vmem [resolvable:$true] %s228_s26 }
   0x4   : > { %p760_p0 = scmp.ge.s32.totalorder %s961_s23, 1  ;;  %p201_p1 = scmp.lt.s32.totalorder %s961_s23, 3 }
   0x5   : > { %p1024_p2 = scmp.eq.s32.totalorder %s758_s27, 0  ;;  %s30_s30 = sadd.s32 1, %s957_s22 }
   0x6   : > { %p1028_p3 = pnand %p760_p0, %p201_p1  ;;  %s217_s9 = sshll.u32 %s1163_s3, 4  ;;  %s218_s9 = int_to_ptr.vmem [resolvable:$true] %s217_s9 }
   0x7   : > { %s1170_s28 = scalar_select %p1024_p2, 1, 0 }
   0x8   : > { %s1171_s29 = scalar_select %p1028_p3, 1, 0 }
   0x9   : > { %p841_p4 = pneg %p1028_p3  ;;  %p1044_p6 = scmp.ge.s32.totalorder %s30_s30, 2 }
   0xa   : > { %s239_s14 = sshll.u32 %s1165_s5, 4  ;;  %s886_s15 = scalar_lea.vmem %s229_s26, 16  ;;  %s240_s14 = int_to_ptr.vmem [resolvable:$true] %s239_s14 }
   0xb   : > { %p1040_p5 = pnand %p1024_p2, %p841_p4  ;;  %p887_p7 = scmp.ne.s32.totalorder %s229_s26, %s886_s15 }
   0xc   : > { %p894_p11 = scmp.lt.s32.totalorder %s229_s26, %s229_s26  ;;  %p895_p12 = scmp.lt.s32.totalorder %s886_s15, %s886_s15 }
   0xd   : > { %p888_p8 = pneg %p1040_p5 }
   0xe   : > { %p896_p13 = por %p895_p12, %p894_p11 }
   0xf   : > { %p889_p9 = pnand %p888_p8, %p887_p7 }
  0x11   : > { %p890_p10 = pneg %p889_p9 }
  0x13   : > { %p897_p0 = pnand %p896_p13, %p890_p10 }
  0x15   : > { %900 = shalt.err (!%p897_p0)
}
  0x16   : > { %s963_s16 = smov [#allocation4]   ;;  %s1179_s30 = smov (%p1044_p6, %s30_s30), 0 }
  0x17   : > { %847 = dma.vmem_to_smem (!%p1040_p5), %s229_s26, 16, %s963_s16, [#allocation5]  }
  0x18   : > { %s901_s17 = scalar_lea.vmem %s218_s9, 16  ;;  %p909_p9 = scmp.lt.s32.totalorder %s218_s9, %s218_s9 }
  0x19   : > { %p902_p1 = scmp.ne.s32.totalorder %s218_s9, %s901_s17  ;;  %p910_p2 = scmp.lt.s32.totalorder %s901_s17, %s901_s17 }
  0x1b   : > { %p904_p4 = pnand %p902_p1, %p888_p8  ;;  %p911_p11 = por %p910_p2, %p909_p9 }
  0x1d   : > { %p905_p7 = pneg %p904_p4 }
  0x1f   : > { %p912_p10 = pnand %p911_p11, %p905_p7 }
  0x21   : > { %915 = shalt.err (!%p912_p10)
}
  0x22   : > { %s964_s18 = smov [#allocation2]   ;;  %s916_s19 = scalar_lea.vmem %s240_s14, 16 }
  0x23   : > { %844 = dma.vmem_to_smem (!%p1040_p5), %s218_s9, 16, %s964_s18, [#allocation3]  }
  0x24   : > { %p917_p6 = scmp.ne.s32.totalorder %s240_s14, %s916_s19  ;;  %p924_p0 = scmp.lt.s32.totalorder %s240_s14, %s240_s14 }
  0x25   : > { %p925_p1 = scmp.lt.s32.totalorder %s916_s19, %s916_s19 }
  0x26   : > { %p919_p12 = pnand %p917_p6, %p888_p8 }
  0x27   : > { %p926_p4 = por %p925_p1, %p924_p0 }
  0x28   : > { %p920_p13 = pneg %p919_p12 }
  0x2a   : > { %p927_p3 = pnand %p926_p4, %p920_p13 }
  0x2c   : > { %930 = shalt.err (!%p927_p3)
}
  0x2d   : > { %s965_s20 = smov [#allocation6]   ;;  %p1174_p2 = scmp.ne.s32.totalorder %s1171_s29, 0 }
  0x2e   : > { %850 = dma.vmem_to_smem (!%p1040_p5), %s240_s14, 16, %s965_s20, [#allocation5]  }
  0x2f   : > { %272 = sbr.rel (%p1174_p2) target bundleno = 309 (0x135), region = 44  ;;  %p1175_p7 = scmp.ne.s32.totalorder (!%p1174_p2), %s1170_s28, 0 }
  0x36   : > { %944 = dma.done.wait (%p1175_p7), [#allocation3], 16  }
  0x37   : > { %946 = vsyncadd (%p1175_p7), [#allocation3], 4294967280 }
  0x38   : > { %948 = dma.done.wait (%p1175_p7), [#allocation5], 32  }
  0x39   : > { %950 = vsyncadd (%p1175_p7), [#allocation5], 4294967264 }
  0x3a   : > { %286 = sfence }
  0x3b   : > { %p324_p3 = scmp.lt.s32.totalorder %s953_s21, 1  ;;  %s349_s24 = sld [smem:[#allocation2]]  ;;  %v966_v0 = vmov 0.0   ;;  %vm967_vm0 = vmmov 0   ;;  %vm370_vm1 = vcmask 1040384   ;;  %vm366_vm2 = vcmask 15360  }
  0x3c   : > { %805 = vmatprep.subr.bf16.mxu0 %v966_v0  ;;  %811 = vmatprep.subr.bf16.mxu1 %v966_v0  ;;  %s350_s25 = sld [smem:[#allocation4]]  ;;  %s775_s27 = sld [smem:[#allocation2 + $0x1]]  ;;  %v363_v33 = vld [vmem:[%s1162_s2] sm:$0x3] }
  0x3d   : > { %s1085_s26 = sld [smem:[#allocation6]]  ;;  %s1181_s21 = smov (!%p324_p3, %s953_s21), 1  ;;  %807 = vmatprep.mubr.msk.bf16.mxu0 %vm967_vm0, %v966_v0  ;;  %813 = vmatprep.mubr.msk.bf16.mxu1 %vm967_vm0, %v966_v0  ;;  %v431_v37 = vld [vmem:[%s1162_s2] sm:$0x3] }
  0x3e   : > { %s776_s28 = sld [smem:[#allocation4 + $0x1]]  ;;  %s771_s29 = sshll.u32 %s1181_s21, 1  ;;  %v499_v43 = vld [vmem:[%s1162_s2] sm:$0x3] }
  0x3f   : > { %s1095_s7 = sld [smem:[#allocation6 + $0x1]]  ;;  %s1100_s10 = scalar_lea.vmem %s1161_s1, %s771_s29  ;;  %v567_v44 = vld [vmem:[%s1162_s2] sm:$0x3] }
  0x40   : > { %s781_s11 = sld [smem:[#allocation2 + $0x2]]  ;;  %s787_s16 = sld [smem:[#allocation2 + $0x3]] }
  0x41   : > { %s352_s12 = scalar_lea.vmem %s1100_s10, %s349_s24  ;;  %s782_s13 = sld [smem:[#allocation4 + $0x2]] }
  0x42   : > { %v353_v1 = vld [vmem:[%s352_s12] sm:$0x1]  ;;  %s355_s14 = scalar_lea.vmem %s1100_s10, %s350_s25  ;;  %s1104_s15 = sld [smem:[#allocation6 + $0x2]] }
  0x43   : > { %v354_v2 = vunpack.c.l.bf16 %v353_v1  ;;  %v356_v3 = vld [vmem:[%s355_s14] sm:$0x1]  ;;  %s788_s17 = sld [smem:[#allocation4 + $0x3]]  ;;  %s420_s18 = scalar_lea.vmem %s1100_s10, %s775_s27  ;;  %v359_v5 = vstv %s1085_s26 }
  0x44   : > { %v357_v4 = vunpack.c.l.bf16 %v356_v3  ;;  %s423_s19 = scalar_lea.vmem %s1100_s10, %s776_s28  ;;  %v421_v6 = vld [vmem:[%s420_s18] sm:$0x1]  ;;  %s1109_s20 = sld [smem:[#allocation6 + $0x3]] }
  0x45   : > { %v424_v7 = vld [vmem:[%s423_s19] sm:$0x1]  ;;  %v422_v9 = vunpack.c.l.bf16 %v421_v6  ;;  %v427_v11 = vstv %s1095_s7 }
  0x46   : > { %v358_v8 = vsub.f32 %v357_v4, %v354_v2  ;;  %v425_v10 = vunpack.c.l.bf16 %v424_v7  ;;  %s488_s24 = scalar_lea.vmem %s1100_s10, %s781_s11  ;;  %s556_s26 = scalar_lea.vmem %s1100_s10, %s787_s16 }
  0x47   : > { %v489_v12 = vld [vmem:[%s488_s24] sm:$0x1]  ;;  %s491_s25 = scalar_lea.vmem %s1100_s10, %s782_s13  ;;  %s795_s13 = sshll.u32 %s1181_s21, 3 }
  0x48   : > { %v360_v13 = vmul.f32 %v359_v5, %v358_v8  ;;  %v426_v14 = vsub.f32 %v425_v10, %v422_v9  ;;  %v490_v15 = vunpack.c.l.bf16 %v489_v12  ;;  %v492_v16 = vld [vmem:[%s491_s25] sm:$0x1]  ;;  %v495_v20 = vstv %s1104_s15  ;;  %s331_s16 = scalar_lea.vmem %s1160_s0, %s795_s13  ;;  %s345_s19 = scalar_lea.vmem %s1166_s6, %s795_s13 }
  0x49   : > { %v493_v17 = vunpack.c.l.bf16 %v492_v16  ;;  %s559_s27 = scalar_lea.vmem %s1100_s10, %s788_s17  ;;  %v557_v21 = vld [vmem:[%s556_s26] sm:$0x1]  ;;  %v778_v46 = vld [vmem:[%s331_s16 + $0x2] sm:$0x3]  ;;  %v784_v54 = vld [vmem:[%s331_s16 + $0x4] sm:$0x3] }
  0x4a   : > { %v361_v18 = vadd.f32 %v360_v13, %v354_v2  ;;  %v428_v19 = vmul.f32 %v427_v11, %v426_v14  ;;  %v560_v22 = vld [vmem:[%s559_s27] sm:$0x1]  ;;  %v558_v24 = vunpack.c.l.bf16 %v557_v21  ;;  %v563_v28 = vstv %s1109_s20  ;;  %v790_v60 = vld [vmem:[%s331_s16 + $0x6] sm:$0x3] }
  0x4b   : > { %v494_v23 = vsub.f32 %v493_v17, %v490_v15  ;;  %v561_v25 = vunpack.c.l.bf16 %v560_v22  ;;  %v364_v45 = vld [vmem:[%s331_s16] sm:$0x3]  ;;  %v434_v48 = vunpack.c.l.bf16 %v778_v46  ;;  %v502_v63 = vunpack.c.l.bf16 %v784_v54 }
  0x4c   : > { %v362_v26 = vpack.c.bf16 %v361_v18, %v361_v18  ;;  %v429_v27 = vadd.f32 %v428_v19, %v422_v9  ;;  %v365_v47 = vunpack.c.l.bf16 %v364_v45 }
  0x4d   : > { %v496_v29 = vmul.f32 %v495_v20, %v494_v23  ;;  %v562_v30 = vsub.f32 %v561_v25, %v558_v24 }
  0x4e   : > { %v372_v31 = vsel %vm370_vm1, %v362_v26, 0  ;;  %v430_v32 = vpack.c.bf16 %v429_v27, %v429_v27 }
  0x4f   : > { %806 = vmatpush3.bf16.msra.mxu0 %v372_v31  ;;  %v497_v34 = vadd.f32 %v496_v29, %v490_v15  ;;  %v564_v35 = vmul.f32 %v563_v28, %v562_v30 }
  0x50   : > { %v439_v36 = vsel %vm370_vm1, %v430_v32, 0  ;;  %817 = vmatprep.subr.bf16.mxu0 %v966_v0 }
  0x51   : > { %812 = vmatpush3.bf16.msra.mxu1 %v439_v36  ;;  %v498_v38 = vpack.c.bf16 %v497_v34, %v497_v34  ;;  %v565_v39 = vadd.f32 %v564_v35, %v558_v24 }
  0x52   : > { %808 = vmatmul.mubr.msk.bf16.vlgmr.msra.gmra.mrb[0].mxu0 %vm366_vm2, %v363_v33  ;;  %823 = vmatprep.subr.bf16.mxu1 %v966_v0 }
  0x53   : > { %v507_v40 = vsel %vm370_vm1, %v498_v38, 0  ;;  %v566_v41 = vpack.c.bf16 %v565_v39, %v565_v39  ;;  %819 = vmatprep.mubr.msk.bf16.mxu0 %vm967_vm0, %v966_v0 }
  0x54   : > { %814 = vmatmul.mubr.msk.bf16.vlgmr.msra.gmra.mrb[0].mxu1 %vm366_vm2, %v431_v37  ;;  %818 = vmatpush3.bf16.msra.mxu0 %v507_v40 }
  0x55   : > { %v575_v42 = vsel %vm370_vm1, %v566_v41, 0  ;;  %825 = vmatprep.mubr.msk.bf16.mxu1 %vm967_vm0, %v966_v0  ;;  %v570_v0 = vunpack.c.l.bf16 %v790_v60 }
  0x56   : > { %824 = vmatpush3.bf16.msra.mxu1 %v575_v42 }
  0x5a   : > { %820 = vmatmul.mubr.msk.bf16.vlgmr.msra.gmra.mrb[4].mxu0 %vm366_vm2, %v499_v43 }
  0x5c   : > { %826 = vmatmul.mubr.msk.bf16.vlgmr.msra.gmra.mrb[4].mxu1 %vm366_vm2, %v567_v44 }
 0x125   : > { %v408_v49 = vpop.f32.mrb[0].mxu0 }
 0x126   : > { %v409_v50 = vadd.f32 %v408_v49, %v365_v47  ;;  %v809_v51 = vpop.f32.mrb[1].mxu0 }
 0x127   : > { %v475_v52 = vpop.f32.mrb[0].mxu1  ;;  %v411_v53 = vpop.f32.mrb[2].mxu0 }
 0x128   : > { %v414_v55 = vpack.c.bf16 %v409_v50, %v409_v50  ;;  %v476_v56 = vadd.f32 %v475_v52, %v434_v48  ;;  %v815_v57 = vpop.f32.mrb[1].mxu1  ;;  %v810_v58 = vpop.f32.mrb[3].mxu0 }
 0x129   : > { %v478_v59 = vpop.f32.mrb[2].mxu1 }
 0x12a   : > { %415 = vst [vmem:[%s345_s19] sm:$0x3] %v414_v55  ;;  %v481_v61 = vpack.c.bf16 %v476_v56, %v476_v56  ;;  %v816_v62 = vpop.f32.mrb[3].mxu1 }
 0x12c   : > { %780 = vst [vmem:[%s345_s19 + $0x2] sm:$0x3] %v481_v61 }
 0x12d   : > { %v543_v1 = vpop.f32.mrb[4].mxu0 }
 0x12e   : > { %v544_v2 = vadd.f32 %v543_v1, %v502_v63  ;;  %v821_v3 = vpop.f32.mrb[5].mxu0 }
 0x12f   : > { %v611_v4 = vpop.f32.mrb[4].mxu1  ;;  %v546_v5 = vpop.f32.mrb[6].mxu0 }
 0x130   : > { %v549_v6 = vpack.c.bf16 %v544_v2, %v544_v2  ;;  %v612_v7 = vadd.f32 %v611_v4, %v570_v0  ;;  %v827_v8 = vpop.f32.mrb[5].mxu1  ;;  %v822_v9 = vpop.f32.mrb[7].mxu0 }
 0x131   : > { %v614_v10 = vpop.f32.mrb[6].mxu1 }
 0x132   : > { %786 = vst [vmem:[%s345_s19 + $0x4] sm:$0x3] %v549_v6  ;;  %v617_v11 = vpack.c.bf16 %v612_v7, %v612_v7  ;;  %v828_v12 = vpop.f32.mrb[7].mxu1 }
 0x134   : > { %792 = vst [vmem:[%s345_s19 + $0x6] sm:$0x3] %v617_v11 }
 0x135 PF: > { %s18_s23 = sadd.s32 1, %s961_s23   ;;  %s1176_s21 = smov %s957_s22 }
 0x136   : > { %p15_p5 = scmp.ge.s32.totalorder %s18_s23, 4   ;;  %s1177_s22 = smov %s1179_s30 }
 0x138   :  { %17 = sbr.rel (!%p15_p5) target bundleno = 3 (0x3), region = 104 }
 0x13f   :  { %650 = vsyncpa [#allocation3], 1 }
 0x140   :  { %652 = vsyncpa [#allocation3 + $0x1], 1 }
 0x141   :  { %653 = vsyncpa [#allocation5], 1 }

// kernel: hrnet_forward.10
= control target key start
LH: loop header
LB: loop body
LE: loop exit
PB: predicated region body
PF: predicated region fallthrough
CT: control target
= control target key end

     0   :  { %s2473_s24 = smov 0   ;;  %s2475_s25 = smov 0   ;;  %s2906_s0 = inlined_call_operand.vmem [shape: bf16[2,3,3,128], index: 0, kind: input, shape index: {}]   ;;  %s2907_s1 = inlined_call_operand.vmem [shape: bf16[2,3,3,128], index: 1, kind: input, shape index: {}]   ;;  %s2908_s2 = inlined_call_operand.vmem [shape: bf16[2,3,3,128], index: 2, kind: input, shape index: {}]   ;;  %s2909_s3 = inlined_call_operand.vmem [shape: bf16[2,3,3,128], index: 3, kind: input, shape index: {}]   ;;  %s2910_s4 = inlined_call_operand.vmem [shape: bf16[9,128,128], index: 4, kind: input, shape index: {}]   ;;  %s2911_s5 = inlined_call_operand.vmem [shape: f32[1,128], index: 5, kind: input, shape index: {}]   ;;  %s2912_s6 = inlined_call_operand.vmem [shape: f32[1,128], index: 6, kind: input, shape index: {}]   ;;  %s2913_s7 = inlined_call_operand.vmem [shape: bf16[2,2,2,128], index: 7, kind: output, shape index: {}]  }
   0x1   :  { %s2477_s26 = smov 0  }
   0x2 LB: > { %s29_s27 = sadd.s32 1, %s2423_s25  ;;  %p1786_p0 = scmp.ge.s32.totalorder %s2427_s26, 1  ;;  %s2427_s26 = sphi %s2477_s26, %s17_s26   ;;  %s2423_s25 = sphi %s2475_s25, %s2917_s25   ;;  %s2419_s24 = sphi %s2473_s24, %s2916_s24  }
   0x3   : > { %p31_p1 = scmp.ge.s32.totalorder %s29_s27, 2  ;;  %p281_p2 = scmp.lt.s32.totalorder %s2427_s26, 3 }
   0x5   : > { %s2919_s27 = smov (%p31_p1, %s29_s27), 0  ;;  %p282_p3 = pnand %p1786_p0, %p281_p2 }
   0x6   : > { %v2333_v0 = vld [vmem:[%s2910_s4 + $0x40] sm:$0xff] (!%p282_p3)   ;;  %v2429_v1 = vmov (!%p282_p3), 0.0   ;;  %v2335_v3 = vld [vmem:[%s2910_s4 + $0x48] sm:$0xff] (!%p282_p3)   ;;  %vm2430_vm0 = vmmov (!%p282_p3), 0   ;;  %p331_p4 = scmp.lt.s32.totalorder (!%p282_p3), %s2419_s24, 1  ;;  %v2337_v5 = vld [vmem:[%s2910_s4 + $0x50] sm:$0xff] (!%p282_p3)   ;;  %v409_v9 = vlaneseq (!%p282_p3) }
   0x7   : > { %285 = sbr.rel (%p282_p3) target bundleno = 395 (0x18b), region = 48  ;;  %2095 = vmatprep.subr.bf16.mxu1 (!%p282_p3), %v2429_v1  ;;  %2175 = vmatprep.subr.bf16.mxu0 (!%p282_p3), %v2429_v1  ;;  %v2334_v2 = vld [vmem:[%s2910_s4 + $0x100] sm:$0xff] (!%p282_p3)   ;;  %v2336_v4 = vld [vmem:[%s2910_s4 + $0x108] sm:$0xff] (!%p282_p3)   ;;  %v2338_v6 = vld [vmem:[%s2910_s4 + $0x110] sm:$0xff] (!%p282_p3)   ;;  %v2431_v16 = vmov (!%p282_p3), 1966171168  }
   0x8   : > { %2096 = vmatpush3.bf16.msra.mxu1 (!%p282_p3), %v2333_v0  ;;  %2111 = vmatprep.mubr.msk.bf16.mxu1 (!%p282_p3), %vm2430_vm0, %v2429_v1  ;;  %v2339_v7 = vld [vmem:[%s2910_s4 + $0x58] sm:$0xff] (!%p282_p3)   ;;  %v2341_v10 = vld [vmem:[%s2910_s4 + $0x60] sm:$0xff] (!%p282_p3)   ;;  %v2343_v12 = vld [vmem:[%s2910_s4 + $0x68] sm:$0xff] (!%p282_p3)   ;;  %v2553_v13 = vshrl.u32 (!%p282_p3), %v409_v9, 7  ;;  %v407_v17 = vunpack.c.l.s4 (!%p282_p3), %v2431_v16  ;;  %vm635_vm1 = vsmask.f32 (!%p282_p3), 256 }
   0x9   : > { %2176 = vmatpush3.bf16.msra.mxu0 (!%p282_p3), %v2334_v2  ;;  %2097 = vmatprep.subr.bf16.mxu1 (!%p282_p3), %v2429_v1  ;;  %v2340_v8 = vld [vmem:[%s2910_s4 + $0x118] sm:$0xff] (!%p282_p3)   ;;  %v2342_v11 = vld [vmem:[%s2910_s4 + $0x120] sm:$0xff] (!%p282_p3)   ;;  %v2344_v14 = vld [vmem:[%s2910_s4 + $0x128] sm:$0xff] (!%p282_p3)   ;;  %vm636_vm2 = vsmask.f32 (!%p282_p3), 1284 }
   0xa   : > { %2177 = vmatprep.subr.bf16.mxu0 (!%p282_p3), %v2429_v1  ;;  %2191 = vmatprep.mubr.msk.bf16.mxu0 (!%p282_p3), %vm2430_vm0, %v2429_v1  ;;  %v408_v20 = vunpack.c.0.s8 (!%p282_p3), %v407_v17  ;;  %v2345_v24 = vld [vmem:[%s2910_s4 + $0x70] sm:$0xff] (!%p282_p3)   ;;  %v2347_v28 = vld [vmem:[%s2910_s4 + $0x78] sm:$0xff] (!%p282_p3)   ;;  %v2349_v32 = vld [vmem:[%s2910_s4] sm:$0xff] (!%p282_p3)   ;;  %vm638_vm4 = vsmask.f32 (!%p282_p3), 2312 }
   0xb   : > { %v2346_v26 = vld [vmem:[%s2910_s4 + $0x130] sm:$0xff] (!%p282_p3)   ;;  %v2348_v30 = vld [vmem:[%s2910_s4 + $0x138] sm:$0xff] (!%p282_p3)   ;;  %v2350_v34 = vld [vmem:[%s2910_s4 + $0x140] sm:$0xff] (!%p282_p3)   ;;  %vm640_vm5 = vsmask.f32 (!%p282_p3), 3340 }
   0xc   : > { %2098 = vmatpush3.bf16.msra.mxu1 (!%p282_p3), %v2335_v3  ;;  %v2563_v23 = vsub.s32 (!%p282_p3), %v408_v20, %v2553_v13  ;;  %v2351_v35 = vld [vmem:[%s2910_s4 + $0x8] sm:$0xff] (!%p282_p3)   ;;  %vm637_vm3 = vmor (!%p282_p3), %vm635_vm1, %vm636_vm2  ;;  %vm642_vm6 = vsmask.f32 (!%p282_p3), 4368  ;;  %v2353_v37 = vld [vmem:[%s2910_s4 + $0x10] sm:$0xff] (!%p282_p3)   ;;  %vm644_vm10 = vsmask.f32 (!%p282_p3), 5396 }
   0xd   : > { %2178 = vmatpush3.bf16.msra.mxu0 (!%p282_p3), %v2336_v4  ;;  %2099 = vmatprep.subr.bf16.mxu1 (!%p282_p3), %v2429_v1  ;;  %v2352_v36 = vld [vmem:[%s2910_s4 + $0x148] sm:$0xff] (!%p282_p3)   ;;  %v2354_v38 = vld [vmem:[%s2910_s4 + $0x150] sm:$0xff] (!%p282_p3)   ;;  %vm639_vm7 = vmor (!%p282_p3), %vm637_vm3, %vm638_vm4  ;;  %vm646_vm12 = vsmask.f32 (!%p282_p3), 6424  ;;  %vm648_vm14 = vsmask.f32 (!%p282_p3), 7452 }
   0xe   : > { %s2921_s24 = smov (!%p331_p4, %s2419_s24), 1  ;;  %2179 = vmatprep.subr.bf16.mxu0 %v2429_v1  ;;  %vm641_vm8 = vmor %vm639_vm7, %vm640_vm5  ;;  %v2355_v41 = vld [vmem:[%s2910_s4 + $0x18] sm:$0xff]   ;;  %v2357_v45 = vld [vmem:[%s2910_s4 + $0x20] sm:$0xff]  }
   0xf   : > { %s2525_s19 = smul.u32 6, %s2921_s24  ;;  %vm643_vm9 = vmor %vm641_vm8, %vm642_vm6  ;;  %v2356_v42 = vld [vmem:[%s2910_s4 + $0x158] sm:$0xff]   ;;  %v2358_v46 = vld [vmem:[%s2910_s4 + $0x160] sm:$0xff]   ;;  %s1791_s8 = sshll.u32 %s2921_s24, 1 }
  0x10   : > { %2100 = vmatpush3.bf16.msra.mxu1 %v2337_v5  ;;  %vm645_vm11 = vmor %vm643_vm9, %vm644_vm10  ;;  %v2359_v51 = vld [vmem:[%s2910_s4 + $0x28] sm:$0xff]   ;;  %v2361_v59 = vld [vmem:[%s2910_s4 + $0x30] sm:$0xff]   ;;  %s358_s11 = scalar_lea.vmem %s2913_s7, %s1791_s8 }
  0x11   : > { %2180 = vmatpush3.bf16.msra.mxu0 %v2338_v6  ;;  %2101 = vmatprep.subr.bf16.mxu1 %v2429_v1  ;;  %s2539_s30 = scalar_lea.vmem %s2907_s1, %s2525_s19  ;;  %s350_s12 = scalar_lea.vmem %s2909_s3, %s2525_s19  ;;  %vm647_vm13 = vmor %vm645_vm11, %vm646_vm12  ;;  %v2360_v55 = vld [vmem:[%s2910_s4 + $0x168] sm:$0xff]   ;;  %v2362_v61 = vld [vmem:[%s2910_s4 + $0x170] sm:$0xff]  }
  0x12   : > { %2181 = vmatprep.subr.bf16.mxu0 %v2429_v1  ;;  %v384_v15 = vld [vmem:[%s2539_s30] sm:$0x1]  ;;  %v385_v18 = vld [vmem:[%s2539_s30 + $0x2] sm:$0x1]  ;;  %s2604_s18 = scalar_lea.vmem %s2908_s2, %s2525_s19  ;;  %s2639_s16 = scalar_lea.vmem %s2906_s0, %s2525_s19  ;;  %vm2646_vm15 = vmor %vm647_vm13, %vm648_vm14 }
  0x13   : > { %v920_v19 = vld [vmem:[%s350_s12] sm:$0x1]  ;;  %v921_v21 = vld [vmem:[%s350_s12 + $0x2] sm:$0x1]  ;;  %v405_v22 = vcombine.low %v384_v15, %v385_v18  ;;  %v2363_v63 = vld [vmem:[%s2910_s4 + $0x38] sm:$0xff]  }
  0x14   : > { %2102 = vmatpush3.bf16.msra.mxu1 %v2339_v7  ;;  %v941_v25 = vcombine.low %v920_v19, %v921_v21  ;;  %v1900_v39 = vld.sshfl [vmem:[%s2604_s18] sm:$0x11 pattern:$0x75316420]  ;;  %v365_v54 = vld [vmem:[%s2639_s16 + $0x2] sm:$0x1] }
  0x15   : > { %2182 = vmatpush3.bf16.msra.mxu0 %v2340_v8  ;;  %2103 = vmatprep.subr.bf16.mxu1 %v2429_v1  ;;  %v412_v27 = vrot.slane %v405_v22, %v2563_v23  ;;  %v1901_v40 = vld.sshfl [vmem:[%s2604_s18 + $0x2] sm:$0x11 pattern:$0x75316420]  ;;  %v1057_v43 = vcombine.high %v1900_v39, %v1900_v39  ;;  %v1067_v47 = vshrl.u32 %v1900_v39, 16  ;;  %v2364_v2 = vld [vmem:[%s2910_s4 + $0x178] sm:$0xff]  }
  0x16   : > { %2183 = vmatprep.subr.bf16.mxu0 %v2429_v1  ;;  %v948_v29 = vrot.slane %v941_v25, %v2563_v23  ;;  %v1065_v44 = vcombine.high %v1901_v40, %v1901_v40  ;;  %v1076_v48 = vshrl.u32 %v1901_v40, 16  ;;  %v364_v53 = vld [vmem:[%s2639_s16] sm:$0x1]  ;;  %v2367_v7 = vld [vmem:[%s2910_s4 + $0x88] sm:$0xff]   ;;  %v2372_v17 = vld [vmem:[%s2910_s4 + $0x198] sm:$0xff]  }
  0x17   : > { %v419_v31 = vrot.slane %v412_v27, %v2563_v23  ;;  %v1072_v49 = vshll.u32 %v1057_v43, 16  ;;  %v511_v58 = vcombine.low %v364_v53, %v365_v54  ;;  %v2365_v4 = vld [vmem:[%s2910_s4 + $0x80] sm:$0xff]   ;;  %v2368_v8 = vld [vmem:[%s2910_s4 + $0x188] sm:$0xff]   ;;  %v2386_v52 = vld [vmem:[%s2910_s4 + $0x1d0] sm:$0xff]  }
  0x18   : > { %2104 = vmatpush3.bf16.msra.mxu1 %v2341_v10  ;;  %v955_v33 = vrot.slane %v948_v29, %v2563_v23  ;;  %v1081_v50 = vshll.u32 %v1065_v44, 16  ;;  %v2366_v6 = vld [vmem:[%s2910_s4 + $0x180] sm:$0xff]   ;;  %v2375_v25 = vld [vmem:[%s2910_s4 + $0xa8] sm:$0xff]   ;;  %v2380_v44 = vld [vmem:[%s2910_s4 + $0x1b8] sm:$0xff]  }
  0x19   : > { %2184 = vmatpush3.bf16.msra.mxu0 %v2342_v11  ;;  %2105 = vmatprep.subr.bf16.mxu1 %v2429_v1  ;;  %v1074_v56 = vsel %vm2646_vm15, %v1067_v47, %v1072_v49  ;;  %v518_v62 = vrot.slane %v511_v58, %v2563_v23  ;;  %v1824_v9 = vld.sshfl [vmem:[%s2639_s16] sm:$0x11 pattern:$0x75316420]  ;;  %v2369_v11 = vld [vmem:[%s2910_s4 + $0x90] sm:$0xff]   ;;  %v2376_v29 = vld [vmem:[%s2910_s4 + $0x1a8] sm:$0xff]  }
  0x1a   : > { %2185 = vmatprep.subr.bf16.mxu0 %v2429_v1  ;;  %v1083_v57 = vsel %vm2646_vm15, %v1076_v48, %v1081_v50  ;;  %v1825_v10 = vld.sshfl [vmem:[%s2639_s16 + $0x2] sm:$0x11 pattern:$0x75316420]  ;;  %v626_v15 = vcombine.high %v1824_v9, %v1824_v9  ;;  %v651_v19 = vshrl.u32 %v1824_v9, 16  ;;  %v2383_v49 = vld [vmem:[%s2910_s4 + $0xc8] sm:$0xff]  }
  0x1b   : > { %v1101_v60 = vcombine.low %v1074_v56, %v1083_v57  ;;  %v525_v3 = vrot.slane %v518_v62, %v2563_v23  ;;  %v634_v16 = vcombine.high %v1825_v10, %v1825_v10  ;;  %v2373_v18 = vld [vmem:[%s2910_s4 + $0xa0] sm:$0xff]   ;;  %v660_v20 = vshrl.u32 %v1825_v10, 16  ;;  %v2384_v50 = vld [vmem:[%s2910_s4 + $0x1c8] sm:$0xff]   ;;  %v2387_v53 = vld [vmem:[%s2910_s4 + $0xd8] sm:$0xff]  }
  0x1c   : > { %2106 = vmatpush3.bf16.msra.mxu1 %v2343_v12  ;;  %v2370_v12 = vld [vmem:[%s2910_s4 + $0x190] sm:$0xff]   ;;  %v656_v21 = vshll.u32 %v626_v15, 16  ;;  %v2382_v48 = vld [vmem:[%s2910_s4 + $0x1c0] sm:$0xff]   ;;  %v2388_v54 = vld [vmem:[%s2910_s4 + $0x1d8] sm:$0xff]  }
  0x1d   : > { %2186 = vmatpush3.bf16.msra.mxu0 %v2344_v14  ;;  %2107 = vmatprep.subr.bf16.mxu1 %v2429_v1  ;;  %v1108_v0 = vrot.slane %v1101_v60, %v2563_v23  ;;  %v2371_v14 = vld [vmem:[%s2910_s4 + $0x98] sm:$0xff]   ;;  %v665_v22 = vshll.u32 %v634_v16, 16  ;;  %v2390_v56 = vld [vmem:[%s2910_s4 + $0x1e0] sm:$0xff]   ;;  %v2391_v57 = vld [vmem:[%s2910_s4 + $0xe8] sm:$0xff]  }
  0x1e   : > { %2187 = vmatprep.subr.bf16.mxu0 %v2429_v1  ;;  %v792_v58 = vld [vmem:[%s2604_s18] sm:$0x1]  ;;  %v2392_v60 = vld [vmem:[%s2910_s4 + $0x1e8] sm:$0xff]   ;;  %v1955_v62 = vld [vmem:[%s2539_s30 + $0x4] sm:$0x1] }
  0x1f   : > { %v1115_v5 = vrot.slane %v1108_v0, %v2563_v23  ;;  %v2734_v27 = vsel %vm2646_vm15, %v660_v20, %v665_v22  ;;  %v2393_v0 = vld [vmem:[%s2910_s4 + $0xf0] sm:$0xff]   ;;  %v2397_v10 = vld [vmem:[%s2910_s4 + $0x200] sm:$0xff]   ;;  %v2402_v16 = vld [vmem:[%s2910_s4 + $0x228] sm:$0xff]  }
  0x20   : > { %2108 = vmatpush3.bf16.msra.mxu1 %v2345_v24  ;;  %v2374_v24 = vld [vmem:[%s2910_s4 + $0x1a0] sm:$0xff]  }
  0x21   : > { %2188 = vmatpush3.bf16.msra.mxu0 %v2346_v26  ;;  %2109 = vmatprep.subr.bf16.mxu1 %v2429_v1  ;;  %v658_v26 = vsel %vm2646_vm15, %v651_v19, %v656_v21  ;;  %v2401_v15 = vld [vmem:[%s2910_s4 + $0x220] sm:$0xff]   ;;  %v2404_v19 = vld [vmem:[%s2910_s4 + $0x238] sm:$0xff]  }
  0x22   : > { %2189 = vmatprep.subr.bf16.mxu0 %v2429_v1 }
  0x24   : > { %2110 = vmatpush3.bf16.msra.mxu1 %v2347_v28  ;;  %v1983_v28 = vld.sshfl [vmem:[%s2639_s16 + $0x4] sm:$0x11 pattern:$0x75316420] }
  0x25   : > { %2190 = vmatpush3.bf16.msra.mxu0 %v2348_v30  ;;  %2115 = vmatprep.subr.bf16.mxu1 %v2429_v1  ;;  %v1928_v30 = vld [vmem:[%s2639_s16 + $0x2] sm:$0x1] }
  0x26   : > { %2195 = vmatprep.subr.bf16.mxu0 %v2429_v1 }
  0x27   : > { %2112 = vmatmul.mubr.bf16.vlgmr.msra.gmra.mrb[0].mxu1 %v419_v31  ;;  %v1929_v31 = vld [vmem:[%s2639_s16 + $0x4] sm:$0x1] }
  0x28   : > { %2116 = vmatpush3.bf16.msra.mxu1 %v2349_v32  ;;  %2192 = vmatmul.mubr.bf16.vlgmr.msra.gmra.mrb[0].mxu0 %v955_v33  ;;  %v1482_v32 = vcombine.high %v1983_v28, %v1983_v28  ;;  %v1493_v33 = vshrl.u32 %v1983_v28, 16 }
  0x29   : > { %2196 = vmatpush3.bf16.msra.mxu0 %v2350_v34  ;;  %2117 = vmatprep.subr.bf16.mxu1 %v2429_v1  ;;  %v685_v34 = vcombine.low %v658_v26, %v2734_v27  ;;  %v2432_v26 = vmov 1983009808  }
  0x2a   : > { %2197 = vmatprep.subr.bf16.mxu0 %v2429_v1  ;;  %2131 = vmatprep.mubr.msk.bf16.mxu1 %vm2430_vm0, %v2429_v1  ;;  %v1642_v28 = vunpack.c.l.s4 %v2432_v26 }
  0x2b   : > { %2211 = vmatprep.mubr.msk.bf16.mxu0 %vm2430_vm0, %v2429_v1 }
  0x2c   : > { %2118 = vmatpush3.bf16.msra.mxu1 %v2351_v35  ;;  %v1498_v35 = vshll.u32 %v1482_v32, 16 }
  0x2d   : > { %2198 = vmatpush3.bf16.msra.mxu0 %v2352_v36  ;;  %2119 = vmatprep.subr.bf16.mxu1 %v2429_v1  ;;  %v2377_v36 = vld [vmem:[%s2910_s4 + $0xb0] sm:$0xff]  }
  0x2e   : > { %2199 = vmatprep.subr.bf16.mxu0 %v2429_v1  ;;  %v2754_v39 = vsel %vm2646_vm15, %v1493_v33, %v1498_v35 }
  0x2f   : > { %v1518_v40 = vcombine.low %v2734_v27, %v2754_v39 }
  0x30   : > { %2120 = vmatpush3.bf16.msra.mxu1 %v2353_v37  ;;  %v1230_v37 = vcombine.low %v1928_v30, %v1929_v31  ;;  %v1643_v31 = vunpack.c.0.s8 %v1642_v28 }
  0x31   : > { %2200 = vmatpush3.bf16.msra.mxu0 %v2354_v38  ;;  %2121 = vmatprep.subr.bf16.mxu1 %v2429_v1  ;;  %v2378_v38 = vld [vmem:[%s2910_s4 + $0x1b0] sm:$0xff]  }
  0x32   : > { %2201 = vmatprep.subr.bf16.mxu0 %v2429_v1  ;;  %v1237_v43 = vrot.slane %v1230_v37, %v2563_v23 }
  0x34   : > { %2122 = vmatpush3.bf16.msra.mxu1 %v2355_v41  ;;  %v692_v41 = vrot.slane %v685_v34, %v2563_v23  ;;  %v1244_v47 = vrot.slane %v1237_v43, %v2563_v23 }
  0x35   : > { %2202 = vmatpush3.bf16.msra.mxu0 %v2356_v42  ;;  %2123 = vmatprep.subr.bf16.mxu1 %v2429_v1  ;;  %v2379_v42 = vld [vmem:[%s2910_s4 + $0xb8] sm:$0xff]  }
  0x36   : > { %2203 = vmatprep.subr.bf16.mxu0 %v2429_v1 }
  0x38   : > { %2124 = vmatpush3.bf16.msra.mxu1 %v2357_v45  ;;  %v699_v45 = vrot.slane %v692_v41, %v2563_v23 }
  0x39   : > { %2204 = vmatpush3.bf16.msra.mxu0 %v2358_v46  ;;  %2125 = vmatprep.subr.bf16.mxu1 %v2429_v1  ;;  %v2381_v46 = vld [vmem:[%s2910_s4 + $0xc0] sm:$0xff]  }
  0x3a   : > { %2205 = vmatprep.subr.bf16.mxu0 %v2429_v1 }
  0x3c   : > { %2126 = vmatpush3.bf16.msra.mxu1 %v2359_v51  ;;  %v2385_v51 = vld [vmem:[%s2910_s4 + $0xd0] sm:$0xff]  }
  0x3d   : > { %2206 = vmatpush3.bf16.msra.mxu0 %v2360_v55  ;;  %2127 = vmatprep.subr.bf16.mxu1 %v2429_v1  ;;  %v2389_v55 = vld [vmem:[%s2910_s4 + $0xe0] sm:$0xff]  }
  0x3e   : > { %2207 = vmatprep.subr.bf16.mxu0 %v2429_v1 }
  0x40   : > { %2128 = vmatpush3.bf16.msra.mxu1 %v2361_v59  ;;  %v793_v59 = vld [vmem:[%s2604_s18 + $0x2] sm:$0x1] }
  0x41   : > { %2208 = vmatpush3.bf16.msra.mxu0 %v2362_v61  ;;  %2129 = vmatprep.subr.bf16.mxu1 %v2429_v1  ;;  %v1954_v61 = vld [vmem:[%s2539_s30 + $0x2] sm:$0x1] }
  0x42   : > { %2209 = vmatprep.subr.bf16.mxu0 %v2429_v1 }
  0x44   : > { %2130 = vmatpush3.bf16.msra.mxu1 %v2363_v63  ;;  %v813_v63 = vcombine.low %v792_v58, %v793_v59 }
  0x45   : > { %2210 = vmatpush3.bf16.msra.mxu0 %v2364_v2  ;;  %2135 = vmatprep.subr.bf16.mxu1 %v2429_v1  ;;  %v1358_v2 = vcombine.low %v1954_v61, %v1955_v62 }
  0x46   : > { %2215 = vmatprep.subr.bf16.mxu0 %v2429_v1 }
  0x47   : > { %2132 = vmatmul.mubr.bf16.vlgmr.msra.gmra.mrb[0].mxu1 %v525_v3  ;;  %v2394_v3 = vld [vmem:[%s2910_s4 + $0x1f0] sm:$0xff]  }
  0x48   : > { %2136 = vmatpush3.bf16.msra.mxu1 %v2365_v4  ;;  %2212 = vmatmul.mubr.bf16.vlgmr.msra.gmra.mrb[0].mxu0 %v1115_v5  ;;  %v820_v4 = vrot.slane %v813_v63, %v2563_v23  ;;  %v2395_v5 = vld [vmem:[%s2910_s4 + $0xf8] sm:$0xff]  }
  0x49   : > { %2216 = vmatpush3.bf16.msra.mxu0 %v2366_v6  ;;  %2137 = vmatprep.subr.bf16.mxu1 %v2429_v1  ;;  %v1365_v6 = vrot.slane %v1358_v2, %v2563_v23 }
  0x4a   : > { %2217 = vmatprep.subr.bf16.mxu0 %v2429_v1  ;;  %2151 = vmatprep.mubr.msk.bf16.mxu1 %vm2430_vm0, %v2429_v1 }
  0x4b   : > { %2231 = vmatprep.mubr.msk.bf16.mxu0 %vm2430_vm0, %v2429_v1  ;;  %v1372_v9 = vrot.slane %v1365_v6, %v2563_v23 }
  0x4c   : > { %2138 = vmatpush3.bf16.msra.mxu1 %v2367_v7  ;;  %v2396_v7 = vld [vmem:[%s2910_s4 + $0x1f8] sm:$0xff]  }
  0x4d   : > { %2218 = vmatpush3.bf16.msra.mxu0 %v2368_v8  ;;  %2139 = vmatprep.subr.bf16.mxu1 %v2429_v1  ;;  %v827_v8 = vrot.slane %v820_v4, %v2563_v23 }
  0x4e   : > { %2219 = vmatprep.subr.bf16.mxu0 %v2429_v1 }
  0x50   : > { %2140 = vmatpush3.bf16.msra.mxu1 %v2369_v11  ;;  %v2398_v11 = vld [vmem:[%s2910_s4 + $0x208] sm:$0xff]  }
  0x51   : > { %2220 = vmatpush3.bf16.msra.mxu0 %v2370_v12  ;;  %2141 = vmatprep.subr.bf16.mxu1 %v2429_v1  ;;  %v2399_v12 = vld [vmem:[%s2910_s4 + $0x210] sm:$0xff]  }
  0x52   : > { %2221 = vmatprep.subr.bf16.mxu0 %v2429_v1 }
  0x54   : > { %2142 = vmatpush3.bf16.msra.mxu1 %v2371_v14  ;;  %v2400_v14 = vld [vmem:[%s2910_s4 + $0x218] sm:$0xff]  }
  0x55   : > { %2222 = vmatpush3.bf16.msra.mxu0 %v2372_v17  ;;  %2143 = vmatprep.subr.bf16.mxu1 %v2429_v1  ;;  %v2403_v17 = vld [vmem:[%s2910_s4 + $0x230] sm:$0xff]  }
  0x56   : > { %2223 = vmatprep.subr.bf16.mxu0 %v2429_v1 }
  0x58   : > { %2144 = vmatpush3.bf16.msra.mxu1 %v2373_v18  ;;  %v1525_v18 = vrot.slane %v1518_v40, %v2563_v23 }
  0x59   : > { %2224 = vmatpush3.bf16.msra.mxu0 %v2374_v24  ;;  %2145 = vmatprep.subr.bf16.mxu1 %v2429_v1 }
  0x5a   : > { %2225 = vmatprep.subr.bf16.mxu0 %v2429_v1  ;;  %v1532_v20 = vrot.slane %v1525_v18, %v2563_v23 }
  0x5c   : > { %2146 = vmatpush3.bf16.msra.mxu1 %v2375_v25 }
  0x5d   : > { %2226 = vmatpush3.bf16.msra.mxu0 %v2376_v29  ;;  %2147 = vmatprep.subr.bf16.mxu1 %v2429_v1  ;;  %v2010_v29 = vld [vmem:[%s2911_s5] ss:$0 sm:$0xff] }
  0x5e   : > { %2227 = vmatprep.subr.bf16.mxu0 %v2429_v1 }
  0x60   : > { %2148 = vmatpush3.bf16.msra.mxu1 %v2377_v36  ;;  %v1646_v36 = vsub.s32 %v1643_v31, %v2553_v13 }
  0x61   : > { %2228 = vmatpush3.bf16.msra.mxu0 %v2378_v38  ;;  %2149 = vmatprep.subr.bf16.mxu1 %v2429_v1 }
  0x62   : > { %2229 = vmatprep.subr.bf16.mxu0 %v2429_v1 }
  0x64   : > { %2150 = vmatpush3.bf16.msra.mxu1 %v2379_v42 }
  0x65   : > { %2230 = vmatpush3.bf16.msra.mxu0 %v2380_v44  ;;  %2155 = vmatprep.subr.bf16.mxu1 %v2429_v1 }
  0x66   : > { %2235 = vmatprep.subr.bf16.mxu0 %v2429_v1 }
  0x67   : > { %2152 = vmatmul.mubr.bf16.vlgmr.msra.gmra.mrb[0].mxu1 %v699_v45 }
  0x68   : > { %2156 = vmatpush3.bf16.msra.mxu1 %v2381_v46  ;;  %2232 = vmatmul.mubr.bf16.vlgmr.msra.gmra.mrb[0].mxu0 %v1244_v47 }
  0x69   : > { %2236 = vmatpush3.bf16.msra.mxu0 %v2382_v48  ;;  %2157 = vmatprep.subr.bf16.mxu1 %v2429_v1 }
  0x6a   : > { %2237 = vmatprep.subr.bf16.mxu0 %v2429_v1  ;;  %2171 = vmatprep.mubr.msk.bf16.mxu1 %vm2430_vm0, %v2429_v1 }
  0x6b   : > { %2251 = vmatprep.mubr.msk.bf16.mxu0 %vm2430_vm0, %v2429_v1 }
  0x6c   : > { %2158 = vmatpush3.bf16.msra.mxu1 %v2383_v49 }
  0x6d   : > { %2238 = vmatpush3.bf16.msra.mxu0 %v2384_v50  ;;  %2159 = vmatprep.subr.bf16.mxu1 %v2429_v1 }
  0x6e   : > { %2239 = vmatprep.subr.bf16.mxu0 %v2429_v1 }
  0x70   : > { %2160 = vmatpush3.bf16.msra.mxu1 %v2385_v51 }
  0x71   : > { %2240 = vmatpush3.bf16.msra.mxu0 %v2386_v52  ;;  %2161 = vmatprep.subr.bf16.mxu1 %v2429_v1 }
  0x72   : > { %2241 = vmatprep.subr.bf16.mxu0 %v2429_v1 }
  0x74   : > { %2162 = vmatpush3.bf16.msra.mxu1 %v2387_v53 }
  0x75   : > { %2242 = vmatpush3.bf16.msra.mxu0 %v2388_v54  ;;  %2163 = vmatprep.subr.bf16.mxu1 %v2429_v1 }
  0x76   : > { %2243 = vmatprep.subr.bf16.mxu0 %v2429_v1 }
  0x78   : > { %2164 = vmatpush3.bf16.msra.mxu1 %v2389_v55 }
  0x79   : > { %2244 = vmatpush3.bf16.msra.mxu0 %v2390_v56  ;;  %2165 = vmatprep.subr.bf16.mxu1 %v2429_v1 }
  0x7a   : > { %2245 = vmatprep.subr.bf16.mxu0 %v2429_v1 }
  0x7c   : > { %2166 = vmatpush3.bf16.msra.mxu1 %v2391_v57 }
  0x7d   : > { %2246 = vmatpush3.bf16.msra.mxu0 %v2392_v60  ;;  %2167 = vmatprep.subr.bf16.mxu1 %v2429_v1 }
  0x7e   : > { %2247 = vmatprep.subr.bf16.mxu0 %v2429_v1 }
  0x80   : > { %2168 = vmatpush3.bf16.msra.mxu1 %v2393_v0 }
  0x81   : > { %2248 = vmatpush3.bf16.msra.mxu0 %v2394_v3  ;;  %2169 = vmatprep.subr.bf16.mxu1 %v2429_v1 }
  0x82   : > { %2249 = vmatprep.subr.bf16.mxu0 %v2429_v1 }
  0x84   : > { %2170 = vmatpush3.bf16.msra.mxu1 %v2395_v5 }
  0x85   : > { %2250 = vmatpush3.bf16.msra.mxu0 %v2396_v7 }
  0x86   : > { %2255 = vmatprep.subr.bf16.mxu0 %v2429_v1 }
  0x87   : > { %2172 = vmatmul.mubr.bf16.vlgmr.msra.gmra.mrb[0].mxu1 %v827_v8 }
  0x88   : > { %2252 = vmatmul.mubr.bf16.vlgmr.msra.gmra.mrb[0].mxu0 %v1372_v9 }
  0x89   : > { %2256 = vmatpush3.bf16.msra.mxu0 %v2397_v10  ;;  %2271 = vmatprep.mubr.msk.bf16.mxu0 %vm2430_vm0, %v2429_v1 }
  0x8a   : > { %2257 = vmatprep.subr.bf16.mxu0 %v2429_v1 }
  0x8d   : > { %2258 = vmatpush3.bf16.msra.mxu0 %v2398_v11 }
  0x8e   : > { %2259 = vmatprep.subr.bf16.mxu0 %v2429_v1 }
  0x91   : > { %2260 = vmatpush3.bf16.msra.mxu0 %v2399_v12 }
  0x92   : > { %2261 = vmatprep.subr.bf16.mxu0 %v2429_v1 }
  0x95   : > { %2262 = vmatpush3.bf16.msra.mxu0 %v2400_v14 }
  0x96   : > { %2263 = vmatprep.subr.bf16.mxu0 %v2429_v1 }
  0x99   : > { %2264 = vmatpush3.bf16.msra.mxu0 %v2401_v15 }
  0x9a   : > { %2265 = vmatprep.subr.bf16.mxu0 %v2429_v1 }
  0x9d   : > { %2266 = vmatpush3.bf16.msra.mxu0 %v2402_v16 }
  0x9e   : > { %2267 = vmatprep.subr.bf16.mxu0 %v2429_v1 }
  0xa1   : > { %2268 = vmatpush3.bf16.msra.mxu0 %v2403_v17 }
  0xa2   : > { %2269 = vmatprep.subr.bf16.mxu0 %v2429_v1  ;;  %v2011_v1 = vld [vmem:[%s2912_s6] ss:$0 sm:$0xff] }
  0xa5   : > { %2270 = vmatpush3.bf16.msra.mxu0 %v2404_v19 }
  0xa8   : > { %2272 = vmatmul.mubr.bf16.vlgmr.msra.gmra.mrb[0].mxu0 %v1532_v20 }
 0x15a   : > { %v911_v21 = vpop.f32.mrb[0].mxu1 }
 0x15b   : > { %v2173_v22 = vpop.f32.mrb[1].mxu1 }
 0x15c   : > { %v914_v24 = vpop.f32.mrb[2].mxu1 }
 0x15d   : > { %v2174_v25 = vpop.f32.mrb[3].mxu1 }
 0x17b   : > { %v1616_v27 = vpop.f32.mrb[0].mxu0 }
 0x17c   : > { %v2275_v30 = vadd.f32 %v1616_v27, %v911_v21  ;;  %v2273_v32 = vpop.f32.mrb[1].mxu0 }
 0x17d   : > { %v1619_v23 = vpop.f32.mrb[2].mxu0 }
 0x17e   : > { %v1630_v33 = vmul.f32 %v2275_v30, %v2010_v29  ;;  %v2274_v34 = vpop.f32.mrb[3].mxu0 }
 0x180   : > { %v1638_v35 = vadd.f32 %v2011_v1, %v1630_v33 }
 0x182   : > { %v1639_v37 = vmax.f32 %v1638_v35, 0.0 }
 0x184   : > { %v1647_v38 = vrot.slane %v1639_v37, %v1646_v36 }
 0x186   : > { %v1648_v39 = vcombine.high %v1647_v38, %v1647_v38  ;;  %v1651_v40 = vpack.c.bf16 %v1647_v38, %v1647_v38 }
 0x188   : > { %v1652_v41 = vpack.c.bf16 %v1648_v39, %v1648_v39  ;;  %1653 = vst [vmem:[%s358_s11] sm:$0x1] %v1651_v40 }
 0x18a   : > { %1654 = vst [vmem:[%s358_s11 + $0x1] sm:$0x1] %v1652_v41 }
 0x18b PF: > { %s17_s26 = sadd.s32 1, %s2427_s26   ;;  %s2916_s24 = smov %s2423_s25 }
 0x18c   : > { %p14_p5 = scmp.ge.s32.totalorder %s17_s26, 4   ;;  %s2917_s25 = smov %s2919_s27 }
 0x18e   :  { %16 = sbr.rel (!%p14_p5) target bundleno = 2 (0x2), region = 101 }

// kernel: hrnet_forward.13
= control target key start
LH: loop header
LB: loop body
LE: loop exit
PB: predicated region body
PF: predicated region fallthrough
CT: control target
= control target key end

     0   :  { %8 = vsyncpa [#allocation3], 0  ;;  %s783_s0 = inlined_call_operand.vmem [shape: f32[16,4], index: 0, kind: input, shape index: {}]   ;;  %s784_s1 = inlined_call_operand.vmem [shape: f32[4,16], index: 1, kind: input, shape index: {}]   ;;  %s785_s2 = inlined_call_operand.vmem [shape: f32[2,1,4,4], index: 2, kind: input, shape index: {}]   ;;  %s786_s3 = inlined_call_operand.hbm [shape: f32[2,1,16,16], index: 3, kind: output, shape index: {}]  }
   0x1   :  { %10 = vsyncpa [#allocation3 + $0x1], 0  ;;  %s655_s12 = smov 0   ;;  %s657_s13 = smov 0  }
   0x2   :  { %s659_s14 = smov 0   ;;  %s661_s15 = smov 0  }
   0x3   :  { %s663_s16 = smov 0   ;;  %s665_s17 = smov 0  }
   0x4 LB: > { %s460_s18 = sadd.s32 4294967295, %s630_s17   ;;  %s461_s19 = sadd.s32 4294967294, %s630_s17   ;;  %s630_s17 = sphi %s665_s17, %s16_s17   ;;  %s626_s16 = sphi %s663_s16, %s793_s16   ;;  %s622_s15 = sphi %s661_s15, %s792_s15   ;;  %s618_s14 = sphi %s659_s14, %s791_s14   ;;  %s614_s13 = sphi %s657_s13, %s790_s13   ;;  %s610_s12 = sphi %s655_s12, %s789_s12  }
   0x5   : > { %s28_s20 = sadd.s32 1, %s626_s16  ;;  %s107_s21 = sadd.s32 1, %s618_s14 }
   0x6   : > { %p30_p0 = scmp.ge.s32.totalorder %s28_s20, 2  ;;  %p117_p1 = scmp.ne.s32.totalorder %s618_s14, %s614_s13 }
   0x7   : > { %p118_p2 = scmp.eq.s32.totalorder %s460_s18, 1  ;;  %p123_p3 = scmp.ne.s32.totalorder %s614_s13, %s610_s12 }
   0x8   : > { %s795_s20 = smov (%p30_p0, %s28_s20), 0  ;;  %p124_p5 = scmp.eq.s32.totalorder %s461_s19, 1 }
   0x9   : > { %p695_p4 = por %p118_p2, %p117_p1  ;;  %s102_s23 = ssub.s32 %s626_s16, %s795_s20 }
   0xa   : > { %p464_p6 = scmp.ge.s32.totalorder %s630_s17, 1  ;;  %p105_p7 = scmp.eq.s32.totalorder %s102_s23, 0 }
   0xb   : > { %p702_p8 = por %p124_p5, %p123_p3  ;;  %p158_p9 = scmp.lt.s32.totalorder %s630_s17, 3 }
   0xc   : > { %s708_s25 = scalar_select %p105_p7, %s618_s14, %s107_s21  }
   0xd   : > { %p159_p10 = pnand %p464_p6, %p158_p9 }
   0xe   : > { %p184_p11 = scmp.lt.s32.totalorder (!%p159_p10), %s622_s15, 1  ;;  %v191_v0 = vld [vmem:[%s783_s0] sm:$0xff] (!%p159_p10)  ;;  %vm194_vm0 = vcmask (!%p159_p10), 31744   ;;  %vm201_vm1 = vcmask (!%p159_p10), 1043456   ;;  %v192_v2 = vld [vmem:[%s783_s0 + $0x8] sm:$0xff] (!%p159_p10)  ;;  %s181_s10 = sand.u32 (!%p159_p10), 1, %s614_s13  }
   0xf   : > { %162 = sbr.rel (%p159_p10) target bundleno = 471 (0x1d7), region = 32  ;;  %487 = vmatprep.mubr.msk.f32.mxu0 (!%p159_p10), %vm194_vm0, %v191_v0  ;;  %v280_v3 = vld [vmem:[%s784_s1] sm:$0xf] (!%p159_p10)  ;;  %s465_s11 = sshll.u32 (!%p159_p10), %s181_s10, 4  ;;  %vm365_vm2 = vcmask (!%p159_p10), 130048  }
  0x10   : > { %490 = vmatprep.subr.msk.mxu1 (!%p159_p10), %vm201_vm1, %v280_v3  ;;  %s183_s18 = scalar_lea.vmem (!%p159_p10), [#allocation2], %s465_s11  ;;  %s478_s21 = sshll.u32 (!%p159_p10), %s622_s15, 8 }
  0x11   : > { %491 = vmatpush3.msk.msra.mxu1 (!%p159_p10), %vm201_vm1, %v280_v3  ;;  %s384_s19 = sshll.u32 (!%p159_p10), %s183_s18, 4  ;;  %s735_s27 = scalar_lea.hbm (!%p159_p10), %s786_s3, %s478_s21  ;;  %s730_s19 = int_to_ptr.vmem [resolvable:$true] %s384_s19 }
  0x16   : > { %s185_s28 = scalar_select %p184_p11, %s622_s15, 1 }
  0x17   : > { %s632_s15 = smov [#allocation2]  }
  0x18   : > { %s466_s29 = sshll.u32 %s185_s28, 2  ;;  %s737_s28 = scalar_lea.sflag [#allocation3], %s181_s10 }
  0x19   : > { %s190_s5 = scalar_lea.vmem %s785_s2, %s466_s29  ;;  %s552_s29 = scalar_lea.vmem %s730_s19, 256 }
  0x1a   : > { %v193_v1 = vld [vmem:[%s190_s5] sm:$0xf]  ;;  %p553_p12 = scmp.ne.s32.totalorder %s730_s19, %s552_s29  ;;  %s556_s30 = sshll.u32 %s632_s15, 4  ;;  %s557_s30 = int_to_ptr.vmem [resolvable:$false] %s556_s30 }
  0x1b   : > { %485 = vmatprep.subr.msk.mxu0 %vm201_vm1, %v193_v1  ;;  %s558_s4 = scalar_lea.vmem %s557_s30, 512  ;;  %p559_p1 = scmp.lt.s32.totalorder %s730_s19, %s557_s30 }
  0x1c   : > { %486 = vmatpush3.msk.msra.mxu0 %vm201_vm1, %v193_v1  ;;  %p554_p13 = pnand %p553_p12, %p695_p4  ;;  %p560_p2 = scmp.lt.s32.totalorder %s558_s4, %s552_s29 }
  0x1d   : > { %488 = vmatmul.mubr.msk.f32.vlgmr.msra.gmra.mrb[0].mxu0 %vm194_vm0, %v192_v2 }
  0x1e   : > { %p555_p0 = pneg %p554_p13  ;;  %p561_p3 = por %p560_p2, %p559_p1 }
  0x20   : > { %p562_p5 = pnand %p561_p3, %p555_p0 }
  0xf0   : > { %v489_v4 = vpop.f32.mrb[0].mxu0 }
  0xf1   : > { %v271_v5 = vpop.f32.mrb[1].mxu0 }
  0xf2   : > { %492 = vmatprep.mubr.msk.f32.mxu1 %vm194_vm0, %v271_v5 }
  0xf3   : > { %493 = vmatmul.mubr.msk.f32.vlgmr.msra.gmra.mrb[0].mxu1 %vm194_vm0, %v489_v4 }
 0x1c6   : > { %v494_v6 = vpop.f32.mrb[0].mxu1 }
 0x1c7   : > { %367 = vst.msk [vmem:[%s183_s18 + $0x8] sm:$0xff] %vm365_vm2, %v494_v6  ;;  %v356_v7 = vpop.f32.mrb[1].mxu1 }
 0x1c8   : > { %366 = vst.msk [vmem:[%s183_s18] sm:$0xff] %vm365_vm2, %v356_v7 }
 0x1c9   : > { %565 = shalt.err (!%p562_p5)
}
 0x1ca   : > { %s566_s5 = scalar_lea.hbm %s735_s27, 256  ;;  %s570_s8 = scalar_lea.hbm %s786_s3, 512 }
 0x1cb   : > { %p567_p6 = scmp.ne.s32.totalorder %s735_s27, %s566_s5  ;;  %p571_p10 = scmp.lt.u32.totalorder %s735_s27, %s786_s3 }
 0x1cc   : > { %p572_p11 = scmp.lt.u32.totalorder %s570_s8, %s566_s5  ;;  %p574_p13 = scmp.lt.u32.totalorder %s566_s5, %s735_s27 }
 0x1cd   : > { %p568_p7 = pnand %p567_p6, %p695_p4 }
 0x1ce   : > { %p573_p12 = por %p572_p11, %p571_p10 }
 0x1cf   : > { %p569_p9 = pneg %p568_p7 }
 0x1d0   : > { %p575_p0 = por %p574_p13, %p573_p12 }
 0x1d2   : > { %p576_p1 = pnand %p575_p0, %p569_p9 }
 0x1d4   : > { %579 = shalt.err (!%p576_p1)
}
 0x1d5   : > { %s633_s11 = smov 128   ;;  %s634_s18 = smov 8  }
 0x1d6   : > { %495 = dma.vmem_to_hbm [thread:$0]  (%p695_p4), %s730_s19, 256, %s735_s27, %s737_s28, %s633_s11, %s633_s11, %s634_s18  }
 0x1d7 PF: > { %p501_p2 = scmp.ge.s32.totalorder %s630_s17, 2  ;;  %s399_s21 = sand.u32 1, %s610_s12  }
 0x1d8   : > { %s400_s23 = scalar_lea.sflag [#allocation3], %s399_s21 }
 0x1d9   : > { %p498_p3 = pnand %p501_p2, %p702_p8 }
 0x1db   : > { %605 = dma.done.wait (!%p498_p3), %s400_s23, 256  }
 0x1dc   : > { %607 = vsyncadd (!%p498_p3), %s400_s23, 4294967040  ;;  %s16_s17 = sadd.s32 1, %s630_s17   ;;  %s789_s12 = smov %s614_s13 }
 0x1dd   : > { %p13_p5 = scmp.ge.s32.totalorder %s16_s17, 4   ;;  %s790_s13 = smov %s618_s14 }
 0x1de   : > { %s791_s14 = smov %s708_s25  ;;  %s792_s15 = smov %s626_s16 }
 0x1df   : > { %s793_s16 = smov %s795_s20  ;;  %15 = sbr.rel (!%p13_p5) target bundleno = 4 (0x4), region = 67 }
 0x1e6   :  { %405 = vsyncpa [#allocation3], 1 }
 0x1e7   :  { %407 = vsyncpa [#allocation3 + $0x1], 1 }

// kernel: hrnet_forward.12
= control target key start
LH: loop header
LB: loop body
LE: loop exit
PB: predicated region body
PF: predicated region fallthrough
CT: control target
= control target key end

     0   :  { %s2932_s23 = smov 0   ;;  %s2934_s24 = smov 0   ;;  %s3436_s0 = inlined_call_operand.vmem [shape: bf16[2,6,6,128], index: 0, kind: input, shape index: {}]   ;;  %s3437_s1 = inlined_call_operand.vmem [shape: bf16[9,128,128], index: 1, kind: input, shape index: {}]   ;;  %s3438_s2 = inlined_call_operand.vmem [shape: f32[1,128], index: 2, kind: input, shape index: {}]   ;;  %s3439_s3 = inlined_call_operand.vmem [shape: f32[1,128], index: 3, kind: input, shape index: {}]   ;;  %s3440_s4 = inlined_call_operand.vmem [shape: bf16[128,1], index: 4, kind: input, shape index: {}]   ;;  %s3441_s5 = inlined_call_operand.<no memory space> [shape: f32[1,1], index: 5, kind: input, shape index: {}]   ;;  %s3442_s6 = inlined_call_operand.vmem [shape: f32[2,4,4,1], index: 6, kind: output, shape index: {}]  }
   0x1   :  { %v11_v0 = vstv %s3441_s5  ;;  %s2936_s25 = smov 0  }
   0x2   :  { %12 = vst [vmem:[#allocation2] sm:$0x1] %v11_v0 }
   0x3 LB: > { %s30_s5 = sadd.s32 1, %s2885_s24  ;;  %p2149_p0 = scmp.ge.s32.totalorder %s2889_s25, 1  ;;  %s2889_s25 = sphi %s2936_s25, %s18_s25   ;;  %s2885_s24 = sphi %s2934_s24, %s3452_s24   ;;  %s2881_s23 = sphi %s2932_s23, %s3451_s23  }
   0x4   : > { %p32_p1 = scmp.ge.s32.totalorder %s30_s5, 2  ;;  %p228_p2 = scmp.lt.s32.totalorder %s2889_s25, 3 }
   0x6   : > { %s3454_s5 = smov (%p32_p1, %s30_s5), 0  ;;  %p229_p3 = pnand %p2149_p0, %p228_p2 }
   0x7   : > { %v2775_v1 = vld [vmem:[%s3437_s1 + $0x40] sm:$0xff] (!%p229_p3)   ;;  %v2891_v2 = vmov (!%p229_p3), 0.0   ;;  %v2777_v4 = vld [vmem:[%s3437_s1 + $0x48] sm:$0xff] (!%p229_p3)   ;;  %vm2892_vm0 = vmmov (!%p229_p3), 0   ;;  %p262_p4 = scmp.lt.s32.totalorder (!%p229_p3), %s2881_s23, 1  ;;  %v2779_v6 = vld [vmem:[%s3437_s1 + $0x50] sm:$0xff] (!%p229_p3)   ;;  %v426_v22 = vlaneseq (!%p229_p3) }
   0x8   : > { %232 = sbr.rel (%p229_p3) target bundleno = 617 (0x269), region = 44  ;;  %2517 = vmatprep.subr.bf16.mxu1 (!%p229_p3), %v2891_v2  ;;  %2597 = vmatprep.subr.bf16.mxu0 (!%p229_p3), %v2891_v2  ;;  %v2776_v3 = vld [vmem:[%s3437_s1 + $0x100] sm:$0xff] (!%p229_p3)   ;;  %v2778_v5 = vld [vmem:[%s3437_s1 + $0x108] sm:$0xff] (!%p229_p3)   ;;  %v2780_v7 = vld [vmem:[%s3437_s1 + $0x110] sm:$0xff] (!%p229_p3)   ;;  %vm341_vm1 = vsmask.f32 (!%p229_p3), 1280 }
   0x9   : > { %2518 = vmatpush3.bf16.msra.mxu1 (!%p229_p3), %v2775_v1  ;;  %2533 = vmatprep.mubr.msk.bf16.mxu1 (!%p229_p3), %vm2892_vm0, %v2891_v2  ;;  %v2781_v8 = vld [vmem:[%s3437_s1 + $0x58] sm:$0xff] (!%p229_p3)   ;;  %v2783_v10 = vld [vmem:[%s3437_s1 + $0x60] sm:$0xff] (!%p229_p3)   ;;  %v2785_v12 = vld [vmem:[%s3437_s1 + $0x68] sm:$0xff] (!%p229_p3)   ;;  %vm342_vm2 = vsmask.f32 (!%p229_p3), 3336  ;;  %v427_v54 = vshrl.u32 (!%p229_p3), %v426_v22, 7 }
   0xa   : > { %2598 = vmatpush3.bf16.msra.mxu0 (!%p229_p3), %v2776_v3  ;;  %2519 = vmatprep.subr.bf16.mxu1 (!%p229_p3), %v2891_v2  ;;  %v2782_v9 = vld [vmem:[%s3437_s1 + $0x118] sm:$0xff] (!%p229_p3)   ;;  %v2784_v11 = vld [vmem:[%s3437_s1 + $0x120] sm:$0xff] (!%p229_p3)   ;;  %v2786_v14 = vld [vmem:[%s3437_s1 + $0x128] sm:$0xff] (!%p229_p3)   ;;  %vm344_vm3 = vsmask.f32 (!%p229_p3), 5392  ;;  %vm679_vm8 = vcmask (!%p229_p3), 1040384  }
   0xb   : > { %2599 = vmatprep.subr.bf16.mxu0 (!%p229_p3), %v2891_v2  ;;  %2613 = vmatprep.mubr.msk.bf16.mxu0 (!%p229_p3), %vm2892_vm0, %v2891_v2  ;;  %vm3013_vm4 = vmor (!%p229_p3), %vm341_vm1, %vm342_vm2  ;;  %vm346_vm5 = vsmask.f32 (!%p229_p3), 7448  ;;  %v2787_v23 = vld [vmem:[%s3437_s1 + $0x70] sm:$0xff] (!%p229_p3)   ;;  %v2789_v50 = vld [vmem:[%s3437_s1 + $0x78] sm:$0xff] (!%p229_p3)   ;;  %v2893_v59 = vmov (!%p229_p3), 1983009808  }
   0xc   : > { %v2788_v28 = vld [vmem:[%s3437_s1 + $0x130] sm:$0xff] (!%p229_p3)   ;;  %vm3027_vm6 = vmor (!%p229_p3), %vm3013_vm4, %vm344_vm3  ;;  %v2790_v55 = vld [vmem:[%s3437_s1 + $0x138] sm:$0xff] (!%p229_p3)   ;;  %v424_v60 = vunpack.c.l.s4 (!%p229_p3), %v2893_v59  ;;  %vm680_vm9 = vcmask (!%p229_p3), 1042434   ;;  %vm682_vm11 = vcmask (!%p229_p3), 1044484   ;;  %vm684_vm13 = vcmask (!%p229_p3), 1046534  }
   0xd   : > { %2520 = vmatpush3.bf16.msra.mxu1 (!%p229_p3), %v2777_v4  ;;  %vm3036_vm7 = vmor (!%p229_p3), %vm3027_vm6, %vm346_vm5  ;;  %vm2049_vm15 = vcmask (!%p229_p3), 3072  }
   0xe   : > { %2600 = vmatpush3.bf16.msra.mxu0 (!%p229_p3), %v2778_v5  ;;  %2521 = vmatprep.subr.bf16.mxu1 (!%p229_p3), %v2891_v2  ;;  %v425_v4 = vunpack.c.0.s8 (!%p229_p3), %v424_v60  ;;  %vm681_vm10 = vmor (!%p229_p3), %vm679_vm8, %vm680_vm9 }
   0xf   : > { %s3456_s23 = smov (!%p262_p4, %s2881_s23), 1  ;;  %2601 = vmatprep.subr.bf16.mxu0 %v2891_v2  ;;  %vm683_vm12 = vmor %vm681_vm10, %vm682_vm11 }
  0x10   : > { %s2747_s14 = smul.u32 24, %s3456_s23  ;;  %vm3097_vm14 = vmor %vm683_vm12, %vm684_vm13  ;;  %s2426_s7 = sshll.u32 %s3456_s23, 4 }
  0x11   : > { %2522 = vmatpush3.bf16.msra.mxu1 %v2779_v6  ;;  %s275_s9 = scalar_lea.vmem %s3442_s6, %s2426_s7 }
  0x12   : > { %2602 = vmatpush3.bf16.msra.mxu0 %v2780_v7  ;;  %2523 = vmatprep.subr.bf16.mxu1 %v2891_v2  ;;  %s2992_s21 = scalar_lea.vmem %s3436_s0, %s2747_s14 }
  0x13   : > { %2603 = vmatprep.subr.bf16.mxu0 %v2891_v2  ;;  %v2153_v13 = vld.sshfl [vmem:[%s2992_s21] sm:$0x13 pattern:$0x76325410] }
  0x14   : > { %v2154_v15 = vld.sshfl [vmem:[%s2992_s21 + $0x4] sm:$0x13 pattern:$0x76325410]  ;;  %v316_v16 = vcombine.high %v2153_v13, %v2153_v13  ;;  %v349_v25 = vshrl.u32 %v2153_v13, 16  ;;  %v352_v26 = vshll.u32 %v2153_v13, 16 }
  0x15   : > { %2524 = vmatpush3.bf16.msra.mxu1 %v2781_v8  ;;  %v2155_v17 = vld.sshfl [vmem:[%s2992_s21 + $0x8] sm:$0x13 pattern:$0x76325410]  ;;  %v324_v18 = vcombine.high %v2154_v15, %v2154_v15  ;;  %v363_v29 = vshrl.u32 %v2154_v15, 16  ;;  %v366_v30 = vshll.u32 %v2154_v15, 16 }
  0x16   : > { %2604 = vmatpush3.bf16.msra.mxu0 %v2782_v9  ;;  %2525 = vmatprep.subr.bf16.mxu1 %v2891_v2  ;;  %v2156_v19 = vld.sshfl [vmem:[%s2992_s21 + $0xc] sm:$0x13 pattern:$0x76325410]  ;;  %v332_v20 = vcombine.high %v2155_v17, %v2155_v17  ;;  %v358_v27 = vshll.u32 %v316_v16, 16  ;;  %v377_v32 = vshrl.u32 %v2155_v17, 16 }
  0x17   : > { %2605 = vmatprep.subr.bf16.mxu0 %v2891_v2  ;;  %v340_v24 = vcombine.high %v2156_v19, %v2156_v19  ;;  %v372_v31 = vshll.u32 %v324_v18, 16  ;;  %v351_v34 = vrot.slane %v349_v25, 6  ;;  %v354_v35 = vrot.slane %v352_v26, 7 }
  0x18   : > { %v360_v36 = vrot.slane %v358_v27, 7  ;;  %v380_v37 = vshll.u32 %v2155_v17, 16  ;;  %v365_v38 = vrot.slane %v363_v29, 6  ;;  %v368_v39 = vrot.slane %v366_v30, 7  ;;  %v2793_v29 = vld [vmem:[%s3437_s1 + $0x8] sm:$0xff]   ;;  %v2792_v30 = vld [vmem:[%s3437_s1 + $0x140] sm:$0xff]  }
  0x19   : > { %2526 = vmatpush3.bf16.msra.mxu1 %v2783_v10  ;;  %v374_v40 = vrot.slane %v372_v31, 7  ;;  %v379_v41 = vrot.slane %v377_v32, 6  ;;  %v355_v42 = vor.u32 %v354_v35, %v351_v34  ;;  %v386_v44 = vshll.u32 %v332_v20, 16  ;;  %v2795_v32 = vld [vmem:[%s3437_s1 + $0x10] sm:$0xff]   ;;  %v2794_v34 = vld [vmem:[%s3437_s1 + $0x148] sm:$0xff]  }
  0x1a   : > { %2606 = vmatpush3.bf16.msra.mxu0 %v2784_v11  ;;  %2527 = vmatprep.subr.bf16.mxu1 %v2891_v2  ;;  %v382_v43 = vrot.slane %v380_v37, 7  ;;  %v391_v45 = vshrl.u32 %v2156_v19, 16  ;;  %v369_v47 = vor.u32 %v368_v39, %v365_v38  ;;  %v394_v48 = vshll.u32 %v2156_v19, 16 }
  0x1b   : > { %2607 = vmatprep.subr.bf16.mxu0 %v2891_v2  ;;  %v400_v49 = vshll.u32 %v340_v24, 16  ;;  %v356_v51 = vrot.slane %v355_v42, 2  ;;  %v388_v57 = vrot.slane %v386_v44, 7  ;;  %v3056_v11 = vsub.s32 %v425_v4, %v427_v54  ;;  %v2805_v4 = vld [vmem:[%s3437_s1 + $0x38] sm:$0xff]  }
  0x1c   : > { %v383_v52 = vor.u32 %v382_v43, %v379_v41  ;;  %v393_v53 = vrot.slane %v391_v45, 6  ;;  %v370_v56 = vrot.slane %v369_v47, 2  ;;  %v396_v58 = vrot.slane %v394_v48, 7  ;;  %v2797_v43 = vld [vmem:[%s3437_s1 + $0x18] sm:$0xff]   ;;  %v2796_v47 = vld [vmem:[%s3437_s1 + $0x150] sm:$0xff]  }
  0x1d   : > { %2528 = vmatpush3.bf16.msra.mxu1 %v2785_v12  ;;  %v361_v61 = vsel %vm3036_vm7, %v356_v51, %v360_v36  ;;  %v402_v63 = vrot.slane %v400_v49, 7  ;;  %v2256_v0 = vld.sshfl [vmem:[%s2992_s21 + $0x10] sm:$0x13 pattern:$0x76325410]  ;;  %v2799_v51 = vld [vmem:[%s3437_s1 + $0x20] sm:$0xff]  }
  0x1e   : > { %2608 = vmatpush3.bf16.msra.mxu0 %v2786_v14  ;;  %2529 = vmatprep.subr.bf16.mxu1 %v2891_v2  ;;  %v384_v62 = vrot.slane %v383_v52, 2  ;;  %v375_v1 = vsel %vm3036_vm7, %v370_v56, %v374_v40  ;;  %v397_v3 = vor.u32 %v396_v58, %v393_v53  ;;  %v1004_v5 = vcombine.high %v2256_v0, %v2256_v0  ;;  %v2286_v33 = vld.sshfl [vmem:[%s2992_s21 + $0x8] sm:$0x12 pattern:$0x76325410]  ;;  %v2798_v53 = vld [vmem:[%s3437_s1 + $0x158] sm:$0xff]  }
  0x1f   : > { %2609 = vmatprep.subr.bf16.mxu0 %v2891_v2  ;;  %v421_v6 = vcombine.low %v361_v61, %v375_v1  ;;  %v1048_v7 = vshrl.u32 %v2256_v0, 16  ;;  %v1051_v8 = vshll.u32 %v2256_v0, 16  ;;  %v2287_v35 = vld.sshfl [vmem:[%s2992_s21 + $0xc] sm:$0x12 pattern:$0x76325410]  ;;  %v1210_v36 = vcombine.high %v2286_v33, %v2286_v33 }
  0x20   : > { %v389_v9 = vsel %vm3036_vm7, %v384_v62, %v388_v57  ;;  %v398_v10 = vrot.slane %v397_v3, 2  ;;  %v1057_v12 = vshll.u32 %v1004_v5, 16  ;;  %v1218_v37 = vcombine.high %v2287_v35, %v2287_v35  ;;  %v2285_v41 = vld.sshfl [vmem:[%s2992_s21 + $0x4] sm:$0x12 pattern:$0x76325410] }
  0x21   : > { %2530 = vmatpush3.bf16.msra.mxu1 %v2787_v23  ;;  %v1050_v13 = vrot.slane %v1048_v7, 6  ;;  %v1053_v14 = vrot.slane %v1051_v8, 7  ;;  %v429_v17 = vrot.slane %v421_v6, %v3056_v11  ;;  %v1078_v20 = vcombine.low %v375_v1, %v389_v9  ;;  %v2791_v23 = vld [vmem:[%s3437_s1] sm:$0xff]   ;;  %v2801_v56 = vld [vmem:[%s3437_s1 + $0x28] sm:$0xff]   ;;  %v2804_v7 = vld [vmem:[%s3437_s1 + $0x170] sm:$0xff]  }
  0x22   : > { %2610 = vmatpush3.bf16.msra.mxu0 %v2788_v28  ;;  %2531 = vmatprep.subr.bf16.mxu1 %v2891_v2  ;;  %v403_v15 = vsel %vm3036_vm7, %v398_v10, %v402_v63  ;;  %v1059_v19 = vrot.slane %v1057_v12, 7  ;;  %v2290_v38 = vrot.slane %v2286_v33, 9  ;;  %v2291_v39 = vrot.slane %v2287_v35, 9  ;;  %v2803_v63 = vld [vmem:[%s3437_s1 + $0x30] sm:$0xff]   ;;  %v2802_v0 = vld [vmem:[%s3437_s1 + $0x168] sm:$0xff]  }
  0x23   : > { %2611 = vmatprep.subr.bf16.mxu0 %v2891_v2  ;;  %v422_v16 = vcombine.low %v389_v9, %v403_v15  ;;  %v1054_v18 = vor.u32 %v1053_v14, %v1050_v13  ;;  %v1086_v27 = vrot.slane %v1078_v20, %v3056_v11  ;;  %v1233_v42 = vrot.slane %v1210_v36, 7  ;;  %v2288_v44 = vld.sshfl [vmem:[%s2992_s21 + $0x10] sm:$0x12 pattern:$0x76325410]  ;;  %v2809_v9 = vld [vmem:[%s3437_s1 + $0x80] sm:$0xff]  }
  0x24   : > { %v1237_v45 = vrot.slane %v1218_v37, 7  ;;  %v1202_v52 = vcombine.high %v2285_v41, %v2285_v41  ;;  %v1226_v54 = vcombine.high %v2288_v44, %v2288_v44  ;;  %v2289_v57 = vrot.slane %v2285_v41, 9  ;;  %v2861_v61 = vld.sshfl [vmem:[%s2992_s21] sm:$0xf pattern:$0x76325410] }
  0x25   : > { %2532 = vmatpush3.bf16.msra.mxu1 %v2789_v50  ;;  %v3063_v21 = vrot.slane %v422_v16, %v3056_v11  ;;  %v1055_v22 = vrot.slane %v1054_v18, 2  ;;  %v3113_v48 = vsel %vm3097_vm14, %v2290_v38, %v1233_v42  ;;  %v2292_v59 = vrot.slane %v2288_v44, 9  ;;  %v2862_v62 = vld.sshfl [vmem:[%s2992_s21 + $0x8] sm:$0xf pattern:$0x76325410] }
  0x26   : > { %2612 = vmatpush3.bf16.msra.mxu0 %v2790_v55  ;;  %2537 = vmatprep.subr.bf16.mxu1 %v2891_v2  ;;  %v3117_v49 = vsel %vm3097_vm14, %v2291_v39, %v1237_v45  ;;  %v2800_v55 = vld [vmem:[%s3437_s1 + $0x160] sm:$0xff]   ;;  %v1229_v58 = vrot.slane %v1202_v52, 7  ;;  %v1241_v60 = vrot.slane %v1226_v54, 7  ;;  %v548_v8 = vcombine.low %v2861_v61, %v2862_v62  ;;  %v2806_v13 = vld [vmem:[%s3437_s1 + $0x178] sm:$0xff]   ;;  %v2813_v18 = vld [vmem:[%s3437_s1 + $0x90] sm:$0xff]  }
  0x27   : > { %2617 = vmatprep.subr.bf16.mxu0 %v2891_v2  ;;  %v437_v24 = vcombine.low %v429_v17, %v3063_v21  ;;  %v3071_v25 = vsel %vm3036_vm7, %v1055_v22, %v1059_v19  ;;  %v1801_v50 = vcombine.low %v3113_v48, %v3117_v49  ;;  %v2810_v16 = vld [vmem:[%s3437_s1 + $0x180] sm:$0xff]   ;;  %v2812_v19 = vld [vmem:[%s3437_s1 + $0x188] sm:$0xff]   ;;  %v2815_v20 = vld [vmem:[%s3437_s1 + $0x98] sm:$0xff]  }
  0x28   : > { %v1079_v26 = vcombine.low %v403_v15, %v3071_v25  ;;  %v3148_v1 = vsel %vm3097_vm14, %v2289_v57, %v1229_v58  ;;  %v3152_v3 = vsel %vm3097_vm14, %v2292_v59, %v1241_v60  ;;  %v2811_v15 = vld [vmem:[%s3437_s1 + $0x88] sm:$0xff]   ;;  %v2189_v17 = vld.sshfl [vmem:[%s2992_s21] sm:$0x12 pattern:$0x76325410]  ;;  %v2821_v44 = vld [vmem:[%s3437_s1 + $0xb0] sm:$0xff]  }
  0x29   : > { %2534 = vmatmul.mubr.bf16.vlgmr.msra.gmra.mrb[0].mxu1 %v437_v24  ;;  %v1260_v5 = vcombine.low %v3148_v1, %v3113_v48  ;;  %v1261_v6 = vcombine.low %v3117_v49, %v3152_v3  ;;  %v654_v22 = vcombine.high %v2189_v17, %v2189_v17  ;;  %v2817_v24 = vld [vmem:[%s3437_s1 + $0xa0] sm:$0xff]   ;;  %v2819_v36 = vld [vmem:[%s3437_s1 + $0xa8] sm:$0xff]   ;;  %v2864_v58 = vld.sshfl [vmem:[%s2992_s21 + $0x10] sm:$0xf pattern:$0x76325410]  ;;  %v3248_v59 = vrot.slane %v1801_v50, %v3056_v11 }
  0x2a   : > { %2538 = vmatpush3.bf16.msra.mxu1 %v2791_v23  ;;  %v1093_v28 = vrot.slane %v1079_v26, %v3056_v11  ;;  %2553 = vmatprep.mubr.msk.bf16.mxu1 %vm2892_vm0, %v2891_v2  ;;  %v2814_v23 = vld [vmem:[%s3437_s1 + $0x190] sm:$0xff]   ;;  %v2818_v41 = vld [vmem:[%s3437_s1 + $0x1a0] sm:$0xff]   ;;  %v2863_v57 = vld.sshfl [vmem:[%s2992_s21 + $0x8] sm:$0xf pattern:$0x76325410] }
  0x2b   : > { %2539 = vmatprep.subr.bf16.mxu1 %v2891_v2  ;;  %v1268_v10 = vrot.slane %v1260_v5, %v3056_v11  ;;  %v1275_v12 = vrot.slane %v1261_v6, %v3056_v11  ;;  %v2352_v26 = vld.sshfl [vmem:[%s2992_s21 + $0x14] sm:$0x13 pattern:$0x76325410]  ;;  %v2825_v50 = vld [vmem:[%s3437_s1 + $0xc0] sm:$0xff]   ;;  %v2830_v5 = vld [vmem:[%s3437_s1 + $0x1c8] sm:$0xff]  }
  0x2c   : > { %v1094_v31 = vcombine.low %v1086_v27, %v1093_v28  ;;  %v2193_v27 = vrot.slane %v2189_v17, 9  ;;  %v1545_v28 = vcombine.high %v2352_v26, %v2352_v26  ;;  %v2822_v62 = vld [vmem:[%s3437_s1 + $0x1b0] sm:$0xff]   ;;  %v2833_v6 = vld [vmem:[%s3437_s1 + $0xd8] sm:$0xff]  }
  0x2d   : > { %v1276_v14 = vcombine.low %v1268_v10, %v1275_v12  ;;  %v2837_v10 = vld [vmem:[%s3437_s1 + $0xe8] sm:$0xff]   ;;  %v2836_v12 = vld [vmem:[%s3437_s1 + $0x1e0] sm:$0xff]   ;;  %v2841_v17 = vld [vmem:[%s3437_s1 + $0xf8] sm:$0xff]  }
  0x2e   : > { %2614 = vmatmul.mubr.bf16.vlgmr.msra.gmra.mrb[0].mxu0 %v1094_v31  ;;  %2540 = vmatpush3.bf16.msra.mxu1 %v2793_v29  ;;  %v1589_v29 = vshrl.u32 %v2352_v26, 16  ;;  %v1592_v31 = vshll.u32 %v2352_v26, 16  ;;  %v2849_v26 = vld [vmem:[%s3437_s1 + $0x220] sm:$0xff]  }
  0x2f   : > { %2618 = vmatpush3.bf16.msra.mxu0 %v2792_v30  ;;  %2541 = vmatprep.subr.bf16.mxu1 %v2891_v2  ;;  %v688_v30 = vrot.slane %v654_v22, 7  ;;  %v2845_v22 = vld [vmem:[%s3437_s1 + $0x200] sm:$0xff]  }
  0x30   : > { %2619 = vmatprep.subr.bf16.mxu0 %v2891_v2  ;;  %2633 = vmatprep.mubr.msk.bf16.mxu0 %vm2892_vm0, %v2891_v2  ;;  %v1591_v33 = vrot.slane %v1589_v29, 6  ;;  %v1594_v35 = vrot.slane %v1592_v31, 7  ;;  %v2852_v29 = vld [vmem:[%s3437_s1 + $0x238] sm:$0xff]   ;;  %v2854_v31 = vld [vmem:[%s3440_s4 + $0x8] sm:$0xff]  }
  0x31   : > { %v689_v38 = vsel %vm3097_vm14, %v2193_v27, %v688_v30  ;;  %v2850_v27 = vld [vmem:[%s3437_s1 + $0x228] sm:$0xff]   ;;  %v2853_v30 = vld [vmem:[%s3440_s4] sm:$0xff]  }
  0x32   : > { %2542 = vmatpush3.bf16.msra.mxu1 %v2795_v32  ;;  %v2816_v32 = vld [vmem:[%s3437_s1 + $0x198] sm:$0xff]   ;;  %v1595_v39 = vor.u32 %v1594_v35, %v1591_v33  ;;  %v719_v45 = vcombine.low %v689_v38, %v3148_v1  ;;  %v2829_v1 = vld [vmem:[%s3437_s1 + $0xc8] sm:$0xff]  }
  0x33   : > { %2620 = vmatpush3.bf16.msra.mxu0 %v2794_v34  ;;  %2543 = vmatprep.subr.bf16.mxu1 %v2891_v2  ;;  %v1598_v34 = vshll.u32 %v1545_v28, 16  ;;  %v2851_v28 = vld [vmem:[%s3437_s1 + $0x230] sm:$0xff]   ;;  %v2856_v33 = vld [vmem:[%s3440_s4 + $0x18] sm:$0xff]   ;;  %v2858_v35 = vld [vmem:[%s3440_s4 + $0x28] sm:$0xff]  }
  0x34   : > { %2621 = vmatprep.subr.bf16.mxu0 %v2891_v2  ;;  %v1596_v42 = vrot.slane %v1595_v39, 2  ;;  %v727_v46 = vrot.slane %v719_v45, %v3056_v11 }
  0x35   : > { %v1600_v37 = vrot.slane %v1598_v34, 7  ;;  %v2857_v34 = vld [vmem:[%s3440_s4 + $0x20] sm:$0xff]  }
  0x36   : > { %2544 = vmatpush3.bf16.msra.mxu1 %v2797_v43  ;;  %v2384_v43 = vld.sshfl [vmem:[%s2992_s21 + $0x14] sm:$0x12 pattern:$0x76325410]  ;;  %v735_v40 = vcombine.low %v727_v46, %v3248_v59 }
  0x37   : > { %2622 = vmatpush3.bf16.msra.mxu0 %v2796_v47  ;;  %2545 = vmatprep.subr.bf16.mxu1 %v2891_v2  ;;  %v1767_v47 = vcombine.high %v2384_v43, %v2384_v43  ;;  %v1601_v52 = vsel %vm3036_vm7, %v1596_v42, %v1600_v37  ;;  %v2860_v37 = vld [vmem:[%s3440_s4 + $0x38] sm:$0xff]  }
  0x38   : > { %2623 = vmatprep.subr.bf16.mxu0 %v2891_v2  ;;  %v1620_v54 = vcombine.low %v3071_v25, %v1601_v52 }
  0x3a   : > { %2546 = vmatpush3.bf16.msra.mxu1 %v2799_v51  ;;  %v2388_v51 = vrot.slane %v2384_v43, 9  ;;  %v3251_v60 = vrot.slane %v1620_v54, %v3056_v11 }
  0x3b   : > { %2624 = vmatpush3.bf16.msra.mxu0 %v2798_v53  ;;  %2547 = vmatprep.subr.bf16.mxu1 %v2891_v2  ;;  %v2820_v53 = vld [vmem:[%s3437_s1 + $0x1a8] sm:$0xff]  }
  0x3c   : > { %2625 = vmatprep.subr.bf16.mxu0 %v2891_v2  ;;  %v1635_v48 = vcombine.low %v3063_v21, %v3251_v60  ;;  %v2848_v21 = vld [vmem:[%s3437_s1 + $0x218] sm:$0xff]   ;;  %v2415_v60 = vld [vmem:[#allocation2] ss:$0 sm:$0xff] }
  0x3e   : > { %2548 = vmatpush3.bf16.msra.mxu1 %v2801_v56  ;;  %v2823_v56 = vld [vmem:[%s3437_s1 + $0xb8] sm:$0xff]  }
  0x3f   : > { %2626 = vmatpush3.bf16.msra.mxu0 %v2800_v55  ;;  %2549 = vmatprep.subr.bf16.mxu1 %v2891_v2  ;;  %v1782_v55 = vrot.slane %v1767_v47, 7 }
  0x40   : > { %2627 = vmatprep.subr.bf16.mxu0 %v2891_v2 }
  0x41   : > { %v1783_v25 = vsel %vm3097_vm14, %v2388_v51, %v1782_v55 }
  0x42   : > { %2550 = vmatpush3.bf16.msra.mxu1 %v2803_v63  ;;  %v1802_v61 = vcombine.low %v3152_v3, %v1783_v25  ;;  %v2828_v3 = vld [vmem:[%s3437_s1 + $0x1c0] sm:$0xff]  }
  0x43   : > { %2628 = vmatpush3.bf16.msra.mxu0 %v2802_v0  ;;  %2551 = vmatprep.subr.bf16.mxu1 %v2891_v2  ;;  %v2824_v0 = vld [vmem:[%s3437_s1 + $0x1b8] sm:$0xff]  }
  0x44   : > { %2629 = vmatprep.subr.bf16.mxu0 %v2891_v2  ;;  %v3264_v49 = vrot.slane %v1802_v61, %v3056_v11  ;;  %v1413_v11 = vcombine.low %v2863_v57, %v2864_v58 }
  0x46   : > { %2552 = vmatpush3.bf16.msra.mxu1 %v2805_v4  ;;  %v1817_v63 = vcombine.low %v3248_v59, %v3264_v49  ;;  %v2831_v4 = vld [vmem:[%s3437_s1 + $0xd0] sm:$0xff]  }
  0x47   : > { %2630 = vmatpush3.bf16.msra.mxu0 %v2804_v7  ;;  %2557 = vmatprep.subr.bf16.mxu1 %v2891_v2  ;;  %v2832_v7 = vld [vmem:[%s3437_s1 + $0x1d0] sm:$0xff]  }
  0x48   : > { %2631 = vmatprep.subr.bf16.mxu0 %v2891_v2 }
  0x49   : > { %2554 = vmatmul.mubr.bf16.vlgmr.msra.gmra.mrb[0].mxu1 %v548_v8  ;;  %v2835_v8 = vld [vmem:[%s3437_s1 + $0xe0] sm:$0xff]  }
  0x4a   : > { %2558 = vmatpush3.bf16.msra.mxu1 %v2809_v9  ;;  %2573 = vmatprep.mubr.msk.bf16.mxu1 %vm2892_vm0, %v2891_v2  ;;  %v2834_v9 = vld [vmem:[%s3437_s1 + $0x1d8] sm:$0xff]  }
  0x4b   : > { %2632 = vmatpush3.bf16.msra.mxu0 %v2806_v13  ;;  %2559 = vmatprep.subr.bf16.mxu1 %v2891_v2  ;;  %v2865_v13 = vld.sshfl [vmem:[%s2992_s21 + $0x4] sm:$0xf pattern:$0x76325410] }
  0x4c   : > { %2637 = vmatprep.subr.bf16.mxu0 %v2891_v2 }
  0x4e   : > { %2634 = vmatmul.mubr.bf16.vlgmr.msra.gmra.mrb[0].mxu0 %v1276_v14  ;;  %2560 = vmatpush3.bf16.msra.mxu1 %v2811_v15  ;;  %v2866_v14 = vld.sshfl [vmem:[%s2992_s21 + $0xc] sm:$0xf pattern:$0x76325410] }
  0x4f   : > { %2638 = vmatpush3.bf16.msra.mxu0 %v2810_v16  ;;  %2561 = vmatprep.subr.bf16.mxu1 %v2891_v2  ;;  %v2839_v15 = vld [vmem:[%s3437_s1 + $0xf0] sm:$0xff]   ;;  %v2838_v16 = vld [vmem:[%s3437_s1 + $0x1e8] sm:$0xff]  }
  0x50   : > { %2639 = vmatprep.subr.bf16.mxu0 %v2891_v2  ;;  %2653 = vmatprep.mubr.msk.bf16.mxu0 %vm2892_vm0, %v2891_v2 }
  0x52   : > { %2562 = vmatpush3.bf16.msra.mxu1 %v2813_v18  ;;  %v2840_v18 = vld [vmem:[%s3437_s1 + $0x1f0] sm:$0xff]  }
  0x53   : > { %2640 = vmatpush3.bf16.msra.mxu0 %v2812_v19  ;;  %2563 = vmatprep.subr.bf16.mxu1 %v2891_v2  ;;  %v872_v19 = vcombine.low %v2865_v13, %v2866_v14 }
  0x54   : > { %2641 = vmatprep.subr.bf16.mxu0 %v2891_v2 }
  0x56   : > { %2564 = vmatpush3.bf16.msra.mxu1 %v2815_v20  ;;  %v2842_v20 = vld [vmem:[%s3437_s1 + $0x1f8] sm:$0xff]  }
  0x57   : > { %2642 = vmatpush3.bf16.msra.mxu0 %v2814_v23  ;;  %2565 = vmatprep.subr.bf16.mxu1 %v2891_v2  ;;  %v2846_v23 = vld [vmem:[%s3437_s1 + $0x208] sm:$0xff]  }
  0x58   : > { %2643 = vmatprep.subr.bf16.mxu0 %v2891_v2 }
  0x5a   : > { %2566 = vmatpush3.bf16.msra.mxu1 %v2817_v24  ;;  %v2847_v24 = vld [vmem:[%s3437_s1 + $0x210] sm:$0xff]  }
  0x5b   : > { %2644 = vmatpush3.bf16.msra.mxu0 %v2816_v32  ;;  %2567 = vmatprep.subr.bf16.mxu1 %v2891_v2  ;;  %v2855_v32 = vld [vmem:[%s3440_s4 + $0x10] sm:$0xff]  }
  0x5c   : > { %2645 = vmatprep.subr.bf16.mxu0 %v2891_v2 }
  0x5e   : > { %2568 = vmatpush3.bf16.msra.mxu1 %v2819_v36  ;;  %v2859_v36 = vld [vmem:[%s3440_s4 + $0x30] sm:$0xff]  }
  0x5f   : > { %2646 = vmatpush3.bf16.msra.mxu0 %v2818_v41  ;;  %2569 = vmatprep.subr.bf16.mxu1 %v2891_v2 }
  0x60   : > { %2647 = vmatprep.subr.bf16.mxu0 %v2891_v2 }
  0x62   : > { %2570 = vmatpush3.bf16.msra.mxu1 %v2821_v44  ;;  %v2413_v44 = vld [vmem:[%s3438_s2] ss:$0 sm:$0xff] }
  0x63   : > { %2648 = vmatpush3.bf16.msra.mxu0 %v2820_v53  ;;  %2571 = vmatprep.subr.bf16.mxu1 %v2891_v2 }
  0x64   : > { %2649 = vmatprep.subr.bf16.mxu0 %v2891_v2 }
  0x66   : > { %2572 = vmatpush3.bf16.msra.mxu1 %v2823_v56 }
  0x67   : > { %2650 = vmatpush3.bf16.msra.mxu0 %v2822_v62  ;;  %2577 = vmatprep.subr.bf16.mxu1 %v2891_v2 }
  0x68   : > { %2651 = vmatprep.subr.bf16.mxu0 %v2891_v2 }
  0x69   : > { %2574 = vmatmul.mubr.bf16.vlgmr.msra.gmra.mrb[0].mxu1 %v735_v40 }
  0x6a   : > { %2578 = vmatpush3.bf16.msra.mxu1 %v2825_v50  ;;  %2593 = vmatprep.mubr.msk.bf16.mxu1 %vm2892_vm0, %v2891_v2 }
  0x6b   : > { %2652 = vmatpush3.bf16.msra.mxu0 %v2824_v0  ;;  %2579 = vmatprep.subr.bf16.mxu1 %v2891_v2 }
  0x6c   : > { %2657 = vmatprep.subr.bf16.mxu0 %v2891_v2 }
  0x6e   : > { %2654 = vmatmul.mubr.bf16.vlgmr.msra.gmra.mrb[0].mxu0 %v1413_v11  ;;  %2580 = vmatpush3.bf16.msra.mxu1 %v2829_v1 }
  0x6f   : > { %2658 = vmatpush3.bf16.msra.mxu0 %v2828_v3  ;;  %2581 = vmatprep.subr.bf16.mxu1 %v2891_v2 }
  0x70   : > { %2659 = vmatprep.subr.bf16.mxu0 %v2891_v2  ;;  %2673 = vmatprep.mubr.msk.bf16.mxu0 %vm2892_vm0, %v2891_v2 }
  0x72   : > { %2582 = vmatpush3.bf16.msra.mxu1 %v2831_v4 }
  0x73   : > { %2660 = vmatpush3.bf16.msra.mxu0 %v2830_v5  ;;  %2583 = vmatprep.subr.bf16.mxu1 %v2891_v2 }
  0x74   : > { %2661 = vmatprep.subr.bf16.mxu0 %v2891_v2 }
  0x76   : > { %2584 = vmatpush3.bf16.msra.mxu1 %v2833_v6 }
  0x77   : > { %2662 = vmatpush3.bf16.msra.mxu0 %v2832_v7  ;;  %2585 = vmatprep.subr.bf16.mxu1 %v2891_v2 }
  0x78   : > { %2663 = vmatprep.subr.bf16.mxu0 %v2891_v2 }
  0x7a   : > { %2586 = vmatpush3.bf16.msra.mxu1 %v2835_v8 }
  0x7b   : > { %2664 = vmatpush3.bf16.msra.mxu0 %v2834_v9  ;;  %2587 = vmatprep.subr.bf16.mxu1 %v2891_v2 }
  0x7c   : > { %2665 = vmatprep.subr.bf16.mxu0 %v2891_v2 }
  0x7e   : > { %2588 = vmatpush3.bf16.msra.mxu1 %v2837_v10 }
  0x7f   : > { %2666 = vmatpush3.bf16.msra.mxu0 %v2836_v12  ;;  %2589 = vmatprep.subr.bf16.mxu1 %v2891_v2 }
  0x80   : > { %2667 = vmatprep.subr.bf16.mxu0 %v2891_v2 }
  0x82   : > { %2590 = vmatpush3.bf16.msra.mxu1 %v2839_v15 }
  0x83   : > { %2668 = vmatpush3.bf16.msra.mxu0 %v2838_v16  ;;  %2591 = vmatprep.subr.bf16.mxu1 %v2891_v2 }
  0x84   : > { %2669 = vmatprep.subr.bf16.mxu0 %v2891_v2 }
  0x86   : > { %2592 = vmatpush3.bf16.msra.mxu1 %v2841_v17 }
  0x87   : > { %2670 = vmatpush3.bf16.msra.mxu0 %v2840_v18  ;;  %2697 = vmatprep.subr.bf16.mxu1 %v2891_v2 }
  0x88   : > { %2671 = vmatprep.subr.bf16.mxu0 %v2891_v2 }
  0x89   : > { %2594 = vmatmul.mubr.bf16.vlgmr.msra.gmra.mrb[0].mxu1 %v872_v19 }
  0x8a   : > { %2713 = vmatprep.mubr.msk.bf16.mxu1 %vm2892_vm0, %v2891_v2  ;;  %2698 = vmatpush3.bf16.msra.mxu1 %v2853_v30 }
  0x8b   : > { %2672 = vmatpush3.bf16.msra.mxu0 %v2842_v20  ;;  %2699 = vmatprep.subr.bf16.mxu1 %v2891_v2 }
  0x8c   : > { %2677 = vmatprep.subr.bf16.mxu0 %v2891_v2 }
  0x8e   : > { %2674 = vmatmul.mubr.bf16.vlgmr.msra.gmra.mrb[0].mxu0 %v1635_v48  ;;  %2700 = vmatpush3.bf16.msra.mxu1 %v2854_v31 }
  0x8f   : > { %2678 = vmatpush3.bf16.msra.mxu0 %v2845_v22  ;;  %2693 = vmatprep.mubr.msk.bf16.mxu0 %vm2892_vm0, %v2891_v2 }
  0x90   : > { %2679 = vmatprep.subr.bf16.mxu0 %v2891_v2  ;;  %2701 = vmatprep.subr.bf16.mxu1 %v2891_v2 }
  0x92   : > { %2702 = vmatpush3.bf16.msra.mxu1 %v2855_v32 }
  0x93   : > { %2680 = vmatpush3.bf16.msra.mxu0 %v2846_v23  ;;  %2703 = vmatprep.subr.bf16.mxu1 %v2891_v2 }
  0x94   : > { %2681 = vmatprep.subr.bf16.mxu0 %v2891_v2 }
  0x96   : > { %2704 = vmatpush3.bf16.msra.mxu1 %v2856_v33 }
  0x97   : > { %2682 = vmatpush3.bf16.msra.mxu0 %v2847_v24  ;;  %2705 = vmatprep.subr.bf16.mxu1 %v2891_v2 }
  0x98   : > { %2683 = vmatprep.subr.bf16.mxu0 %v2891_v2 }
  0x9a   : > { %2706 = vmatpush3.bf16.msra.mxu1 %v2857_v34 }
  0x9b   : > { %2684 = vmatpush3.bf16.msra.mxu0 %v2848_v21  ;;  %2707 = vmatprep.subr.bf16.mxu1 %v2891_v2 }
  0x9c   : > { %2685 = vmatprep.subr.bf16.mxu0 %v2891_v2 }
  0x9e   : > { %2708 = vmatpush3.bf16.msra.mxu1 %v2858_v35 }
  0x9f   : > { %2686 = vmatpush3.bf16.msra.mxu0 %v2849_v26  ;;  %2709 = vmatprep.subr.bf16.mxu1 %v2891_v2 }
  0xa0   : > { %2687 = vmatprep.subr.bf16.mxu0 %v2891_v2 }
  0xa2   : > { %2710 = vmatpush3.bf16.msra.mxu1 %v2859_v36 }
  0xa3   : > { %2688 = vmatpush3.bf16.msra.mxu0 %v2850_v27  ;;  %2711 = vmatprep.subr.bf16.mxu1 %v2891_v2 }
  0xa4   : > { %2689 = vmatprep.subr.bf16.mxu0 %v2891_v2 }
  0xa6   : > { %2712 = vmatpush3.bf16.msra.mxu1 %v2860_v37 }
  0xa7   : > { %2690 = vmatpush3.bf16.msra.mxu0 %v2851_v28 }
  0xa8   : > { %2691 = vmatprep.subr.bf16.mxu0 %v2891_v2  ;;  %v2414_v2 = vld [vmem:[%s3439_s3] ss:$0 sm:$0xff] }
  0xab   : > { %2692 = vmatpush3.bf16.msra.mxu0 %v2852_v29 }
  0xae   : > { %2694 = vmatmul.mubr.bf16.vlgmr.msra.gmra.mrb[0].mxu0 %v1817_v63 }
 0x15c   : > { %v956_v38 = vpop.f32.mrb[0].mxu1 }
 0x15d   : > { %v2595_v39 = vpop.f32.mrb[1].mxu1 }
 0x15e   : > { %v959_v41 = vpop.f32.mrb[2].mxu1 }
 0x15f   : > { %v2596_v42 = vpop.f32.mrb[3].mxu1 }
 0x181   : > { %v1901_v43 = vpop.f32.mrb[0].mxu0 }
 0x182   : > { %v2717_v45 = vadd.f32 %v1901_v43, %v956_v38  ;;  %v2695_v47 = vpop.f32.mrb[1].mxu0 }
 0x183   : > { %v1904_v51 = vpop.f32.mrb[2].mxu0 }
 0x184   : > { %v1917_v52 = vmul.f32 %v2717_v45, %v2413_v44  ;;  %v2718_v53 = vadd.f32 %v1904_v51, %v959_v41  ;;  %v2696_v54 = vpop.f32.mrb[3].mxu0 }
 0x186   : > { %v1926_v55 = vadd.f32 %v2414_v2, %v1917_v52  ;;  %v1918_v56 = vmul.f32 %v2718_v53, %v2413_v44 }
 0x188   : > { %v1927_v57 = vadd.f32 %v2414_v2, %v1918_v56  ;;  %v1928_v58 = vmax.f32 %v1926_v55, 0.0 }
 0x18a   : > { %v1929_v46 = vmax.f32 %v1927_v57, 0.0 }
 0x18c   : > { %v1930_v59 = vpack.c.bf16 %v1929_v46, %v1928_v58 }
 0x18e   : > { %2714 = vmatmul.mubr.bf16.vlgmr.msra.gmra.mrb[4].mxu1 %v1930_v59 }
 0x261   : > { %v2036_v25 = vpop.f32.mrb[4].mxu1 }
 0x262   : > { %v2037_v61 = vadd.f32 %v2415_v60, %v2036_v25  ;;  %v2715_v62 = vpop.f32.mrb[5].mxu1 }
 0x263   : > { %v2039_v48 = vpop.f32.mrb[6].mxu1 }
 0x264   : > { %v2045_v49 = vcombine.high %v2037_v61, %v2037_v61  ;;  %2050 = vst.msk [vmem:[%s275_s9] sm:$0xf] %vm2049_vm15, %v2037_v61  ;;  %v2040_v40 = vadd.f32 %v2415_v60, %v2039_v48  ;;  %v2716_v50 = vpop.f32.mrb[7].mxu1 }
 0x266   : > { %2051 = vst.msk [vmem:[%s275_s9 + $0x4] sm:$0xf] %vm2049_vm15, %v2045_v49  ;;  %v2046_v63 = vcombine.high %v2040_v40, %v2040_v40  ;;  %2052 = vst.msk [vmem:[%s275_s9 + $0x8] sm:$0xf] %vm2049_vm15, %v2040_v40 }
 0x268   : > { %2053 = vst.msk [vmem:[%s275_s9 + $0xc] sm:$0xf] %vm2049_vm15, %v2046_v63 }
 0x269 PF: > { %s18_s25 = sadd.s32 1, %s2889_s25   ;;  %s3451_s23 = smov %s2885_s24 }
 0x26a   : > { %p15_p5 = scmp.ge.s32.totalorder %s18_s25, 4   ;;  %s3452_s24 = smov %s3454_s5 }
 0x26c   :  { %17 = sbr.rel (!%p15_p5) target bundleno = 3 (0x3), region = 85 }

</bundles_post_ra>
